<compile_context>
chip_gen: v7x
topology: tpu7x:2x2x1
jax: 0.10.0
libtpu: 0.0.40
codegen_flags: <defaults>
</compile_context>

<pallas_src>
import math
from functools import partial

import jax
import jax.numpy as jnp
from jax.experimental import pallas as pl
from jax.experimental.pallas import tpu as pltpu

_SQRT_2_OVER_PI = math.sqrt(2.0 / math.pi)

# Conservative per-kernel scoped-VMEM budget: equals the default scoped limit
# on v6e/v7x (32 MiB) and explicitly raises v5e's 16 MiB default.  Tile sizes
# are derived from it so double-buffering always has headroom.
# TODO(synk): differentiate per generation (v6e could take 2x larger row tiles)
# via pltpu.get_tpu_info() once the deployment matrix is fixed.
_VMEM_BUDGET = 32 * 1024 * 1024


def _gelu(x):
    # tanh-approximate GELU, computed in f32 on the VPU/EUP.
    # TODO(synk): switch to exact-erf GELU (torch nn.GELU default) once
    # lax.erf is guaranteed to lower in Mosaic; difference is ~1e-3.
    return 0.5 * x * (1.0 + jnp.tanh(_SQRT_2_OVER_PI * (x + 0.044715 * x * x * x)))


def _row_tile(m, bytes_per_row):
    """Largest row tile (<=1024, power of two) whose double-buffered footprint
    fits comfortably inside the VMEM budget."""
    tm = 1024
    while tm > 8 and 4 * tm * bytes_per_row > _VMEM_BUDGET:
        tm //= 2
    return min(tm, m)


# ----------------------------------------------------------------------------
# Pallas kernels
# ----------------------------------------------------------------------------
def _expand_res_kernel(x_ref, w1_ref, b1_ref, wr_ref, br_ref, h1_ref, res_ref):
    """Fused: expansion 1x1 conv (input-BN + BN folded, GELU) AND residual 1x1
    projection (BN folded, GELU).  Each x tile is read from HBM exactly once.
    Residual output is stored bf16 (review: halves the residual HBM traffic).
    # TODO(synk): concatenate W1|Wr into a single (Cin, Chid+Cout) matmul when
    # both Chid and Cout are 128-multiples (one MXU weight push; v5e MRF win).
    """
    xb = x_ref[...].astype(jnp.bfloat16)
    h = jnp.dot(xb, w1_ref[...], preferred_element_type=jnp.float32)
    h1_ref[...] = _gelu(h + b1_ref[...]).astype(h1_ref.dtype)
    r = jnp.dot(xb, wr_ref[...], preferred_element_type=jnp.float32)
    res_ref[...] = _gelu(r + br_ref[...]).astype(res_ref.dtype)


def _expand_kernel(x_ref, w1_ref, b1_ref, h1_ref):
    """Expansion 1x1 conv + folded-BN bias + GELU (Cin == Cout case)."""
    xb = x_ref[...].astype(jnp.bfloat16)
    h = jnp.dot(xb, w1_ref[...], preferred_element_type=jnp.float32)
    h1_ref[...] = _gelu(h + b1_ref[...]).astype(h1_ref.dtype)


def _dw3x3_s1_kernel(x_ref, w_ref, b_ref, o_ref, pool_ref, xpad_ref):
    """Depthwise 3x3 / stride 1 conv + folded-BN bias + GELU on one
    (batch, channel-block) tile, plus the SE global-average pool as a second
    output.

    Perf notes (review):
      * only the 1-px border of the halo scratch is zeroed, not the full slab;
      * the halo scratch is bf16 (same dtype as h1): half the VMEM footprint
        and half the interior-copy store traffic; taps are cast to f32 at the
        multiply (rides the same VALU op);
      * the 9-tap accumulation is one fused dataflow expression so the f32
        accumulator does not round-trip through VMEM between taps.
    # TODO(synk): hoist the dw shifts into 3 pre-shifted slabs (pltpu.roll) if
    # bundle dumps show XLU pressure from the 6 sublane-unaligned tap reads.
    # TODO(synk): tile H into strips (1-row halo) for large H*W (e.g. 112x112)
    # to keep double-buffering headroom on v7x's 64 MiB VMEM.
    """
    _, H, W, tc = x_ref.shape
    _, Ho, Wo, _ = o_ref.shape

    zrow = jnp.zeros((1, W + 2, tc), jnp.bfloat16)
    zcol = jnp.zeros((H, 1, tc), jnp.bfloat16)
    xpad_ref[0:1, :, :] = zrow                       # top halo row
    xpad_ref[H + 1:H + 2, :, :] = zrow               # bottom halo row
    xpad_ref[1:H + 1, 0:1, :] = zcol                 # left halo column
    xpad_ref[1:H + 1, W + 1:W + 2, :] = zcol         # right halo column
    xpad_ref[1:H + 1, 1:W + 1, :] = x_ref[0]         # interior (bf16, no cast)

    acc = None
    for dh in range(3):
        for dw in range(3):
            patch = xpad_ref[dh:dh + Ho, dw:dw + Wo, :].astype(jnp.float32)
            term = patch * w_ref[dh:dh + 1, dw:dw + 1, :]
            acc = term if acc is None else acc + term

    y = _gelu(acc + b_ref[...].reshape(1, 1, tc))
    o_ref[0] = y.astype(o_ref.dtype)
    pool_ref[...] = jnp.sum(y, axis=(0, 1), keepdims=True) * (1.0 / (Ho * Wo))


def _dw3x3_s2_kernel(x_ref, w_ref, b_ref, o_ref, pool_ref, xpe_ref, xpo_ref):
    """Depthwise 3x3 / stride 2 variant.  The W dimension of the zero-padded
    input is deinterleaved ONCE into even/odd column-phase scratches (review
    item), so all 9 taps become stride-1 sublane reads; only the leading (row)
    dimension uses a strided window, which is cheap alternate-slab selection."""
    _, H, W, tc = x_ref.shape
    _, Ho, Wo, _ = o_ref.shape
    wh = W // 2                                      # wrapper asserts W is even

    zrow = jnp.zeros((1, wh + 1, tc), jnp.bfloat16)
    zcol = jnp.zeros((H, 1, tc), jnp.bfloat16)
    xpe_ref[0:1, :, :] = zrow
    xpe_ref[H + 1:H + 2, :, :] = zrow
    xpo_ref[0:1, :, :] = zrow
    xpo_ref[H + 1:H + 2, :, :] = zrow
    xpe_ref[1:H + 1, 0:1, :] = zcol                  # left zero pad (xpad col 0)
    xpo_ref[1:H + 1, wh:wh + 1, :] = zcol            # right zero pad (xpad col W+1)
    # even cols of xpad = [0, x[:,1], x[:,3], ...]; odd cols = [x[:,0], x[:,2], ...]
    xpe_ref[1:H + 1, 1:wh + 1, :] = x_ref[0, :, pl.ds(1, wh, 2), :]
    xpo_ref[1:H + 1, 0:wh, :] = x_ref[0, :, pl.ds(0, wh, 2), :]

    acc = None
    for dh in range(3):
        rows = pl.ds(dh, Ho, 2)
        taps = ((xpe_ref[rows, 0:Wo, :], 0),         # dw = 0 -> xpad cols 2j
                (xpo_ref[rows, 0:Wo, :], 1),         # dw = 1 -> xpad cols 2j+1
                (xpe_ref[rows, 1:Wo + 1, :], 2))     # dw = 2 -> xpad cols 2j+2
        for patch, dw in taps:
            term = patch.astype(jnp.float32) * w_ref[dh:dh + 1, dw:dw + 1, :]
            acc = term if acc is None else acc + term

    y = _gelu(acc + b_ref[...].reshape(1, 1, tc))
    o_ref[0] = y.astype(o_ref.dtype)
    pool_ref[...] = jnp.sum(y, axis=(0, 1), keepdims=True) * (1.0 / (Ho * Wo))


def _proj_kernel(h2_ref, gate_ref, w3_ref, b3_ref, r_ref, o_ref):
    """Projection 1x1 conv (folded BN, GELU) fused with the SE channel gate and
    the residual add.  The gate multiply stays in bf16 (VPU-native on v6e/v7x;
    the MXU consumes bf16 anyway); GELU / bias / residual add stay f32."""
    h = h2_ref[0] * gate_ref[0]                      # bf16 * bf16
    y = jnp.dot(h, w3_ref[...], preferred_element_type=jnp.float32)
    o_ref[0] = r_ref[0].astype(jnp.float32) + _gelu(y + b3_ref[...])


# ----------------------------------------------------------------------------
# pallas_call wrappers
# ----------------------------------------------------------------------------
def expand_and_res(x2d, w1, b1, wr, br):
    M, Cin = x2d.shape
    Chid = w1.shape[1]
    Cout = wr.shape[1]
    tm = _row_tile(M, 4 * Cin + 2 * Chid + 2 * Cout)
    return pl.pallas_call(
        _expand_res_kernel,
        out_shape=(jax.ShapeDtypeStruct((M, Chid), jnp.bfloat16),
                   jax.ShapeDtypeStruct((M, Cout), jnp.bfloat16)),
        grid=(pl.cdiv(M, tm),),
        in_specs=[pl.BlockSpec((tm, Cin), lambda i: (i, 0)),
                  pl.BlockSpec((Cin, Chid), lambda i: (0, 0)),
                  pl.BlockSpec((1, Chid), lambda i: (0, 0)),
                  pl.BlockSpec((Cin, Cout), lambda i: (0, 0)),
                  pl.BlockSpec((1, Cout), lambda i: (0, 0))],
        out_specs=(pl.BlockSpec((tm, Chid), lambda i: (i, 0)),
                   pl.BlockSpec((tm, Cout), lambda i: (i, 0))),
        compiler_params=pltpu.CompilerParams(
            dimension_semantics=("parallel",),
            vmem_limit_bytes=_VMEM_BUDGET),
    )(x2d, w1.astype(jnp.bfloat16), b1.reshape(1, Chid),
      wr.astype(jnp.bfloat16), br.reshape(1, Cout))


def expand_only(x2d, w1, b1):
    M, Cin = x2d.shape
    Chid = w1.shape[1]
    tm = _row_tile(M, 4 * Cin + 2 * Chid)
    return pl.pallas_call(
        _expand_kernel,
        out_shape=jax.ShapeDtypeStruct((M, Chid), jnp.bfloat16),
        grid=(pl.cdiv(M, tm),),
        in_specs=[pl.BlockSpec((tm, Cin), lambda i: (i, 0)),
                  pl.BlockSpec((Cin, Chid), lambda i: (0, 0)),
                  pl.BlockSpec((1, Chid), lambda i: (0, 0))],
        out_specs=pl.BlockSpec((tm, Chid), lambda i: (i, 0)),
        compiler_params=pltpu.CompilerParams(
            dimension_semantics=("parallel",),
            vmem_limit_bytes=_VMEM_BUDGET),
    )(x2d, w1.astype(jnp.bfloat16), b1.reshape(1, Chid))


def dw_conv_gelu_pool(h1, w, b, *, stride, out_hw):
    N, H, W, Chid = h1.shape
    Ho, Wo = out_hw
    tc = 128 if Chid % 128 == 0 else Chid            # lane-dense channel blocks
    if stride == 1:
        kern = _dw3x3_s1_kernel
        scratch = [pltpu.VMEM((H + 2, W + 2, tc), jnp.bfloat16)]
    else:
        kern = _dw3x3_s2_kernel
        scratch = [pltpu.VMEM((H + 2, W // 2 + 1, tc), jnp.bfloat16),
                   pltpu.VMEM((H + 2, W // 2 + 1, tc), jnp.bfloat16)]
    return pl.pallas_call(
        kern,
        out_shape=(jax.ShapeDtypeStruct((N, Ho, Wo, Chid), jnp.bfloat16),
                   jax.ShapeDtypeStruct((N, 1, Chid), jnp.float32)),
        grid=(N, Chid // tc),
        in_specs=[pl.BlockSpec((1, H, W, tc), lambda n, c: (n, 0, 0, c)),
                  pl.BlockSpec((3, 3, tc), lambda n, c: (0, 0, c)),
                  pl.BlockSpec((1, tc), lambda n, c: (0, c))],
        out_specs=(pl.BlockSpec((1, Ho, Wo, tc), lambda n, c: (n, 0, 0, c)),
                   pl.BlockSpec((1, 1, tc), lambda n, c: (n, 0, c))),
        scratch_shapes=scratch,
        compiler_params=pltpu.CompilerParams(
            dimension_semantics=("parallel", "parallel"),
            vmem_limit_bytes=_VMEM_BUDGET),
    )(h1, w, b.reshape(1, Chid))


def proj_gate_add(h2_3d, gate, w3, b3, res_3d):
    N, M, Chid = h2_3d.shape
    Cout = w3.shape[1]
    res_bytes = 2 if res_3d.dtype == jnp.bfloat16 else 4
    tm = _row_tile(M, 2 * Chid + 4 * Cout + res_bytes * Cout)
    # TODO(synk): pad Cout to a 128 multiple inside the pipeline when Cout>128
    # and not lane-dense (avoids masked vst.msk partial stores).
    return pl.pallas_call(
        _proj_kernel,
        out_shape=jax.ShapeDtypeStruct((N, M, Cout), jnp.float32),
        grid=(N, pl.cdiv(M, tm)),
        in_specs=[pl.BlockSpec((1, tm, Chid), lambda n, i: (n, i, 0)),
                  pl.BlockSpec((1, 1, Chid), lambda n, i: (n, 0, 0)),
                  pl.BlockSpec((Chid, Cout), lambda n, i: (0, 0)),
                  pl.BlockSpec((1, Cout), lambda n, i: (0, 0)),
                  pl.BlockSpec((1, tm, Cout), lambda n, i: (n, i, 0))],
        out_specs=pl.BlockSpec((1, tm, Cout), lambda n, i: (n, i, 0)),
        compiler_params=pltpu.CompilerParams(
            dimension_semantics=("parallel", "parallel"),
            vmem_limit_bytes=_VMEM_BUDGET),
    )(h2_3d, gate, w3.astype(jnp.bfloat16), b3.reshape(1, Cout), res_3d)


# ----------------------------------------------------------------------------
# Parameter setup + BN folding (plain-JAX glue)
# ----------------------------------------------------------------------------
def _bn_fold(g, b, m, v, eps=1e-5):
    scale = g / jnp.sqrt(v + eps)
    shift = b - m * scale
    return scale, shift


def init_params(key, cin, cout, expansion=4, r=4):
    chid = expansion * cin
    cred = max(chid // r, 1)
    keys = iter(jax.random.split(key, 32))

    def nrm(shape, scale=0.2):
        return (scale * jax.random.normal(next(keys), shape)).astype(jnp.float32)

    def bn(prefix, c):
        return {
            prefix + "g": (1.0 + 0.1 * jax.random.normal(next(keys), (c,))).astype(jnp.float32),
            prefix + "b": nrm((c,), 0.1),
            prefix + "m": nrm((c,), 0.05),
            prefix + "v": (0.5 + jax.random.uniform(next(keys), (c,))).astype(jnp.float32),
        }

    p = {}
    p.update(bn("n0_", cin))                 # self.norm
    p["W1"] = nrm((cin, chid))               # pw_conv 1x1 weight (Cin, Chid)
    p.update(bn("n1_", chid))
    p["Wdw"] = nrm((3, 3, chid))             # dw_conv depthwise 3x3 weight
    p.update(bn("n2_", chid))
    p["Wse1"] = nrm((chid, cred))            # SE reduce
    p["bse1"] = nrm((cred,), 0.1)
    p["Wse2"] = nrm((cred, chid))            # SE expand
    p["bse2"] = nrm((chid,), 0.1)
    p["W3"] = nrm((chid, cout))              # proj 1x1 weight
    p.update(bn("n3_", cout))
    p["Wr"] = nrm((cin, cout))               # res_proj 1x1 weight (used iff cin != cout)
    p.update(bn("nr_", cout))
    return p


def _avg_pool_3x3_s2(x_nhwc):
    # F.avg_pool2d(kernel_size=3, stride=2, padding=1, count_include_pad=True)
    xp = jnp.pad(x_nhwc, ((0, 0), (1, 1), (1, 1), (0, 0)))
    s = jax.lax.reduce_window(xp, 0.0, jax.lax.add, (1, 3, 3, 1), (1, 2, 2, 1), "VALID")
    return s / 9.0


# ----------------------------------------------------------------------------
# MBConv forward (Pallas path)
# ----------------------------------------------------------------------------
def mbconv_forward(x_nchw, p, *, stride=1):
    assert stride in (1, 2)
    N, Cin, H, W = x_nchw.shape
    Chid = p["W1"].shape[1]
    Cout = p["W3"].shape[1]
    if stride == 2 and Cin == Cout:
        # The reference module's identity shortcut is only shape-consistent at
        # stride 1 (the PyTorch residual add would fail as well).
        raise ValueError("stride=2 requires in_channels != out_channels")
    if stride == 2 and W % 2 != 0:
        # TODO(synk): extend the even/odd phase split to odd W.
        raise ValueError("stride=2 depthwise kernel requires even W")

    x = jnp.transpose(x_nchw, (0, 2, 3, 1)).astype(jnp.float32)      # NHWC

    # ---- fold BatchNorms into conv weights / biases ----
    a0, c0 = _bn_fold(p["n0_g"], p["n0_b"], p["n0_m"], p["n0_v"])    # input norm
    s1, t1 = _bn_fold(p["n1_g"], p["n1_b"], p["n1_m"], p["n1_v"])
    s2, t2 = _bn_fold(p["n2_g"], p["n2_b"], p["n2_m"], p["n2_v"])
    s3, t3 = _bn_fold(p["n3_g"], p["n3_b"], p["n3_m"], p["n3_v"])

    Wt = p["W1"] * s1[None, :]
    W1_eff = a0[:, None] * Wt                  # folds the input-BN affine too
    b1_eff = c0 @ Wt + t1
    Wdw_eff = p["Wdw"] * s2[None, None, :]
    bdw_eff = t2
    W3_eff = p["W3"] * s3[None, :]
    b3_eff = t3

    Ho = (H + 2 - 3) // stride + 1
    Wo = (W + 2 - 3) // stride + 1
    M = N * H * W
    x2d = x.reshape(M, Cin)

    # ---- expansion pw conv, fused with residual projection when Cin != Cout ----
    if Cin != Cout:
        sr, tr = _bn_fold(p["nr_g"], p["nr_b"], p["nr_m"], p["nr_v"])
        Wr_eff = p["Wr"] * sr[None, :]
        br_eff = tr
        h1_2d, res2d = expand_and_res(x2d, W1_eff, b1_eff, Wr_eff, br_eff)
        res = res2d.reshape(N, H, W, Cout)
        if stride == 2:
            # Reference order: 1x1 conv -> BN -> GELU at full resolution,
            # THEN 3x3/s2 avg-pool (GELU and pooling do not commute).
            res = _avg_pool_3x3_s2(res.astype(jnp.float32)).astype(jnp.bfloat16)
    else:
        h1_2d = expand_only(x2d, W1_eff, b1_eff)
        res = x                                  # identity shortcut (stride == 1 here)

    # ---- depthwise conv + GELU, halo in VMEM, SE pool emitted in-kernel ----
    h1 = h1_2d.reshape(N, H, W, Chid)
    h2, pooled = dw_conv_gelu_pool(h1, Wdw_eff, bdw_eff, stride=stride, out_hw=(Ho, Wo))

    # ---- SE FCs (M = batch rows, MXU-irrelevant) in plain JAX ----
    pooled2 = pooled.reshape(N, Chid)
    hse = jnp.maximum(pooled2 @ p["Wse1"] + p["bse1"][None, :], 0.0)
    gate = jax.nn.sigmoid(hse @ p["Wse2"] + p["bse2"][None, :])
    gate = gate.reshape(N, 1, Chid).astype(jnp.bfloat16)

    # ---- projection pw conv, fused with SE gate + residual add ----
    out3d = proj_gate_add(h2.reshape(N, Ho * Wo, Chid), gate, W3_eff, b3_eff,
                          res.reshape(N, Ho * Wo, Cout))
    out = out3d.reshape(N, Ho, Wo, Cout)
    return jnp.transpose(out, (0, 3, 1, 2))      # back to NCHW


# ----------------------------------------------------------------------------
# Plain-JAX (XLA) reference for validation — direct transcription of the module
# ----------------------------------------------------------------------------
def mbconv_reference(x_nchw, p, *, stride, eps=1e-5):
    Cin = p["W1"].shape[0]
    Chid = p["W1"].shape[1]
    Cout = p["W3"].shape[1]
    x = jnp.transpose(x_nchw, (0, 2, 3, 1)).astype(jnp.float32)
    N, H, W, _ = x.shape

    def bn(h, pre):
        return ((h - p[pre + "m"]) / jnp.sqrt(p[pre + "v"] + eps)
                * p[pre + "g"] + p[pre + "b"])

    h = bn(x, "n0_")
    h = _gelu(bn(h @ p["W1"], "n1_"))
    hp = jnp.pad(h, ((0, 0), (1, 1), (1, 1), (0, 0)))
    Ho = (H - 1) // stride + 1
    Wo = (W - 1) // stride + 1
    y = jnp.zeros((N, Ho, Wo, Chid), jnp.float32)
    for dh in range(3):
        for dw in range(3):
            patch = hp[:, dh:dh + stride * (Ho - 1) + 1:stride,
                       dw:dw + stride * (Wo - 1) + 1:stride, :]
            y = y + patch * p["Wdw"][dh, dw][None, None, None, :]
    h = _gelu(bn(y, "n2_"))
    s = jnp.mean(h, axis=(1, 2))
    e = jax.nn.sigmoid(jnp.maximum(s @ p["Wse1"] + p["bse1"], 0.0) @ p["Wse2"] + p["bse2"])
    h = h * e[:, None, None, :]
    h = _gelu(bn(h @ p["W3"], "n3_"))

    if Cin != Cout:
        r = _gelu(bn(x @ p["Wr"], "nr_"))
        if stride == 2:
            r = _avg_pool_3x3_s2(r)
    else:
        r = x
    return jnp.transpose(r + h, (0, 3, 1, 2))


if __name__ == "__main__":
    key = jax.random.PRNGKey(0)
    kx, kp = jax.random.split(key)
    N, Cin, H, W = 2, 4, 16, 16
    Cout, stride = 8, 1
    x = jax.random.normal(kx, (N, Cin, H, W), dtype=jnp.float32)
    params = init_params(kp, Cin, Cout, expansion=4, r=4)

    fwd = jax.jit(partial(mbconv_forward, stride=stride))
    out = jax.block_until_ready(fwd(x, params))

    assert out.shape == (N, Cout, H, W), out.shape
    assert bool(jnp.all(jnp.isfinite(out)))

    ref = jax.block_until_ready(mbconv_reference(x, params, stride=stride))
    # bf16 intermediates + bf16 MXU inputs vs. an f32 reference -> loose tolerance.
    assert bool(jnp.allclose(out, ref, atol=5e-2, rtol=5e-2))
    print("KERNEL_OK")
</pallas_src>

<mosaic_0001>
module attributes {stable_mosaic.version = 11 : i64} {
  func.func @_dw3x3_s1_kernel(%arg0: i32, %arg1: i32, %arg2: memref<1x16x16x16xbf16, #tpu.memory_space<vmem>>, %arg3: memref<3x3x16xf32, #tpu.memory_space<vmem>>, %arg4: memref<1x16xf32, #tpu.memory_space<vmem>>, %arg5: memref<1x16x16x16xbf16, #tpu.memory_space<vmem>>, %arg6: memref<1x1x16xf32, #tpu.memory_space<vmem>>, %arg7: memref<18x18x16xbf16, #tpu.memory_space<vmem>>) attributes {dimension_semantics = [#tpu.dimension_semantics<parallel>, #tpu.dimension_semantics<parallel>], iteration_bounds = array<i64: 2, 1>, scalar_prefetch = 0 : i64, scratch_operands = 1 : i64, tpu.core_type = #tpu.core_type<tc>, window_params = [{transform_indices = @transform_0, window_bounds = array<i64: 1, 16, 16, 16>}, {transform_indices = @transform_1, window_bounds = array<i64: 3, 3, 16>}, {transform_indices = @transform_2, window_bounds = array<i64: 1, 16>}, {transform_indices = @transform_3, window_bounds = array<i64: 1, 16, 16, 16>}, {transform_indices = @transform_4, window_bounds = array<i64: 1, 1, 16>}]} {
    %cst = arith.constant 0.000000e+00 : bf16
    %0 = vector.broadcast %cst : bf16 to vector<1x18x16xbf16>
    %cst_0 = arith.constant 0.000000e+00 : bf16
    %1 = vector.broadcast %cst_0 : bf16 to vector<16x1x16xbf16>
    %c0 = arith.constant 0 : index
    %c0_1 = arith.constant 0 : index
    %c0_2 = arith.constant 0 : index
    %2 = vector.load %arg7[%c0, %c0_1, %c0_2] : memref<18x18x16xbf16, #tpu.memory_space<vmem>>, vector<1x18x16xbf16>
    tpu.vector_store %arg7[%c0, %c0_1, %c0_2], %0 {strides = array<i32>} : memref<18x18x16xbf16, #tpu.memory_space<vmem>>, vector<1x18x16xbf16>,
    %c17 = arith.constant 17 : index
    %c0_3 = arith.constant 0 : index
    %c0_4 = arith.constant 0 : index
    %3 = vector.load %arg7[%c17, %c0_3, %c0_4] : memref<18x18x16xbf16, #tpu.memory_space<vmem>>, vector<1x18x16xbf16>
    tpu.vector_store %arg7[%c17, %c0_3, %c0_4], %0 {strides = array<i32>} : memref<18x18x16xbf16, #tpu.memory_space<vmem>>, vector<1x18x16xbf16>,
    %c1 = arith.constant 1 : index
    %c0_5 = arith.constant 0 : index
    %c0_6 = arith.constant 0 : index
    %4 = vector.load %arg7[%c1, %c0_5, %c0_6] : memref<18x18x16xbf16, #tpu.memory_space<vmem>>, vector<16x1x16xbf16>
    tpu.vector_store %arg7[%c1, %c0_5, %c0_6], %1 {strides = array<i32>} : memref<18x18x16xbf16, #tpu.memory_space<vmem>>, vector<16x1x16xbf16>,
    %c1_7 = arith.constant 1 : index
    %c17_8 = arith.constant 17 : index
    %c0_9 = arith.constant 0 : index
    %5 = vector.load %arg7[%c1_7, %c17_8, %c0_9] : memref<18x18x16xbf16, #tpu.memory_space<vmem>>, vector<16x1x16xbf16>
    tpu.vector_store %arg7[%c1_7, %c17_8, %c0_9], %1 {strides = array<i32>} : memref<18x18x16xbf16, #tpu.memory_space<vmem>>, vector<16x1x16xbf16>,
    %c0_10 = arith.constant 0 : index
    %c0_11 = arith.constant 0 : index
    %c0_12 = arith.constant 0 : index
    %c0_13 = arith.constant 0 : index
    %6 = vector.load %arg2[%c0_10, %c0_11, %c0_12, %c0_13] : memref<1x16x16x16xbf16, #tpu.memory_space<vmem>>, vector<1x16x16x16xbf16>
    %7 = vector.shape_cast %6 : vector<1x16x16x16xbf16> to vector<16x16x16xbf16>
    %c1_14 = arith.constant 1 : index
    %c1_15 = arith.constant 1 : index
    %c0_16 = arith.constant 0 : index
    %8 = vector.load %arg7[%c1_14, %c1_15, %c0_16] : memref<18x18x16xbf16, #tpu.memory_space<vmem>>, vector<16x16x16xbf16>
    tpu.vector_store %arg7[%c1_14, %c1_15, %c0_16], %7 {strides = array<i32>} : memref<18x18x16xbf16, #tpu.memory_space<vmem>>, vector<16x16x16xbf16>,
    %c0_17 = arith.constant 0 : index
    %c0_18 = arith.constant 0 : index
    %c0_19 = arith.constant 0 : index
    %9 = vector.load %arg7[%c0_17, %c0_18, %c0_19] : memref<18x18x16xbf16, #tpu.memory_space<vmem>>, vector<16x16x16xbf16>
    %10 = arith.extf %9 : vector<16x16x16xbf16> to vector<16x16x16xf32>
    %c0_20 = arith.constant 0 : index
    %c0_21 = arith.constant 0 : index
    %c0_22 = arith.constant 0 : index
    %11 = vector.load %arg3[%c0_20, %c0_21, %c0_22] : memref<3x3x16xf32, #tpu.memory_space<vmem>>, vector<1x1x16xf32>
    %12 = vector.broadcast %11 : vector<1x1x16xf32> to vector<16x16x16xf32>
    %13 = arith.mulf %10, %12 : vector<16x16x16xf32>
    %c0_23 = arith.constant 0 : index
    %c1_24 = arith.constant 1 : index
    %c0_25 = arith.constant 0 : index
    %14 = vector.load %arg7[%c0_23, %c1_24, %c0_25] : memref<18x18x16xbf16, #tpu.memory_space<vmem>>, vector<16x16x16xbf16>
    %15 = arith.extf %14 : vector<16x16x16xbf16> to vector<16x16x16xf32>
    %c0_26 = arith.constant 0 : index
    %c1_27 = arith.constant 1 : index
    %c0_28 = arith.constant 0 : index
    %16 = vector.load %arg3[%c0_26, %c1_27, %c0_28] : memref<3x3x16xf32, #tpu.memory_space<vmem>>, vector<1x1x16xf32>
    %17 = vector.broadcast %16 : vector<1x1x16xf32> to vector<16x16x16xf32>
    %18 = arith.mulf %15, %17 : vector<16x16x16xf32>
    %19 = arith.addf %13, %18 : vector<16x16x16xf32>
    %c0_29 = arith.constant 0 : index
    %c2 = arith.constant 2 : index
    %c0_30 = arith.constant 0 : index
    %20 = vector.load %arg7[%c0_29, %c2, %c0_30] : memref<18x18x16xbf16, #tpu.memory_space<vmem>>, vector<16x16x16xbf16>
    %21 = arith.extf %20 : vector<16x16x16xbf16> to vector<16x16x16xf32>
    %c0_31 = arith.constant 0 : index
    %c2_32 = arith.constant 2 : index
    %c0_33 = arith.constant 0 : index
    %22 = vector.load %arg3[%c0_31, %c2_32, %c0_33] : memref<3x3x16xf32, #tpu.memory_space<vmem>>, vector<1x1x16xf32>
    %23 = vector.broadcast %22 : vector<1x1x16xf32> to vector<16x16x16xf32>
    %24 = arith.mulf %21, %23 : vector<16x16x16xf32>
    %25 = arith.addf %19, %24 : vector<16x16x16xf32>
    %c1_34 = arith.constant 1 : index
    %c0_35 = arith.constant 0 : index
    %c0_36 = arith.constant 0 : index
    %26 = vector.load %arg7[%c1_34, %c0_35, %c0_36] : memref<18x18x16xbf16, #tpu.memory_space<vmem>>, vector<16x16x16xbf16>
    %27 = arith.extf %26 : vector<16x16x16xbf16> to vector<16x16x16xf32>
    %c1_37 = arith.constant 1 : index
    %c0_38 = arith.constant 0 : index
    %c0_39 = arith.constant 0 : index
    %28 = vector.load %arg3[%c1_37, %c0_38, %c0_39] : memref<3x3x16xf32, #tpu.memory_space<vmem>>, vector<1x1x16xf32>
    %29 = vector.broadcast %28 : vector<1x1x16xf32> to vector<16x16x16xf32>
    %30 = arith.mulf %27, %29 : vector<16x16x16xf32>
    %31 = arith.addf %25, %30 : vector<16x16x16xf32>
    %c1_40 = arith.constant 1 : index
    %c1_41 = arith.constant 1 : index
    %c0_42 = arith.constant 0 : index
    %32 = vector.load %arg7[%c1_40, %c1_41, %c0_42] : memref<18x18x16xbf16, #tpu.memory_space<vmem>>, vector<16x16x16xbf16>
    %33 = arith.extf %32 : vector<16x16x16xbf16> to vector<16x16x16xf32>
    %c1_43 = arith.constant 1 : index
    %c1_44 = arith.constant 1 : index
    %c0_45 = arith.constant 0 : index
    %34 = vector.load %arg3[%c1_43, %c1_44, %c0_45] : memref<3x3x16xf32, #tpu.memory_space<vmem>>, vector<1x1x16xf32>
    %35 = vector.broadcast %34 : vector<1x1x16xf32> to vector<16x16x16xf32>
    %36 = arith.mulf %33, %35 : vector<16x16x16xf32>
    %37 = arith.addf %31, %36 : vector<16x16x16xf32>
    %c1_46 = arith.constant 1 : index
    %c2_47 = arith.constant 2 : index
    %c0_48 = arith.constant 0 : index
    %38 = vector.load %arg7[%c1_46, %c2_47, %c0_48] : memref<18x18x16xbf16, #tpu.memory_space<vmem>>, vector<16x16x16xbf16>
    %39 = arith.extf %38 : vector<16x16x16xbf16> to vector<16x16x16xf32>
    %c1_49 = arith.constant 1 : index
    %c2_50 = arith.constant 2 : index
    %c0_51 = arith.constant 0 : index
    %40 = vector.load %arg3[%c1_49, %c2_50, %c0_51] : memref<3x3x16xf32, #tpu.memory_space<vmem>>, vector<1x1x16xf32>
    %41 = vector.broadcast %40 : vector<1x1x16xf32> to vector<16x16x16xf32>
    %42 = arith.mulf %39, %41 : vector<16x16x16xf32>
    %43 = arith.addf %37, %42 : vector<16x16x16xf32>
    %c2_52 = arith.constant 2 : index
    %c0_53 = arith.constant 0 : index
    %c0_54 = arith.constant 0 : index
    %44 = vector.load %arg7[%c2_52, %c0_53, %c0_54] : memref<18x18x16xbf16, #tpu.memory_space<vmem>>, vector<16x16x16xbf16>
    %45 = arith.extf %44 : vector<16x16x16xbf16> to vector<16x16x16xf32>
    %c2_55 = arith.constant 2 : index
    %c0_56 = arith.constant 0 : index
    %c0_57 = arith.constant 0 : index
    %46 = vector.load %arg3[%c2_55, %c0_56, %c0_57] : memref<3x3x16xf32, #tpu.memory_space<vmem>>, vector<1x1x16xf32>
    %47 = vector.broadcast %46 : vector<1x1x16xf32> to vector<16x16x16xf32>
    %48 = arith.mulf %45, %47 : vector<16x16x16xf32>
    %49 = arith.addf %43, %48 : vector<16x16x16xf32>
    %c2_58 = arith.constant 2 : index
    %c1_59 = arith.constant 1 : index
    %c0_60 = arith.constant 0 : index
    %50 = vector.load %arg7[%c2_58, %c1_59, %c0_60] : memref<18x18x16xbf16, #tpu.memory_space<vmem>>, vector<16x16x16xbf16>
    %51 = arith.extf %50 : vector<16x16x16xbf16> to vector<16x16x16xf32>
    %c2_61 = arith.constant 2 : index
    %c1_62 = arith.constant 1 : index
    %c0_63 = arith.constant 0 : index
    %52 = vector.load %arg3[%c2_61, %c1_62, %c0_63] : memref<3x3x16xf32, #tpu.memory_space<vmem>>, vector<1x1x16xf32>
    %53 = vector.broadcast %52 : vector<1x1x16xf32> to vector<16x16x16xf32>
    %54 = arith.mulf %51, %53 : vector<16x16x16xf32>
    %55 = arith.addf %49, %54 : vector<16x16x16xf32>
    %c2_64 = arith.constant 2 : index
    %c2_65 = arith.constant 2 : index
    %c0_66 = arith.constant 0 : index
    %56 = vector.load %arg7[%c2_64, %c2_65, %c0_66] : memref<18x18x16xbf16, #tpu.memory_space<vmem>>, vector<16x16x16xbf16>
    %57 = arith.extf %56 : vector<16x16x16xbf16> to vector<16x16x16xf32>
    %c2_67 = arith.constant 2 : index
    %c2_68 = arith.constant 2 : index
    %c0_69 = arith.constant 0 : index
    %58 = vector.load %arg3[%c2_67, %c2_68, %c0_69] : memref<3x3x16xf32, #tpu.memory_space<vmem>>, vector<1x1x16xf32>
    %59 = vector.broadcast %58 : vector<1x1x16xf32> to vector<16x16x16xf32>
    %60 = arith.mulf %57, %59 : vector<16x16x16xf32>
    %61 = arith.addf %55, %60 : vector<16x16x16xf32>
    %c0_70 = arith.constant 0 : index
    %c0_71 = arith.constant 0 : index
    %62 = vector.load %arg4[%c0_70, %c0_71] : memref<1x16xf32, #tpu.memory_space<vmem>>, vector<1x16xf32>
    %63 = vector.shape_cast %62 : vector<1x16xf32> to vector<1x1x16xf32>
    %64 = vector.broadcast %63 : vector<1x1x16xf32> to vector<16x16x16xf32>
    %65 = arith.addf %61, %64 : vector<16x16x16xf32>
    %cst_72 = arith.constant 5.000000e-01 : f32
    %66 = vector.broadcast %cst_72 : f32 to vector<16x16x16xf32>
    %67 = arith.mulf %66, %65 : vector<16x16x16xf32>
    %cst_73 = arith.constant 4.471500e-02 : f32
    %68 = vector.broadcast %cst_73 : f32 to vector<16x16x16xf32>
    %69 = arith.mulf %68, %65 : vector<16x16x16xf32>
    %70 = arith.mulf %69, %65 : vector<16x16x16xf32>
    %71 = arith.mulf %70, %65 : vector<16x16x16xf32>
    %72 = arith.addf %65, %71 : vector<16x16x16xf32>
    %cst_74 = arith.constant 0.797884583 : f32
    %73 = vector.broadcast %cst_74 : f32 to vector<16x16x16xf32>
    %74 = arith.mulf %73, %72 : vector<16x16x16xf32>
    %75 = math.tanh %74 : vector<16x16x16xf32>
    %cst_75 = arith.constant 1.000000e+00 : f32
    %76 = vector.broadcast %cst_75 : f32 to vector<16x16x16xf32>
    %77 = arith.addf %76, %75 : vector<16x16x16xf32>
    %78 = arith.mulf %67, %77 : vector<16x16x16xf32>
    %79 = arith.truncf %78 : vector<16x16x16xf32> to vector<16x16x16xbf16>
    %c0_76 = arith.constant 0 : index
    %c0_77 = arith.constant 0 : index
    %c0_78 = arith.constant 0 : index
    %c0_79 = arith.constant 0 : index
    %80 = vector.load %arg5[%c0_76, %c0_77, %c0_78, %c0_79] : memref<1x16x16x16xbf16, #tpu.memory_space<vmem>>, vector<1x16x16x16xbf16>
    %81 = vector.shape_cast %80 : vector<1x16x16x16xbf16> to vector<16x16x16xbf16>
    %82 = vector.shape_cast %79 : vector<16x16x16xbf16> to vector<1x16x16x16xbf16>
    tpu.vector_store %arg5[%c0_76, %c0_77, %c0_78, %c0_79], %82 {strides = array<i32>} : memref<1x16x16x16xbf16, #tpu.memory_space<vmem>>, vector<1x16x16x16xbf16>,
    %cst_80 = arith.constant dense<0.000000e+00> : vector<16xf32>
    %83 = vector.multi_reduction <add>, %78, %cst_80 [0, 1] : vector<16x16x16xf32> to vector<16xf32>
    %84 = vector.shape_cast %83 : vector<16xf32> to vector<1x1x16xf32>
    %cst_81 = arith.constant 3.906250e-03 : f32
    %85 = vector.broadcast %cst_81 : f32 to vector<1x1x16xf32>
    %86 = arith.mulf %84, %85 : vector<1x1x16xf32>
    %c0_82 = arith.constant 0 : index
    %c0_83 = arith.constant 0 : index
    %c0_84 = arith.constant 0 : index
    %87 = vector.load %arg6[%c0_82, %c0_83, %c0_84] : memref<1x1x16xf32, #tpu.memory_space<vmem>>, vector<1x1x16xf32>
    tpu.vector_store %arg6[%c0_82, %c0_83, %c0_84], %86 {strides = array<i32>} : memref<1x1x16xf32, #tpu.memory_space<vmem>>, vector<1x1x16xf32>,
    return
  }
  func.func @transform_0(%arg0: i32, %arg1: i32) -> (i32, i32, i32, i32) {
    %c0_i32 = arith.constant 0 : i32
    %c0_i32_0 = arith.constant 0 : i32
    %c0_i32_1 = arith.constant 0 : i32
    return %arg0, %c0_i32, %c0_i32_0, %arg1 : i32, i32, i32, i32
  }
  func.func @transform_1(%arg0: i32, %arg1: i32) -> (i32, i32, i32) {
    %c0_i32 = arith.constant 0 : i32
    %c0_i32_0 = arith.constant 0 : i32
    %c0_i32_1 = arith.constant 0 : i32
    return %c0_i32, %c0_i32_0, %arg1 : i32, i32, i32
  }
  func.func @transform_2(%arg0: i32, %arg1: i32) -> (i32, i32) {
    %c0_i32 = arith.constant 0 : i32
    %c0_i32_0 = arith.constant 0 : i32
    return %c0_i32, %arg1 : i32, i32
  }
  func.func @transform_3(%arg0: i32, %arg1: i32) -> (i32, i32, i32, i32) {
    %c0_i32 = arith.constant 0 : i32
    %c0_i32_0 = arith.constant 0 : i32
    %c0_i32_1 = arith.constant 0 : i32
    return %arg0, %c0_i32, %c0_i32_0, %arg1 : i32, i32, i32, i32
  }
  func.func @transform_4(%arg0: i32, %arg1: i32) -> (i32, i32, i32) {
    %c0_i32 = arith.constant 0 : i32
    %c0_i32_0 = arith.constant 0 : i32
    return %arg0, %c0_i32, %arg1 : i32, i32, i32
  }
}

module attributes {stable_mosaic.version = 11 : i64} {
  func.func @_expand_res_kernel(%arg0: i32, %arg1: memref<512x4xf32, #tpu.memory_space<vmem>>, %arg2: memref<4x16xbf16, #tpu.memory_space<vmem>>, %arg3: memref<1x16xf32, #tpu.memory_space<vmem>>, %arg4: memref<4x8xbf16, #tpu.memory_space<vmem>>, %arg5: memref<1x8xf32, #tpu.memory_space<vmem>>, %arg6: memref<512x16xbf16, #tpu.memory_space<vmem>>, %arg7: memref<512x8xbf16, #tpu.memory_space<vmem>>) attributes {dimension_semantics = [#tpu.dimension_semantics<parallel>], iteration_bounds = array<i64: 1>, scalar_prefetch = 0 : i64, scratch_operands = 0 : i64, tpu.core_type = #tpu.core_type<tc>, window_params = [{transform_indices = @transform_0, window_bounds = array<i64: 512, 4>}, {pipeline_mode = #tpu.pipeline_mode<synchronous>, transform_indices = @transform_1, window_bounds = array<i64: 4, 16>}, {pipeline_mode = #tpu.pipeline_mode<synchronous>, transform_indices = @transform_2, window_bounds = array<i64: 1, 16>}, {pipeline_mode = #tpu.pipeline_mode<synchronous>, transform_indices = @transform_3, window_bounds = array<i64: 4, 8>}, {pipeline_mode = #tpu.pipeline_mode<synchronous>, transform_indices = @transform_4, window_bounds = array<i64: 1, 8>}, {transform_indices = @transform_5, window_bounds = array<i64: 512, 16>}, {transform_indices = @transform_6, window_bounds = array<i64: 512, 8>}]} {
    %c0 = arith.constant 0 : index
    %c0_0 = arith.constant 0 : index
    %0 = vector.load %arg1[%c0, %c0_0] : memref<512x4xf32, #tpu.memory_space<vmem>>, vector<512x4xf32>
    %1 = arith.truncf %0 : vector<512x4xf32> to vector<512x4xbf16>
    %c0_1 = arith.constant 0 : index
    %c0_2 = arith.constant 0 : index
    %2 = vector.load %arg2[%c0_1, %c0_2] : memref<4x16xbf16, #tpu.memory_space<vmem>>, vector<4x16xbf16>
    %cst = arith.constant dense<0.000000e+00> : vector<512x16xf32>
    %3 = tpu.matmul %1, %2, %cst {dimension_numbers = #tpu.dot_dimension_numbers<[1], [0], [0], [1], [0, 0, 1, 1], [], []>} : vector<512x4xbf16>, vector<4x16xbf16>, vector<512x16xf32> -> vector<512x16xf32>
    %c0_3 = arith.constant 0 : index
    %c0_4 = arith.constant 0 : index
    %4 = vector.load %arg3[%c0_3, %c0_4] : memref<1x16xf32, #tpu.memory_space<vmem>>, vector<1x16xf32>
    %5 = vector.broadcast %4 : vector<1x16xf32> to vector<512x16xf32>
    %6 = arith.addf %3, %5 : vector<512x16xf32>
    %cst_5 = arith.constant 5.000000e-01 : f32
    %7 = vector.broadcast %cst_5 : f32 to vector<512x16xf32>
    %8 = arith.mulf %7, %6 : vector<512x16xf32>
    %cst_6 = arith.constant 4.471500e-02 : f32
    %9 = vector.broadcast %cst_6 : f32 to vector<512x16xf32>
    %10 = arith.mulf %9, %6 : vector<512x16xf32>
    %11 = arith.mulf %10, %6 : vector<512x16xf32>
    %12 = arith.mulf %11, %6 : vector<512x16xf32>
    %13 = arith.addf %6, %12 : vector<512x16xf32>
    %cst_7 = arith.constant 0.797884583 : f32
    %14 = vector.broadcast %cst_7 : f32 to vector<512x16xf32>
    %15 = arith.mulf %14, %13 : vector<512x16xf32>
    %16 = math.tanh %15 : vector<512x16xf32>
    %cst_8 = arith.constant 1.000000e+00 : f32
    %17 = vector.broadcast %cst_8 : f32 to vector<512x16xf32>
    %18 = arith.addf %17, %16 : vector<512x16xf32>
    %19 = arith.mulf %8, %18 : vector<512x16xf32>
    %20 = arith.truncf %19 : vector<512x16xf32> to vector<512x16xbf16>
    %c0_9 = arith.constant 0 : index
    %c0_10 = arith.constant 0 : index
    %21 = vector.load %arg6[%c0_9, %c0_10] : memref<512x16xbf16, #tpu.memory_space<vmem>>, vector<512x16xbf16>
    tpu.vector_store %arg6[%c0_9, %c0_10], %20 {strides = array<i32>} : memref<512x16xbf16, #tpu.memory_space<vmem>>, vector<512x16xbf16>,
    %c0_11 = arith.constant 0 : index
    %c0_12 = arith.constant 0 : index
    %22 = vector.load %arg4[%c0_11, %c0_12] : memref<4x8xbf16, #tpu.memory_space<vmem>>, vector<4x8xbf16>
    %cst_13 = arith.constant dense<0.000000e+00> : vector<512x8xf32>
    %23 = tpu.matmul %1, %22, %cst_13 {dimension_numbers = #tpu.dot_dimension_numbers<[1], [0], [0], [1], [0, 0, 1, 1], [], []>} : vector<512x4xbf16>, vector<4x8xbf16>, vector<512x8xf32> -> vector<512x8xf32>
    %c0_14 = arith.constant 0 : index
    %c0_15 = arith.constant 0 : index
    %24 = vector.load %arg5[%c0_14, %c0_15] : memref<1x8xf32, #tpu.memory_space<vmem>>, vector<1x8xf32>
    %25 = vector.broadcast %24 : vector<1x8xf32> to vector<512x8xf32>
    %26 = arith.addf %23, %25 : vector<512x8xf32>
    %cst_16 = arith.constant 5.000000e-01 : f32
    %27 = vector.broadcast %cst_16 : f32 to vector<512x8xf32>
    %28 = arith.mulf %27, %26 : vector<512x8xf32>
    %cst_17 = arith.constant 4.471500e-02 : f32
    %29 = vector.broadcast %cst_17 : f32 to vector<512x8xf32>
    %30 = arith.mulf %29, %26 : vector<512x8xf32>
    %31 = arith.mulf %30, %26 : vector<512x8xf32>
    %32 = arith.mulf %31, %26 : vector<512x8xf32>
    %33 = arith.addf %26, %32 : vector<512x8xf32>
    %cst_18 = arith.constant 0.797884583 : f32
    %34 = vector.broadcast %cst_18 : f32 to vector<512x8xf32>
    %35 = arith.mulf %34, %33 : vector<512x8xf32>
    %36 = math.tanh %35 : vector<512x8xf32>
    %cst_19 = arith.constant 1.000000e+00 : f32
    %37 = vector.broadcast %cst_19 : f32 to vector<512x8xf32>
    %38 = arith.addf %37, %36 : vector<512x8xf32>
    %39 = arith.mulf %28, %38 : vector<512x8xf32>
    %40 = arith.truncf %39 : vector<512x8xf32> to vector<512x8xbf16>
    %c0_20 = arith.constant 0 : index
    %c0_21 = arith.constant 0 : index
    %41 = vector.load %arg7[%c0_20, %c0_21] : memref<512x8xbf16, #tpu.memory_space<vmem>>, vector<512x8xbf16>
    tpu.vector_store %arg7[%c0_20, %c0_21], %40 {strides = array<i32>} : memref<512x8xbf16, #tpu.memory_space<vmem>>, vector<512x8xbf16>,
    return
  }
  func.func @transform_0(%arg0: i32) -> (i32, i32) {
    %c0_i32 = arith.constant 0 : i32
    %c0_i32_0 = arith.constant 0 : i32
    return %arg0, %c0_i32 : i32, i32
  }
  func.func @transform_1(%arg0: i32) -> (i32, i32) {
    %c0_i32 = arith.constant 0 : i32
    %c0_i32_0 = arith.constant 0 : i32
    %c0_i32_1 = arith.constant 0 : i32
    return %c0_i32, %c0_i32_0 : i32, i32
  }
  func.func @transform_2(%arg0: i32) -> (i32, i32) {
    %c0_i32 = arith.constant 0 : i32
    %c0_i32_0 = arith.constant 0 : i32
    %c0_i32_1 = arith.constant 0 : i32
    return %c0_i32, %c0_i32_0 : i32, i32
  }
  func.func @transform_3(%arg0: i32) -> (i32, i32) {
    %c0_i32 = arith.constant 0 : i32
    %c0_i32_0 = arith.constant 0 : i32
    %c0_i32_1 = arith.constant 0 : i32
    return %c0_i32, %c0_i32_0 : i32, i32
  }
  func.func @transform_4(%arg0: i32) -> (i32, i32) {
    %c0_i32 = arith.constant 0 : i32
    %c0_i32_0 = arith.constant 0 : i32
    %c0_i32_1 = arith.constant 0 : i32
    return %c0_i32, %c0_i32_0 : i32, i32
  }
  func.func @transform_5(%arg0: i32) -> (i32, i32) {
    %c0_i32 = arith.constant 0 : i32
    %c0_i32_0 = arith.constant 0 : i32
    return %arg0, %c0_i32 : i32, i32
  }
  func.func @transform_6(%arg0: i32) -> (i32, i32) {
    %c0_i32 = arith.constant 0 : i32
    %c0_i32_0 = arith.constant 0 : i32
    return %arg0, %c0_i32 : i32, i32
  }
}

module attributes {stable_mosaic.version = 11 : i64} {
  func.func @_proj_kernel(%arg0: i32, %arg1: i32, %arg2: memref<1x256x16xbf16, #tpu.memory_space<vmem>>, %arg3: memref<1x1x16xbf16, #tpu.memory_space<vmem>>, %arg4: memref<16x8xbf16, #tpu.memory_space<vmem>>, %arg5: memref<1x8xf32, #tpu.memory_space<vmem>>, %arg6: memref<1x256x8xbf16, #tpu.memory_space<vmem>>, %arg7: memref<1x256x8xf32, #tpu.memory_space<vmem>>) attributes {dimension_semantics = [#tpu.dimension_semantics<parallel>, #tpu.dimension_semantics<parallel>], iteration_bounds = array<i64: 2, 1>, scalar_prefetch = 0 : i64, scratch_operands = 0 : i64, tpu.core_type = #tpu.core_type<tc>, window_params = [{transform_indices = @transform_0, window_bounds = array<i64: 1, 256, 16>}, {transform_indices = @transform_1, window_bounds = array<i64: 1, 1, 16>}, {pipeline_mode = #tpu.pipeline_mode<synchronous>, transform_indices = @transform_2, window_bounds = array<i64: 16, 8>}, {pipeline_mode = #tpu.pipeline_mode<synchronous>, transform_indices = @transform_3, window_bounds = array<i64: 1, 8>}, {transform_indices = @transform_4, window_bounds = array<i64: 1, 256, 8>}, {transform_indices = @transform_5, window_bounds = array<i64: 1, 256, 8>}]} {
    %c0 = arith.constant 0 : index
    %c0_0 = arith.constant 0 : index
    %c0_1 = arith.constant 0 : index
    %0 = vector.load %arg2[%c0, %c0_0, %c0_1] : memref<1x256x16xbf16, #tpu.memory_space<vmem>>, vector<1x256x16xbf16>
    %1 = vector.shape_cast %0 : vector<1x256x16xbf16> to vector<256x16xbf16>
    %c0_2 = arith.constant 0 : index
    %c0_3 = arith.constant 0 : index
    %c0_4 = arith.constant 0 : index
    %2 = vector.load %arg3[%c0_2, %c0_3, %c0_4] : memref<1x1x16xbf16, #tpu.memory_space<vmem>>, vector<1x1x16xbf16>
    %3 = vector.shape_cast %2 : vector<1x1x16xbf16> to vector<1x16xbf16>
    %4 = vector.broadcast %3 : vector<1x16xbf16> to vector<256x16xbf16>
    %5 = arith.mulf %1, %4 : vector<256x16xbf16>
    %c0_5 = arith.constant 0 : index
    %c0_6 = arith.constant 0 : index
    %6 = vector.load %arg4[%c0_5, %c0_6] : memref<16x8xbf16, #tpu.memory_space<vmem>>, vector<16x8xbf16>
    %cst = arith.constant dense<0.000000e+00> : vector<256x8xf32>
    %7 = tpu.matmul %5, %6, %cst {dimension_numbers = #tpu.dot_dimension_numbers<[1], [0], [0], [1], [0, 0, 1, 1], [], []>} : vector<256x16xbf16>, vector<16x8xbf16>, vector<256x8xf32> -> vector<256x8xf32>
    %c0_7 = arith.constant 0 : index
    %c0_8 = arith.constant 0 : index
    %c0_9 = arith.constant 0 : index
    %8 = vector.load %arg6[%c0_7, %c0_8, %c0_9] : memref<1x256x8xbf16, #tpu.memory_space<vmem>>, vector<1x256x8xbf16>
    %9 = vector.shape_cast %8 : vector<1x256x8xbf16> to vector<256x8xbf16>
    %10 = arith.extf %9 : vector<256x8xbf16> to vector<256x8xf32>
    %c0_10 = arith.constant 0 : index
    %c0_11 = arith.constant 0 : index
    %11 = vector.load %arg5[%c0_10, %c0_11] : memref<1x8xf32, #tpu.memory_space<vmem>>, vector<1x8xf32>
    %12 = vector.broadcast %11 : vector<1x8xf32> to vector<256x8xf32>
    %13 = arith.addf %7, %12 : vector<256x8xf32>
    %cst_12 = arith.constant 5.000000e-01 : f32
    %14 = vector.broadcast %cst_12 : f32 to vector<256x8xf32>
    %15 = arith.mulf %14, %13 : vector<256x8xf32>
    %cst_13 = arith.constant 4.471500e-02 : f32
    %16 = vector.broadcast %cst_13 : f32 to vector<256x8xf32>
    %17 = arith.mulf %16, %13 : vector<256x8xf32>
    %18 = arith.mulf %17, %13 : vector<256x8xf32>
    %19 = arith.mulf %18, %13 : vector<256x8xf32>
    %20 = arith.addf %13, %19 : vector<256x8xf32>
    %cst_14 = arith.constant 0.797884583 : f32
    %21 = vector.broadcast %cst_14 : f32 to vector<256x8xf32>
    %22 = arith.mulf %21, %20 : vector<256x8xf32>
    %23 = math.tanh %22 : vector<256x8xf32>
    %cst_15 = arith.constant 1.000000e+00 : f32
    %24 = vector.broadcast %cst_15 : f32 to vector<256x8xf32>
    %25 = arith.addf %24, %23 : vector<256x8xf32>
    %26 = arith.mulf %15, %25 : vector<256x8xf32>
    %27 = arith.addf %10, %26 : vector<256x8xf32>
    %c0_16 = arith.constant 0 : index
    %c0_17 = arith.constant 0 : index
    %c0_18 = arith.constant 0 : index
    %28 = vector.load %arg7[%c0_16, %c0_17, %c0_18] : memref<1x256x8xf32, #tpu.memory_space<vmem>>, vector<1x256x8xf32>
    %29 = vector.shape_cast %28 : vector<1x256x8xf32> to vector<256x8xf32>
    %30 = vector.shape_cast %27 : vector<256x8xf32> to vector<1x256x8xf32>
    tpu.vector_store %arg7[%c0_16, %c0_17, %c0_18], %30 {strides = array<i32>} : memref<1x256x8xf32, #tpu.memory_space<vmem>>, vector<1x256x8xf32>,
    return
  }
  func.func @transform_0(%arg0: i32, %arg1: i32) -> (i32, i32, i32) {
    %c0_i32 = arith.constant 0 : i32
    %c0_i32_0 = arith.constant 0 : i32
    return %arg0, %arg1, %c0_i32 : i32, i32, i32
  }
  func.func @transform_1(%arg0: i32, %arg1: i32) -> (i32, i32, i32) {
    %c0_i32 = arith.constant 0 : i32
    %c0_i32_0 = arith.constant 0 : i32
    %c0_i32_1 = arith.constant 0 : i32
    return %arg0, %c0_i32, %c0_i32_0 : i32, i32, i32
  }
  func.func @transform_2(%arg0: i32, %arg1: i32) -> (i32, i32) {
    %c0_i32 = arith.constant 0 : i32
    %c0_i32_0 = arith.constant 0 : i32
    %c0_i32_1 = arith.constant 0 : i32
    return %c0_i32, %c0_i32_0 : i32, i32
  }
  func.func @transform_3(%arg0: i32, %arg1: i32) -> (i32, i32) {
    %c0_i32 = arith.constant 0 : i32
    %c0_i32_0 = arith.constant 0 : i32
    %c0_i32_1 = arith.constant 0 : i32
    return %c0_i32, %c0_i32_0 : i32, i32
  }
  func.func @transform_4(%arg0: i32, %arg1: i32) -> (i32, i32, i32) {
    %c0_i32 = arith.constant 0 : i32
    %c0_i32_0 = arith.constant 0 : i32
    return %arg0, %arg1, %c0_i32 : i32, i32, i32
  }
  func.func @transform_5(%arg0: i32, %arg1: i32) -> (i32, i32, i32) {
    %c0_i32 = arith.constant 0 : i32
    %c0_i32_0 = arith.constant 0 : i32
    return %arg0, %arg1, %c0_i32 : i32, i32, i32
  }
}

</mosaic_0001>

<bundles_post_ra>
// kernel: mbconv_forward.5
= control target key start
LH: loop header
LB: loop body
LE: loop exit
PB: predicated region body
PF: predicated region fallthrough
CT: control target
= control target key end

     0   :  { %s1553_s18 = smov 0   ;;  %s1555_s19 = smov 0   ;;  %s2202_s0 = inlined_call_operand.vmem [shape: bf16[2,256,16], index: 0, kind: input, shape index: {}]   ;;  %s2203_s1 = inlined_call_operand.vmem [shape: bf16[2,1,16], index: 1, kind: input, shape index: {}]   ;;  %s2204_s2 = inlined_call_operand.vmem [shape: bf16[16,8], index: 2, kind: input, shape index: {}]   ;;  %s2205_s3 = inlined_call_operand.vmem [shape: f32[1,8], index: 3, kind: input, shape index: {}]   ;;  %s2206_s4 = inlined_call_operand.vmem [shape: bf16[2,256,8], index: 4, kind: input, shape index: {}]   ;;  %s2207_s5 = inlined_call_operand.vmem [shape: f32[2,256,8], index: 5, kind: output, shape index: {}]  }
   0x1   :  { %s1557_s20 = smov 0  }
   0x2 LB: > { %s27_s21 = sadd.s32 1, %s1517_s19  ;;  %p1231_p0 = scmp.ge.s32.totalorder %s1521_s20, 1  ;;  %s1521_s20 = sphi %s1557_s20, %s15_s20   ;;  %s1517_s19 = sphi %s1555_s19, %s2232_s19   ;;  %s1513_s18 = sphi %s1553_s18, %s2231_s18  }
   0x3   : > { %p29_p1 = scmp.ge.s32.totalorder %s27_s21, 2  ;;  %p233_p2 = scmp.lt.s32.totalorder %s1521_s20, 3 }
   0x5   : > { %s2234_s21 = smov (%p29_p1, %s27_s21), 0  ;;  %p234_p3 = pnand %p1231_p0, %p233_p2 }
   0x7   : > { %237 = sbr.rel (%p234_p3) target bundleno = 353 (0x161), region = 40 }
   0xe   : > { %v1434_v0 = vld [vmem:[%s2204_s2] sm:$0xff]   ;;  %p282_p4 = scmp.lt.s32.totalorder %s1513_s18, 1  ;;  %v351_v1 = vlaneseq  ;;  %vm550_vm0 = vcmask 130048   ;;  %vm1080_vm1 = vcmask 64512  }
   0xf   : > { %1374 = vmatprep.subr.bf16.mxu0 %v1434_v0  ;;  %1408 = vmatprep.subr.bf16.mxu1 %v1434_v0 }
  0x10   : > { %s2236_s18 = smov (!%p282_p4, %s1513_s18), 1  ;;  %v352_v2 = vshrl.u32 %v351_v1, 7  ;;  %1375 = vmatpush3.bf16.msra.mxu0 %v1434_v0  ;;  %1409 = vmatpush3.bf16.msra.mxu1 %v1434_v0 }
  0x11   : > { %s1275_s24 = sshll.u32 %s2236_s18, 7  ;;  %s293_s27 = scalar_lea.vmem %s2203_s1, %s2236_s18 }
  0x12   : > { %v353_v3 = vsub.s32 0, %v352_v2  ;;  %s1586_s30 = scalar_lea.vmem %s2202_s0, %s1275_s24  ;;  %v347_v4 = vld [vmem:[%s293_s27] sm:$0x1]  ;;  %s1675_s8 = scalar_lea.vmem %s2206_s4, %s1275_s24 }
  0x13   : > { %v349_v5 = vpack.i.b16 %v347_v4, %v347_v4  ;;  %v315_v6 = vld [vmem:[%s1586_s30] sm:$0xf]  ;;  %v316_v7 = vld [vmem:[%s1586_s30 + $0x4] sm:$0xf]  ;;  %v317_v11 = vld [vmem:[%s1586_s30 + $0x8] sm:$0xf] }
  0x14   : > { %v331_v9 = vld [vmem:[%s1586_s30 + $0x40] sm:$0xf]  ;;  %v332_v10 = vld [vmem:[%s1586_s30 + $0x44] sm:$0xf]  ;;  %v318_v13 = vld [vmem:[%s1586_s30 + $0xc] sm:$0xf] }
  0x15   : > { %v354_v8 = vrot.slane %v349_v5, %v353_v3  ;;  %v333_v14 = vld [vmem:[%s1586_s30 + $0x48] sm:$0xf]  ;;  %v334_v15 = vld [vmem:[%s1586_s30 + $0x4c] sm:$0xf]  ;;  %v319_v16 = vld [vmem:[%s1586_s30 + $0x10] sm:$0xf] }
  0x16   : > { %v320_v17 = vld [vmem:[%s1586_s30 + $0x14] sm:$0xf]  ;;  %v335_v22 = vld [vmem:[%s1586_s30 + $0x50] sm:$0xf]  ;;  %v321_v28 = vld [vmem:[%s1586_s30 + $0x18] sm:$0xf] }
  0x17   : > { %v1593_v12 = vcombine.low %v354_v8, %v354_v8  ;;  %v336_v23 = vld [vmem:[%s1586_s30 + $0x54] sm:$0xf]  ;;  %v322_v29 = vld [vmem:[%s1586_s30 + $0x1c] sm:$0xf]  ;;  %v337_v34 = vld [vmem:[%s1586_s30 + $0x58] sm:$0xf] }
  0x18   : > { %v338_v35 = vld [vmem:[%s1586_s30 + $0x5c] sm:$0xf]  ;;  %v323_v40 = vld [vmem:[%s1586_s30 + $0x20] sm:$0xf]  ;;  %v324_v41 = vld [vmem:[%s1586_s30 + $0x24] sm:$0xf] }
  0x19   : > { %v359_v18 = vmul.bf16 %v1593_v12, %v315_v6  ;;  %v360_v19 = vmul.bf16 %v1593_v12, %v316_v7  ;;  %v375_v20 = vmul.bf16 %v1593_v12, %v331_v9  ;;  %v376_v21 = vmul.bf16 %v1593_v12, %v332_v10  ;;  %v339_v42 = vld [vmem:[%s1586_s30 + $0x60] sm:$0xf]  ;;  %v340_v46 = vld [vmem:[%s1586_s30 + $0x64] sm:$0xf]  ;;  %v325_v56 = vld [vmem:[%s1586_s30 + $0x28] sm:$0xf] }
  0x1a   : > { %v361_v24 = vmul.bf16 %v1593_v12, %v317_v11  ;;  %v362_v25 = vmul.bf16 %v1593_v12, %v318_v13  ;;  %v377_v26 = vmul.bf16 %v1593_v12, %v333_v14  ;;  %v378_v27 = vmul.bf16 %v1593_v12, %v334_v15  ;;  %v326_v57 = vld [vmem:[%s1586_s30 + $0x2c] sm:$0xf]  ;;  %v341_v60 = vld [vmem:[%s1586_s30 + $0x68] sm:$0xf]  ;;  %v327_v62 = vld [vmem:[%s1586_s30 + $0x30] sm:$0xf] }
  0x1b   : > { %v1240_v30 = vcombine.low %v359_v18, %v360_v19  ;;  %v1248_v31 = vcombine.low %v375_v20, %v376_v21  ;;  %v363_v32 = vmul.bf16 %v1593_v12, %v319_v16  ;;  %v364_v33 = vmul.bf16 %v1593_v12, %v320_v17  ;;  %v342_v61 = vld [vmem:[%s1586_s30 + $0x6c] sm:$0xf]  ;;  %v328_v63 = vld [vmem:[%s1586_s30 + $0x34] sm:$0xf]  ;;  %v343_v0 = vld [vmem:[%s1586_s30 + $0x70] sm:$0xf] }
  0x1c   : > { %v1241_v36 = vcombine.low %v361_v24, %v362_v25  ;;  %v1249_v37 = vcombine.low %v377_v26, %v378_v27  ;;  %v379_v38 = vmul.bf16 %v1593_v12, %v335_v22  ;;  %v380_v39 = vmul.bf16 %v1593_v12, %v336_v23  ;;  %v344_v1 = vld [vmem:[%s1586_s30 + $0x74] sm:$0xf]  ;;  %v329_v13 = vld [vmem:[%s1586_s30 + $0x38] sm:$0xf]  ;;  %v330_v16 = vld [vmem:[%s1586_s30 + $0x3c] sm:$0xf] }
  0x1d   : > { %1376 = vmatprep.mubr.msk.bf16.mxu0 %vm550_vm0, %v1240_v30  ;;  %1392 = vmatprep.mubr.msk.bf16.mxu1 %vm550_vm0, %v1248_v31  ;;  %v1242_v43 = vcombine.low %v363_v32, %v364_v33  ;;  %v365_v44 = vmul.bf16 %v1593_v12, %v321_v28  ;;  %v366_v45 = vmul.bf16 %v1593_v12, %v322_v29  ;;  %v345_v17 = vld [vmem:[%s1586_s30 + $0x78] sm:$0xf]  ;;  %v346_v18 = vld [vmem:[%s1586_s30 + $0x7c] sm:$0xf]  ;;  %v1681_v25 = vld [vmem:[%s1675_s8 + $0x48] sm:$0xff]   ;;  %s1277_s11 = sshll.u32 %s2236_s18, 8 }
  0x1e   : > { %1377 = vmatmul.mubr.msk.bf16.vlgmr.msra.gmra.mrb[0].mxu0 %vm550_vm0, %v1241_v36  ;;  %1393 = vmatmul.mubr.msk.bf16.vlgmr.msra.gmra.mrb[0].mxu1 %vm550_vm0, %v1249_v37  ;;  %v1250_v47 = vcombine.low %v379_v38, %v380_v39  ;;  %v381_v48 = vmul.bf16 %v1593_v12, %v337_v34  ;;  %v382_v49 = vmul.bf16 %v1593_v12, %v338_v35  ;;  %v1684_v26 = vld [vmem:[%s1675_s8] sm:$0xff]   ;;  %v1690_v28 = vld [vmem:[%s1675_s8 + $0x18] sm:$0xff]   ;;  %v1316_v31 = vunpack.c.l.bf16 %v1681_v25  ;;  %v1698_v32 = vld [vmem:[%s1675_s8 + $0x10] sm:$0xff]   ;;  %s1879_s14 = scalar_lea.vmem %s2207_s5, %s1277_s11 }
  0x1f   : > { %1380 = vmatprep.mubr.msk.bf16.mxu0 %vm550_vm0, %v1242_v43  ;;  %v367_v50 = vmul.bf16 %v1593_v12, %v323_v40  ;;  %v368_v51 = vmul.bf16 %v1593_v12, %v324_v41  ;;  %v383_v52 = vmul.bf16 %v1593_v12, %v339_v42  ;;  %v384_v53 = vmul.bf16 %v1593_v12, %v340_v46  ;;  %v1687_v27 = vld [vmem:[%s1675_s8 + $0x40] sm:$0xff]   ;;  %v1693_v29 = vld [vmem:[%s1675_s8 + $0x58] sm:$0xff]   ;;  %v1701_v33 = vld [vmem:[%s1675_s8 + $0x50] sm:$0xff]  }
  0x20   : > { %1396 = vmatprep.mubr.msk.bf16.mxu1 %vm550_vm0, %v1250_v47  ;;  %v1243_v54 = vcombine.low %v365_v44, %v366_v45  ;;  %v1251_v55 = vcombine.low %v381_v48, %v382_v49  ;;  %v369_v2 = vmul.bf16 %v1593_v12, %v325_v56  ;;  %v370_v3 = vmul.bf16 %v1593_v12, %v326_v57  ;;  %v1706_v34 = vld [vmem:[%s2205_s3] ss:$0 sm:$0xff]  ;;  %v1717_v43 = vld [vmem:[%s1675_s8 + $0x28] sm:$0xff]  }
  0x21   : > { %v1244_v58 = vcombine.low %v367_v50, %v368_v51  ;;  %v1252_v59 = vcombine.low %v383_v52, %v384_v53  ;;  %v385_v4 = vmul.bf16 %v1593_v12, %v341_v60  ;;  %v386_v5 = vmul.bf16 %v1593_v12, %v342_v61  ;;  %v1720_v44 = vld [vmem:[%s1675_s8 + $0x68] sm:$0xff]   ;;  %v1727_v51 = vld [vmem:[%s1675_s8 + $0x20] sm:$0xff]  }
  0x22   : > { %v371_v6 = vmul.bf16 %v1593_v12, %v327_v62  ;;  %v372_v7 = vmul.bf16 %v1593_v12, %v328_v63  ;;  %v387_v8 = vmul.bf16 %v1593_v12, %v343_v0  ;;  %v388_v9 = vmul.bf16 %v1593_v12, %v344_v1  ;;  %v1730_v52 = vld [vmem:[%s1675_s8 + $0x60] sm:$0xff]  }
  0x23   : > { %v1245_v10 = vcombine.low %v369_v2, %v370_v3  ;;  %v1253_v11 = vcombine.low %v385_v4, %v386_v5  ;;  %v373_v19 = vmul.bf16 %v1593_v12, %v329_v13  ;;  %v374_v20 = vmul.bf16 %v1593_v12, %v330_v16 }
  0x24   : > { %v1246_v14 = vcombine.low %v371_v6, %v372_v7  ;;  %v1254_v15 = vcombine.low %v387_v8, %v388_v9  ;;  %v389_v21 = vmul.bf16 %v1593_v12, %v345_v17  ;;  %v390_v22 = vmul.bf16 %v1593_v12, %v346_v18  ;;  %v1678_v12 = vld [vmem:[%s1675_s8 + $0x8] sm:$0xff]  }
  0x25   : > { %v1247_v23 = vcombine.low %v373_v19, %v374_v20  ;;  %v1284_v30 = vunpack.c.l.bf16 %v1678_v12  ;;  %v1280_v35 = vunpack.c.l.bf16 %v1684_v26 }
  0x26   : > { %1381 = vmatmul.mubr.msk.bf16.gmra.mrb[4].mxu0 %vm550_vm0, %v1243_v54  ;;  %1397 = vmatmul.mubr.msk.bf16.gmra.mrb[4].mxu1 %vm550_vm0, %v1251_v55  ;;  %v1255_v24 = vcombine.low %v389_v21, %v390_v22 }
  0x27   : > { %1384 = vmatprep.mubr.msk.bf16.mxu0 %vm550_vm0, %v1244_v58  ;;  %1400 = vmatprep.mubr.msk.bf16.mxu1 %vm550_vm0, %v1252_v59 }
  0x2e   : > { %1385 = vmatmul.mubr.msk.bf16.gmra.mrb[8].mxu0 %vm550_vm0, %v1245_v10  ;;  %1401 = vmatmul.mubr.msk.bf16.gmra.mrb[8].mxu1 %vm550_vm0, %v1253_v11 }
  0x2f   : > { %1388 = vmatprep.mubr.msk.bf16.mxu0 %vm550_vm0, %v1246_v14  ;;  %1404 = vmatprep.mubr.msk.bf16.mxu1 %vm550_vm0, %v1254_v15 }
  0x36   : > { %1389 = vmatmul.mubr.msk.bf16.gmra.mrb[12].mxu0 %vm550_vm0, %v1247_v23  ;;  %1405 = vmatmul.mubr.msk.bf16.gmra.mrb[12].mxu1 %vm550_vm0, %v1255_v24 }
  0xf1   : > { %v1378_v45 = vpop.f32.mrb[0].mxu0  ;;  %v1394_v46 = vpop.f32.mrb[0].mxu1 }
  0xf2   : > { %v642_v53 = vadd.f32 %v1378_v45, %v1706_v34  ;;  %v706_v54 = vadd.f32 %v1394_v46, %v1706_v34  ;;  %v633_v55 = vpop.f32.mrb[1].mxu0  ;;  %v697_v56 = vpop.f32.mrb[1].mxu1 }
  0xf3   : > { %v1737_v59 = vadd.f32 %v1706_v34, %v633_v55  ;;  %v1740_v60 = vadd.f32 %v1706_v34, %v697_v56  ;;  %v1379_v61 = vpop.f32.mrb[2].mxu0  ;;  %v1395_v62 = vpop.f32.mrb[2].mxu1 }
  0xf4   : > { %v794_v1 = vmul.f32 0.044715, %v642_v53  ;;  %v810_v2 = vmul.f32 0.044715, %v706_v54  ;;  %v1751_v11 = vadd.f32 %v1379_v61, %v1706_v34  ;;  %v1754_v13 = vadd.f32 %v1395_v62, %v1706_v34  ;;  %v636_v14 = vpop.f32.mrb[3].mxu0  ;;  %v700_v15 = vpop.f32.mrb[3].mxu1 }
  0xf5   : > { %v792_v5 = vmul.f32 0.044715, %v1737_v59  ;;  %v808_v6 = vmul.f32 0.044715, %v1740_v60  ;;  %v1759_v18 = vadd.f32 %v1706_v34, %v636_v14  ;;  %v1764_v24 = vmul.f32 0.5, %v642_v53 }
  0xf6   : > { %v826_v9 = vmul.f32 %v794_v1, %v642_v53  ;;  %v842_v10 = vmul.f32 %v810_v2, %v706_v54  ;;  %v795_v22 = vmul.f32 0.044715, %v1751_v11  ;;  %v811_v55 = vmul.f32 0.044715, %v1754_v13 }
  0xf7   : > { %v824_v16 = vmul.f32 %v792_v5, %v1737_v59  ;;  %v840_v17 = vmul.f32 %v808_v6, %v1740_v60  ;;  %v1771_v5 = vadd.f32 %v1706_v34, %v700_v15  ;;  %v1844_v58 = vmul.f32 0.5, %v1759_v18 }
  0xf8   : > { %v858_v20 = vmul.f32 %v826_v9, %v642_v53  ;;  %v874_v21 = vmul.f32 %v842_v10, %v706_v54  ;;  %v827_v2 = vmul.f32 %v795_v22, %v1751_v11 }
  0xf9   : > { %v856_v45 = vmul.f32 %v824_v16, %v1737_v59  ;;  %v872_v46 = vmul.f32 %v840_v17, %v1740_v60  ;;  %v1382_v56 = vpop.f32.mrb[4].mxu0  ;;  %v1398_v61 = vpop.f32.mrb[4].mxu1  ;;  %v843_v16 = vmul.f32 %v811_v55, %v1754_v13  ;;  %v793_v17 = vmul.f32 0.044715, %v1759_v18 }
  0xfa   : > { %v890_v62 = vadd.f32 %v858_v20, %v642_v53  ;;  %v906_v1 = vadd.f32 %v874_v21, %v706_v54  ;;  %v649_v6 = vpop.f32.mrb[5].mxu0  ;;  %v713_v9 = vpop.f32.mrb[5].mxu1  ;;  %v1779_v20 = vmul.f32 0.5, %v706_v54  ;;  %v859_v15 = vmul.f32 %v827_v2, %v1751_v11 }
  0xfb   : > { %v888_v10 = vadd.f32 %v856_v45, %v1737_v59  ;;  %v904_v14 = vadd.f32 %v872_v46, %v1740_v60  ;;  %v1383_v23 = vpop.f32.mrb[6].mxu0  ;;  %v1777_v19 = vpop.f32.mrb[6].mxu1  ;;  %v875_v45 = vmul.f32 %v843_v16, %v1754_v13  ;;  %v825_v46 = vmul.f32 %v793_v17, %v1759_v18 }
  0xfc   : > { %v922_v53 = vmul.f32 0.7978846, %v890_v62  ;;  %v938_v21 = vmul.f32 0.7978846, %v906_v1  ;;  %v1782_v22 = vpop.f32.mrb[7].mxu0  ;;  %v1786_v55 = vpop.f32.mrb[7].mxu1  ;;  %v891_v4 = vadd.f32 %v859_v15, %v1751_v11  ;;  %v1791_v54 = vadd.f32 %v1382_v56, %v1706_v34 }
  0xfd   : > { %v920_v8 = vmul.f32 0.7978846, %v888_v10  ;;  %v936_v7 = vmul.f32 0.7978846, %v904_v14  ;;  %v809_v62 = vmul.f32 0.044715, %v1771_v5  ;;  %v907_v1 = vadd.f32 %v875_v45, %v1754_v13 }
  0xfe   : > { %1435 = vtanh.f32 %v922_v53  ;;  %v857_v2 = vmul.f32 %v825_v46, %v1759_v18  ;;  %v1796_v10 = vadd.f32 %v1398_v61, %v1706_v34  ;;  %v1799_v14 = vmul.f32 0.5, %v1737_v59 }
  0xff   : > { %1437 = vtanh.f32 %v938_v21  ;;  %v923_v16 = vmul.f32 0.7978846, %v891_v4  ;;  %v841_v17 = vmul.f32 %v809_v62, %v1771_v5  ;;  %v939_v53 = vmul.f32 0.7978846, %v907_v1 }
 0x100   : > { %1439 = vtanh.f32 %v920_v8  ;;  %v889_v56 = vadd.f32 %v857_v2, %v1759_v18  ;;  %v798_v21 = vmul.f32 0.044715, %v1791_v54  ;;  %v1809_v61 = vmul.f32 0.5, %v1740_v60 }
 0x101   : > { %1441 = vtanh.f32 %v936_v7  ;;  %v1804_v15 = vpop.f32.mrb[8].mxu0  ;;  %v1806_v45 = vpop.f32.mrb[8].mxu1  ;;  %v873_v59 = vmul.f32 %v841_v17, %v1771_v5  ;;  %v814_v4 = vmul.f32 0.044715, %v1796_v10  ;;  %v1819_v1 = vadd.f32 %v1706_v34, %v649_v6 }
 0x102   : > { %1443 = vtanh.f32 %v923_v16  ;;  %v1813_v8 = vpop.f32.mrb[9].mxu0  ;;  %v1815_v7 = vpop.f32.mrb[9].mxu1  ;;  %v921_v46 = vmul.f32 0.7978846, %v889_v56  ;;  %v830_v62 = vmul.f32 %v798_v21, %v1791_v54  ;;  %v1828_v3 = vadd.f32 %v1706_v34, %v713_v9 }
 0x103   : > { %1445 = vtanh.f32 %v939_v53  ;;  %v1821_v2 = vpop.f32.mrb[10].mxu0  ;;  %v1823_v60 = vpop.f32.mrb[10].mxu1  ;;  %v905_v16 = vadd.f32 %v873_v59, %v1771_v5  ;;  %v846_v17 = vmul.f32 %v814_v4, %v1796_v10  ;;  %v1831_v53 = vadd.f32 %v1383_v23, %v1706_v34 }
 0x104   : > { %v1833_v56 = vpop.f32.mrb[11].mxu0  ;;  %v1835_v21 = vpop.f32.mrb[11].mxu1  ;;  %v763_v6 = vmul.f32 0.5, %v1751_v11  ;;  %1447 = vtanh.f32 %v921_v46  ;;  %v862_v0 = vmul.f32 %v830_v62, %v1791_v54  ;;  %v796_v59 = vmul.f32 0.044715, %v1819_v1 }
 0x105   : > { %v779_v4 = vmul.f32 0.5, %v1754_v13  ;;  %v937_v63 = vmul.f32 0.7978846, %v905_v16  ;;  %v878_v9 = vmul.f32 %v846_v17, %v1796_v10  ;;  %v812_v23 = vmul.f32 0.044715, %v1828_v3 }
 0x106   : > { %v894_v57 = vadd.f32 %v862_v0, %v1791_v54  ;;  %v828_v11 = vmul.f32 %v796_v59, %v1819_v1  ;;  %v799_v46 = vmul.f32 0.044715, %v1831_v53  ;;  %v1850_v50 = vmul.f32 0.5, %v1771_v5 }
 0x107   : > { %1449 = vtanh.f32 %v937_v63  ;;  %v910_v13 = vadd.f32 %v878_v9, %v1796_v10  ;;  %v844_v16 = vmul.f32 %v812_v23, %v1828_v3  ;;  %v1858_v0 = vadd.f32 %v1777_v19, %v1706_v34 }
 0x108   : > { %v1436_v62 = vpop.eup %1435  ;;  %v926_v18 = vmul.f32 0.7978846, %v894_v57  ;;  %v860_v48 = vmul.f32 %v828_v11, %v1819_v1  ;;  %v831_v23 = vmul.f32 %v799_v46, %v1831_v53 }
 0x109   : > { %v1438_v17 = vpop.eup %1437  ;;  %v986_v49 = vadd.f32 1.0, %v1436_v62  ;;  %v1860_v59 = vpop.f32.mrb[12].mxu0  ;;  %v942_v42 = vmul.f32 0.7978846, %v910_v13  ;;  %v876_v9 = vmul.f32 %v844_v16, %v1828_v3 }
 0x10a   : > { %v1862_v47 = vpop.f32.mrb[12].mxu1  ;;  %v1440_v5 = vpop.eup %1439  ;;  %v1002_v63 = vadd.f32 1.0, %v1438_v17  ;;  %1451 = vtanh.f32 %v926_v18  ;;  %v892_v40 = vadd.f32 %v860_v48, %v1819_v1 }
 0x10b   : > { %v1866_v41 = vpop.f32.mrb[13].mxu0  ;;  %v1868_v57 = vpop.f32.mrb[13].mxu1  ;;  %v1018_v62 = vmul.f32 %v986_v49, %v1764_v24  ;;  %v984_v19 = vadd.f32 1.0, %v1440_v5  ;;  %1453 = vtanh.f32 %v942_v42  ;;  %v908_v49 = vadd.f32 %v876_v9, %v1828_v3 }
 0x10c   : > { %v1442_v11 = vpop.eup %1441  ;;  %v1872_v39 = vpop.f32.mrb[14].mxu0  ;;  %v1034_v46 = vmul.f32 %v1002_v63, %v1779_v20  ;;  %v924_v36 = vmul.f32 0.7978846, %v892_v40  ;;  %v2209_v40 = vunpack.c.l.bf16 %v1687_v27 }
 0x10d   : > { %v1874_v38 = vpop.f32.mrb[14].mxu1  ;;  %v1444_v13 = vpop.eup %1443  ;;  %v1000_v16 = vadd.f32 1.0, %v1442_v11  ;;  %v1050_v18 = vadd.f32 %v1284_v30, %v1018_v62  ;;  %v1016_v5 = vmul.f32 %v984_v19, %v1799_v14  ;;  %v940_v9 = vmul.f32 0.7978846, %v908_v49 }
 0x10e   : > { %v1883_v24 = vpop.f32.mrb[15].mxu0  ;;  %v1885_v48 = vpop.f32.mrb[15].mxu1  ;;  %v987_v37 = vadd.f32 1.0, %v1444_v13  ;;  %v1066_v20 = vadd.f32 %v1316_v31, %v1034_v46  ;;  %1455 = vtanh.f32 %v924_v36  ;;  %v863_v14 = vmul.f32 %v831_v23, %v1831_v53 }
 0x10f   : > { %2208 = vst [vmem:[#allocation2_spill] sm:$0xff] %v1885_v48  ;;  %v1446_v17 = vpop.eup %1445  ;;  %v1032_v42 = vmul.f32 %v1000_v16, %v1809_v61  ;;  %1083 = vst.msk [vmem:[%s1879_s14 + $0x10] sm:$0xff] %vm1080_vm1, %v1050_v18  ;;  %v1048_v48 = vadd.f32 %v1280_v35, %v1016_v5  ;;  %1457 = vtanh.f32 %v940_v9  ;;  %v2210_v19 = vunpack.c.h.bf16 %v1678_v12 }
 0x110   : > { %v1003_v63 = vadd.f32 1.0, %v1446_v17  ;;  %v1448_v11 = vpop.eup %1447  ;;  %v1019_v30 = vmul.f32 %v987_v37, %v763_v6  ;;  %1099 = vst.msk [vmem:[%s1879_s14 + $0x90] sm:$0xff] %vm1080_vm1, %v1066_v20  ;;  %v895_v35 = vadd.f32 %v863_v14, %v1831_v53  ;;  %v815_v36 = vmul.f32 0.044715, %v1858_v0 }
 0x111   : > { %v1064_v31 = vadd.f32 %v2209_v40, %v1032_v42  ;;  %v985_v62 = vadd.f32 1.0, %v1448_v11  ;;  %1081 = vst.msk [vmem:[%s1879_s14] sm:$0xff] %vm1080_vm1, %v1048_v48  ;;  %v1910_v37 = vadd.f32 %v1706_v34, %v1782_v22  ;;  %v1450_v6 = vpop.eup %1449  ;;  %v1919_v12 = vadd.f32 %v1706_v34, %v1786_v55 }
 0x112   : > { %v1035_v61 = vmul.f32 %v1003_v63, %v779_v4  ;;  %v1051_v13 = vadd.f32 %v2210_v19, %v1019_v30  ;;  %v2211_v4 = vunpack.c.h.bf16 %v1681_v25  ;;  %v1923_v16 = vadd.f32 %v1804_v15, %v1706_v34 }
 0x113   : > { %1097 = vst.msk [vmem:[%s1879_s14 + $0x80] sm:$0xff] %vm1080_vm1, %v1064_v31  ;;  %v1017_v46 = vmul.f32 %v985_v62, %v1844_v58  ;;  %v1001_v22 = vadd.f32 1.0, %v1450_v6  ;;  %v766_v49 = vmul.f32 0.5, %v1791_v54  ;;  %v927_v48 = vmul.f32 0.7978846, %v895_v35 }
 0x114   : > { %v1067_v23 = vadd.f32 %v2211_v4, %v1035_v61  ;;  %1084 = vst.msk [vmem:[%s1879_s14 + $0x18] sm:$0xff] %vm1080_vm1, %v1051_v13  ;;  %v847_v25 = vmul.f32 %v815_v36, %v1858_v0  ;;  %v2212_v58 = vunpack.c.h.bf16 %v1684_v26  ;;  %v782_v55 = vmul.f32 0.5, %v1796_v10  ;;  %v1452_v5 = vpop.eup %1451 }
 0x115   : > { %v797_v18 = vmul.f32 0.044715, %v1910_v37  ;;  %v813_v15 = vmul.f32 0.044715, %v1919_v12  ;;  %v1033_v20 = vmul.f32 %v1001_v22, %v1850_v50  ;;  %v764_v42 = vmul.f32 0.5, %v1819_v1  ;;  %v1454_v63 = vpop.eup %1453 }
 0x116   : > { %1100 = vst.msk [vmem:[%s1879_s14 + $0x98] sm:$0xff] %vm1080_vm1, %v1067_v23  ;;  %v1049_v17 = vadd.f32 %v2212_v58, %v1017_v46  ;;  %1459 = vtanh.f32 %v927_v48  ;;  %v879_v54 = vmul.f32 %v847_v25, %v1858_v0  ;;  %v990_v26 = vadd.f32 1.0, %v1452_v5 }
 0x117   : > { %v829_v9 = vmul.f32 %v797_v18, %v1910_v37  ;;  %v845_v10 = vmul.f32 %v813_v15, %v1919_v12  ;;  %v802_v11 = vmul.f32 0.044715, %v1923_v16  ;;  %v2213_v30 = vunpack.c.h.bf16 %v1687_v27 }
 0x118   : > { %1082 = vst.msk [vmem:[%s1879_s14 + $0x8] sm:$0xff] %vm1080_vm1, %v1049_v17  ;;  %v1006_v50 = vadd.f32 1.0, %v1454_v63  ;;  %v911_v1 = vadd.f32 %v879_v54, %v1858_v0  ;;  %v1949_v40 = vadd.f32 %v1806_v45, %v1706_v34  ;;  %v1022_v31 = vmul.f32 %v990_v26, %v766_v49  ;;  %v1456_v13 = vpop.eup %1455 }
 0x119   : > { %v1065_v14 = vadd.f32 %v2213_v30, %v1033_v20  ;;  %v861_v61 = vmul.f32 %v829_v9, %v1910_v37  ;;  %v877_v62 = vmul.f32 %v845_v10, %v1919_v12  ;;  %v834_v19 = vmul.f32 %v802_v11, %v1923_v16  ;;  %v1458_v45 = vpop.eup %1457 }
 0x11a   : > { %v1038_v27 = vmul.f32 %v1006_v50, %v782_v55  ;;  %v780_v35 = vmul.f32 0.5, %v1828_v3  ;;  %v943_v36 = vmul.f32 0.7978846, %v911_v1  ;;  %v818_v6 = vmul.f32 0.044715, %v1949_v40 }
 0x11b   : > { %1098 = vst.msk [vmem:[%s1879_s14 + $0x88] sm:$0xff] %vm1080_vm1, %v1065_v14  ;;  %v2214_v4 = vunpack.c.l.bf16 %v1690_v28  ;;  %v988_v46 = vadd.f32 1.0, %v1456_v13  ;;  %v893_v22 = vadd.f32 %v861_v61, %v1910_v37  ;;  %v909_v49 = vadd.f32 %v877_v62, %v1919_v12 }
 0x11c   : > { %v2215_v48 = vunpack.c.l.bf16 %v1693_v29  ;;  %v1004_v58 = vadd.f32 1.0, %v1458_v45  ;;  %1461 = vtanh.f32 %v943_v36  ;;  %v866_v3 = vmul.f32 %v834_v19, %v1923_v16 }
 0x11d   : > { %v1054_v23 = vadd.f32 %v2214_v4, %v1022_v31  ;;  %v1020_v17 = vmul.f32 %v988_v46, %v764_v42  ;;  %v925_v55 = vmul.f32 0.7978846, %v893_v22  ;;  %v941_v18 = vmul.f32 0.7978846, %v909_v49 }
 0x11e   : > { %v1070_v25 = vadd.f32 %v2215_v48, %v1038_v27  ;;  %v850_v15 = vmul.f32 %v818_v6, %v1949_v40  ;;  %v1036_v5 = vmul.f32 %v1004_v58, %v780_v35  ;;  %v898_v20 = vadd.f32 %v866_v3, %v1923_v16 }
 0x11f   : > { %1087 = vst.msk [vmem:[%s1879_s14 + $0x30] sm:$0xff] %vm1080_vm1, %v1054_v23  ;;  %v1973_v54 = vadd.f32 %v1706_v34, %v1813_v8  ;;  %v1977_v63 = vadd.f32 %v1706_v34, %v1815_v7  ;;  %v2216_v42 = vunpack.c.l.bf16 %v1698_v32  ;;  %1463 = vtanh.f32 %v925_v55 }
 0x120   : > { %1103 = vst.msk [vmem:[%s1879_s14 + $0xb0] sm:$0xff] %vm1080_vm1, %v1070_v25  ;;  %v882_v9 = vmul.f32 %v850_v15, %v1949_v40  ;;  %v1984_v10 = vadd.f32 %v1821_v2, %v1706_v34  ;;  %v1460_v11 = vpop.eup %1459  ;;  %v2217_v30 = vunpack.c.l.bf16 %v1701_v33  ;;  %v767_v14 = vmul.f32 0.5, %v1831_v53 }
 0x121   : > { %v1052_v26 = vadd.f32 %v2216_v42, %v1020_v17  ;;  %1465 = vtanh.f32 %v941_v18  ;;  %v930_v50 = vmul.f32 0.7978846, %v898_v20  ;;  %v991_v7 = vadd.f32 1.0, %v1460_v11 }
 0x122   : > { %v1068_v8 = vadd.f32 %v2217_v30, %v1036_v5  ;;  %v783_v1 = vmul.f32 0.5, %v1858_v0  ;;  %v914_v31 = vadd.f32 %v882_v9, %v1949_v40  ;;  %v800_v61 = vmul.f32 0.044715, %v1973_v54 }
 0x123   : > { %1085 = vst.msk [vmem:[%s1879_s14 + $0x20] sm:$0xff] %vm1080_vm1, %v1052_v26  ;;  %v765_v2 = vmul.f32 0.5, %v1910_v37  ;;  %1467 = vtanh.f32 %v930_v50  ;;  %v816_v62 = vmul.f32 0.044715, %v1977_v63  ;;  %v803_v53 = vmul.f32 0.044715, %v1984_v10 }
 0x124   : > { %1101 = vst.msk [vmem:[%s1879_s14 + $0xa0] sm:$0xff] %vm1080_vm1, %v1068_v8  ;;  %v1023_v19 = vmul.f32 %v991_v7, %v767_v14  ;;  %v946_v13 = vmul.f32 0.7978846, %v914_v31  ;;  %v832_v27 = vmul.f32 %v800_v61, %v1973_v54  ;;  %v2002_v0 = vadd.f32 %v1823_v60, %v1706_v34 }
 0x125   : > { %v848_v35 = vmul.f32 %v816_v62, %v1977_v63  ;;  %v835_v36 = vmul.f32 %v803_v53, %v1984_v10  ;;  %v2008_v37 = vadd.f32 %v1706_v34, %v1833_v56  ;;  %v2012_v6 = vadd.f32 %v1706_v34, %v1835_v21 }
 0x126   : > { %v2218_v45 = vunpack.c.h.bf16 %v1690_v28  ;;  %v781_v23 = vmul.f32 0.5, %v1919_v12  ;;  %1469 = vtanh.f32 %v946_v13  ;;  %v864_v60 = vmul.f32 %v832_v27, %v1973_v54  ;;  %v1462_v46 = vpop.eup %1461 }
 0x127   : > { %v770_v22 = vmul.f32 0.5, %v1923_v16  ;;  %v880_v49 = vmul.f32 %v848_v35, %v1977_v63  ;;  %v867_v56 = vmul.f32 %v835_v36, %v1984_v10  ;;  %v819_v48 = vmul.f32 0.044715, %v2002_v0 }
 0x128   : > { %v1055_v4 = vadd.f32 %v2218_v45, %v1023_v19  ;;  %v1007_v21 = vadd.f32 1.0, %v1462_v46  ;;  %v786_v28 = vmul.f32 0.5, %v1949_v40  ;;  %v896_v25 = vadd.f32 %v864_v60, %v1973_v54 }
 0x129   : > { %v801_v12 = vmul.f32 0.044715, %v2008_v37  ;;  %v912_v58 = vadd.f32 %v880_v49, %v1977_v63  ;;  %v899_v3 = vadd.f32 %v867_v56, %v1984_v10  ;;  %v851_v16 = vmul.f32 %v819_v48, %v2002_v0  ;;  %v1464_v55 = vpop.eup %1463 }
 0x12a   : > { %1088 = vst.msk [vmem:[%s1879_s14 + $0x38] sm:$0xff] %vm1080_vm1, %v1055_v4  ;;  %v817_v17 = vmul.f32 0.044715, %v2012_v6  ;;  %v1039_v18 = vmul.f32 %v1007_v21, %v783_v1  ;;  %v928_v15 = vmul.f32 0.7978846, %v896_v25  ;;  %v2034_v40 = vadd.f32 %v1860_v59, %v1706_v34 }
 0x12b   : > { %v833_v5 = vmul.f32 %v801_v12, %v2008_v37  ;;  %v1466_v20 = vpop.eup %1465  ;;  %v989_v42 = vadd.f32 1.0, %v1464_v55  ;;  %v944_v26 = vmul.f32 0.7978846, %v912_v58  ;;  %v931_v9 = vmul.f32 0.7978846, %v899_v3 }
 0x12c   : > { %v883_v11 = vmul.f32 %v851_v16, %v2002_v0  ;;  %v2219_v30 = vunpack.c.h.bf16 %v1693_v29  ;;  %v1005_v14 = vadd.f32 1.0, %v1466_v20  ;;  %1471 = vtanh.f32 %v928_v15 }
 0x12d   : > { %v865_v50 = vmul.f32 %v833_v5, %v2008_v37  ;;  %v1468_v7 = vpop.eup %1467  ;;  %v1021_v1 = vmul.f32 %v989_v42, %v765_v2  ;;  %1473 = vtanh.f32 %v944_v26  ;;  %v849_v59 = vmul.f32 %v817_v17, %v2012_v6 }
 0x12e   : > { %v1071_v8 = vadd.f32 %v2219_v30, %v1039_v18  ;;  %v915_v31 = vadd.f32 %v883_v11, %v2002_v0  ;;  %v1037_v61 = vmul.f32 %v1005_v14, %v781_v23  ;;  %v994_v62 = vadd.f32 1.0, %v1468_v7 }
 0x12f   : > { %1475 = vtanh.f32 %v931_v9  ;;  %v897_v29 = vadd.f32 %v865_v50, %v2008_v37  ;;  %v2220_v53 = vunpack.c.h.bf16 %v1698_v32  ;;  %v768_v13 = vmul.f32 0.5, %v1973_v54 }
 0x130   : > { %1104 = vst.msk [vmem:[%s1879_s14 + $0xb8] sm:$0xff] %vm1080_vm1, %v1071_v8  ;;  %v947_v2 = vmul.f32 0.7978846, %v915_v31  ;;  %v881_v27 = vmul.f32 %v849_v59, %v2012_v6  ;;  %v1470_v35 = vpop.eup %1469  ;;  %v2221_v36 = vunpack.c.h.bf16 %v1701_v33  ;;  %v1026_v4 = vmul.f32 %v994_v62, %v770_v22 }
 0x131   : > { %v1053_v19 = vadd.f32 %v2220_v53, %v1021_v1  ;;  %v929_v60 = vmul.f32 0.7978846, %v897_v29  ;;  %v806_v23 = vmul.f32 0.044715, %v2034_v40  ;;  %v1010_v46 = vadd.f32 1.0, %v1470_v35 }
 0x132   : > { %v1069_v45 = vadd.f32 %v2221_v36, %v1037_v61  ;;  %1477 = vtanh.f32 %v947_v2  ;;  %v913_v32 = vadd.f32 %v881_v27, %v2012_v6  ;;  %v2057_v54 = vadd.f32 %v1862_v47, %v1706_v34 }
 0x133   : > { %1086 = vst.msk [vmem:[%s1879_s14 + $0x28] sm:$0xff] %vm1080_vm1, %v1053_v19  ;;  %v2222_v33 = vunpack.c.l.bf16 %v1717_v43  ;;  %1479 = vtanh.f32 %v929_v60  ;;  %v838_v22 = vmul.f32 %v806_v23, %v2034_v40  ;;  %v2066_v56 = vadd.f32 %v1706_v34, %v1866_v41 }
 0x134   : > { %1102 = vst.msk [vmem:[%s1879_s14 + $0xa8] sm:$0xff] %vm1080_vm1, %v1069_v45  ;;  %v1042_v48 = vmul.f32 %v1010_v46, %v786_v28  ;;  %v784_v21 = vmul.f32 0.5, %v1977_v63  ;;  %v945_v25 = vmul.f32 0.7978846, %v913_v32  ;;  %v822_v12 = vmul.f32 0.044715, %v2057_v54 }
 0x135   : > { %v1058_v49 = vadd.f32 %v2222_v33, %v1026_v4  ;;  %v771_v47 = vmul.f32 0.5, %v1984_v10  ;;  %v870_v58 = vmul.f32 %v838_v22, %v2034_v40  ;;  %v804_v3 = vmul.f32 0.044715, %v2066_v56 }
 0x136   : > { %v2077_v16 = vadd.f32 %v1706_v34, %v1868_v57  ;;  %v2223_v41 = vunpack.c.l.bf16 %v1720_v44  ;;  %1481 = vtanh.f32 %v945_v25  ;;  %v854_v63 = vmul.f32 %v822_v12, %v2057_v54  ;;  %v1472_v55 = vpop.eup %1471  ;;  %v2227_v12 = vld [vmem:[#allocation2_spill] sm:$0xff] }
 0x137   : > { %1091 = vst.msk [vmem:[%s1879_s14 + $0x50] sm:$0xff] %vm1080_vm1, %v1058_v49  ;;  %v2084_v17 = vadd.f32 %v1872_v39, %v1706_v34  ;;  %v787_v10 = vmul.f32 0.5, %v2002_v0  ;;  %v902_v18 = vadd.f32 %v870_v58, %v2034_v40  ;;  %v836_v15 = vmul.f32 %v804_v3, %v2066_v56  ;;  %v1474_v5 = vpop.eup %1473 }
 0x138   : > { %v1074_v28 = vadd.f32 %v2223_v41, %v1042_v48  ;;  %v820_v57 = vmul.f32 0.044715, %v2077_v16  ;;  %v992_v20 = vadd.f32 1.0, %v1472_v55  ;;  %v769_v42 = vmul.f32 0.5, %v2008_v37 }
 0x139   : > { %v886_v26 = vmul.f32 %v854_v63, %v2057_v54  ;;  %v807_v39 = vmul.f32 0.044715, %v2084_v17  ;;  %v1476_v9 = vpop.eup %1475  ;;  %v1008_v11 = vadd.f32 1.0, %v1474_v5  ;;  %v934_v30 = vmul.f32 0.7978846, %v902_v18  ;;  %v2148_v5 = vld [vmem:[%s1675_s8 + $0x30] sm:$0xff]  }
 0x13a   : > { %1107 = vst.msk [vmem:[%s1879_s14 + $0xd0] sm:$0xff] %vm1080_vm1, %v1074_v28  ;;  %v868_v0 = vmul.f32 %v836_v15, %v2066_v56  ;;  %v852_v8 = vmul.f32 %v820_v57, %v2077_v16  ;;  %v1024_v14 = vmul.f32 %v992_v20, %v768_v13  ;;  %v995_v50 = vadd.f32 1.0, %v1476_v9  ;;  %v2151_v20 = vld [vmem:[%s1675_s8 + $0x70] sm:$0xff]  }
 0x13b   : > { %v918_v7 = vadd.f32 %v886_v26, %v2057_v54  ;;  %v839_v1 = vmul.f32 %v807_v39, %v2084_v17  ;;  %v1040_v31 = vmul.f32 %v1008_v11, %v784_v21  ;;  %1483 = vtanh.f32 %v934_v30 }
 0x13c   : > { %v900_v37 = vadd.f32 %v868_v0, %v2066_v56  ;;  %v884_v59 = vmul.f32 %v852_v8, %v2077_v16  ;;  %v1478_v61 = vpop.eup %1477  ;;  %v2224_v62 = vunpack.c.l.bf16 %v1727_v51  ;;  %v1027_v53 = vmul.f32 %v995_v50, %v771_v47 }
 0x13d   : > { %v950_v19 = vmul.f32 0.7978846, %v918_v7  ;;  %v871_v13 = vmul.f32 %v839_v1, %v2084_v17  ;;  %v1480_v2 = vpop.eup %1479  ;;  %v2225_v27 = vunpack.c.l.bf16 %v1730_v52  ;;  %v1011_v36 = vadd.f32 1.0, %v1478_v61 }
 0x13e   : > { %v1056_v29 = vadd.f32 %v2224_v62, %v1024_v14  ;;  %v932_v45 = vmul.f32 0.7978846, %v900_v37  ;;  %v916_v4 = vadd.f32 %v884_v59, %v2077_v16  ;;  %v2226_v60 = vunpack.c.h.bf16 %v1717_v43 }
 0x13f   : > { %v1072_v35 = vadd.f32 %v2225_v27, %v1040_v31  ;;  %v993_v46 = vadd.f32 1.0, %v1480_v2  ;;  %1485 = vtanh.f32 %v950_v19  ;;  %v903_v32 = vadd.f32 %v871_v13, %v2084_v17 }
 0x140   : > { %1089 = vst.msk [vmem:[%s1879_s14 + $0x40] sm:$0xff] %vm1080_vm1, %v1056_v29  ;;  %v1059_v23 = vadd.f32 %v2226_v60, %v1027_v53  ;;  %v1043_v33 = vmul.f32 %v1011_v36, %v787_v10  ;;  %1487 = vtanh.f32 %v932_v45  ;;  %v948_v49 = vmul.f32 0.7978846, %v916_v4  ;;  %v1482_v48 = vpop.eup %1481 }
 0x141   : > { %1105 = vst.msk [vmem:[%s1879_s14 + $0xc0] sm:$0xff] %vm1080_vm1, %v1072_v35  ;;  %v2116_v22 = vadd.f32 %v1874_v38, %v1706_v34  ;;  %v1025_v43 = vmul.f32 %v993_v46, %v769_v42  ;;  %v935_v21 = vmul.f32 0.7978846, %v903_v32  ;;  %v2122_v25 = vadd.f32 %v1706_v34, %v1883_v24 }
 0x142   : > { %1092 = vst.msk [vmem:[%s1879_s14 + $0x58] sm:$0xff] %vm1080_vm1, %v1059_v23  ;;  %v2126_v47 = vadd.f32 %v1706_v34, %v2227_v12  ;;  %v2228_v58 = vunpack.c.h.bf16 %v1720_v44  ;;  %v785_v3 = vmul.f32 0.5, %v2012_v6  ;;  %v1009_v41 = vadd.f32 1.0, %v1482_v48  ;;  %v1348_v34 = vld [vmem:[%s1675_s8 + $0x38] sm:$0xff]  }
 0x143   : > { %1489 = vtanh.f32 %v948_v49  ;;  %v2229_v28 = vunpack.c.h.bf16 %v1727_v51  ;;  %v823_v24 = vmul.f32 0.044715, %v2116_v22  ;;  %v805_v44 = vmul.f32 0.044715, %v2122_v25  ;;  %v2142_v6 = vld [vmem:[%s1675_s8 + $0x78] sm:$0xff]  }
 0x144   : > { %v1075_v38 = vadd.f32 %v2228_v58, %v1043_v33  ;;  %1491 = vtanh.f32 %v935_v21  ;;  %v1041_v55 = vmul.f32 %v1009_v41, %v785_v3  ;;  %v821_v10 = vmul.f32 0.044715, %v2126_v47 }
 0x145   : > { %v1057_v63 = vadd.f32 %v2229_v28, %v1025_v43  ;;  %v855_v18 = vmul.f32 %v823_v24, %v2116_v22  ;;  %v1484_v51 = vpop.eup %1483  ;;  %v2230_v15 = vunpack.c.h.bf16 %v1730_v52  ;;  %v837_v42 = vmul.f32 %v805_v44, %v2122_v25 }
 0x146   : > { %1108 = vst.msk [vmem:[%s1879_s14 + $0xd8] sm:$0xff] %vm1080_vm1, %v1075_v38  ;;  %v853_v26 = vmul.f32 %v821_v10, %v2126_v47  ;;  %v1308_v39 = vunpack.c.l.bf16 %v1348_v34  ;;  %v774_v9 = vmul.f32 0.5, %v2034_v40  ;;  %v998_v11 = vadd.f32 1.0, %v1484_v51 }
 0x147   : > { %1090 = vst.msk [vmem:[%s1879_s14 + $0x48] sm:$0xff] %vm1080_vm1, %v1057_v63  ;;  %v1073_v57 = vadd.f32 %v2230_v15, %v1041_v55  ;;  %v887_v30 = vmul.f32 %v855_v18, %v2116_v22  ;;  %v1340_v0 = vunpack.c.l.bf16 %v2142_v6  ;;  %v869_v52 = vmul.f32 %v837_v42, %v2122_v25 }
 0x148   : > { %v885_v8 = vmul.f32 %v853_v26, %v2126_v47  ;;  %v1030_v50 = vmul.f32 %v998_v11, %v774_v9  ;;  %v1304_v7 = vunpack.c.l.bf16 %v2148_v5  ;;  %v1336_v1 = vunpack.c.l.bf16 %v2151_v20 }
 0x149   : > { %1106 = vst.msk [vmem:[%s1879_s14 + $0xc8] sm:$0xff] %vm1080_vm1, %v1073_v57  ;;  %v1486_v14 = vpop.eup %1485  ;;  %v919_v31 = vadd.f32 %v887_v30, %v2116_v22  ;;  %v790_v37 = vmul.f32 0.5, %v2057_v54  ;;  %v901_v61 = vadd.f32 %v869_v52, %v2122_v25  ;;  %v772_v53 = vmul.f32 0.5, %v2066_v56 }
 0x14a   : > { %v1488_v40 = vpop.eup %1487  ;;  %v1014_v59 = vadd.f32 1.0, %v1486_v14  ;;  %v917_v62 = vadd.f32 %v885_v8, %v2126_v47  ;;  %v1062_v29 = vadd.f32 %v1308_v39, %v1030_v50  ;;  %v1309_v35 = vunpack.c.h.bf16 %v1348_v34 }
 0x14b   : > { %v996_v19 = vadd.f32 1.0, %v1488_v40  ;;  %v951_v13 = vmul.f32 0.7978846, %v919_v31  ;;  %v933_v36 = vmul.f32 0.7978846, %v901_v61  ;;  %v788_v60 = vmul.f32 0.5, %v2077_v16 }
 0x14c   : > { %v1046_v27 = vmul.f32 %v1014_v59, %v790_v37  ;;  %v949_v45 = vmul.f32 0.7978846, %v917_v62  ;;  %1095 = vst.msk [vmem:[%s1879_s14 + $0x70] sm:$0xff] %vm1080_vm1, %v1062_v29  ;;  %v775_v46 = vmul.f32 0.5, %v2084_v17  ;;  %v1341_v17 = vunpack.c.h.bf16 %v2142_v6 }
 0x14d   : > { %v1490_v2 = vpop.eup %1489  ;;  %v1028_v54 = vmul.f32 %v996_v19, %v772_v53  ;;  %1493 = vtanh.f32 %v951_v13  ;;  %v791_v58 = vmul.f32 0.5, %v2116_v22  ;;  %v1305_v41 = vunpack.c.h.bf16 %v2148_v5 }
 0x14e   : > { %v1492_v4 = vpop.eup %1491  ;;  %v1012_v23 = vadd.f32 1.0, %v1490_v2  ;;  %v1078_v56 = vadd.f32 %v1340_v0, %v1046_v27  ;;  %1495 = vtanh.f32 %v933_v36  ;;  %v773_v28 = vmul.f32 0.5, %v2122_v25 }
 0x14f   : > { %v999_v32 = vadd.f32 1.0, %v1492_v4  ;;  %v1060_v33 = vadd.f32 %v1304_v7, %v1028_v54  ;;  %1497 = vtanh.f32 %v949_v45  ;;  %v1337_v55 = vunpack.c.h.bf16 %v2151_v20 }
 0x150   : > { %v1044_v49 = vmul.f32 %v1012_v23, %v788_v60  ;;  %1111 = vst.msk [vmem:[%s1879_s14 + $0xf0] sm:$0xff] %vm1080_vm1, %v1078_v56  ;;  %v789_v34 = vmul.f32 0.5, %v2126_v47 }
 0x151   : > { %v1031_v48 = vmul.f32 %v999_v32, %v775_v46  ;;  %1093 = vst.msk [vmem:[%s1879_s14 + $0x60] sm:$0xff] %vm1080_vm1, %v1060_v33 }
 0x152   : > { %v1076_v43 = vadd.f32 %v1336_v1, %v1044_v49 }
 0x153   : > { %v1063_v21 = vadd.f32 %v1309_v35, %v1031_v48 }
 0x154   : > { %1109 = vst.msk [vmem:[%s1879_s14 + $0xe0] sm:$0xff] %vm1080_vm1, %v1076_v43 }
 0x155   : > { %1096 = vst.msk [vmem:[%s1879_s14 + $0x78] sm:$0xff] %vm1080_vm1, %v1063_v21 }
 0x157   : > { %v1494_v16 = vpop.eup %1493 }
 0x158   : > { %v1496_v12 = vpop.eup %1495  ;;  %v1015_v38 = vadd.f32 1.0, %v1494_v16 }
 0x159   : > { %v1498_v3 = vpop.eup %1497  ;;  %v997_v63 = vadd.f32 1.0, %v1496_v12 }
 0x15a   : > { %v1047_v24 = vmul.f32 %v1015_v38, %v791_v58  ;;  %v1013_v44 = vadd.f32 1.0, %v1498_v3 }
 0x15b   : > { %v1029_v10 = vmul.f32 %v997_v63, %v773_v28 }
 0x15c   : > { %v1079_v18 = vadd.f32 %v1341_v17, %v1047_v24  ;;  %v1045_v6 = vmul.f32 %v1013_v44, %v789_v34 }
 0x15d   : > { %v1061_v51 = vadd.f32 %v1305_v41, %v1029_v10 }
 0x15e   : > { %1112 = vst.msk [vmem:[%s1879_s14 + $0xf8] sm:$0xff] %vm1080_vm1, %v1079_v18  ;;  %v1077_v22 = vadd.f32 %v1337_v55, %v1045_v6 }
 0x15f   : > { %1094 = vst.msk [vmem:[%s1879_s14 + $0x68] sm:$0xff] %vm1080_vm1, %v1061_v51 }
 0x160   : > { %1110 = vst.msk [vmem:[%s1879_s14 + $0xe8] sm:$0xff] %vm1080_vm1, %v1077_v22 }
 0x161 PF: > { %s15_s20 = sadd.s32 1, %s1521_s20   ;;  %s2231_s18 = smov %s1517_s19 }
 0x162   : > { %p12_p5 = scmp.ge.s32.totalorder %s15_s20, 4   ;;  %s2232_s19 = smov %s2234_s21 }
 0x164   :  { %14 = sbr.rel (!%p12_p5) target bundleno = 2 (0x2), region = 76 }

// kernel: mbconv_forward.3
= control target key start
LH: loop header
LB: loop body
LE: loop exit
PB: predicated region body
PF: predicated region fallthrough
CT: control target
= control target key end

     0   :  { %vm224_vm0 = vcmask 1041408   ;;  %vm127_vm1 = vcmask 31744   ;;  %vm1349_vm2 = vcmask 125952   ;;  %vm2546_vm3 = vcmask 60416   ;;  %s5613_s1 = inlined_call_operand.vmem [shape: bf16[4,16], index: 1, kind: input, shape index: {}]   ;;  %s5614_s3 = inlined_call_operand.vmem [shape: bf16[4,8], index: 3, kind: input, shape index: {}]   ;;  %s5615_s0 = inlined_call_operand.vmem [shape: f32[512,4], index: 0, kind: input, shape index: {}]   ;;  %s5616_s2 = inlined_call_operand.vmem [shape: f32[1,16], index: 2, kind: input, shape index: {}]   ;;  %s5617_s4 = inlined_call_operand.vmem [shape: f32[1,8], index: 4, kind: input, shape index: {}]   ;;  %s5618_s5 = inlined_call_operand.vmem [shape: bf16[512,16], index: 5, kind: output, shape index: {0}]   ;;  %s5619_s6 = inlined_call_operand.vmem [shape: bf16[512,8], index: 6, kind: output, shape index: {1}]  }
   0x1   :  { %v119_v0 = vld [vmem:[%s5613_s1] sm:$0x3]  ;;  %v24_v5 = vld [vmem:[%s5615_s0 + $0x8] sm:$0xff]  ;;  %v25_v6 = vld [vmem:[%s5615_s0 + $0x10] sm:$0xff] }
   0x2   :  { %v1414_v1 = vld [vmem:[%s5614_s3] sm:$0x3]  ;;  %3139 = vmatprep.subr.msk.bf16.mxu0 %vm224_vm0, %v119_v0  ;;  %v226_v3 = vsel %vm224_vm0, %v119_v0, 0  ;;  %v26_v7 = vld [vmem:[%s5615_s0 + $0x18] sm:$0xff]  ;;  %v28_v11 = vld [vmem:[%s5615_s0 + $0x28] sm:$0xff] }
   0x3   :  { %v23_v2 = vld [vmem:[%s5615_s0] sm:$0xff]  ;;  %3140 = vmatprep.subr.msk.bf16.mxu1 %vm224_vm0, %v1414_v1  ;;  %v1423_v4 = vsel %vm224_vm0, %v1414_v1, 0  ;;  %3008 = vmatpush3.bf16.msra.mxu0 %v226_v3  ;;  %v88_v9 = vpack.c.bf16 %v26_v7, %v25_v6  ;;  %v29_v13 = vld [vmem:[%s5615_s0 + $0x30] sm:$0xff]  ;;  %v30_v14 = vld [vmem:[%s5615_s0 + $0x38] sm:$0xff] }
   0x4   :  { %3074 = vmatpush3.bf16.msra.mxu1 %v1423_v4  ;;  %v87_v8 = vpack.c.bf16 %v24_v5, %v23_v2  ;;  %v27_v10 = vld [vmem:[%s5615_s0 + $0x20] sm:$0xff]  ;;  %v32_v16 = vld [vmem:[%s5615_s0 + $0x48] sm:$0xff]  ;;  %v90_v17 = vpack.c.bf16 %v30_v14, %v29_v13  ;;  %v33_v19 = vld [vmem:[%s5615_s0 + $0x50] sm:$0xff] }
   0x5   :  { %v89_v12 = vpack.c.bf16 %v28_v11, %v27_v10  ;;  %v31_v15 = vld [vmem:[%s5615_s0 + $0x40] sm:$0xff]  ;;  %v34_v20 = vld [vmem:[%s5615_s0 + $0x58] sm:$0xff]  ;;  %v36_v22 = vld [vmem:[%s5615_s0 + $0x68] sm:$0xff] }
   0x6   :  { %3009 = vmatprep.mubr.msk.bf16.mxu0 %vm127_vm1, %v87_v8  ;;  %3075 = vmatprep.mubr.msk.bf16.mxu1 %vm127_vm1, %v87_v8  ;;  %v91_v18 = vpack.c.bf16 %v32_v16, %v31_v15  ;;  %v35_v21 = vld [vmem:[%s5615_s0 + $0x60] sm:$0xff]  ;;  %v92_v23 = vpack.c.bf16 %v34_v20, %v33_v19  ;;  %v37_v25 = vld [vmem:[%s5615_s0 + $0x70] sm:$0xff]  ;;  %v38_v26 = vld [vmem:[%s5615_s0 + $0x78] sm:$0xff] }
   0x7   :  { %3010 = vmatmul.mubr.msk.bf16.vlgmr.msra.gmra.mrb[0].mxu0 %vm127_vm1, %v88_v9  ;;  %3076 = vmatmul.mubr.msk.bf16.vlgmr.msra.gmra.mrb[0].mxu1 %vm127_vm1, %v88_v9  ;;  %v93_v24 = vpack.c.bf16 %v36_v22, %v35_v21  ;;  %v39_v27 = vld [vmem:[%s5615_s0 + $0x80] sm:$0xff]  ;;  %v40_v28 = vld [vmem:[%s5615_s0 + $0x88] sm:$0xff]  ;;  %v94_v29 = vpack.c.bf16 %v38_v26, %v37_v25  ;;  %v41_v31 = vld [vmem:[%s5615_s0 + $0x90] sm:$0xff] }
   0x8   :  { %3013 = vmatprep.mubr.msk.bf16.mxu0 %vm127_vm1, %v89_v12  ;;  %3079 = vmatprep.mubr.msk.bf16.mxu1 %vm127_vm1, %v89_v12  ;;  %v95_v30 = vpack.c.bf16 %v40_v28, %v39_v27  ;;  %v42_v32 = vld [vmem:[%s5615_s0 + $0x98] sm:$0xff]  ;;  %v43_v33 = vld [vmem:[%s5615_s0 + $0xa0] sm:$0xff]  ;;  %v44_v34 = vld [vmem:[%s5615_s0 + $0xa8] sm:$0xff] }
   0x9   :  { %v96_v35 = vpack.c.bf16 %v42_v32, %v41_v31  ;;  %v97_v36 = vpack.c.bf16 %v44_v34, %v43_v33  ;;  %v45_v37 = vld [vmem:[%s5615_s0 + $0xb0] sm:$0xff]  ;;  %v46_v38 = vld [vmem:[%s5615_s0 + $0xb8] sm:$0xff]  ;;  %v47_v39 = vld [vmem:[%s5615_s0 + $0xc0] sm:$0xff] }
   0xa   :  { %v48_v40 = vld [vmem:[%s5615_s0 + $0xc8] sm:$0xff]  ;;  %v98_v41 = vpack.c.bf16 %v46_v38, %v45_v37  ;;  %v49_v43 = vld [vmem:[%s5615_s0 + $0xd0] sm:$0xff]  ;;  %v50_v44 = vld [vmem:[%s5615_s0 + $0xd8] sm:$0xff] }
   0xb   :  { %v99_v42 = vpack.c.bf16 %v48_v40, %v47_v39  ;;  %v51_v45 = vld [vmem:[%s5615_s0 + $0xe0] sm:$0xff]  ;;  %v52_v46 = vld [vmem:[%s5615_s0 + $0xe8] sm:$0xff]  ;;  %v100_v47 = vpack.c.bf16 %v50_v44, %v49_v43  ;;  %v53_v49 = vld [vmem:[%s5615_s0 + $0xf0] sm:$0xff] }
   0xc   :  { %v101_v48 = vpack.c.bf16 %v52_v46, %v51_v45  ;;  %v54_v50 = vld [vmem:[%s5615_s0 + $0xf8] sm:$0xff]  ;;  %v55_v51 = vld [vmem:[%s5615_s0 + $0x100] sm:$0xff]  ;;  %v56_v52 = vld [vmem:[%s5615_s0 + $0x108] sm:$0xff] }
   0xd   :  { %v102_v53 = vpack.c.bf16 %v54_v50, %v53_v49  ;;  %v103_v54 = vpack.c.bf16 %v56_v52, %v55_v51  ;;  %v57_v55 = vld [vmem:[%s5615_s0 + $0x110] sm:$0xff]  ;;  %v58_v56 = vld [vmem:[%s5615_s0 + $0x118] sm:$0xff]  ;;  %v59_v57 = vld [vmem:[%s5615_s0 + $0x120] sm:$0xff] }
   0xe   :  { %v60_v58 = vld [vmem:[%s5615_s0 + $0x128] sm:$0xff]  ;;  %v104_v59 = vpack.c.bf16 %v58_v56, %v57_v55  ;;  %v61_v61 = vld [vmem:[%s5615_s0 + $0x130] sm:$0xff]  ;;  %v62_v62 = vld [vmem:[%s5615_s0 + $0x138] sm:$0xff] }
   0xf   :  { %3014 = vmatmul.mubr.msk.bf16.gmra.mrb[4].mxu0 %vm127_vm1, %v90_v17  ;;  %3080 = vmatmul.mubr.msk.bf16.gmra.mrb[4].mxu1 %vm127_vm1, %v90_v17  ;;  %v105_v60 = vpack.c.bf16 %v60_v58, %v59_v57  ;;  %v63_v63 = vld [vmem:[%s5615_s0 + $0x140] sm:$0xff]  ;;  %v64_v0 = vld [vmem:[%s5615_s0 + $0x148] sm:$0xff]  ;;  %v106_v1 = vpack.c.bf16 %v62_v62, %v61_v61  ;;  %v65_v3 = vld [vmem:[%s5615_s0 + $0x150] sm:$0xff] }
  0x10   :  { %3017 = vmatprep.mubr.msk.bf16.mxu0 %vm127_vm1, %v91_v18  ;;  %3083 = vmatprep.mubr.msk.bf16.mxu1 %vm127_vm1, %v91_v18  ;;  %v107_v2 = vpack.c.bf16 %v64_v0, %v63_v63  ;;  %v66_v4 = vld [vmem:[%s5615_s0 + $0x158] sm:$0xff]  ;;  %v67_v5 = vld [vmem:[%s5615_s0 + $0x160] sm:$0xff]  ;;  %v68_v6 = vld [vmem:[%s5615_s0 + $0x168] sm:$0xff] }
  0x11   :  { %v108_v7 = vpack.c.bf16 %v66_v4, %v65_v3  ;;  %v109_v8 = vpack.c.bf16 %v68_v6, %v67_v5  ;;  %v69_v9 = vld [vmem:[%s5615_s0 + $0x170] sm:$0xff]  ;;  %v70_v10 = vld [vmem:[%s5615_s0 + $0x178] sm:$0xff]  ;;  %v71_v11 = vld [vmem:[%s5615_s0 + $0x180] sm:$0xff] }
  0x12   :  { %v72_v12 = vld [vmem:[%s5615_s0 + $0x188] sm:$0xff]  ;;  %v110_v13 = vpack.c.bf16 %v70_v10, %v69_v9  ;;  %v73_v15 = vld [vmem:[%s5615_s0 + $0x190] sm:$0xff]  ;;  %v74_v16 = vld [vmem:[%s5615_s0 + $0x198] sm:$0xff] }
  0x13   :  { %v111_v14 = vpack.c.bf16 %v72_v12, %v71_v11  ;;  %v75_v17 = vld [vmem:[%s5615_s0 + $0x1a0] sm:$0xff]  ;;  %v76_v18 = vld [vmem:[%s5615_s0 + $0x1a8] sm:$0xff]  ;;  %v112_v19 = vpack.c.bf16 %v74_v16, %v73_v15  ;;  %v77_v21 = vld [vmem:[%s5615_s0 + $0x1b0] sm:$0xff] }
  0x14   :  { %v113_v20 = vpack.c.bf16 %v76_v18, %v75_v17  ;;  %v78_v22 = vld [vmem:[%s5615_s0 + $0x1b8] sm:$0xff]  ;;  %v81_v27 = vld [vmem:[%s5615_s0 + $0x1d0] sm:$0xff]  ;;  %v3708_v37 = vld [vmem:[%s5617_s4] ss:$0 sm:$0xff] }
  0x15   :  { %v114_v25 = vpack.c.bf16 %v78_v22, %v77_v21  ;;  %v82_v28 = vld [vmem:[%s5615_s0 + $0x1d8] sm:$0xff]  ;;  %v85_v33 = vld [vmem:[%s5615_s0 + $0x1f0] sm:$0xff] }
  0x16   :  { %v116_v31 = vpack.c.bf16 %v82_v28, %v81_v27  ;;  %v86_v34 = vld [vmem:[%s5615_s0 + $0x1f8] sm:$0xff] }
  0x17   :  { %3018 = vmatmul.mubr.msk.bf16.gmra.mrb[8].mxu0 %vm127_vm1, %v92_v23  ;;  %3084 = vmatmul.mubr.msk.bf16.gmra.mrb[8].mxu1 %vm127_vm1, %v92_v23  ;;  %v79_v23 = vld [vmem:[%s5615_s0 + $0x1c0] sm:$0xff] }
  0x18   :  { %3021 = vmatprep.mubr.msk.bf16.mxu0 %vm127_vm1, %v93_v24  ;;  %3087 = vmatprep.mubr.msk.bf16.mxu1 %vm127_vm1, %v93_v24  ;;  %v80_v24 = vld [vmem:[%s5615_s0 + $0x1c8] sm:$0xff] }
  0x19   :  { %v115_v26 = vpack.c.bf16 %v80_v24, %v79_v23 }
  0x1f   :  { %3022 = vmatmul.mubr.msk.bf16.gmra.mrb[12].mxu0 %vm127_vm1, %v94_v29  ;;  %3088 = vmatmul.mubr.msk.bf16.gmra.mrb[12].mxu1 %vm127_vm1, %v94_v29  ;;  %v83_v29 = vld [vmem:[%s5615_s0 + $0x1e0] sm:$0xff] }
  0x20   :  { %3025 = vmatprep.mubr.msk.bf16.mxu0 %vm127_vm1, %v95_v30  ;;  %3091 = vmatprep.mubr.msk.bf16.mxu1 %vm127_vm1, %v95_v30  ;;  %v84_v30 = vld [vmem:[%s5615_s0 + $0x1e8] sm:$0xff] }
  0x21   :  { %v117_v32 = vpack.c.bf16 %v84_v30, %v83_v29 }
  0x27   :  { %3026 = vmatmul.mubr.msk.bf16.gmra.mrb[16].mxu0 %vm127_vm1, %v96_v35  ;;  %3092 = vmatmul.mubr.msk.bf16.gmra.mrb[16].mxu1 %vm127_vm1, %v96_v35  ;;  %v118_v35 = vpack.c.bf16 %v86_v34, %v85_v33 }
  0x28   :  { %3029 = vmatprep.mubr.msk.bf16.mxu0 %vm127_vm1, %v97_v36  ;;  %3095 = vmatprep.mubr.msk.bf16.mxu1 %vm127_vm1, %v97_v36  ;;  %v3703_v36 = vld [vmem:[%s5616_s2] ss:$0 sm:$0xff] }
  0x2f   :  { %3030 = vmatmul.mubr.msk.bf16.gmra.mrb[20].mxu0 %vm127_vm1, %v98_v41  ;;  %3096 = vmatmul.mubr.msk.bf16.gmra.mrb[20].mxu1 %vm127_vm1, %v98_v41 }
  0x30   :  { %3033 = vmatprep.mubr.msk.bf16.mxu0 %vm127_vm1, %v99_v42  ;;  %3099 = vmatprep.mubr.msk.bf16.mxu1 %vm127_vm1, %v99_v42 }
  0x37   :  { %3034 = vmatmul.mubr.msk.bf16.gmra.mrb[24].mxu0 %vm127_vm1, %v100_v47  ;;  %3100 = vmatmul.mubr.msk.bf16.gmra.mrb[24].mxu1 %vm127_vm1, %v100_v47 }
  0x38   :  { %3037 = vmatprep.mubr.msk.bf16.mxu0 %vm127_vm1, %v101_v48  ;;  %3103 = vmatprep.mubr.msk.bf16.mxu1 %vm127_vm1, %v101_v48 }
  0x3f   :  { %3038 = vmatmul.mubr.msk.bf16.gmra.mrb[28].mxu0 %vm127_vm1, %v102_v53  ;;  %3104 = vmatmul.mubr.msk.bf16.gmra.mrb[28].mxu1 %vm127_vm1, %v102_v53 }
  0x40   :  { %3041 = vmatprep.mubr.msk.bf16.mxu0 %vm127_vm1, %v103_v54  ;;  %3107 = vmatprep.mubr.msk.bf16.mxu1 %vm127_vm1, %v103_v54 }
  0x47   :  { %3042 = vmatmul.mubr.msk.bf16.gmra.mrb[32].mxu0 %vm127_vm1, %v104_v59  ;;  %3108 = vmatmul.mubr.msk.bf16.gmra.mrb[32].mxu1 %vm127_vm1, %v104_v59 }
  0x48   :  { %3045 = vmatprep.mubr.msk.bf16.mxu0 %vm127_vm1, %v105_v60  ;;  %3111 = vmatprep.mubr.msk.bf16.mxu1 %vm127_vm1, %v105_v60 }
  0x4f   :  { %3046 = vmatmul.mubr.msk.bf16.gmra.mrb[36].mxu0 %vm127_vm1, %v106_v1  ;;  %3112 = vmatmul.mubr.msk.bf16.gmra.mrb[36].mxu1 %vm127_vm1, %v106_v1 }
  0x50   :  { %3049 = vmatprep.mubr.msk.bf16.mxu0 %vm127_vm1, %v107_v2  ;;  %3115 = vmatprep.mubr.msk.bf16.mxu1 %vm127_vm1, %v107_v2 }
  0x57   :  { %3050 = vmatmul.mubr.msk.bf16.gmra.mrb[40].mxu0 %vm127_vm1, %v108_v7  ;;  %3116 = vmatmul.mubr.msk.bf16.gmra.mrb[40].mxu1 %vm127_vm1, %v108_v7 }
  0x58   :  { %3053 = vmatprep.mubr.msk.bf16.mxu0 %vm127_vm1, %v109_v8  ;;  %3119 = vmatprep.mubr.msk.bf16.mxu1 %vm127_vm1, %v109_v8 }
  0x5f   :  { %3054 = vmatmul.mubr.msk.bf16.gmra.mrb[44].mxu0 %vm127_vm1, %v110_v13  ;;  %3120 = vmatmul.mubr.msk.bf16.gmra.mrb[44].mxu1 %vm127_vm1, %v110_v13 }
  0x60   :  { %3057 = vmatprep.mubr.msk.bf16.mxu0 %vm127_vm1, %v111_v14  ;;  %3123 = vmatprep.mubr.msk.bf16.mxu1 %vm127_vm1, %v111_v14 }
  0x67   :  { %3058 = vmatmul.mubr.msk.bf16.gmra.mrb[48].mxu0 %vm127_vm1, %v112_v19  ;;  %3124 = vmatmul.mubr.msk.bf16.gmra.mrb[48].mxu1 %vm127_vm1, %v112_v19 }
  0x68   :  { %3061 = vmatprep.mubr.msk.bf16.mxu0 %vm127_vm1, %v113_v20  ;;  %3127 = vmatprep.mubr.msk.bf16.mxu1 %vm127_vm1, %v113_v20 }
  0x6f   :  { %3062 = vmatmul.mubr.msk.bf16.gmra.mrb[52].mxu0 %vm127_vm1, %v114_v25  ;;  %3128 = vmatmul.mubr.msk.bf16.gmra.mrb[52].mxu1 %vm127_vm1, %v114_v25 }
  0x70   :  { %3065 = vmatprep.mubr.msk.bf16.mxu0 %vm127_vm1, %v115_v26  ;;  %3131 = vmatprep.mubr.msk.bf16.mxu1 %vm127_vm1, %v115_v26 }
  0x77   :  { %3066 = vmatmul.mubr.msk.bf16.gmra.mrb[56].mxu0 %vm127_vm1, %v116_v31  ;;  %3132 = vmatmul.mubr.msk.bf16.gmra.mrb[56].mxu1 %vm127_vm1, %v116_v31 }
  0x78   :  { %3069 = vmatprep.mubr.msk.bf16.mxu0 %vm127_vm1, %v117_v32  ;;  %3135 = vmatprep.mubr.msk.bf16.mxu1 %vm127_vm1, %v117_v32 }
  0x7f   :  { %3070 = vmatmul.mubr.msk.bf16.gmra.mrb[60].mxu0 %vm127_vm1, %v118_v35  ;;  %3136 = vmatmul.mubr.msk.bf16.gmra.mrb[60].mxu1 %vm127_vm1, %v118_v35 }
  0xda   :  { %v3011_v38 = vpop.f32.mrb[0].mxu0  ;;  %v3077_v39 = vpop.f32.mrb[0].mxu1 }
  0xdb   :  { %v271_v40 = vadd.f32 %v3011_v38, %v3703_v36  ;;  %v1468_v41 = vadd.f32 %v3077_v39, %v3708_v37  ;;  %v262_v42 = vpop.f32.mrb[1].mxu0  ;;  %v1459_v43 = vpop.f32.mrb[1].mxu1 }
  0xdc   :  { %v263_v44 = vadd.f32 %v3703_v36, %v262_v42  ;;  %v1460_v45 = vadd.f32 %v3708_v37, %v1459_v43  ;;  %v3012_v46 = vpop.f32.mrb[2].mxu0  ;;  %v3078_v47 = vpop.f32.mrb[2].mxu1 }
  0xdd   :  { %v583_v48 = vmul.f32 0.044715, %v271_v40  ;;  %v1780_v49 = vmul.f32 0.044715, %v1468_v41  ;;  %v274_v54 = vadd.f32 %v3012_v46, %v3703_v36  ;;  %v3716_v55 = vadd.f32 %v3078_v47, %v3708_v37  ;;  %v265_v56 = vpop.f32.mrb[3].mxu0  ;;  %v1462_v57 = vpop.f32.mrb[3].mxu1 }
  0xde   :  { %v581_v50 = vmul.f32 0.044715, %v263_v44  ;;  %v1778_v51 = vmul.f32 0.044715, %v1460_v45  ;;  %v3719_v60 = vadd.f32 %v3703_v36, %v265_v56  ;;  %v3721_v61 = vmul.f32 0.5, %v271_v40 }
  0xdf   :  { %v647_v52 = vmul.f32 %v583_v48, %v271_v40  ;;  %v1844_v53 = vmul.f32 %v1780_v49, %v1468_v41  ;;  %v584_v0 = vmul.f32 0.044715, %v274_v54  ;;  %v3723_v1 = vmul.f32 0.5, %v1468_v41 }
  0xe0   :  { %v645_v58 = vmul.f32 %v581_v50, %v263_v44  ;;  %v1842_v59 = vmul.f32 %v1778_v51, %v1460_v45  ;;  %v1781_v4 = vmul.f32 0.044715, %v3716_v55  ;;  %v3727_v10 = vadd.f32 %v3708_v37, %v1462_v57 }
  0xe1   :  { %v711_v62 = vmul.f32 %v647_v52, %v271_v40  ;;  %v1908_v63 = vmul.f32 %v1844_v53, %v1468_v41  ;;  %v648_v9 = vmul.f32 %v584_v0, %v274_v54  ;;  %v582_v16 = vmul.f32 0.044715, %v3719_v60 }
  0xe2   :  { %v709_v2 = vmul.f32 %v645_v58, %v263_v44  ;;  %v1906_v3 = vmul.f32 %v1842_v59, %v1460_v45  ;;  %v3015_v5 = vpop.f32.mrb[4].mxu0  ;;  %v3081_v6 = vpop.f32.mrb[4].mxu1  ;;  %v1845_v15 = vmul.f32 %v1781_v4, %v3716_v55  ;;  %v3733_v21 = vmul.f32 0.5, %v263_v44 }
  0xe3   :  { %v775_v7 = vadd.f32 %v711_v62, %v271_v40  ;;  %v1972_v8 = vadd.f32 %v1908_v63, %v1468_v41  ;;  %v278_v11 = vpop.f32.mrb[5].mxu0  ;;  %v1475_v12 = vpop.f32.mrb[5].mxu1  ;;  %v712_v22 = vmul.f32 %v648_v9, %v274_v54  ;;  %v646_v27 = vmul.f32 %v582_v16, %v3719_v60 }
  0xe4   :  { %v773_v13 = vadd.f32 %v709_v2, %v263_v44  ;;  %v1970_v14 = vadd.f32 %v1906_v3, %v1460_v45  ;;  %v3016_v17 = vpop.f32.mrb[6].mxu0  ;;  %v3731_v18 = vpop.f32.mrb[6].mxu1  ;;  %v1909_v26 = vmul.f32 %v1845_v15, %v3716_v55  ;;  %v1779_v30 = vmul.f32 0.044715, %v3727_v10 }
  0xe5   :  { %v839_v19 = vmul.f32 0.7978846, %v775_v7  ;;  %v2036_v20 = vmul.f32 0.7978846, %v1972_v8  ;;  %v3735_v23 = vpop.f32.mrb[7].mxu0  ;;  %v3739_v28 = vpop.f32.mrb[7].mxu1  ;;  %v776_v29 = vadd.f32 %v712_v22, %v274_v54  ;;  %v287_v31 = vadd.f32 %v3015_v5, %v3703_v36 }
  0xe6   :  { %v837_v24 = vmul.f32 0.7978846, %v773_v13  ;;  %v2034_v25 = vmul.f32 0.7978846, %v1970_v14  ;;  %v1973_v32 = vadd.f32 %v1909_v26, %v3716_v55  ;;  %v710_v33 = vmul.f32 %v646_v27, %v3719_v60 }
  0xe7   :  { %3141 = vtanh.f32 %v839_v19  ;;  %v3746_v34 = vadd.f32 %v3081_v6, %v3708_v37  ;;  %v3748_v35 = vmul.f32 0.5, %v1460_v45  ;;  %v840_v38 = vmul.f32 0.7978846, %v776_v29 }
  0xe8   :  { %3143 = vtanh.f32 %v2036_v20  ;;  %v1843_v39 = vmul.f32 %v1779_v30, %v3727_v10  ;;  %v2037_v40 = vmul.f32 0.7978846, %v1973_v32  ;;  %v774_v41 = vadd.f32 %v710_v33, %v3719_v60 }
  0xe9   :  { %3145 = vtanh.f32 %v837_v24  ;;  %v587_v42 = vmul.f32 0.044715, %v287_v31  ;;  %v3756_v46 = vmul.f32 0.5, %v274_v54  ;;  %v1784_v45 = vmul.f32 0.044715, %v3746_v34 }
  0xea   :  { %3147 = vtanh.f32 %v2034_v25  ;;  %v3752_v43 = vpop.f32.mrb[8].mxu0  ;;  %v3754_v44 = vpop.f32.mrb[8].mxu1  ;;  %v1907_v47 = vmul.f32 %v1843_v39, %v3727_v10  ;;  %v838_v50 = vmul.f32 0.7978846, %v774_v41  ;;  %v3765_v52 = vadd.f32 %v3703_v36, %v278_v11 }
  0xeb   :  { %3149 = vtanh.f32 %v840_v38  ;;  %v3760_v48 = vpop.f32.mrb[9].mxu0  ;;  %v3762_v49 = vpop.f32.mrb[9].mxu1  ;;  %v651_v51 = vmul.f32 %v587_v42, %v287_v31  ;;  %v1848_v57 = vmul.f32 %v1784_v45, %v3746_v34  ;;  %v3774_v58 = vadd.f32 %v3708_v37, %v1475_v12 }
  0xec   :  { %3151 = vtanh.f32 %v2037_v40  ;;  %v3767_v53 = vpop.f32.mrb[10].mxu0  ;;  %v3769_v56 = vpop.f32.mrb[10].mxu1  ;;  %v1971_v54 = vadd.f32 %v1907_v47, %v3727_v10  ;;  %v3777_v59 = vadd.f32 %v3016_v17, %v3703_v36  ;;  %v3784_v0 = vmul.f32 0.5, %v3716_v55 }
  0xed   :  { %v3779_v62 = vpop.f32.mrb[11].mxu0  ;;  %v3781_v63 = vpop.f32.mrb[11].mxu1  ;;  %3153 = vtanh.f32 %v838_v50  ;;  %v715_v2 = vmul.f32 %v651_v51, %v287_v31  ;;  %v585_v3 = vmul.f32 0.044715, %v3765_v52  ;;  %v3788_v4 = vmul.f32 0.5, %v3719_v60 }
  0xee   :  { %v2035_v5 = vmul.f32 0.7978846, %v1971_v54  ;;  %v1912_v6 = vmul.f32 %v1848_v57, %v3746_v34  ;;  %v1782_v7 = vmul.f32 0.044715, %v3774_v58  ;;  %v3793_v8 = vmul.f32 0.5, %v3727_v10 }
  0xef   :  { %v779_v9 = vadd.f32 %v715_v2, %v287_v31  ;;  %v649_v11 = vmul.f32 %v585_v3, %v3765_v52  ;;  %v588_v55 = vmul.f32 0.044715, %v3777_v59  ;;  %v3797_v13 = vmul.f32 0.5, %v287_v31 }
  0xf0   :  { %3155 = vtanh.f32 %v2035_v5  ;;  %v1976_v60 = vadd.f32 %v1912_v6, %v3746_v34  ;;  %v1846_v14 = vmul.f32 %v1782_v7, %v3774_v58  ;;  %v3804_v10 = vadd.f32 %v3731_v18, %v3708_v37 }
  0xf1   :  { %v3142_v12 = vpop.eup %3141  ;;  %v843_v17 = vmul.f32 0.7978846, %v779_v9  ;;  %v713_v19 = vmul.f32 %v649_v11, %v3765_v52  ;;  %v652_v29 = vmul.f32 %v588_v55, %v3777_v59 }
  0xf2   :  { %v3144_v15 = vpop.eup %3143  ;;  %v967_v16 = vadd.f32 1.0, %v3142_v12  ;;  %v3806_v20 = vpop.f32.mrb[12].mxu0  ;;  %v2040_v26 = vmul.f32 0.7978846, %v1976_v60  ;;  %v1910_v27 = vmul.f32 %v1846_v14, %v3774_v58 }
  0xf3   :  { %v3808_v22 = vpop.f32.mrb[12].mxu1  ;;  %v3146_v24 = vpop.eup %3145  ;;  %v2164_v25 = vadd.f32 1.0, %v3144_v15  ;;  %3157 = vtanh.f32 %v843_v17  ;;  %v777_v38 = vadd.f32 %v713_v19, %v3765_v52  ;;  %v716_v12 = vmul.f32 %v652_v29, %v3777_v59 }
  0xf4   :  { %v3812_v30 = vpop.f32.mrb[13].mxu0  ;;  %v3814_v31 = vpop.f32.mrb[13].mxu1  ;;  %v1031_v33 = vmul.f32 %v967_v16, %v3721_v61  ;;  %v965_v18 = vadd.f32 1.0, %v3146_v24  ;;  %3159 = vtanh.f32 %v2040_v26  ;;  %v1974_v45 = vadd.f32 %v1910_v27, %v3774_v58 }
  0xf5   :  { %v3148_v32 = vpop.eup %3147  ;;  %v3818_v39 = vpop.f32.mrb[14].mxu0  ;;  %v2228_v42 = vmul.f32 %v2164_v25, %v3723_v1  ;;  %v841_v3 = vmul.f32 0.7978846, %v777_v38  ;;  %v1785_v15 = vmul.f32 0.044715, %v3804_v10  ;;  %v3849_v16 = vadd.f32 %v3703_v36, %v3735_v23 }
  0xf6   :  { %v3820_v40 = vpop.f32.mrb[14].mxu1  ;;  %v3150_v41 = vpop.eup %3149  ;;  %v2162_v47 = vadd.f32 1.0, %v3148_v32  ;;  %v2815_v54 = vpack.c.bf16 %v1031_v33, %v1031_v33  ;;  %v1029_v57 = vmul.f32 %v965_v18, %v3733_v21  ;;  %v2038_v9 = vmul.f32 0.7978846, %v1974_v45 }
  0xf7   :  { %v3824_v50 = vpop.f32.mrb[15].mxu0  ;;  %v3826_v51 = vpop.f32.mrb[15].mxu1  ;;  %v968_v2 = vadd.f32 1.0, %v3150_v41  ;;  %v2879_v5 = vpack.c.bf16 %v2228_v42, %v2228_v42  ;;  %3161 = vtanh.f32 %v841_v3  ;;  %v3862_v26 = vadd.f32 %v3708_v37, %v3739_v28 }
  0xf8   :  { %v3152_v61 = vpop.eup %3151  ;;  %v2226_v6 = vmul.f32 %v2162_v47, %v3748_v35  ;;  %1352 = vst.msk [vmem:[%s5618_s5 + $0x8] sm:$0xf] %vm1349_vm2, %v2815_v54  ;;  %v2813_v11 = vpack.c.bf16 %v1029_v57, %v1029_v57  ;;  %3163 = vtanh.f32 %v2038_v9  ;;  %v3866_v23 = vadd.f32 %v3752_v43, %v3703_v36 }
  0xf9   :  { %v2165_v7 = vadd.f32 1.0, %v3152_v61  ;;  %v3154_v1 = vpop.eup %3153  ;;  %v1032_v55 = vmul.f32 %v968_v2, %v3756_v46  ;;  %2549 = vst.msk [vmem:[%s5619_s6 + $0x8] sm:$0xf] %vm2546_vm3, %v2879_v5  ;;  %v780_v46 = vadd.f32 %v716_v12, %v3777_v59  ;;  %v1849_v28 = vmul.f32 %v1785_v15, %v3804_v10 }
  0xfa   :  { %v2877_v21 = vpack.c.bf16 %v2226_v6, %v2226_v6  ;;  %v966_v60 = vadd.f32 1.0, %v3154_v1  ;;  %1350 = vst.msk [vmem:[%s5618_s5] sm:$0xf] %vm1349_vm2, %v2813_v11  ;;  %v3851_v17 = vpop.f32.mrb[16].mxu0  ;;  %v3853_v19 = vpop.f32.mrb[16].mxu1  ;;  %v521_v41 = vmul.f32 0.5, %v3765_v52  ;;  %v3906_v1 = vadd.f32 %v3754_v44, %v3708_v37 }
  0xfb   :  { %v2229_v35 = vmul.f32 %v2165_v7, %v3784_v0  ;;  %v2816_v14 = vpack.c.bf16 %v1032_v55, %v1032_v55  ;;  %v3156_v0 = vpop.eup %3155  ;;  %v3868_v27 = vpop.f32.mrb[17].mxu0  ;;  %v844_v33 = vmul.f32 0.7978846, %v780_v46  ;;  %v586_v42 = vmul.f32 0.044715, %v3849_v16 }
  0xfc   :  { %2547 = vst.msk [vmem:[%s5619_s6] sm:$0xf] %vm2546_vm3, %v2877_v21  ;;  %v1030_v25 = vmul.f32 %v966_v60, %v3788_v4  ;;  %v3870_v29 = vpop.f32.mrb[17].mxu1  ;;  %v2163_v32 = vadd.f32 1.0, %v3156_v0  ;;  %v1720_v4 = vmul.f32 0.5, %v3746_v34  ;;  %v3878_v18 = vpop.f32.mrb[18].mxu0  ;;  %v1913_v57 = vmul.f32 %v1849_v28, %v3804_v10 }
  0xfd   :  { %v2880_v24 = vpack.c.bf16 %v2229_v35, %v2229_v35  ;;  %1353 = vst.msk [vmem:[%s5618_s5 + $0xc] sm:$0xf] %vm1349_vm2, %v2816_v14  ;;  %v3880_v38 = vpop.f32.mrb[18].mxu1  ;;  %v1783_v47 = vmul.f32 0.044715, %v3862_v26  ;;  %v3889_v34 = vpop.f32.mrb[19].mxu0  ;;  %3165 = vtanh.f32 %v844_v33  ;;  %v650_v5 = vmul.f32 %v586_v42, %v3849_v16 }
  0xfe   :  { %v2814_v43 = vpack.c.bf16 %v1030_v25, %v1030_v25  ;;  %v3158_v45 = vpop.eup %3157  ;;  %v2227_v61 = vmul.f32 %v2163_v32, %v3793_v8  ;;  %v1718_v54 = vmul.f32 0.5, %v3774_v58  ;;  %v3894_v2 = vpop.f32.mrb[19].mxu1  ;;  %v591_v8 = vmul.f32 0.044715, %v3866_v23 }
  0xff   :  { %2550 = vst.msk [vmem:[%s5619_s6 + $0xc] sm:$0xf] %vm2546_vm3, %v2880_v24  ;;  %v3160_v3 = vpop.eup %3159  ;;  %v971_v52 = vadd.f32 1.0, %v3158_v45  ;;  %v1847_v6 = vmul.f32 %v1783_v47, %v3862_v26  ;;  %v1977_v9 = vadd.f32 %v1913_v57, %v3804_v10  ;;  %v714_v55 = vmul.f32 %v650_v5, %v3849_v16 }
 0x100   :  { %1351 = vst.msk [vmem:[%s5618_s5 + $0x4] sm:$0xf] %vm1349_vm2, %v2814_v43  ;;  %v2878_v7 = vpack.c.bf16 %v2227_v61, %v2227_v61  ;;  %v2168_v58 = vadd.f32 1.0, %v3160_v3  ;;  %v655_v21 = vmul.f32 %v591_v8, %v3866_v23  ;;  %v524_v14 = vmul.f32 0.5, %v3777_v59 }
 0x101   :  { %v1035_v11 = vmul.f32 %v971_v52, %v3797_v13  ;;  %v1911_v12 = vmul.f32 %v1847_v6, %v3862_v26  ;;  %v3162_v35 = vpop.eup %3161  ;;  %v2041_v46 = vmul.f32 0.7978846, %v1977_v9  ;;  %v1788_v44 = vmul.f32 0.044715, %v3906_v1 }
 0x102   :  { %2548 = vst.msk [vmem:[%s5619_s6 + $0x4] sm:$0xf] %vm2546_vm3, %v2878_v7  ;;  %v2232_v60 = vmul.f32 %v2168_v58, %v1720_v4  ;;  %v3918_v15 = vpop.f32.mrb[20].mxu0  ;;  %v3164_v13 = vpop.eup %3163  ;;  %v969_v24 = vadd.f32 1.0, %v3162_v35  ;;  %v778_v25 = vadd.f32 %v714_v55, %v3849_v16  ;;  %v719_v59 = vmul.f32 %v655_v21, %v3866_v23 }
 0x103   :  { %v2819_v0 = vpack.c.bf16 %v1035_v11, %v1035_v11  ;;  %v1975_v32 = vadd.f32 %v1911_v12, %v3862_v26  ;;  %v3922_v33 = vpop.f32.mrb[20].mxu1  ;;  %v3924_v28 = vpop.f32.mrb[21].mxu0  ;;  %v2166_v4 = vadd.f32 1.0, %v3164_v13  ;;  %3167 = vtanh.f32 %v2041_v46 }
 0x104   :  { %v2883_v43 = vpack.c.bf16 %v2232_v60, %v2232_v60  ;;  %v3927_v42 = vpop.f32.mrb[21].mxu1  ;;  %v3929_v47 = vpop.f32.mrb[22].mxu0  ;;  %v1033_v45 = vmul.f32 %v969_v24, %v521_v41  ;;  %v842_v61 = vmul.f32 0.7978846, %v778_v25  ;;  %v1852_v3 = vmul.f32 %v1788_v44, %v3906_v1 }
 0x105   :  { %1356 = vst.msk [vmem:[%s5618_s5 + $0x18] sm:$0xf] %vm1349_vm2, %v2819_v0  ;;  %v2039_v57 = vmul.f32 0.7978846, %v1975_v32  ;;  %v3936_v52 = vpop.f32.mrb[22].mxu1  ;;  %v3938_v5 = vpop.f32.mrb[23].mxu0  ;;  %v2230_v6 = vmul.f32 %v2166_v4, %v1718_v54  ;;  %v783_v8 = vadd.f32 %v719_v59, %v3866_v23  ;;  %v295_v7 = vadd.f32 %v3703_v36, %v3760_v48 }
 0x106   :  { %2553 = vst.msk [vmem:[%s5619_s6 + $0x18] sm:$0xf] %vm2546_vm3, %v2883_v43  ;;  %v3949_v41 = vadd.f32 %v3708_v37, %v3762_v49  ;;  %v3951_v58 = vpop.f32.mrb[23].mxu1  ;;  %v2817_v9 = vpack.c.bf16 %v1033_v45, %v1033_v45  ;;  %3169 = vtanh.f32 %v842_v61  ;;  %v1916_v11 = vmul.f32 %v1852_v3, %v3906_v1 }
 0x107   :  { %v3956_v55 = vadd.f32 %v3767_v53, %v3703_v36  ;;  %v3166_v54 = vpop.eup %3165  ;;  %v2881_v12 = vpack.c.bf16 %v2230_v6, %v2230_v6  ;;  %v1721_v21 = vmul.f32 0.5, %v3804_v10  ;;  %3171 = vtanh.f32 %v2039_v57 }
 0x108   :  { %v847_v48 = vmul.f32 0.7978846, %v783_v8  ;;  %1354 = vst.msk [vmem:[%s5618_s5 + $0x10] sm:$0xf] %vm1349_vm2, %v2817_v9  ;;  %v972_v49 = vadd.f32 1.0, %v3166_v54  ;;  %v522_v35 = vmul.f32 0.5, %v3849_v16  ;;  %v1980_v60 = vadd.f32 %v1916_v11, %v3906_v1 }
 0x109   :  { %v589_v46 = vmul.f32 0.044715, %v295_v7  ;;  %2551 = vst.msk [vmem:[%s5619_s6 + $0x10] sm:$0xf] %vm2546_vm3, %v2881_v12  ;;  %v3970_v53 = vmul.f32 0.5, %v3862_v26  ;;  %v3978_v25 = vadd.f32 %v3769_v56, %v3708_v37  ;;  %v3988_v59 = vadd.f32 %v3703_v36, %v3779_v62 }
 0x10a   :  { %3173 = vtanh.f32 %v847_v48  ;;  %v1786_v10 = vmul.f32 0.044715, %v3949_v41  ;;  %v592_v44 = vmul.f32 0.044715, %v3956_v55  ;;  %v3974_v13 = vpop.f32.mrb[24].mxu0  ;;  %v1036_v0 = vmul.f32 %v972_v49, %v524_v14  ;;  %v3980_v32 = vpop.f32.mrb[24].mxu1 }
 0x10b   :  { %v2044_v16 = vmul.f32 0.7978846, %v1980_v60  ;;  %v653_v24 = vmul.f32 %v589_v46, %v295_v7  ;;  %v3982_v43 = vpop.f32.mrb[25].mxu0  ;;  %v3992_v14 = vadd.f32 %v3708_v37, %v3781_v63  ;;  %v3994_v45 = vpop.f32.mrb[25].mxu1  ;;  %v527_v57 = vmul.f32 0.5, %v3866_v23 }
 0x10c   :  { %v1850_v26 = vmul.f32 %v1786_v10, %v3949_v41  ;;  %v656_v4 = vmul.f32 %v592_v44, %v3956_v55  ;;  %v3996_v56 = vpop.f32.mrb[26].mxu0  ;;  %v2820_v61 = vpack.c.bf16 %v1036_v0, %v1036_v0  ;;  %v3999_v6 = vpop.f32.mrb[26].mxu1  ;;  %v4004_v62 = vmul.f32 0.5, %v3906_v1 }
 0x10d   :  { %3175 = vtanh.f32 %v2044_v16  ;;  %v717_v3 = vmul.f32 %v653_v24, %v295_v7  ;;  %v4001_v8 = vpop.f32.mrb[27].mxu0  ;;  %v3168_v9 = vpop.eup %3167  ;;  %v1789_v54 = vmul.f32 0.044715, %v3978_v25  ;;  %v4015_v48 = vmul.f32 0.5, %v295_v7 }
 0x10e   :  { %v1914_v63 = vmul.f32 %v1850_v26, %v3949_v41  ;;  %v720_v11 = vmul.f32 %v656_v4, %v3956_v55  ;;  %v4009_v12 = vpop.f32.mrb[27].mxu1  ;;  %1357 = vst.msk [vmem:[%s5618_s5 + $0x1c] sm:$0xf] %vm1349_vm2, %v2820_v61  ;;  %v2169_v23 = vadd.f32 1.0, %v3168_v9  ;;  %v590_v1 = vmul.f32 0.044715, %v3988_v59 }
 0x10f   :  { %5620 = vst [vmem:[#allocation2_spill] sm:$0xff] %v4009_v12  ;;  %v781_v49 = vadd.f32 %v717_v3, %v295_v7  ;;  %v1853_v10 = vmul.f32 %v1789_v54, %v3978_v25  ;;  %v1787_v44 = vmul.f32 0.044715, %v3992_v14  ;;  %v4025_v4 = vadd.f32 %v3806_v20, %v3703_v36 }
 0x110   :  { %v1978_v60 = vadd.f32 %v1914_v63, %v3949_v41  ;;  %v784_v46 = vadd.f32 %v720_v11, %v3956_v55  ;;  %v3170_v0 = vpop.eup %3169  ;;  %v2233_v16 = vmul.f32 %v2169_v23, %v1721_v21  ;;  %v654_v26 = vmul.f32 %v590_v1, %v3988_v59 }
 0x111   :  { %v845_v24 = vmul.f32 0.7978846, %v781_v49  ;;  %v3172_v7 = vpop.eup %3171  ;;  %v970_v61 = vadd.f32 1.0, %v3170_v0  ;;  %v1917_v63 = vmul.f32 %v1853_v10, %v3978_v25 }
 0x112   :  { %v2042_v3 = vmul.f32 0.7978846, %v1978_v60  ;;  %v848_v9 = vmul.f32 0.7978846, %v784_v46  ;;  %v4028_v11 = vpop.f32.mrb[28].mxu0  ;;  %v2884_v54 = vpack.c.bf16 %v2233_v16, %v2233_v16  ;;  %v2167_v12 = vadd.f32 1.0, %v3172_v7 }
 0x113   :  { %3177 = vtanh.f32 %v845_v24  ;;  %v718_v21 = vmul.f32 %v654_v26, %v3988_v59  ;;  %v4031_v23 = vpop.f32.mrb[28].mxu1  ;;  %v4033_v49 = vpop.f32.mrb[29].mxu0  ;;  %v1034_v20 = vmul.f32 %v970_v61, %v522_v35  ;;  %v1981_v0 = vadd.f32 %v1917_v63, %v3978_v25 }
 0x114   :  { %5621 = vst [vmem:[#allocation3_spill] sm:$0xff] %v4033_v49  ;;  %v3174_v1 = vpop.eup %3173  ;;  %3179 = vtanh.f32 %v2042_v3  ;;  %v1851_v60 = vmul.f32 %v1787_v44, %v3992_v14  ;;  %v4037_v46 = vpop.f32.mrb[29].mxu1  ;;  %2554 = vst.msk [vmem:[%s5619_s6 + $0x1c] sm:$0xf] %vm2546_vm3, %v2884_v54  ;;  %v2231_v16 = vmul.f32 %v2167_v12, %v3970_v53  ;;  %v1722_v61 = vmul.f32 0.5, %v3949_v41 }
 0x115   :  { %5622 = vst [vmem:[#allocation4_spill] sm:$0xff] %v4037_v46  ;;  %v4039_v10 = vpop.f32.mrb[30].mxu0  ;;  %v975_v24 = vadd.f32 1.0, %v3174_v1  ;;  %3181 = vtanh.f32 %v848_v9  ;;  %v782_v35 = vadd.f32 %v718_v21, %v3988_v59  ;;  %v4047_v26 = vpop.f32.mrb[30].mxu1  ;;  %v2818_v44 = vpack.c.bf16 %v1034_v20, %v1034_v20 }
 0x116   :  { %5623 = vst [vmem:[#allocation5_spill] sm:$0xff] %v4039_v10  ;;  %v4049_v7 = vpop.f32.mrb[31].mxu0  ;;  %v2045_v3 = vmul.f32 0.7978846, %v1981_v0  ;;  %v1915_v63 = vmul.f32 %v1851_v60, %v3992_v14  ;;  %v4053_v10 = vpop.f32.mrb[31].mxu1  ;;  %v2882_v54 = vpack.c.bf16 %v2231_v16, %v2231_v16  ;;  %v4063_v21 = vadd.f32 %v3808_v22, %v3708_v37 }
 0x117   :  { %5624 = vst [vmem:[#allocation6_spill] sm:$0xff] %v4053_v10  ;;  %v3176_v46 = vpop.eup %3175  ;;  %v1039_v49 = vmul.f32 %v975_v24, %v527_v57  ;;  %v846_v53 = vmul.f32 0.7978846, %v782_v35  ;;  %v595_v12 = vmul.f32 0.044715, %v4025_v4  ;;  %v4072_v20 = vadd.f32 %v3703_v36, %v3812_v30 }
 0x118   :  { %1355 = vst.msk [vmem:[%s5618_s5 + $0x14] sm:$0xf] %vm1349_vm2, %v2818_v44  ;;  %v2172_v9 = vadd.f32 1.0, %v3176_v46  ;;  %3183 = vtanh.f32 %v2045_v3  ;;  %v1979_v41 = vadd.f32 %v1915_v63, %v3992_v14  ;;  %v528_v60 = vmul.f32 0.5, %v3956_v55 }
 0x119   :  { %2552 = vst.msk [vmem:[%s5619_s6 + $0x14] sm:$0xf] %vm2546_vm3, %v2882_v54  ;;  %v2823_v57 = vpack.c.bf16 %v1039_v49, %v1039_v49  ;;  %3185 = vtanh.f32 %v846_v53  ;;  %v659_v1 = vmul.f32 %v595_v12, %v4025_v4  ;;  %v1792_v22 = vmul.f32 0.044715, %v4063_v21 }
 0x11a   :  { %v2236_v0 = vmul.f32 %v2172_v9, %v4004_v62  ;;  %v2043_v46 = vmul.f32 0.7978846, %v1979_v41  ;;  %v4077_v16 = vpop.f32.mrb[32].mxu0  ;;  %v1725_v49 = vmul.f32 0.5, %v3978_v25  ;;  %v593_v30 = vmul.f32 0.044715, %v4072_v20 }
 0x11b   :  { %5625 = vst [vmem:[#allocation7_spill] sm:$0xff] %v4077_v16  ;;  %1360 = vst.msk [vmem:[%s5618_s5 + $0x28] sm:$0xf] %vm1349_vm2, %v2823_v57  ;;  %v723_v24 = vmul.f32 %v659_v1, %v4025_v4  ;;  %v4088_v62 = vadd.f32 %v3708_v37, %v3814_v31  ;;  %v4090_v55 = vpop.f32.mrb[32].mxu1  ;;  %v4092_v35 = vpop.f32.mrb[33].mxu0  ;;  %v1856_v3 = vmul.f32 %v1792_v22, %v4063_v21  ;;  %v526_v31 = vmul.f32 0.5, %v3988_v59 }
 0x11c   :  { %5626 = vst [vmem:[#allocation8_spill] sm:$0xff] %v4090_v55  ;;  %5627 = vst [vmem:[#allocation9_spill] sm:$0xff] %v4092_v35  ;;  %v2887_v44 = vpack.c.bf16 %v2236_v0, %v2236_v0  ;;  %3187 = vtanh.f32 %v2043_v46  ;;  %v4097_v63 = vadd.f32 %v3818_v39, %v3703_v36  ;;  %v4099_v25 = vpop.f32.mrb[33].mxu1  ;;  %v4101_v54 = vpop.f32.mrb[34].mxu0  ;;  %v657_v9 = vmul.f32 %v593_v30, %v4072_v20 }
 0x11d   :  { %5628 = vst [vmem:[#allocation10_spill] sm:$0xff] %v4099_v25  ;;  %5629 = vst [vmem:[#allocation11_spill] sm:$0xff] %v4101_v54  ;;  %v3178_v53 = vpop.eup %3177  ;;  %v787_v12 = vadd.f32 %v723_v24, %v4025_v4  ;;  %v1790_v41 = vmul.f32 0.044715, %v4088_v62  ;;  %v4107_v57 = vpop.f32.mrb[34].mxu1  ;;  %v1723_v46 = vmul.f32 0.5, %v3992_v14  ;;  %v1920_v59 = vmul.f32 %v1856_v3, %v4063_v21 }
 0x11e   :  { %5630 = vst [vmem:[#allocation12_spill] sm:$0xff] %v4107_v57  ;;  %v4109_v1 = vpop.f32.mrb[35].mxu0  ;;  %v3180_v0 = vpop.eup %3179  ;;  %2557 = vst.msk [vmem:[%s5619_s6 + $0x28] sm:$0xf] %vm2546_vm3, %v2887_v44  ;;  %v973_v39 = vadd.f32 1.0, %v3178_v53 }
 0x11f   :  { %5631 = vst [vmem:[#allocation13_spill] sm:$0xff] %v4109_v1  ;;  %v596_v22 = vmul.f32 0.044715, %v4097_v63  ;;  %v4118_v24 = vpop.f32.mrb[35].mxu1  ;;  %v3182_v30 = vpop.eup %3181  ;;  %v2170_v54 = vadd.f32 1.0, %v3180_v0  ;;  %v721_v1 = vmul.f32 %v657_v9, %v4072_v20  ;;  %v1854_v25 = vmul.f32 %v1790_v41, %v4088_v62 }
 0x120   :  { %5632 = vst [vmem:[#allocation14_spill] sm:$0xff] %v4118_v24  ;;  %v851_v57 = vmul.f32 0.7978846, %v787_v12  ;;  %v1037_v35 = vmul.f32 %v973_v39, %v4015_v48  ;;  %v976_v55 = vadd.f32 1.0, %v3182_v30  ;;  %v1984_v44 = vadd.f32 %v1920_v59, %v4063_v21 }
 0x121   :  { %v660_v14 = vmul.f32 %v596_v22, %v4097_v63  ;;  %v2234_v53 = vmul.f32 %v2170_v54, %v1722_v61  ;;  %v785_v3 = vadd.f32 %v721_v1, %v4072_v20  ;;  %v1918_v24 = vmul.f32 %v1854_v25, %v4088_v62 }
 0x122   :  { %3189 = vtanh.f32 %v851_v57  ;;  %v3184_v16 = vpop.eup %3183  ;;  %v2821_v0 = vpack.c.bf16 %v1037_v35, %v1037_v35  ;;  %v1040_v12 = vmul.f32 %v976_v55, %v528_v60  ;;  %v2048_v10 = vmul.f32 0.7978846, %v1984_v44  ;;  %v4128_v41 = vpop.f32.mrb[36].mxu0 }
 0x123   :  { %v724_v9 = vmul.f32 %v660_v14, %v4097_v63  ;;  %v4130_v48 = vpop.f32.mrb[36].mxu1  ;;  %v3186_v39 = vpop.eup %3185  ;;  %v2885_v59 = vpack.c.bf16 %v2234_v53, %v2234_v53  ;;  %v2173_v30 = vadd.f32 1.0, %v3184_v16  ;;  %v849_v22 = vmul.f32 0.7978846, %v785_v3 }
 0x124   :  { %v1982_v61 = vadd.f32 %v1918_v24, %v4088_v62  ;;  %v4133_v54 = vpop.f32.mrb[37].mxu0  ;;  %v4135_v57 = vpop.f32.mrb[37].mxu1  ;;  %1358 = vst.msk [vmem:[%s5618_s5 + $0x20] sm:$0xf] %vm1349_vm2, %v2821_v0  ;;  %v2824_v60 = vpack.c.bf16 %v1040_v12, %v1040_v12  ;;  %v974_v55 = vadd.f32 1.0, %v3186_v39  ;;  %3191 = vtanh.f32 %v2048_v10 }
 0x125   :  { %v788_v35 = vadd.f32 %v724_v9, %v4097_v63  ;;  %v4142_v25 = vpop.f32.mrb[38].mxu0  ;;  %v4144_v16 = vpop.f32.mrb[38].mxu1  ;;  %2555 = vst.msk [vmem:[%s5619_s6 + $0x20] sm:$0xf] %vm2546_vm3, %v2885_v59  ;;  %v2237_v1 = vmul.f32 %v2173_v30, %v1725_v49  ;;  %3193 = vtanh.f32 %v849_v22  ;;  %v1519_v44 = vadd.f32 %v3820_v40, %v3708_v37 }
 0x126   :  { %v2046_v24 = vmul.f32 0.7978846, %v1982_v61  ;;  %v3188_v14 = vpop.eup %3187  ;;  %1361 = vst.msk [vmem:[%s5618_s5 + $0x2c] sm:$0xf] %vm1349_vm2, %v2824_v60  ;;  %v1038_v10 = vmul.f32 %v974_v55, %v526_v31  ;;  %v4158_v3 = vadd.f32 %v3703_v36, %v3824_v50  ;;  %v4162_v49 = vadd.f32 %v3708_v37, %v3826_v51  ;;  %v4164_v0 = vpop.f32.mrb[39].mxu0 }
 0x127   :  { %v852_v53 = vmul.f32 0.7978846, %v788_v35  ;;  %5633 = vst [vmem:[#allocation15_spill] sm:$0xff] %v4164_v0  ;;  %v2888_v12 = vpack.c.bf16 %v2237_v1, %v2237_v1  ;;  %v2171_v40 = vadd.f32 1.0, %v3188_v14  ;;  %v531_v9 = vmul.f32 0.5, %v4025_v4  ;;  %v4175_v61 = vpop.f32.mrb[39].mxu1 }
 0x128   :  { %3195 = vtanh.f32 %v2046_v24  ;;  %v2822_v39 = vpack.c.bf16 %v1038_v10, %v1038_v10  ;;  %v1728_v59 = vmul.f32 0.5, %v4063_v21  ;;  %v1793_v31 = vmul.f32 0.044715, %v1519_v44  ;;  %5634 = vst [vmem:[#allocation16_spill] sm:$0xff] %v4175_v61 }
 0x129   :  { %3197 = vtanh.f32 %v852_v53  ;;  %2558 = vst.msk [vmem:[%s5619_s6 + $0x2c] sm:$0xf] %vm2546_vm3, %v2888_v12  ;;  %v2235_v50 = vmul.f32 %v2171_v40, %v1723_v46  ;;  %v529_v51 = vmul.f32 0.5, %v4072_v20  ;;  %v594_v30 = vmul.f32 0.044715, %v4158_v3 }
 0x12a   :  { %v1791_v22 = vmul.f32 0.044715, %v4162_v49  ;;  %1359 = vst.msk [vmem:[%s5618_s5 + $0x24] sm:$0xf] %vm1349_vm2, %v2822_v39  ;;  %v1726_v4 = vmul.f32 0.5, %v4088_v62  ;;  %v1857_v21 = vmul.f32 %v1793_v31, %v1519_v44  ;;  %v4184_v60 = vadd.f32 %v3851_v17, %v3703_v36  ;;  %v4217_v0 = vpop.f32.mrb[40].mxu0 }
 0x12b   :  { %v4188_v20 = vadd.f32 %v3853_v19, %v3708_v37  ;;  %v2886_v55 = vpack.c.bf16 %v2235_v50, %v2235_v50  ;;  %v532_v35 = vmul.f32 0.5, %v4097_v63  ;;  %v658_v1 = vmul.f32 %v594_v30, %v4158_v3 }
 0x12c   :  { %v3190_v46 = vpop.eup %3189  ;;  %v1855_v24 = vmul.f32 %v1791_v22, %v4162_v49  ;;  %v4193_v10 = vmul.f32 0.5, %v1519_v44  ;;  %v1921_v62 = vmul.f32 %v1857_v21, %v1519_v44  ;;  %v599_v53 = vmul.f32 0.044715, %v4184_v60 }
 0x12d   :  { %v979_v14 = vadd.f32 1.0, %v3190_v46  ;;  %2556 = vst.msk [vmem:[%s5619_s6 + $0x24] sm:$0xf] %vm2546_vm3, %v2886_v55  ;;  %v722_v17 = vmul.f32 %v658_v1, %v4158_v3  ;;  %v1796_v63 = vmul.f32 0.044715, %v4188_v20  ;;  %v4205_v12 = vadd.f32 %v3703_v36, %v3868_v27 }
 0x12e   :  { %v1919_v19 = vmul.f32 %v1855_v24, %v4162_v49  ;;  %v3192_v40 = vpop.eup %3191  ;;  %v1985_v31 = vadd.f32 %v1921_v62, %v1519_v44  ;;  %v663_v50 = vmul.f32 %v599_v53, %v4184_v60  ;;  %v4210_v30 = vadd.f32 %v3708_v37, %v3870_v29 }
 0x12f   :  { %v1043_v39 = vmul.f32 %v979_v14, %v531_v9  ;;  %v3194_v22 = vpop.eup %3193  ;;  %v2176_v21 = vadd.f32 1.0, %v3192_v40  ;;  %v786_v46 = vadd.f32 %v722_v17, %v4158_v3  ;;  %v1860_v1 = vmul.f32 %v1796_v63, %v4188_v20  ;;  %v4219_v40 = vpop.f32.mrb[40].mxu1 }
 0x130   :  { %v1983_v55 = vadd.f32 %v1919_v19, %v4162_v49  ;;  %v977_v27 = vadd.f32 1.0, %v3194_v22  ;;  %v2049_v61 = vmul.f32 0.7978846, %v1985_v31  ;;  %v727_v9 = vmul.f32 %v663_v50, %v4184_v60  ;;  %v4228_v31 = vpop.f32.mrb[41].mxu1 }
 0x131   :  { %v2827_v24 = vpack.c.bf16 %v1043_v39, %v1043_v39  ;;  %v2240_v14 = vmul.f32 %v2176_v21, %v1728_v59  ;;  %v850_v62 = vmul.f32 0.7978846, %v786_v46  ;;  %v1924_v29 = vmul.f32 %v1860_v1, %v4188_v20  ;;  %v4226_v59 = vpop.f32.mrb[41].mxu0  ;;  %5636 = vst [vmem:[#allocation18_spill] sm:$0xff] %v4228_v31 }
 0x132   :  { %v3196_v44 = vpop.eup %3195  ;;  %v2047_v53 = vmul.f32 0.7978846, %v1983_v55  ;;  %v1041_v19 = vmul.f32 %v977_v27, %v529_v51  ;;  %3199 = vtanh.f32 %v2049_v61  ;;  %v791_v39 = vadd.f32 %v727_v9, %v4184_v60  ;;  %5635 = vst [vmem:[#allocation17_spill] sm:$0xff] %v4226_v59 }
 0x133   :  { %v3198_v17 = vpop.eup %3197  ;;  %1364 = vst.msk [vmem:[%s5618_s5 + $0x38] sm:$0xf] %vm1349_vm2, %v2827_v24  ;;  %v2174_v63 = vadd.f32 1.0, %v3196_v44  ;;  %v2891_v50 = vpack.c.bf16 %v2240_v14, %v2240_v14  ;;  %3201 = vtanh.f32 %v850_v62  ;;  %v1988_v21 = vadd.f32 %v1924_v29, %v4188_v20 }
 0x134   :  { %v980_v22 = vadd.f32 1.0, %v3198_v17  ;;  %v2825_v46 = vpack.c.bf16 %v1041_v19, %v1041_v19  ;;  %3203 = vtanh.f32 %v2047_v53  ;;  %v855_v1 = vmul.f32 0.7978846, %v791_v39  ;;  %v4277_v17 = vld [vmem:[%s5617_s4] ss:$0 sm:$0xff]  ;;  %v4283_v19 = vpop.f32.mrb[42].mxu0 }
 0x135   :  { %v2238_v55 = vmul.f32 %v2174_v63, %v1726_v4  ;;  %2561 = vst.msk [vmem:[%s5619_s6 + $0x38] sm:$0xf] %vm2546_vm3, %v2891_v50  ;;  %v530_v61 = vmul.f32 0.5, %v4158_v3  ;;  %v2052_v24 = vmul.f32 0.7978846, %v1988_v21  ;;  %v4244_v44 = vadd.f32 %v3878_v18, %v3703_v36  ;;  %5637 = vst [vmem:[#allocation19_spill] sm:$0xff] %v4283_v19 }
 0x136   :  { %v1044_v51 = vmul.f32 %v980_v22, %v532_v35  ;;  %v597_v27 = vmul.f32 0.044715, %v4205_v12  ;;  %1362 = vst.msk [vmem:[%s5618_s5 + $0x30] sm:$0xf] %vm1349_vm2, %v2825_v46  ;;  %3205 = vtanh.f32 %v855_v1  ;;  %v1794_v4 = vmul.f32 0.044715, %v4210_v30 }
 0x137   :  { %v2889_v9 = vpack.c.bf16 %v2238_v55, %v2238_v55  ;;  %3207 = vtanh.f32 %v2052_v24  ;;  %v4249_v35 = vadd.f32 %v3880_v38, %v3708_v37  ;;  %v1727_v62 = vmul.f32 0.5, %v4162_v49  ;;  %v4261_v18 = vld [vmem:[%s5616_s2] ss:$0 sm:$0xff]  ;;  %v4289_v22 = vpop.f32.mrb[42].mxu1 }
 0x138   :  { %v2828_v14 = vpack.c.bf16 %v1044_v51, %v1044_v51  ;;  %v661_v3 = vmul.f32 %v597_v27, %v4205_v12  ;;  %v1858_v53 = vmul.f32 %v1794_v4, %v4210_v30  ;;  %v600_v36 = vmul.f32 0.044715, %v4244_v44  ;;  %5638 = vst [vmem:[#allocation20_spill] sm:$0xff] %v4289_v22 }
 0x139   :  { %2559 = vst.msk [vmem:[%s5619_s6 + $0x30] sm:$0xf] %vm2546_vm3, %v2889_v9  ;;  %v4265_v37 = vadd.f32 %v4261_v18, %v3889_v34  ;;  %v535_v38 = vmul.f32 0.5, %v4184_v60  ;;  %v1797_v29 = vmul.f32 0.044715, %v4249_v35  ;;  %v4281_v34 = vadd.f32 %v4277_v17, %v3894_v2  ;;  %v4304_v9 = vpop.f32.mrb[43].mxu0 }
 0x13a   :  { %1365 = vst.msk [vmem:[%s5618_s5 + $0x3c] sm:$0xf] %vm1349_vm2, %v2828_v14  ;;  %v725_v49 = vmul.f32 %v661_v3, %v4205_v12  ;;  %v1732_v63 = vmul.f32 0.5, %v4188_v20  ;;  %v1922_v39 = vmul.f32 %v1858_v53, %v4210_v30  ;;  %v664_v60 = vmul.f32 %v600_v36, %v4244_v44  ;;  %5639 = vst [vmem:[#allocation21_spill] sm:$0xff] %v4304_v9  ;;  %v4308_v36 = vpop.f32.mrb[43].mxu1 }
 0x13b   :  { %v598_v50 = vmul.f32 0.044715, %v4265_v37  ;;  %v4292_v21 = vmul.f32 0.5, %v4205_v12  ;;  %v1861_v2 = vmul.f32 %v1797_v29, %v4249_v35  ;;  %v1795_v55 = vmul.f32 0.044715, %v4281_v34  ;;  %5640 = vst [vmem:[#allocation22_spill] sm:$0xff] %v4308_v36 }
 0x13c   :  { %v789_v46 = vadd.f32 %v725_v49, %v4205_v12  ;;  %v3200_v1 = vpop.eup %3199  ;;  %v1986_v20 = vadd.f32 %v1922_v39, %v4210_v30  ;;  %v728_v51 = vmul.f32 %v664_v60, %v4244_v44  ;;  %v4302_v27 = vadd.f32 %v4261_v18, %v3918_v15 }
 0x13d   :  { %v662_v24 = vmul.f32 %v598_v50, %v4265_v37  ;;  %v3202_v4 = vpop.eup %3201  ;;  %v2177_v14 = vadd.f32 1.0, %v3200_v1  ;;  %v1925_v3 = vmul.f32 %v1861_v2, %v4249_v35  ;;  %v1859_v53 = vmul.f32 %v1795_v55, %v4281_v34 }
 0x13e   :  { %v853_v12 = vmul.f32 0.7978846, %v789_v46  ;;  %v3204_v49 = vpop.eup %3203  ;;  %v978_v29 = vadd.f32 1.0, %v3202_v4  ;;  %v2050_v39 = vmul.f32 0.7978846, %v1986_v20  ;;  %v792_v60 = vadd.f32 %v728_v51, %v4244_v44 }
 0x13f   :  { %v726_v50 = vmul.f32 %v662_v24, %v4265_v37  ;;  %v2241_v15 = vmul.f32 %v2177_v14, %v4193_v10  ;;  %v2175_v22 = vadd.f32 1.0, %v3204_v49  ;;  %v1989_v1 = vadd.f32 %v1925_v3, %v4249_v35 }
 0x140   :  { %3209 = vtanh.f32 %v853_v12  ;;  %v3206_v46 = vpop.eup %3205  ;;  %v1042_v9 = vmul.f32 %v978_v29, %v530_v61  ;;  %v856_v2 = vmul.f32 0.7978846, %v792_v60  ;;  %v1923_v14 = vmul.f32 %v1859_v53, %v4281_v34 }
 0x141   :  { %3211 = vtanh.f32 %v2050_v39  ;;  %v790_v55 = vadd.f32 %v726_v50, %v4265_v37  ;;  %v3208_v36 = vpop.eup %3207  ;;  %v2892_v19 = vpack.c.bf16 %v2241_v15, %v2241_v15  ;;  %v2239_v4 = vmul.f32 %v2175_v22, %v1727_v62 }
 0x142   :  { %v983_v20 = vadd.f32 1.0, %v3206_v46  ;;  %v2053_v31 = vmul.f32 0.7978846, %v1989_v1  ;;  %v2826_v51 = vpack.c.bf16 %v1042_v9, %v1042_v9  ;;  %v2180_v59 = vadd.f32 1.0, %v3208_v36 }
 0x143   :  { %3213 = vtanh.f32 %v856_v2  ;;  %v854_v24 = vmul.f32 0.7978846, %v790_v55  ;;  %2562 = vst.msk [vmem:[%s5619_s6 + $0x3c] sm:$0xf] %vm2546_vm3, %v2892_v19  ;;  %v2890_v10 = vpack.c.bf16 %v2239_v4, %v2239_v4  ;;  %v1730_v22 = vmul.f32 0.5, %v4210_v30  ;;  %v4339_v30 = vpop.f32.mrb[44].mxu0 }
 0x144   :  { %v1047_v61 = vmul.f32 %v983_v20, %v535_v38  ;;  %3215 = vtanh.f32 %v2053_v31  ;;  %1363 = vst.msk [vmem:[%s5618_s5 + $0x34] sm:$0xf] %vm1349_vm2, %v2826_v51  ;;  %v2244_v62 = vmul.f32 %v2180_v59, %v1732_v63  ;;  %v603_v9 = vmul.f32 0.044715, %v4302_v27  ;;  %v4341_v63 = vpop.f32.mrb[44].mxu1  ;;  %v4367_v50 = vpop.f32.mrb[45].mxu0 }
 0x145   :  { %3217 = vtanh.f32 %v854_v24  ;;  %2560 = vst.msk [vmem:[%s5619_s6 + $0x34] sm:$0xf] %vm2546_vm3, %v2890_v10  ;;  %v1987_v31 = vadd.f32 %v1923_v14, %v4281_v34  ;;  %v4333_v19 = vadd.f32 %v4277_v17, %v3922_v33  ;;  %v4337_v59 = vadd.f32 %v4261_v18, %v3924_v28  ;;  %v4383_v10 = vpop.f32.mrb[45].mxu1 }
 0x146   :  { %v2831_v38 = vpack.c.bf16 %v1047_v61, %v1047_v61  ;;  %v2895_v12 = vpack.c.bf16 %v2244_v62, %v2244_v62  ;;  %v667_v3 = vmul.f32 %v603_v9, %v4302_v27  ;;  %v4346_v53 = vadd.f32 %v4277_v17, %v3927_v42 }
 0x147   :  { %v4350_v36 = vadd.f32 %v4261_v18, %v3929_v47  ;;  %v536_v33 = vmul.f32 0.5, %v4244_v44  ;;  %v1733_v28 = vmul.f32 0.5, %v4249_v35  ;;  %v2051_v49 = vmul.f32 0.7978846, %v1987_v31 }
 0x148   :  { %1368 = vst.msk [vmem:[%s5618_s5 + $0x48] sm:$0xf] %vm1349_vm2, %v2831_v38  ;;  %v1800_v29 = vmul.f32 0.044715, %v4333_v19  ;;  %v534_v42 = vmul.f32 0.5, %v4265_v37  ;;  %v731_v47 = vmul.f32 %v667_v3, %v4302_v27  ;;  %v4370_v35 = vmul.f32 0.5, %v4281_v34 }
 0x149   :  { %2565 = vst.msk [vmem:[%s5619_s6 + $0x48] sm:$0xf] %vm2546_vm3, %v2895_v12  ;;  %v601_v39 = vmul.f32 0.044715, %v4337_v59  ;;  %v1798_v60 = vmul.f32 0.044715, %v4346_v53  ;;  %3219 = vtanh.f32 %v2051_v49  ;;  %v4381_v34 = vadd.f32 %v4277_v17, %v3936_v52 }
 0x14a   :  { %v3210_v44 = vpop.eup %3209  ;;  %v1864_v15 = vmul.f32 %v1800_v29, %v4333_v19  ;;  %v604_v1 = vmul.f32 0.044715, %v4350_v36  ;;  %v795_v37 = vadd.f32 %v731_v47, %v4302_v27  ;;  %v4390_v47 = vpop.f32.mrb[46].mxu0 }
 0x14b   :  { %v3212_v46 = vpop.eup %3211  ;;  %v981_v2 = vadd.f32 1.0, %v3210_v44  ;;  %v665_v55 = vmul.f32 %v601_v39, %v4337_v59  ;;  %v1862_v4 = vmul.f32 %v1798_v60, %v4346_v53  ;;  %v4392_v52 = vpop.f32.mrb[46].mxu1 }
 0x14c   :  { %v2178_v20 = vadd.f32 1.0, %v3212_v46  ;;  %v1928_v51 = vmul.f32 %v1864_v15, %v4333_v19  ;;  %v668_v24 = vmul.f32 %v604_v1, %v4350_v36  ;;  %v859_v62 = vmul.f32 0.7978846, %v795_v37 }
 0x14d   :  { %v3214_v61 = vpop.eup %3213  ;;  %v1045_v14 = vmul.f32 %v981_v2, %v4292_v21  ;;  %v729_v9 = vmul.f32 %v665_v55, %v4337_v59  ;;  %v1926_v38 = vmul.f32 %v1862_v4, %v4346_v53 }
 0x14e   :  { %v3216_v31 = vpop.eup %3215  ;;  %v2242_v12 = vmul.f32 %v2178_v20, %v1730_v22  ;;  %v984_v3 = vadd.f32 1.0, %v3214_v61  ;;  %v1992_v49 = vadd.f32 %v1928_v51, %v4333_v19  ;;  %v732_v29 = vmul.f32 %v668_v24, %v4350_v36  ;;  %v4401_v20 = vpop.f32.mrb[47].mxu0 }
 0x14f   :  { %v3218_v39 = vpop.eup %3217  ;;  %v2829_v60 = vpack.c.bf16 %v1045_v14, %v1045_v14  ;;  %v2181_v44 = vadd.f32 1.0, %v3216_v31  ;;  %3221 = vtanh.f32 %v859_v62  ;;  %v793_v21 = vadd.f32 %v729_v9, %v4337_v59 }
 0x150   :  { %v2893_v15 = vpack.c.bf16 %v2242_v12, %v2242_v12  ;;  %v1048_v1 = vmul.f32 %v984_v3, %v536_v33  ;;  %v982_v46 = vadd.f32 1.0, %v3218_v39  ;;  %v2056_v2 = vmul.f32 0.7978846, %v1992_v49 }
 0x151   :  { %1366 = vst.msk [vmem:[%s5618_s5 + $0x40] sm:$0xf] %vm1349_vm2, %v2829_v60  ;;  %v2245_v22 = vmul.f32 %v2181_v44, %v1733_v28  ;;  %v857_v37 = vmul.f32 0.7978846, %v793_v21  ;;  %v1990_v55 = vadd.f32 %v1926_v38, %v4346_v53  ;;  %v796_v4 = vadd.f32 %v732_v29, %v4350_v36  ;;  %v4440_v29 = vpop.f32.mrb[47].mxu1 }
 0x152   :  { %2563 = vst.msk [vmem:[%s5619_s6 + $0x40] sm:$0xf] %vm2546_vm3, %v2893_v15  ;;  %v2832_v33 = vpack.c.bf16 %v1048_v1, %v1048_v1  ;;  %v1046_v51 = vmul.f32 %v982_v46, %v534_v42  ;;  %v539_v24 = vmul.f32 0.5, %v4302_v27  ;;  %3223 = vtanh.f32 %v2056_v2 }
 0x153   :  { %v2896_v61 = vpack.c.bf16 %v2245_v22, %v2245_v22  ;;  %3225 = vtanh.f32 %v857_v37  ;;  %v2054_v28 = vmul.f32 0.7978846, %v1990_v55  ;;  %v860_v14 = vmul.f32 0.7978846, %v796_v4  ;;  %v3220_v62 = vpop.eup %3219 }
 0x154   :  { %1369 = vst.msk [vmem:[%s5618_s5 + $0x4c] sm:$0xf] %vm1349_vm2, %v2832_v33  ;;  %v2830_v9 = vpack.c.bf16 %v1046_v51, %v1046_v51  ;;  %v1801_v38 = vmul.f32 0.044715, %v4381_v34  ;;  %v4415_v31 = vadd.f32 %v4261_v18, %v3938_v5  ;;  %v4419_v27 = vadd.f32 %v4277_v17, %v3951_v58 }
 0x155   :  { %2566 = vst.msk [vmem:[%s5619_s6 + $0x4c] sm:$0xf] %vm2546_vm3, %v2896_v61  ;;  %v2179_v42 = vadd.f32 1.0, %v3220_v62  ;;  %3227 = vtanh.f32 %v2054_v28  ;;  %v4427_v12 = vadd.f32 %v4261_v18, %v3974_v13  ;;  %v4431_v3 = vadd.f32 %v4277_v17, %v3980_v32 }
 0x156   :  { %1367 = vst.msk [vmem:[%s5618_s5 + $0x44] sm:$0xf] %vm1349_vm2, %v2830_v9  ;;  %v1736_v5 = vmul.f32 0.5, %v4333_v19  ;;  %3229 = vtanh.f32 %v860_v14  ;;  %v1865_v58 = vmul.f32 %v1801_v38, %v4381_v34  ;;  %v602_v49 = vmul.f32 0.044715, %v4415_v31 }
 0x157   :  { %v2243_v13 = vmul.f32 %v2179_v42, %v4370_v35  ;;  %v537_v39 = vmul.f32 0.5, %v4337_v59  ;;  %v1734_v32 = vmul.f32 0.5, %v4346_v53  ;;  %v1799_v60 = vmul.f32 0.044715, %v4419_v27 }
 0x158   :  { %v540_v44 = vmul.f32 0.5, %v4350_v36  ;;  %v1929_v21 = vmul.f32 %v1865_v58, %v4381_v34  ;;  %v666_v19 = vmul.f32 %v602_v49, %v4415_v31  ;;  %v607_v15 = vmul.f32 0.044715, %v4427_v12 }
 0x159   :  { %v3222_v1 = vpop.eup %3221  ;;  %v2894_v46 = vpack.c.bf16 %v2243_v13, %v2243_v13  ;;  %v1863_v2 = vmul.f32 %v1799_v60, %v4419_v27  ;;  %v1804_v35 = vmul.f32 0.044715, %v4431_v3  ;;  %v4454_v59 = vadd.f32 %v4261_v18, %v3982_v43 }
 0x15a   :  { %v987_v53 = vadd.f32 1.0, %v3222_v1  ;;  %v1993_v22 = vadd.f32 %v1929_v21, %v4381_v34  ;;  %v730_v36 = vmul.f32 %v666_v19, %v4415_v31  ;;  %v671_v37 = vmul.f32 %v607_v15, %v4427_v12  ;;  %v4474_v21 = vpop.f32.mrb[48].mxu0 }
 0x15b   :  { %2564 = vst.msk [vmem:[%s5619_s6 + $0x44] sm:$0xf] %vm2546_vm3, %v2894_v46  ;;  %v4464_v55 = vmul.f32 0.5, %v4381_v34  ;;  %v1927_v4 = vmul.f32 %v1863_v2, %v4419_v27  ;;  %v1868_v43 = vmul.f32 %v1804_v35, %v4431_v3  ;;  %v605_v33 = vmul.f32 0.044715, %v4454_v59  ;;  %v4480_v35 = vpop.f32.mrb[49].mxu0 }
 0x15c   :  { %v3224_v51 = vpop.eup %3223  ;;  %v1051_v61 = vmul.f32 %v987_v53, %v539_v24  ;;  %v2057_v28 = vmul.f32 0.7978846, %v1993_v22  ;;  %v794_v14 = vadd.f32 %v730_v36, %v4415_v31  ;;  %v735_v62 = vmul.f32 %v671_v37, %v4427_v12  ;;  %v4476_v24 = vpop.f32.mrb[48].mxu1 }
 0x15d   :  { %v3226_v9 = vpop.eup %3225  ;;  %v2184_v38 = vadd.f32 1.0, %v3224_v51  ;;  %v1991_v42 = vadd.f32 %v1927_v4, %v4419_v27  ;;  %v1932_v34 = vmul.f32 %v1868_v43, %v4431_v3  ;;  %v669_v58 = vmul.f32 %v605_v33, %v4454_v59  ;;  %v4487_v4 = vpop.f32.mrb[49].mxu1 }
 0x15e   :  { %v2835_v49 = vpack.c.bf16 %v1051_v61, %v1051_v61  ;;  %v985_v13 = vadd.f32 1.0, %v3226_v9  ;;  %3231 = vtanh.f32 %v2057_v28  ;;  %v858_v60 = vmul.f32 0.7978846, %v794_v14 }
 0x15f   :  { %v3228_v19 = vpop.eup %3227  ;;  %v2248_v15 = vmul.f32 %v2184_v38, %v1736_v5  ;;  %v2055_v1 = vmul.f32 0.7978846, %v1991_v42  ;;  %v799_v46 = vadd.f32 %v735_v62, %v4427_v12  ;;  %v1996_v2 = vadd.f32 %v1932_v34, %v4431_v3  ;;  %v4490_v62 = vpop.f32.mrb[50].mxu0 }
 0x160   :  { %v3230_v53 = vpop.eup %3229  ;;  %1372 = vst.msk [vmem:[%s5618_s5 + $0x58] sm:$0xf] %vm1349_vm2, %v2835_v49  ;;  %v1049_v22 = vmul.f32 %v985_v13, %v537_v39  ;;  %v2182_v36 = vadd.f32 1.0, %v3228_v19  ;;  %3233 = vtanh.f32 %v858_v60  ;;  %v733_v37 = vmul.f32 %v669_v58, %v4454_v59  ;;  %v4522_v60 = vpop.f32.mrb[50].mxu1 }
 0x161   :  { %v2899_v5 = vpack.c.bf16 %v2248_v15, %v2248_v15  ;;  %v988_v43 = vadd.f32 1.0, %v3230_v53  ;;  %3235 = vtanh.f32 %v2055_v1  ;;  %v863_v33 = vmul.f32 0.7978846, %v799_v46 }
 0x162   :  { %v2833_v51 = vpack.c.bf16 %v1049_v22, %v1049_v22  ;;  %v2246_v61 = vmul.f32 %v2182_v36, %v1734_v32  ;;  %v2060_v28 = vmul.f32 0.7978846, %v1996_v2  ;;  %v797_v14 = vadd.f32 %v733_v37, %v4454_v59 }
 0x163   :  { %2569 = vst.msk [vmem:[%s5619_s6 + $0x58] sm:$0xf] %vm2546_vm3, %v2899_v5  ;;  %v1052_v39 = vmul.f32 %v988_v43, %v540_v44  ;;  %3237 = vtanh.f32 %v863_v33  ;;  %v4498_v9 = vadd.f32 %v4277_v17, %v3994_v45  ;;  %v4502_v38 = vadd.f32 %v4261_v18, %v3996_v56 }
 0x164   :  { %1370 = vst.msk [vmem:[%s5618_s5 + $0x50] sm:$0xf] %vm1349_vm2, %v2833_v51  ;;  %v2897_v32 = vpack.c.bf16 %v2246_v61, %v2246_v61  ;;  %3239 = vtanh.f32 %v2060_v28  ;;  %v861_v42 = vmul.f32 0.7978846, %v797_v14  ;;  %v4510_v44 = vadd.f32 %v4277_v17, %v3999_v6  ;;  %v5642_v51 = vld [vmem:[#allocation3_spill] sm:$0xff]  ;;  %v4558_v61 = vpop.f32.mrb[51].mxu0 }
 0x165   :  { %v2836_v34 = vpack.c.bf16 %v1052_v39, %v1052_v39  ;;  %v538_v45 = vmul.f32 0.5, %v4415_v31  ;;  %v1735_v58 = vmul.f32 0.5, %v4419_v27  ;;  %v1802_v56 = vmul.f32 0.044715, %v4498_v9  ;;  %v4560_v28 = vpop.f32.mrb[51].mxu1 }
 0x166   :  { %2567 = vst.msk [vmem:[%s5619_s6 + $0x50] sm:$0xf] %vm2546_vm3, %v2897_v32  ;;  %v543_v49 = vmul.f32 0.5, %v4427_v12  ;;  %3241 = vtanh.f32 %v861_v42  ;;  %v608_v13 = vmul.f32 0.044715, %v4502_v38  ;;  %v1740_v31 = vmul.f32 0.5, %v4431_v3 }
 0x167   :  { %v1805_v6 = vmul.f32 0.044715, %v4510_v44  ;;  %1373 = vst.msk [vmem:[%s5618_s5 + $0x5c] sm:$0xf] %vm1349_vm2, %v2836_v34  ;;  %v1866_v27 = vmul.f32 %v1802_v56, %v4498_v9  ;;  %v4532_v19 = vadd.f32 %v4261_v18, %v4001_v8  ;;  %v5641_v12 = vld [vmem:[#allocation2_spill] sm:$0xff]  ;;  %v541_v46 = vmul.f32 0.5, %v4454_v59 }
 0x168   :  { %v4536_v15 = vadd.f32 %v4277_v17, %v5641_v12  ;;  %v3232_v1 = vpop.eup %3231  ;;  %v672_v2 = vmul.f32 %v608_v13, %v4502_v38  ;;  %v4543_v3 = vadd.f32 %v4261_v18, %v4028_v11  ;;  %v4549_v37 = vadd.f32 %v4277_v17, %v4031_v23 }
 0x169   :  { %v1869_v53 = vmul.f32 %v1805_v6, %v4510_v44  ;;  %v2185_v22 = vadd.f32 1.0, %v3232_v1  ;;  %v1930_v36 = vmul.f32 %v1866_v27, %v4498_v9  ;;  %v606_v8 = vmul.f32 0.044715, %v4532_v19 }
 0x16a   :  { %v3234_v5 = vpop.eup %3233  ;;  %v736_v59 = vmul.f32 %v672_v2, %v4502_v38  ;;  %v1803_v33 = vmul.f32 0.044715, %v4536_v15  ;;  %v4556_v11 = vadd.f32 %v4261_v18, %v5642_v51 }
 0x16b   :  { %v1933_v43 = vmul.f32 %v1869_v53, %v4510_v44  ;;  %v3236_v14 = vpop.eup %3235  ;;  %v2249_v39 = vmul.f32 %v2185_v22, %v4464_v55  ;;  %v986_v23 = vadd.f32 1.0, %v3234_v5  ;;  %v1994_v32 = vadd.f32 %v1930_v36, %v4498_v9 }
 0x16c   :  { %v670_v42 = vmul.f32 %v606_v8, %v4532_v19  ;;  %v2183_v34 = vadd.f32 1.0, %v3236_v14  ;;  %v800_v56 = vadd.f32 %v736_v59, %v4502_v38  ;;  %v1867_v6 = vmul.f32 %v1803_v33, %v4536_v15 }
 0x16d   :  { %v1997_v13 = vadd.f32 %v1933_v43, %v4510_v44  ;;  %v3238_v27 = vpop.eup %3237  ;;  %v2900_v12 = vpack.c.bf16 %v2249_v39, %v2249_v39  ;;  %v1050_v1 = vmul.f32 %v986_v23, %v538_v45  ;;  %v2058_v2 = vmul.f32 0.7978846, %v1994_v32 }
 0x16e   :  { %v734_v53 = vmul.f32 %v670_v42, %v4532_v19  ;;  %v3240_v51 = vpop.eup %3239  ;;  %v2247_v55 = vmul.f32 %v2183_v34, %v1735_v58  ;;  %v991_v22 = vadd.f32 1.0, %v3238_v27  ;;  %v864_v5 = vmul.f32 0.7978846, %v800_v56  ;;  %v4585_v56 = vpop.f32.mrb[52].mxu0 }
 0x16f   :  { %v2061_v36 = vmul.f32 0.7978846, %v1997_v13  ;;  %2570 = vst.msk [vmem:[%s5619_s6 + $0x5c] sm:$0xf] %vm2546_vm3, %v2900_v12  ;;  %v2834_v8 = vpack.c.bf16 %v1050_v1, %v1050_v1  ;;  %v2188_v59 = vadd.f32 1.0, %v3240_v51  ;;  %3243 = vtanh.f32 %v2058_v2  ;;  %v4587_v13 = vpop.f32.mrb[52].mxu1 }
 0x170   :  { %v798_v43 = vadd.f32 %v734_v53, %v4532_v19  ;;  %v3242_v33 = vpop.eup %3241  ;;  %v2898_v45 = vpack.c.bf16 %v2247_v55, %v2247_v55  ;;  %v1055_v14 = vmul.f32 %v991_v22, %v543_v49  ;;  %3245 = vtanh.f32 %v864_v5  ;;  %v4590_v12 = vpop.f32.mrb[53].mxu0  ;;  %v5643_v55 = vld [vmem:[#allocation4_spill] sm:$0xff]  ;;  %v5644_v5 = vld [vmem:[#allocation5_spill] sm:$0xff] }
 0x171   :  { %v1931_v39 = vmul.f32 %v1867_v6, %v4536_v15  ;;  %1371 = vst.msk [vmem:[%s5618_s5 + $0x54] sm:$0xf] %vm1349_vm2, %v2834_v8  ;;  %v2252_v58 = vmul.f32 %v2188_v59, %v1740_v31  ;;  %v989_v23 = vadd.f32 1.0, %v3242_v33  ;;  %3247 = vtanh.f32 %v2061_v36 }
 0x172   :  { %v862_v32 = vmul.f32 0.7978846, %v798_v43  ;;  %2568 = vst.msk [vmem:[%s5619_s6 + $0x54] sm:$0xf] %vm2546_vm3, %v2898_v45  ;;  %v2839_v42 = vpack.c.bf16 %v1055_v14, %v1055_v14  ;;  %v611_v34 = vmul.f32 0.044715, %v4543_v3  ;;  %v4606_v22 = vadd.f32 %v4277_v17, %v5643_v55 }
 0x173   :  { %v1995_v49 = vadd.f32 %v1931_v39, %v4536_v15  ;;  %v2903_v6 = vpack.c.bf16 %v2252_v58, %v2252_v58  ;;  %v1053_v27 = vmul.f32 %v989_v23, %v541_v46  ;;  %v1738_v31 = vmul.f32 0.5, %v4498_v9  ;;  %v4626_v39 = vpop.f32.mrb[53].mxu1 }
 0x174   :  { %3249 = vtanh.f32 %v862_v32  ;;  %1376 = vst.msk [vmem:[%s5618_s5 + $0x68] sm:$0xf] %vm1349_vm2, %v2839_v42  ;;  %v544_v1 = vmul.f32 0.5, %v4502_v38  ;;  %v675_v53 = vmul.f32 %v611_v34, %v4543_v3  ;;  %v1808_v51 = vmul.f32 0.044715, %v4549_v37  ;;  %5645 = vst [vmem:[#allocation2_spill] sm:$0xff] %v4626_v39 }
 0x175   :  { %v2059_v2 = vmul.f32 0.7978846, %v1995_v49  ;;  %2573 = vst.msk [vmem:[%s5619_s6 + $0x68] sm:$0xf] %vm2546_vm3, %v2903_v6  ;;  %v2837_v9 = vpack.c.bf16 %v1053_v27, %v1053_v27  ;;  %v609_v46 = vmul.f32 0.044715, %v4556_v11  ;;  %v4610_v38 = vadd.f32 %v4261_v18, %v5644_v5 }
 0x176   :  { %v739_v36 = vmul.f32 %v675_v53, %v4543_v3  ;;  %v1872_v8 = vmul.f32 %v1808_v51, %v4549_v37  ;;  %v4616_v59 = vadd.f32 %v4277_v17, %v4047_v26  ;;  %v1741_v43 = vmul.f32 0.5, %v4510_v44  ;;  %v4641_v51 = vpop.f32.mrb[54].mxu0 }
 0x177   :  { %3251 = vtanh.f32 %v2059_v2  ;;  %1374 = vst.msk [vmem:[%s5618_s5 + $0x60] sm:$0xf] %vm1349_vm2, %v2837_v9  ;;  %v542_v33 = vmul.f32 0.5, %v4532_v19  ;;  %v673_v45 = vmul.f32 %v609_v46, %v4556_v11  ;;  %v1806_v14 = vmul.f32 0.044715, %v4606_v22  ;;  %5646 = vst [vmem:[#allocation3_spill] sm:$0xff] %v4641_v51 }
 0x178   :  { %v1739_v58 = vmul.f32 0.5, %v4536_v15  ;;  %v803_v26 = vadd.f32 %v739_v36, %v4543_v3  ;;  %v1936_v23 = vmul.f32 %v1872_v8, %v4549_v37  ;;  %v612_v32 = vmul.f32 0.044715, %v4610_v38 }
 0x179   :  { %v3244_v42 = vpop.eup %3243  ;;  %v737_v49 = vmul.f32 %v673_v45, %v4556_v11  ;;  %v1870_v44 = vmul.f32 %v1806_v14, %v4606_v22  ;;  %v1809_v19 = vmul.f32 0.044715, %v4616_v59  ;;  %v4637_v34 = vadd.f32 %v4261_v18, %v4049_v7  ;;  %v4646_v14 = vpop.f32.mrb[54].mxu1 }
 0x17a   :  { %v3246_v6 = vpop.eup %3245  ;;  %v2186_v27 = vadd.f32 1.0, %v3244_v42  ;;  %v867_v15 = vmul.f32 0.7978846, %v803_v26  ;;  %v2000_v2 = vadd.f32 %v1936_v23, %v4549_v37  ;;  %v676_v53 = vmul.f32 %v612_v32, %v4610_v38 }
 0x17b   :  { %v3248_v9 = vpop.eup %3247  ;;  %v992_v46 = vadd.f32 1.0, %v3246_v6  ;;  %v801_v55 = vadd.f32 %v737_v49, %v4556_v11  ;;  %v1934_v5 = vmul.f32 %v1870_v44, %v4606_v22  ;;  %v1873_v36 = vmul.f32 %v1809_v19, %v4616_v59  ;;  %v4650_v44 = vpop.f32.mrb[55].mxu0 }
 0x17c   :  { %v2250_v8 = vmul.f32 %v2186_v27, %v1738_v31  ;;  %v2189_v7 = vadd.f32 1.0, %v3248_v9  ;;  %3253 = vtanh.f32 %v867_v15  ;;  %v2064_v45 = vmul.f32 0.7978846, %v2000_v2 }
 0x17d   :  { %v1056_v23 = vmul.f32 %v992_v46, %v544_v1  ;;  %v865_v42 = vmul.f32 0.7978846, %v801_v55  ;;  %v1998_v32 = vadd.f32 %v1934_v5, %v4606_v22  ;;  %v740_v51 = vmul.f32 %v676_v53, %v4610_v38  ;;  %v4664_v55 = vpop.f32.mrb[55].mxu1 }
 0x17e   :  { %v3250_v26 = vpop.eup %3249  ;;  %v2901_v6 = vpack.c.bf16 %v2250_v8, %v2250_v8  ;;  %v2253_v39 = vmul.f32 %v2189_v7, %v1741_v43  ;;  %3255 = vtanh.f32 %v2064_v45  ;;  %v547_v53 = vmul.f32 0.5, %v4543_v3  ;;  %5647 = vst [vmem:[#allocation4_spill] sm:$0xff] %v4664_v55 }
 0x17f   :  { %v990_v49 = vadd.f32 1.0, %v3250_v26  ;;  %v2840_v19 = vpack.c.bf16 %v1056_v23, %v1056_v23  ;;  %3257 = vtanh.f32 %v865_v42  ;;  %v2062_v31 = vmul.f32 0.7978846, %v1998_v32  ;;  %v5650_v26 = vld [vmem:[#allocation8_spill] sm:$0xff] }
 0x180   :  { %v804_v27 = vadd.f32 %v740_v51, %v4610_v38  ;;  %2571 = vst.msk [vmem:[%s5619_s6 + $0x60] sm:$0xf] %vm2546_vm3, %v2901_v6  ;;  %v2904_v1 = vpack.c.bf16 %v2253_v39, %v2253_v39  ;;  %v1937_v43 = vmul.f32 %v1873_v36, %v4616_v59  ;;  %v610_v46 = vmul.f32 0.044715, %v4637_v34  ;;  %v5648_v39 = vld [vmem:[#allocation6_spill] sm:$0xff]  ;;  %v5649_v36 = vld [vmem:[#allocation7_spill] sm:$0xff] }
 0x181   :  { %v3252_v15 = vpop.eup %3251  ;;  %v1054_v2 = vmul.f32 %v990_v49, %v542_v33  ;;  %1377 = vst.msk [vmem:[%s5618_s5 + $0x6c] sm:$0xf] %vm1349_vm2, %v2840_v19  ;;  %3259 = vtanh.f32 %v2062_v31  ;;  %v4673_v5 = vadd.f32 %v4277_v17, %v5648_v39  ;;  %v4677_v8 = vadd.f32 %v4261_v18, %v5649_v36  ;;  %v5652_v36 = vld [vmem:[#allocation10_spill] sm:$0xff] }
 0x182   :  { %v2187_v9 = vadd.f32 1.0, %v3252_v15  ;;  %v868_v51 = vmul.f32 0.7978846, %v804_v27  ;;  %2574 = vst.msk [vmem:[%s5619_s6 + $0x6c] sm:$0xf] %vm2546_vm3, %v2904_v1  ;;  %v2001_v33 = vadd.f32 %v1937_v43, %v4616_v59  ;;  %v674_v45 = vmul.f32 %v610_v46, %v4637_v34  ;;  %v5651_v43 = vld [vmem:[#allocation9_spill] sm:$0xff] }
 0x183   :  { %v2838_v3 = vpack.c.bf16 %v1054_v2, %v1054_v2  ;;  %v4682_v23 = vadd.f32 %v4277_v17, %v5650_v26  ;;  %v1744_v42 = vmul.f32 0.5, %v4549_v37  ;;  %v545_v32 = vmul.f32 0.5, %v4556_v11 }
 0x184   :  { %v2251_v7 = vmul.f32 %v2187_v9, %v1739_v58  ;;  %3261 = vtanh.f32 %v868_v51  ;;  %v2065_v6 = vmul.f32 0.7978846, %v2001_v33  ;;  %v1807_v49 = vmul.f32 0.044715, %v4673_v5 }
 0x185   :  { %1375 = vst.msk [vmem:[%s5618_s5 + $0x64] sm:$0xf] %vm1349_vm2, %v2838_v3  ;;  %v1742_v19 = vmul.f32 0.5, %v4606_v22  ;;  %v738_v31 = vmul.f32 %v674_v45, %v4637_v34  ;;  %v615_v27 = vmul.f32 0.044715, %v4677_v8  ;;  %v4698_v37 = vadd.f32 %v4261_v18, %v5651_v43 }
 0x186   :  { %v2902_v58 = vpack.c.bf16 %v2251_v7, %v2251_v7  ;;  %v3254_v15 = vpop.eup %3253  ;;  %3263 = vtanh.f32 %v2065_v6  ;;  %v1871_v1 = vmul.f32 %v1807_v49, %v4673_v5  ;;  %v1812_v2 = vmul.f32 0.044715, %v4682_v23 }
 0x187   :  { %v995_v11 = vadd.f32 1.0, %v3254_v15  ;;  %v548_v22 = vmul.f32 0.5, %v4610_v38  ;;  %v802_v9 = vadd.f32 %v738_v31, %v4637_v34  ;;  %v679_v51 = vmul.f32 %v615_v27, %v4677_v8  ;;  %v4717_v31 = vpop.f32.mrb[56].mxu1 }
 0x188   :  { %2572 = vst.msk [vmem:[%s5619_s6 + $0x64] sm:$0xf] %vm2546_vm3, %v2902_v58  ;;  %v3256_v46 = vpop.eup %3255  ;;  %v1935_v3 = vmul.f32 %v1871_v1, %v4673_v5  ;;  %v1876_v33 = vmul.f32 %v1812_v2, %v4682_v23  ;;  %v613_v39 = vmul.f32 0.044715, %v4698_v37  ;;  %v4712_v7 = vadd.f32 %v4277_v17, %v5652_v36  ;;  %v4715_v58 = vpop.f32.mrb[56].mxu0  ;;  %5653 = vst [vmem:[#allocation5_spill] sm:$0xff] %v4717_v31 }
 0x189   :  { %v3258_v45 = vpop.eup %3257  ;;  %v1059_v26 = vmul.f32 %v995_v11, %v547_v53  ;;  %v2192_v6 = vadd.f32 1.0, %v3256_v46  ;;  %v866_v49 = vmul.f32 0.7978846, %v802_v9  ;;  %v743_v38 = vmul.f32 %v679_v51, %v4677_v8  ;;  %v4722_v43 = vpop.f32.mrb[57].mxu0 }
 0x18a   :  { %v993_v27 = vadd.f32 1.0, %v3258_v45  ;;  %v1999_v15 = vadd.f32 %v1935_v3, %v4673_v5  ;;  %v1940_v1 = vmul.f32 %v1876_v33, %v4682_v23  ;;  %v677_v2 = vmul.f32 %v613_v39, %v4698_v37  ;;  %v4725_v9 = vpop.f32.mrb[57].mxu1 }
 0x18b   :  { %v3260_v36 = vpop.eup %3259  ;;  %v2843_v55 = vpack.c.bf16 %v1059_v26, %v1059_v26  ;;  %v2256_v53 = vmul.f32 %v2192_v6, %v1744_v42  ;;  %3265 = vtanh.f32 %v866_v49  ;;  %v807_v11 = vadd.f32 %v743_v38, %v4677_v8 }
 0x18c   :  { %v1057_v51 = vmul.f32 %v993_v27, %v545_v32  ;;  %v2190_v46 = vadd.f32 1.0, %v3260_v36  ;;  %v2063_v31 = vmul.f32 0.7978846, %v1999_v15  ;;  %v2004_v45 = vadd.f32 %v1940_v1, %v4682_v23  ;;  %v4734_v32 = vpop.f32.mrb[58].mxu0  ;;  %v5654_v1 = vld [vmem:[#allocation11_spill] sm:$0xff]  ;;  %v5655_v36 = vld [vmem:[#allocation12_spill] sm:$0xff] }
 0x18d   :  { %1380 = vst.msk [vmem:[%s5618_s5 + $0x78] sm:$0xf] %vm1349_vm2, %v2843_v55  ;;  %v2907_v33 = vpack.c.bf16 %v2256_v53, %v2256_v53  ;;  %v1745_v39 = vmul.f32 0.5, %v4616_v59  ;;  %v871_v42 = vmul.f32 0.7978846, %v807_v11  ;;  %v741_v26 = vmul.f32 %v677_v2, %v4698_v37  ;;  %v4754_v11 = vpop.f32.mrb[58].mxu1 }
 0x18e   :  { %v3262_v3 = vpop.eup %3261  ;;  %v2841_v6 = vpack.c.bf16 %v1057_v51, %v1057_v51  ;;  %v2254_v49 = vmul.f32 %v2190_v46, %v1742_v19  ;;  %3267 = vtanh.f32 %v2063_v31  ;;  %v2068_v27 = vmul.f32 0.7978846, %v2004_v45 }
 0x18f   :  { %v996_v38 = vadd.f32 1.0, %v3262_v3  ;;  %2577 = vst.msk [vmem:[%s5619_s6 + $0x78] sm:$0xf] %vm2546_vm3, %v2907_v33  ;;  %3269 = vtanh.f32 %v871_v42  ;;  %v805_v55 = vadd.f32 %v741_v26, %v4698_v37  ;;  %v1810_v59 = vmul.f32 0.044715, %v4712_v7 }
 0x190   :  { %v3264_v15 = vpop.eup %3263  ;;  %1378 = vst.msk [vmem:[%s5618_s5 + $0x70] sm:$0xf] %vm1349_vm2, %v2841_v6  ;;  %v2905_v19 = vpack.c.bf16 %v2254_v49, %v2254_v49  ;;  %v4748_v2 = vadd.f32 %v4261_v18, %v5654_v1  ;;  %v4752_v53 = vadd.f32 %v4277_v17, %v5655_v36  ;;  %3271 = vtanh.f32 %v2068_v27 }
 0x191   :  { %v1060_v31 = vmul.f32 %v996_v38, %v548_v22  ;;  %v2193_v51 = vadd.f32 1.0, %v3264_v15  ;;  %v869_v46 = vmul.f32 0.7978846, %v805_v55  ;;  %v1874_v45 = vmul.f32 %v1810_v59, %v4712_v7  ;;  %v5657_v55 = vld [vmem:[#allocation14_spill] sm:$0xff] }
 0x192   :  { %2575 = vst.msk [vmem:[%s5619_s6 + $0x70] sm:$0xf] %vm2546_vm3, %v2905_v19  ;;  %v546_v3 = vmul.f32 0.5, %v4637_v34  ;;  %v1743_v33 = vmul.f32 0.5, %v4673_v5  ;;  %v616_v42 = vmul.f32 0.044715, %v4748_v2 }
 0x193   :  { %v2844_v22 = vpack.c.bf16 %v1060_v31, %v1060_v31  ;;  %v2257_v26 = vmul.f32 %v2193_v51, %v1745_v39  ;;  %3273 = vtanh.f32 %v869_v46  ;;  %v1938_v6 = vmul.f32 %v1874_v45, %v4712_v7  ;;  %v5656_v34 = vld [vmem:[#allocation13_spill] sm:$0xff] }
 0x194   :  { %v1813_v49 = vmul.f32 0.044715, %v4752_v53  ;;  %v551_v38 = vmul.f32 0.5, %v4677_v8  ;;  %v680_v27 = vmul.f32 %v616_v42, %v4748_v2  ;;  %v4774_v5 = vadd.f32 %v4261_v18, %v5656_v34  ;;  %v4802_v34 = vpop.f32.mrb[59].mxu0 }
 0x195   :  { %1381 = vst.msk [vmem:[%s5618_s5 + $0x7c] sm:$0xf] %vm1349_vm2, %v2844_v22  ;;  %v4778_v39 = vadd.f32 %v4277_v17, %v5657_v55  ;;  %v3266_v59 = vpop.eup %3265  ;;  %v2908_v15 = vpack.c.bf16 %v2257_v26, %v2257_v26  ;;  %v1748_v19 = vmul.f32 0.5, %v4682_v23  ;;  %v2002_v31 = vadd.f32 %v1938_v6, %v4712_v7  ;;  %5658 = vst [vmem:[#allocation6_spill] sm:$0xff] %v4802_v34  ;;  %v4804_v55 = vpop.f32.mrb[59].mxu1 }
 0x196   :  { %v1877_v1 = vmul.f32 %v1813_v49, %v4752_v53  ;;  %v994_v36 = vadd.f32 1.0, %v3266_v59  ;;  %v549_v8 = vmul.f32 0.5, %v4698_v37  ;;  %v744_v51 = vmul.f32 %v680_v27, %v4748_v2  ;;  %5659 = vst [vmem:[#allocation7_spill] sm:$0xff] %v4804_v55  ;;  %v4820_v55 = vpop.f32.mrb[60].mxu1 }
 0x197   :  { %v614_v46 = vmul.f32 0.044715, %v4774_v5  ;;  %2578 = vst.msk [vmem:[%s5619_s6 + $0x7c] sm:$0xf] %vm2546_vm3, %v2908_v15  ;;  %v2066_v45 = vmul.f32 0.7978846, %v2002_v31  ;;  %v4794_v42 = vadd.f32 %v4261_v18, %v4128_v41  ;;  %v4800_v27 = vadd.f32 %v4277_v17, %v4130_v48 }
 0x198   :  { %v1941_v22 = vmul.f32 %v1877_v1, %v4752_v53  ;;  %v1811_v23 = vmul.f32 0.044715, %v4778_v39  ;;  %v3268_v26 = vpop.eup %3267  ;;  %v1058_v37 = vmul.f32 %v994_v36, %v546_v3  ;;  %v808_v6 = vadd.f32 %v744_v51, %v4748_v2 }
 0x199   :  { %v678_v49 = vmul.f32 %v614_v46, %v4774_v5  ;;  %v3270_v59 = vpop.eup %3269  ;;  %v2191_v15 = vadd.f32 1.0, %v3268_v26  ;;  %3275 = vtanh.f32 %v2066_v45  ;;  %v619_v34 = vmul.f32 0.044715, %v4794_v42 }
 0x19a   :  { %v2005_v41 = vadd.f32 %v1941_v22, %v4752_v53  ;;  %v1875_v18 = vmul.f32 %v1811_v23, %v4778_v39  ;;  %v2842_v3 = vpack.c.bf16 %v1058_v37, %v1058_v37  ;;  %v999_v31 = vadd.f32 1.0, %v3270_v59  ;;  %v3272_v51 = vpop.eup %3271 }
 0x19b   :  { %v872_v1 = vmul.f32 0.7978846, %v808_v6  ;;  %v742_v36 = vmul.f32 %v678_v49, %v4774_v5  ;;  %v2255_v46 = vmul.f32 %v2191_v15, %v1743_v33  ;;  %v2196_v22 = vadd.f32 1.0, %v3272_v51  ;;  %v4838_v51 = vld [vmem:[%s5616_s2] ss:$0 sm:$0xff] }
 0x19c   :  { %v2069_v48 = vmul.f32 0.7978846, %v2005_v41  ;;  %v1939_v17 = vmul.f32 %v1875_v18, %v4778_v39  ;;  %1379 = vst.msk [vmem:[%s5618_s5 + $0x74] sm:$0xf] %vm1349_vm2, %v2842_v3  ;;  %v1063_v45 = vmul.f32 %v999_v31, %v551_v38  ;;  %v683_v6 = vmul.f32 %v619_v34, %v4794_v42  ;;  %v4818_v18 = vpop.f32.mrb[60].mxu0 }
 0x19d   :  { %3277 = vtanh.f32 %v872_v1  ;;  %v806_v23 = vadd.f32 %v742_v36, %v4774_v5  ;;  %v3274_v26 = vpop.eup %3273  ;;  %v2906_v37 = vpack.c.bf16 %v2255_v46, %v2255_v46  ;;  %v2260_v59 = vmul.f32 %v2196_v22, %v1748_v19  ;;  %v4829_v1 = vpop.f32.mrb[61].mxu0 }
 0x19e   :  { %3279 = vtanh.f32 %v2069_v48  ;;  %v2003_v33 = vadd.f32 %v1939_v17, %v4778_v39  ;;  %v2847_v49 = vpack.c.bf16 %v1063_v45, %v1063_v45  ;;  %v997_v15 = vadd.f32 1.0, %v3274_v26  ;;  %v4849_v17 = vld [vmem:[%s5617_s4] ss:$0 sm:$0xff] }
 0x19f   :  { %v870_v41 = vmul.f32 0.7978846, %v806_v23  ;;  %2576 = vst.msk [vmem:[%s5619_s6 + $0x74] sm:$0xf] %vm2546_vm3, %v2906_v37  ;;  %v1746_v38 = vmul.f32 0.5, %v4712_v7  ;;  %v747_v31 = vmul.f32 %v683_v6, %v4794_v42  ;;  %v2911_v19 = vpack.c.bf16 %v2260_v59, %v2260_v59 }
 0x1a0   :  { %v2067_v3 = vmul.f32 0.7978846, %v2003_v33  ;;  %v1816_v34 = vmul.f32 0.044715, %v4800_v27  ;;  %1384 = vst.msk [vmem:[%s5618_s5 + $0x88] sm:$0xf] %vm1349_vm2, %v2847_v49  ;;  %v1061_v36 = vmul.f32 %v997_v15, %v549_v8  ;;  %v4842_v7 = vadd.f32 %v4838_v51, %v4133_v54 }
 0x1a1   :  { %3281 = vtanh.f32 %v870_v41  ;;  %v811_v46 = vadd.f32 %v747_v31, %v4794_v42  ;;  %v4853_v8 = vadd.f32 %v4849_v17, %v4135_v57  ;;  %2581 = vst.msk [vmem:[%s5619_s6 + $0x88] sm:$0xf] %vm2546_vm3, %v2911_v19  ;;  %v552_v45 = vmul.f32 0.5, %v4748_v2  ;;  %v4868_v49 = vpop.f32.mrb[61].mxu1 }
 0x1a2   :  { %3283 = vtanh.f32 %v2067_v3  ;;  %v1880_v48 = vmul.f32 %v1816_v34, %v4800_v27  ;;  %v2845_v54 = vpack.c.bf16 %v1061_v36, %v1061_v36  ;;  %v617_v22 = vmul.f32 0.044715, %v4842_v7  ;;  %5660 = vst [vmem:[#allocation8_spill] sm:$0xff] %v4868_v49 }
 0x1a3   :  { %v4863_v23 = vadd.f32 %v4838_v51, %v4142_v25  ;;  %v3276_v26 = vpop.eup %3275  ;;  %v1749_v37 = vmul.f32 0.5, %v4752_v53  ;;  %v875_v33 = vmul.f32 0.7978846, %v811_v46  ;;  %v1814_v6 = vmul.f32 0.044715, %v4853_v8 }
 0x1a4   :  { %v1944_v57 = vmul.f32 %v1880_v48, %v4800_v27  ;;  %1382 = vst.msk [vmem:[%s5618_s5 + $0x80] sm:$0xf] %vm1349_vm2, %v2845_v54  ;;  %v2194_v2 = vadd.f32 1.0, %v3276_v26  ;;  %v550_v59 = vmul.f32 0.5, %v4774_v5  ;;  %v681_v25 = vmul.f32 %v617_v22, %v4842_v7  ;;  %v5661_v26 = vld [vmem:[#allocation15_spill] sm:$0xff] }
 0x1a5   :  { %v620_v15 = vmul.f32 0.044715, %v4863_v23  ;;  %3285 = vtanh.f32 %v875_v33  ;;  %v1878_v41 = vmul.f32 %v1814_v6, %v4853_v8  ;;  %v4881_v3 = vadd.f32 %v4849_v17, %v4144_v16  ;;  %v4893_v16 = vpop.f32.mrb[62].mxu1 }
 0x1a6   :  { %v2008_v53 = vadd.f32 %v1944_v57, %v4800_v27  ;;  %v2258_v34 = vmul.f32 %v2194_v2, %v1746_v38  ;;  %v1747_v19 = vmul.f32 0.5, %v4778_v39  ;;  %v745_v36 = vmul.f32 %v681_v25, %v4842_v7  ;;  %v4891_v57 = vpop.f32.mrb[62].mxu0  ;;  %5663 = vst [vmem:[#allocation10_spill] sm:$0xff] %v4893_v16  ;;  %v4908_v16 = vpop.f32.mrb[63].mxu1 }
 0x1a7   :  { %v3278_v31 = vpop.eup %3277  ;;  %v684_v5 = vmul.f32 %v620_v15, %v4863_v23  ;;  %v1942_v22 = vmul.f32 %v1878_v41, %v4853_v8  ;;  %v4889_v33 = vadd.f32 %v4838_v51, %v5661_v26  ;;  %5662 = vst [vmem:[#allocation9_spill] sm:$0xff] %v4891_v57 }
 0x1a8   :  { %v3280_v46 = vpop.eup %3279  ;;  %v1000_v48 = vadd.f32 1.0, %v3278_v31  ;;  %v2072_v54 = vmul.f32 0.7978846, %v2008_v53  ;;  %v2909_v38 = vpack.c.bf16 %v2258_v34, %v2258_v34  ;;  %v809_v39 = vadd.f32 %v745_v36, %v4842_v7 }
 0x1a9   :  { %v2197_v6 = vadd.f32 1.0, %v3280_v46  ;;  %v748_v2 = vmul.f32 %v684_v5, %v4863_v23  ;;  %v2006_v15 = vadd.f32 %v1942_v22, %v4853_v8  ;;  %v1817_v53 = vmul.f32 0.044715, %v4881_v3  ;;  %v4906_v22 = vpop.f32.mrb[63].mxu0 }
 0x1aa   :  { %v1064_v25 = vmul.f32 %v1000_v48, %v552_v45  ;;  %3287 = vtanh.f32 %v2072_v54  ;;  %2579 = vst.msk [vmem:[%s5619_s6 + $0x80] sm:$0xf] %vm2546_vm3, %v2909_v38  ;;  %v555_v34 = vmul.f32 0.5, %v4794_v42  ;;  %v873_v46 = vmul.f32 0.7978846, %v809_v39 }
 0x1ab   :  { %v3282_v41 = vpop.eup %3281  ;;  %v2261_v31 = vmul.f32 %v2197_v6, %v1749_v37  ;;  %v812_v36 = vadd.f32 %v748_v2, %v4863_v23  ;;  %v2070_v48 = vmul.f32 0.7978846, %v2006_v15  ;;  %v1881_v54 = vmul.f32 %v1817_v53, %v4881_v3  ;;  %v5664_v2 = vld [vmem:[#allocation16_spill] sm:$0xff] }
 0x1ac   :  { %v3284_v26 = vpop.eup %3283  ;;  %v2848_v5 = vpack.c.bf16 %v1064_v25, %v1064_v25  ;;  %v998_v45 = vadd.f32 1.0, %v3282_v41  ;;  %3289 = vtanh.f32 %v873_v46  ;;  %v618_v6 = vmul.f32 0.044715, %v4889_v33 }
 0x1ad   :  { %v2912_v57 = vpack.c.bf16 %v2261_v31, %v2261_v31  ;;  %v2195_v49 = vadd.f32 1.0, %v3284_v26  ;;  %v876_v38 = vmul.f32 0.7978846, %v812_v36  ;;  %3291 = vtanh.f32 %v2070_v48 }
 0x1ae   :  { %1385 = vst.msk [vmem:[%s5618_s5 + $0x8c] sm:$0xf] %vm1349_vm2, %v2848_v5  ;;  %v1062_v42 = vmul.f32 %v998_v45, %v550_v59  ;;  %v1945_v37 = vmul.f32 %v1881_v54, %v4881_v3  ;;  %v4922_v25 = vadd.f32 %v4849_v17, %v5664_v2  ;;  %v4926_v15 = vadd.f32 %v4838_v51, %v4217_v0 }
 0x1af   :  { %2582 = vst.msk [vmem:[%s5619_s6 + $0x8c] sm:$0xf] %vm2546_vm3, %v2912_v57  ;;  %v2259_v39 = vmul.f32 %v2195_v49, %v1747_v19  ;;  %3293 = vtanh.f32 %v876_v38  ;;  %v3286_v59 = vpop.eup %3285  ;;  %v682_v31 = vmul.f32 %v618_v6, %v4889_v33  ;;  %v4932_v46 = vadd.f32 %v4849_v17, %v4219_v40 }
 0x1b0   :  { %v2846_v53 = vpack.c.bf16 %v1062_v42, %v1062_v42  ;;  %v2009_v41 = vadd.f32 %v1945_v37, %v4881_v3  ;;  %v1003_v19 = vadd.f32 1.0, %v3286_v59  ;;  %v1752_v57 = vmul.f32 0.5, %v4800_v27  ;;  %v5665_v37 = vld [vmem:[#allocation17_spill] sm:$0xff] }
 0x1b1   :  { %v2910_v49 = vpack.c.bf16 %v2259_v39, %v2259_v39  ;;  %v1815_v36 = vmul.f32 0.044715, %v4922_v25  ;;  %v553_v0 = vmul.f32 0.5, %v4842_v7  ;;  %v746_v5 = vmul.f32 %v682_v31, %v4889_v33 }
 0x1b2   :  { %1383 = vst.msk [vmem:[%s5618_s5 + $0x84] sm:$0xf] %vm1349_vm2, %v2846_v53  ;;  %v2073_v26 = vmul.f32 0.7978846, %v2009_v41  ;;  %v623_v45 = vmul.f32 0.044715, %v4926_v15  ;;  %v1067_v40 = vmul.f32 %v1003_v19, %v555_v34  ;;  %v4954_v6 = vadd.f32 %v4838_v51, %v5665_v37 }
 0x1b3   :  { %2580 = vst.msk [vmem:[%s5619_s6 + $0x84] sm:$0xf] %vm2546_vm3, %v2910_v49  ;;  %v1750_v27 = vmul.f32 0.5, %v4853_v8  ;;  %v1879_v48 = vmul.f32 %v1815_v36, %v4922_v25  ;;  %v1820_v54 = vmul.f32 0.044715, %v4932_v46  ;;  %v810_v7 = vadd.f32 %v746_v5, %v4889_v33  ;;  %v5666_v5 = vld [vmem:[#allocation18_spill] sm:$0xff] }
 0x1b4   :  { %v3288_v38 = vpop.eup %3287  ;;  %3295 = vtanh.f32 %v2073_v26  ;;  %v687_v42 = vmul.f32 %v623_v45, %v4926_v15  ;;  %v2851_v39 = vpack.c.bf16 %v1067_v40, %v1067_v40  ;;  %v556_v59 = vmul.f32 0.5, %v4863_v23 }
 0x1b5   :  { %v2200_v2 = vadd.f32 1.0, %v3288_v38  ;;  %v1943_v34 = vmul.f32 %v1879_v48, %v4922_v25  ;;  %v1884_v8 = vmul.f32 %v1820_v54, %v4932_v46  ;;  %v874_v53 = vmul.f32 0.7978846, %v810_v7 }
 0x1b6   :  { %v751_v41 = vmul.f32 %v687_v42, %v4926_v15  ;;  %v621_v31 = vmul.f32 0.044715, %v4954_v6  ;;  %v3290_v49 = vpop.eup %3289  ;;  %1388 = vst.msk [vmem:[%s5618_s5 + $0x98] sm:$0xf] %vm1349_vm2, %v2851_v39  ;;  %v4969_v45 = vadd.f32 %v4849_v17, %v5666_v5  ;;  %v5667_v5 = vld [vmem:[#allocation19_spill] sm:$0xff] }
 0x1b7   :  { %v2264_v19 = vmul.f32 %v2200_v2, %v1752_v57  ;;  %v2007_v36 = vadd.f32 %v1943_v34, %v4922_v25  ;;  %v1948_v26 = vmul.f32 %v1884_v8, %v4932_v46  ;;  %v3292_v23 = vpop.eup %3291  ;;  %v1001_v40 = vadd.f32 1.0, %v3290_v49 }
 0x1b8   :  { %3297 = vtanh.f32 %v874_v53  ;;  %v815_v48 = vadd.f32 %v751_v41, %v4926_v15  ;;  %v685_v54 = vmul.f32 %v621_v31, %v4954_v6  ;;  %v2198_v42 = vadd.f32 1.0, %v3292_v23 }
 0x1b9   :  { %v3294_v38 = vpop.eup %3293  ;;  %v2915_v7 = vpack.c.bf16 %v2264_v19, %v2264_v19  ;;  %v2071_v37 = vmul.f32 0.7978846, %v2007_v36  ;;  %v2012_v57 = vadd.f32 %v1948_v26, %v4932_v46  ;;  %v1065_v39 = vmul.f32 %v1001_v40, %v553_v0 }
 0x1ba   :  { %v1004_v2 = vadd.f32 1.0, %v3294_v38  ;;  %v879_v34 = vmul.f32 0.7978846, %v815_v48  ;;  %v749_v8 = vmul.f32 %v685_v54, %v4954_v6  ;;  %v2262_v53 = vmul.f32 %v2198_v42, %v1750_v27  ;;  %v5669_v54 = vld [vmem:[#allocation21_spill] sm:$0xff] }
 0x1bb   :  { %2585 = vst.msk [vmem:[%s5619_s6 + $0x98] sm:$0xf] %vm2546_vm3, %v2915_v7  ;;  %v1753_v41 = vmul.f32 0.5, %v4881_v3  ;;  %3299 = vtanh.f32 %v2071_v37  ;;  %v2076_v31 = vmul.f32 0.7978846, %v2012_v57  ;;  %v2849_v49 = vpack.c.bf16 %v1065_v39, %v1065_v39 }
 0x1bc   :  { %v1068_v19 = vmul.f32 %v1004_v2, %v556_v59  ;;  %3301 = vtanh.f32 %v879_v34  ;;  %v813_v36 = vadd.f32 %v749_v8, %v4954_v6  ;;  %v2913_v0 = vpack.c.bf16 %v2262_v53, %v2262_v53  ;;  %v5668_v59 = vld [vmem:[#allocation20_spill] sm:$0xff] }
 0x1bd   :  { %3303 = vtanh.f32 %v2076_v31  ;;  %v1818_v26 = vmul.f32 0.044715, %v4969_v45  ;;  %v4984_v23 = vadd.f32 %v4838_v51, %v5667_v5  ;;  %1386 = vst.msk [vmem:[%s5618_s5 + $0x90] sm:$0xf] %vm1349_vm2, %v2849_v49  ;;  %v4992_v48 = vadd.f32 %v4849_v17, %v5668_v59 }
 0x1be   :  { %v3296_v40 = vpop.eup %3295  ;;  %v2852_v3 = vpack.c.bf16 %v1068_v19, %v1068_v19  ;;  %v877_v27 = vmul.f32 0.7978846, %v813_v36  ;;  %v4996_v38 = vadd.f32 %v4838_v51, %v5669_v54  ;;  %2583 = vst.msk [vmem:[%s5619_s6 + $0x90] sm:$0xf] %vm2546_vm3, %v2913_v0  ;;  %v554_v42 = vmul.f32 0.5, %v4889_v33 }
 0x1bf   :  { %v2201_v7 = vadd.f32 1.0, %v3296_v40  ;;  %v1882_v37 = vmul.f32 %v1818_v26, %v4969_v45  ;;  %v624_v57 = vmul.f32 0.044715, %v4984_v23  ;;  %v1751_v39 = vmul.f32 0.5, %v4922_v25  ;;  %v5670_v25 = vld [vmem:[#allocation22_spill] sm:$0xff] }
 0x1c0   :  { %1389 = vst.msk [vmem:[%s5618_s5 + $0x9c] sm:$0xf] %vm1349_vm2, %v2852_v3  ;;  %v559_v2 = vmul.f32 0.5, %v4926_v15  ;;  %3305 = vtanh.f32 %v877_v27  ;;  %v1821_v34 = vmul.f32 0.044715, %v4992_v48  ;;  %v1756_v19 = vmul.f32 0.5, %v4932_v46 }
 0x1c1   :  { %v2265_v8 = vmul.f32 %v2201_v7, %v1753_v41  ;;  %v1946_v53 = vmul.f32 %v1882_v37, %v4969_v45  ;;  %v688_v33 = vmul.f32 %v624_v57, %v4984_v23  ;;  %v622_v31 = vmul.f32 0.044715, %v4996_v38 }
 0x1c2   :  { %v3298_v49 = vpop.eup %3297  ;;  %v557_v36 = vmul.f32 0.5, %v4954_v6  ;;  %v1885_v0 = vmul.f32 %v1821_v34, %v4992_v48  ;;  %v5020_v15 = vadd.f32 %v4849_v17, %v5670_v25  ;;  %v5029_v6 = vadd.f32 %v4838_v51, %v4339_v30 }
 0x1c3   :  { %v2916_v26 = vpack.c.bf16 %v2265_v8, %v2265_v8  ;;  %v1002_v5 = vadd.f32 1.0, %v3298_v49  ;;  %v2010_v41 = vadd.f32 %v1946_v53, %v4969_v45  ;;  %v752_v40 = vmul.f32 %v688_v33, %v4984_v23 }
 0x1c4   :  { %v1949_v3 = vmul.f32 %v1885_v0, %v4992_v48  ;;  %v686_v27 = vmul.f32 %v622_v31, %v4996_v38  ;;  %v1819_v46 = vmul.f32 0.044715, %v5020_v15  ;;  %v5038_v57 = vadd.f32 %v4849_v17, %v4341_v63 }
 0x1c5   :  { %v3300_v59 = vpop.eup %3299  ;;  %2586 = vst.msk [vmem:[%s5619_s6 + $0x9c] sm:$0xf] %vm2546_vm3, %v2916_v26  ;;  %v1066_v54 = vmul.f32 %v1002_v5, %v554_v42  ;;  %v2074_v7 = vmul.f32 0.7978846, %v2010_v41  ;;  %v816_v37 = vadd.f32 %v752_v40, %v4984_v23 }
 0x1c6   :  { %v3302_v34 = vpop.eup %3301  ;;  %v2199_v8 = vadd.f32 1.0, %v3300_v59  ;;  %v2013_v53 = vadd.f32 %v1949_v3, %v4992_v48  ;;  %v750_v30 = vmul.f32 %v686_v27, %v4996_v38  ;;  %v1883_v33 = vmul.f32 %v1819_v46, %v5020_v15 }
 0x1c7   :  { %v3304_v31 = vpop.eup %3303  ;;  %v2850_v49 = vpack.c.bf16 %v1066_v54, %v1066_v54  ;;  %v1007_v0 = vadd.f32 1.0, %v3302_v34  ;;  %3307 = vtanh.f32 %v2074_v7  ;;  %v880_v42 = vmul.f32 0.7978846, %v816_v37 }
 0x1c8   :  { %v2263_v25 = vmul.f32 %v2199_v8, %v1751_v39  ;;  %v2204_v26 = vadd.f32 1.0, %v3304_v31  ;;  %v2077_v5 = vmul.f32 0.7978846, %v2013_v53  ;;  %v814_v41 = vadd.f32 %v750_v30, %v4996_v38 }
 0x1c9   :  { %1387 = vst.msk [vmem:[%s5618_s5 + $0x94] sm:$0xf] %vm1349_vm2, %v2850_v49  ;;  %v1071_v63 = vmul.f32 %v1007_v0, %v559_v2  ;;  %3309 = vtanh.f32 %v880_v42  ;;  %v1947_v40 = vmul.f32 %v1883_v33, %v5020_v15  ;;  %v627_v3 = vmul.f32 0.044715, %v5029_v6 }
 0x1ca   :  { %v3306_v27 = vpop.eup %3305  ;;  %v2914_v46 = vpack.c.bf16 %v2263_v25, %v2263_v25  ;;  %v2268_v59 = vmul.f32 %v2204_v26, %v1756_v19  ;;  %3311 = vtanh.f32 %v2077_v5  ;;  %v878_v39 = vmul.f32 0.7978846, %v814_v41 }
 0x1cb   :  { %v2855_v54 = vpack.c.bf16 %v1071_v63, %v1071_v63  ;;  %v1005_v7 = vadd.f32 1.0, %v3306_v27  ;;  %v2011_v37 = vadd.f32 %v1947_v40, %v5020_v15  ;;  %v691_v34 = vmul.f32 %v627_v3, %v5029_v6 }
 0x1cc   :  { %2584 = vst.msk [vmem:[%s5619_s6 + $0x94] sm:$0xf] %vm2546_vm3, %v2914_v46  ;;  %v2919_v2 = vpack.c.bf16 %v2268_v59, %v2268_v59  ;;  %v1754_v8 = vmul.f32 0.5, %v4969_v45  ;;  %3313 = vtanh.f32 %v878_v39  ;;  %v1824_v53 = vmul.f32 0.044715, %v5038_v57 }
 0x1cd   :  { %1392 = vst.msk [vmem:[%s5618_s5 + $0xa8] sm:$0xf] %vm1349_vm2, %v2855_v54  ;;  %v1069_v19 = vmul.f32 %v1005_v7, %v557_v36  ;;  %v2075_v30 = vmul.f32 0.7978846, %v2011_v37  ;;  %v755_v33 = vmul.f32 %v691_v34, %v5029_v6  ;;  %v5065_v31 = vadd.f32 %v4838_v51, %v4367_v50 }
 0x1ce   :  { %2589 = vst.msk [vmem:[%s5619_s6 + $0xa8] sm:$0xf] %vm2546_vm3, %v2919_v2  ;;  %v560_v45 = vmul.f32 0.5, %v4984_v23  ;;  %v1888_v49 = vmul.f32 %v1824_v53, %v5038_v57  ;;  %v5075_v0 = vadd.f32 %v4849_v17, %v4383_v10  ;;  %v5079_v36 = vadd.f32 %v4838_v51, %v4390_v47 }
 0x1cf   :  { %v2853_v42 = vpack.c.bf16 %v1069_v19, %v1069_v19  ;;  %3315 = vtanh.f32 %v2075_v30  ;;  %v819_v50 = vadd.f32 %v755_v33, %v5029_v6  ;;  %v5084_v25 = vadd.f32 %v4849_v17, %v4392_v52 }
 0x1d0   :  { %v1757_v23 = vmul.f32 0.5, %v4992_v48  ;;  %v1952_v26 = vmul.f32 %v1888_v49, %v5038_v57  ;;  %v625_v5 = vmul.f32 0.044715, %v5065_v31  ;;  %v1822_v10 = vmul.f32 0.044715, %v5075_v0 }
 0x1d1   :  { %v3308_v41 = vpop.eup %3307  ;;  %1390 = vst.msk [vmem:[%s5618_s5 + $0xa0] sm:$0xf] %vm1349_vm2, %v2853_v42  ;;  %v558_v47 = vmul.f32 0.5, %v4996_v38  ;;  %v1755_v63 = vmul.f32 0.5, %v5020_v15  ;;  %v883_v52 = vmul.f32 0.7978846, %v819_v50  ;;  %v5104_v38 = vadd.f32 %v4838_v51, %v4401_v20 }
 0x1d2   :  { %v628_v40 = vmul.f32 0.044715, %v5079_v36  ;;  %v2202_v48 = vadd.f32 1.0, %v3308_v41  ;;  %v2016_v3 = vadd.f32 %v1952_v26, %v5038_v57  ;;  %v689_v27 = vmul.f32 %v625_v5, %v5065_v31 }
 0x1d3   :  { %v1886_v46 = vmul.f32 %v1822_v10, %v5075_v0  ;;  %v3310_v59 = vpop.eup %3309  ;;  %3317 = vtanh.f32 %v883_v52  ;;  %v1825_v54 = vmul.f32 0.044715, %v5084_v25  ;;  %v563_v52 = vmul.f32 0.5, %v5029_v6 }
 0x1d4   :  { %v692_v39 = vmul.f32 %v628_v40, %v5079_v36  ;;  %v3312_v15 = vpop.eup %3311  ;;  %v2266_v7 = vmul.f32 %v2202_v48, %v1754_v8  ;;  %v1008_v37 = vadd.f32 1.0, %v3310_v59  ;;  %v2080_v34 = vmul.f32 0.7978846, %v2016_v3 }
 0x1d5   :  { %v753_v2 = vmul.f32 %v689_v27, %v5065_v31  ;;  %v2205_v53 = vadd.f32 1.0, %v3312_v15  ;;  %v1950_v19 = vmul.f32 %v1886_v46, %v5075_v0  ;;  %v1889_v33 = vmul.f32 %v1825_v54, %v5084_v25 }
 0x1d6   :  { %v756_v30 = vmul.f32 %v692_v39, %v5079_v36  ;;  %v3314_v49 = vpop.eup %3313  ;;  %v2917_v42 = vpack.c.bf16 %v2266_v7, %v2266_v7  ;;  %v1072_v50 = vmul.f32 %v1008_v37, %v560_v45  ;;  %3319 = vtanh.f32 %v2080_v34 }
 0x1d7   :  { %v817_v20 = vadd.f32 %v753_v2, %v5065_v31  ;;  %v2269_v26 = vmul.f32 %v2205_v53, %v1757_v23  ;;  %v1006_v5 = vadd.f32 1.0, %v3314_v49  ;;  %v2014_v8 = vadd.f32 %v1950_v19, %v5075_v0 }
 0x1d8   :  { %v820_v10 = vadd.f32 %v756_v30, %v5079_v36  ;;  %2587 = vst.msk [vmem:[%s5619_s6 + $0xa0] sm:$0xf] %vm2546_vm3, %v2917_v42  ;;  %v2856_v41 = vpack.c.bf16 %v1072_v50, %v1072_v50  ;;  %v1953_v45 = vmul.f32 %v1889_v33, %v5084_v25  ;;  %v626_v54 = vmul.f32 0.044715, %v5104_v38 }
 0x1d9   :  { %v881_v40 = vmul.f32 0.7978846, %v817_v20  ;;  %v3316_v48 = vpop.eup %3315  ;;  %v2920_v3 = vpack.c.bf16 %v2269_v26, %v2269_v26  ;;  %v1070_v27 = vmul.f32 %v1006_v5, %v558_v47  ;;  %v2078_v23 = vmul.f32 0.7978846, %v2014_v8 }
 0x1da   :  { %v884_v46 = vmul.f32 0.7978846, %v820_v10  ;;  %1393 = vst.msk [vmem:[%s5618_s5 + $0xac] sm:$0xf] %vm1349_vm2, %v2856_v41  ;;  %v2203_v59 = vadd.f32 1.0, %v3316_v48  ;;  %v2017_v39 = vadd.f32 %v1953_v45, %v5084_v25  ;;  %v5131_v47 = vadd.f32 %v4849_v17, %v4440_v29 }
 0x1db   :  { %3321 = vtanh.f32 %v881_v40  ;;  %2590 = vst.msk [vmem:[%s5619_s6 + $0xac] sm:$0xf] %vm2546_vm3, %v2920_v3  ;;  %v2854_v6 = vpack.c.bf16 %v1070_v27, %v1070_v27  ;;  %v5135_v15 = vadd.f32 %v4838_v51, %v4474_v21  ;;  %v690_v34 = vmul.f32 %v626_v54, %v5104_v38 }
 0x1dc   :  { %3323 = vtanh.f32 %v2078_v23  ;;  %v2267_v7 = vmul.f32 %v2203_v59, %v1755_v63  ;;  %v2081_v37 = vmul.f32 0.7978846, %v2017_v39  ;;  %v1760_v53 = vmul.f32 0.5, %v5038_v57 }
 0x1dd   :  { %3325 = vtanh.f32 %v884_v46  ;;  %v3318_v2 = vpop.eup %3317  ;;  %1391 = vst.msk [vmem:[%s5618_s5 + $0xa4] sm:$0xf] %vm1349_vm2, %v2854_v6  ;;  %v561_v29 = vmul.f32 0.5, %v5065_v31  ;;  %v1823_v19 = vmul.f32 0.044715, %v5131_v47  ;;  %v754_v33 = vmul.f32 %v690_v34, %v5104_v38 }
 0x1de   :  { %v631_v21 = vmul.f32 0.044715, %v5135_v15  ;;  %v2918_v30 = vpack.c.bf16 %v2267_v7, %v2267_v7  ;;  %v1011_v63 = vadd.f32 1.0, %v3318_v2  ;;  %3327 = vtanh.f32 %v2081_v37 }
 0x1df   :  { %v1887_v49 = vmul.f32 %v1823_v19, %v5131_v47  ;;  %v5151_v50 = vadd.f32 %v4849_v17, %v4476_v24  ;;  %v5155_v57 = vadd.f32 %v4838_v51, %v4480_v35  ;;  %v1758_v26 = vmul.f32 0.5, %v5075_v0 }
 0x1e0   :  { %v695_v42 = vmul.f32 %v631_v21, %v5135_v15  ;;  %v3320_v31 = vpop.eup %3319  ;;  %2588 = vst.msk [vmem:[%s5619_s6 + $0xa4] sm:$0xf] %vm2546_vm3, %v2918_v30  ;;  %v1075_v20 = vmul.f32 %v1011_v63, %v563_v52  ;;  %v818_v5 = vadd.f32 %v754_v33, %v5104_v38  ;;  %v5165_v8 = vadd.f32 %v4849_v17, %v4487_v4 }
 0x1e1   :  { %v2208_v24 = vadd.f32 1.0, %v3320_v31  ;;  %v564_v10 = vmul.f32 0.5, %v5079_v36  ;;  %v1951_v35 = vmul.f32 %v1887_v49, %v5131_v47  ;;  %v1761_v45 = vmul.f32 0.5, %v5084_v25 }
 0x1e2   :  { %v759_v41 = vmul.f32 %v695_v42, %v5135_v15  ;;  %v2859_v40 = vpack.c.bf16 %v1075_v20, %v1075_v20  ;;  %v882_v48 = vmul.f32 0.7978846, %v818_v5  ;;  %v1828_v52 = vmul.f32 0.044715, %v5151_v50 }
 0x1e3   :  { %v2272_v0 = vmul.f32 %v2208_v24, %v1760_v53  ;;  %v2015_v3 = vadd.f32 %v1951_v35, %v5131_v47  ;;  %v629_v4 = vmul.f32 0.044715, %v5155_v57  ;;  %v1826_v25 = vmul.f32 0.044715, %v5165_v8 }
 0x1e4   :  { %v823_v27 = vadd.f32 %v759_v41, %v5135_v15  ;;  %1396 = vst.msk [vmem:[%s5618_s5 + $0xb8] sm:$0xf] %vm1349_vm2, %v2859_v40  ;;  %3329 = vtanh.f32 %v882_v48  ;;  %v1892_v36 = vmul.f32 %v1828_v52, %v5151_v50  ;;  %v5183_v46 = vadd.f32 %v4838_v51, %v4490_v62 }
 0x1e5   :  { %v3322_v23 = vpop.eup %3321  ;;  %v2923_v39 = vpack.c.bf16 %v2272_v0, %v2272_v0  ;;  %v2079_v6 = vmul.f32 0.7978846, %v2015_v3  ;;  %v693_v53 = vmul.f32 %v629_v4, %v5155_v57  ;;  %v1890_v19 = vmul.f32 %v1826_v25, %v5165_v8 }
 0x1e6   :  { %v3324_v59 = vpop.eup %3323  ;;  %v1009_v54 = vadd.f32 1.0, %v3322_v23  ;;  %v887_v7 = vmul.f32 0.7978846, %v823_v27  ;;  %v1956_v2 = vmul.f32 %v1892_v36, %v5151_v50  ;;  %v562_v30 = vmul.f32 0.5, %v5104_v38 }
 0x1e7   :  { %v3326_v37 = vpop.eup %3325  ;;  %v2206_v34 = vadd.f32 1.0, %v3324_v59  ;;  %2593 = vst.msk [vmem:[%s5619_s6 + $0xb8] sm:$0xf] %vm2546_vm3, %v2923_v39  ;;  %3331 = vtanh.f32 %v2079_v6  ;;  %v757_v42 = vmul.f32 %v693_v53, %v5155_v57  ;;  %v1954_v24 = vmul.f32 %v1890_v19, %v5165_v8 }
 0x1e8   :  { %v1073_v62 = vmul.f32 %v1009_v54, %v561_v29  ;;  %v1012_v21 = vadd.f32 1.0, %v3326_v37  ;;  %v3328_v63 = vpop.eup %3327  ;;  %3333 = vtanh.f32 %v887_v7  ;;  %v2020_v49 = vadd.f32 %v1956_v2, %v5151_v50 }
 0x1e9   :  { %v2270_v33 = vmul.f32 %v2206_v34, %v1758_v26  ;;  %v2209_v5 = vadd.f32 1.0, %v3328_v63  ;;  %v821_v29 = vadd.f32 %v757_v42, %v5155_v57  ;;  %v632_v40 = vmul.f32 0.044715, %v5183_v46 }
 0x1ea   :  { %v2857_v31 = vpack.c.bf16 %v1073_v62, %v1073_v62  ;;  %v1076_v20 = vmul.f32 %v1012_v21, %v564_v10  ;;  %v2084_v41 = vmul.f32 0.7978846, %v2020_v49  ;;  %v2018_v48 = vadd.f32 %v1954_v24, %v5165_v8 }
 0x1eb   :  { %v2921_v35 = vpack.c.bf16 %v2270_v33, %v2270_v33  ;;  %v2273_v26 = vmul.f32 %v2209_v5, %v1761_v45  ;;  %v5205_v10 = vadd.f32 %v4849_v17, %v4522_v60  ;;  %v885_v52 = vmul.f32 0.7978846, %v821_v29 }
 0x1ec   :  { %1394 = vst.msk [vmem:[%s5618_s5 + $0xb0] sm:$0xf] %vm1349_vm2, %v2857_v31  ;;  %v2860_v38 = vpack.c.bf16 %v1076_v20, %v1076_v20  ;;  %3335 = vtanh.f32 %v2084_v41  ;;  %v696_v0 = vmul.f32 %v632_v40, %v5183_v46  ;;  %v5214_v3 = vadd.f32 %v4838_v51, %v4558_v61 }
 0x1ed   :  { %2591 = vst.msk [vmem:[%s5619_s6 + $0xb0] sm:$0xf] %vm2546_vm3, %v2921_v35  ;;  %v2924_v60 = vpack.c.bf16 %v2273_v26, %v2273_v26  ;;  %v1759_v45 = vmul.f32 0.5, %v5131_v47  ;;  %v2082_v27 = vmul.f32 0.7978846, %v2018_v48  ;;  %v567_v36 = vmul.f32 0.5, %v5135_v15 }
 0x1ee   :  { %1397 = vst.msk [vmem:[%s5618_s5 + $0xbc] sm:$0xf] %vm1349_vm2, %v2860_v38  ;;  %v1829_v4 = vmul.f32 0.044715, %v5205_v10  ;;  %v3330_v23 = vpop.eup %3329  ;;  %3337 = vtanh.f32 %v885_v52  ;;  %v760_v25 = vmul.f32 %v696_v0, %v5183_v46  ;;  %v630_v61 = vmul.f32 0.044715, %v5214_v3 }
 0x1ef   :  { %2594 = vst.msk [vmem:[%s5619_s6 + $0xbc] sm:$0xf] %vm2546_vm3, %v2924_v60  ;;  %v1010_v59 = vadd.f32 1.0, %v3330_v23  ;;  %3339 = vtanh.f32 %v2082_v27  ;;  %v5232_v39 = vadd.f32 %v4849_v17, %v4560_v28  ;;  %v1764_v15 = vmul.f32 0.5, %v5151_v50 }
 0x1f0   :  { %v1893_v47 = vmul.f32 %v1829_v4, %v5205_v10  ;;  %v824_v54 = vadd.f32 %v760_v25, %v5183_v46  ;;  %v694_v6 = vmul.f32 %v630_v61, %v5214_v3  ;;  %v5239_v7 = vadd.f32 %v4838_v51, %v4585_v56  ;;  %v5671_v25 = vld [vmem:[#allocation2_spill] sm:$0xff] }
 0x1f1   :  { %v3332_v37 = vpop.eup %3331  ;;  %v1074_v34 = vmul.f32 %v1010_v59, %v562_v30  ;;  %v565_v2 = vmul.f32 0.5, %v5155_v57  ;;  %v1827_v19 = vmul.f32 0.044715, %v5232_v39  ;;  %v5247_v63 = vadd.f32 %v4849_v17, %v4587_v13 }
 0x1f2   :  { %v1957_v53 = vmul.f32 %v1893_v47, %v5205_v10  ;;  %v3334_v28 = vpop.eup %3333  ;;  %v2207_v62 = vadd.f32 1.0, %v3332_v37  ;;  %v888_v21 = vmul.f32 0.7978846, %v824_v54  ;;  %v758_v50 = vmul.f32 %v694_v6, %v5214_v3 }
 0x1f3   :  { %v2858_v33 = vpack.c.bf16 %v1074_v34, %v1074_v34  ;;  %v1015_v56 = vadd.f32 1.0, %v3334_v28  ;;  %v1891_v30 = vmul.f32 %v1827_v19, %v5232_v39  ;;  %v635_v31 = vmul.f32 0.044715, %v5239_v7 }
 0x1f4   :  { %v2021_v49 = vadd.f32 %v1957_v53, %v5205_v10  ;;  %v2271_v57 = vmul.f32 %v2207_v62, %v1759_v45  ;;  %3341 = vtanh.f32 %v888_v21  ;;  %v822_v42 = vadd.f32 %v758_v50, %v5214_v3 }
 0x1f5   :  { %1395 = vst.msk [vmem:[%s5618_s5 + $0xb4] sm:$0xf] %vm1349_vm2, %v2858_v33  ;;  %v1079_v20 = vmul.f32 %v1015_v56, %v567_v36  ;;  %v1762_v13 = vmul.f32 0.5, %v5165_v8  ;;  %v1955_v24 = vmul.f32 %v1891_v30, %v5232_v39  ;;  %v699_v40 = vmul.f32 %v635_v31, %v5239_v7 }
 0x1f6   :  { %v2085_v5 = vmul.f32 0.7978846, %v2021_v49  ;;  %v3336_v35 = vpop.eup %3335  ;;  %v2922_v41 = vpack.c.bf16 %v2271_v57, %v2271_v57  ;;  %v886_v29 = vmul.f32 0.7978846, %v822_v42  ;;  %v1832_v38 = vmul.f32 0.044715, %v5247_v63 }
 0x1f7   :  { %v2863_v26 = vpack.c.bf16 %v1079_v20, %v1079_v20  ;;  %v2212_v48 = vadd.f32 1.0, %v3336_v35  ;;  %v2019_v52 = vadd.f32 %v1955_v24, %v5232_v39  ;;  %v763_v8 = vmul.f32 %v699_v40, %v5239_v7 }
 0x1f8   :  { %3343 = vtanh.f32 %v2085_v5  ;;  %v3338_v0 = vpop.eup %3337  ;;  %2592 = vst.msk [vmem:[%s5619_s6 + $0xb4] sm:$0xf] %vm2546_vm3, %v2922_v41  ;;  %v1896_v60 = vmul.f32 %v1832_v38, %v5247_v63  ;;  %v5270_v45 = vadd.f32 %v4838_v51, %v4590_v12  ;;  %v5278_v61 = vadd.f32 %v4849_v17, %v5671_v25 }
 0x1f9   :  { %3345 = vtanh.f32 %v886_v29  ;;  %v3340_v27 = vpop.eup %3339  ;;  %1400 = vst.msk [vmem:[%s5618_s5 + $0xc8] sm:$0xf] %vm1349_vm2, %v2863_v26  ;;  %v2276_v4 = vmul.f32 %v2212_v48, %v1764_v15  ;;  %v1013_v23 = vadd.f32 1.0, %v3338_v0  ;;  %v2083_v36 = vmul.f32 0.7978846, %v2019_v52 }
 0x1fa   :  { %v2210_v59 = vadd.f32 1.0, %v3340_v27  ;;  %v568_v47 = vmul.f32 0.5, %v5183_v46  ;;  %v827_v54 = vadd.f32 %v763_v8, %v5239_v7  ;;  %v1960_v12 = vmul.f32 %v1896_v60, %v5247_v63 }
 0x1fb   :  { %v2927_v6 = vpack.c.bf16 %v2276_v4, %v2276_v4  ;;  %v1077_v37 = vmul.f32 %v1013_v23, %v565_v2  ;;  %3347 = vtanh.f32 %v2083_v36  ;;  %v633_v34 = vmul.f32 0.044715, %v5270_v45  ;;  %v5672_v2 = vld [vmem:[#allocation3_spill] sm:$0xff] }
 0x1fc   :  { %v2274_v53 = vmul.f32 %v2210_v59, %v1762_v13  ;;  %v1765_v15 = vmul.f32 0.5, %v5205_v10  ;;  %v891_v19 = vmul.f32 0.7978846, %v827_v54  ;;  %v2024_v28 = vadd.f32 %v1960_v12, %v5247_v63 }
 0x1fd   :  { %2597 = vst.msk [vmem:[%s5619_s6 + $0xc8] sm:$0xf] %vm2546_vm3, %v2927_v6  ;;  %v2861_v46 = vpack.c.bf16 %v1077_v37, %v1077_v37  ;;  %v697_v62 = vmul.f32 %v633_v34, %v5270_v45  ;;  %v1830_v21 = vmul.f32 0.044715, %v5278_v61  ;;  %v5294_v50 = vadd.f32 %v4838_v51, %v5672_v2 }
 0x1fe   :  { %v3342_v33 = vpop.eup %3341  ;;  %v2925_v56 = vpack.c.bf16 %v2274_v53, %v2274_v53  ;;  %3349 = vtanh.f32 %v891_v19  ;;  %v2088_v10 = vmul.f32 0.7978846, %v2024_v28  ;;  %v5298_v49 = vadd.f32 %v4849_v17, %v4646_v14 }
 0x1ff   :  { %1398 = vst.msk [vmem:[%s5618_s5 + $0xc0] sm:$0xf] %vm1349_vm2, %v2861_v46  ;;  %v1016_v30 = vadd.f32 1.0, %v3342_v33  ;;  %v566_v57 = vmul.f32 0.5, %v5214_v3  ;;  %v761_v42 = vmul.f32 %v697_v62, %v5270_v45  ;;  %v1894_v31 = vmul.f32 %v1830_v21, %v5278_v61  ;;  %v5674_v33 = vld [vmem:[#allocation5_spill] sm:$0xff] }
 0x200   :  { %2595 = vst.msk [vmem:[%s5619_s6 + $0xc0] sm:$0xf] %vm2546_vm3, %v2925_v56  ;;  %v1763_v14 = vmul.f32 0.5, %v5232_v39  ;;  %3351 = vtanh.f32 %v2088_v10  ;;  %v636_v20 = vmul.f32 0.044715, %v5294_v50  ;;  %v5318_v41 = vadd.f32 %v4838_v51, %v4650_v44  ;;  %v5673_v44 = vld [vmem:[#allocation4_spill] sm:$0xff] }
 0x201   :  { %v1833_v13 = vmul.f32 0.044715, %v5298_v49  ;;  %v1080_v24 = vmul.f32 %v1016_v30, %v568_v47  ;;  %v825_v3 = vadd.f32 %v761_v42, %v5270_v45  ;;  %v1958_v35 = vmul.f32 %v1894_v31, %v5278_v61 }
 0x202   :  { %v3344_v5 = vpop.eup %3343  ;;  %v571_v38 = vmul.f32 0.5, %v5239_v7  ;;  %v700_v39 = vmul.f32 %v636_v20, %v5294_v50  ;;  %v5328_v23 = vadd.f32 %v4849_v17, %v5673_v44  ;;  %v634_v59 = vmul.f32 0.044715, %v5318_v41 }
 0x203   :  { %v3346_v29 = vpop.eup %3345  ;;  %v2213_v40 = vadd.f32 1.0, %v3344_v5  ;;  %v1897_v26 = vmul.f32 %v1833_v13, %v5298_v49  ;;  %v2864_v48 = vpack.c.bf16 %v1080_v24, %v1080_v24  ;;  %v889_v0 = vmul.f32 0.7978846, %v825_v3 }
 0x204   :  { %v1014_v52 = vadd.f32 1.0, %v3346_v29  ;;  %v2022_v8 = vadd.f32 %v1958_v35, %v5278_v61  ;;  %v764_v27 = vmul.f32 %v700_v39, %v5294_v50  ;;  %v1768_v34 = vmul.f32 0.5, %v5247_v63 }
 0x205   :  { %v2277_v60 = vmul.f32 %v2213_v40, %v1765_v15  ;;  %v1961_v4 = vmul.f32 %v1897_v26, %v5298_v49  ;;  %v3348_v36 = vpop.eup %3347  ;;  %1401 = vst.msk [vmem:[%s5618_s5 + $0xcc] sm:$0xf] %vm1349_vm2, %v2864_v48  ;;  %3353 = vtanh.f32 %v889_v0  ;;  %v698_v53 = vmul.f32 %v634_v59, %v5318_v41 }
 0x206   :  { %v1078_v7 = vmul.f32 %v1014_v52, %v566_v57  ;;  %v2086_v25 = vmul.f32 0.7978846, %v2022_v8  ;;  %v2211_v54 = vadd.f32 1.0, %v3348_v36  ;;  %v828_v12 = vadd.f32 %v764_v27, %v5294_v50 }
 0x207   :  { %v2928_v47 = vpack.c.bf16 %v2277_v60, %v2277_v60  ;;  %v2025_v6 = vadd.f32 %v1961_v4, %v5298_v49  ;;  %v1831_v62 = vmul.f32 0.044715, %v5328_v23  ;;  %v762_v21 = vmul.f32 %v698_v53, %v5318_v41 }
 0x208   :  { %v2862_v37 = vpack.c.bf16 %v1078_v7, %v1078_v7  ;;  %3355 = vtanh.f32 %v2086_v25  ;;  %v3350_v15 = vpop.eup %3349  ;;  %v2275_v19 = vmul.f32 %v2211_v54, %v1763_v14  ;;  %v892_v28 = vmul.f32 0.7978846, %v828_v12 }
 0x209   :  { %2598 = vst.msk [vmem:[%s5619_s6 + $0xcc] sm:$0xf] %vm2546_vm3, %v2928_v47  ;;  %v2089_v46 = vmul.f32 0.7978846, %v2025_v6  ;;  %v1019_v63 = vadd.f32 1.0, %v3350_v15  ;;  %v5351_v2 = vadd.f32 %v4838_v51, %v4715_v58  ;;  %v5355_v56 = vadd.f32 %v4849_v17, %v5674_v33 }
 0x20a   :  { %1399 = vst.msk [vmem:[%s5618_s5 + $0xc4] sm:$0xf] %vm1349_vm2, %v2862_v37  ;;  %v3352_v10 = vpop.eup %3351  ;;  %v2926_v30 = vpack.c.bf16 %v2275_v19, %v2275_v19  ;;  %3357 = vtanh.f32 %v892_v28  ;;  %v1895_v57 = vmul.f32 %v1831_v62, %v5328_v23  ;;  %v5360_v42 = vadd.f32 %v4838_v51, %v4722_v43 }
 0x20b   :  { %v1083_v31 = vmul.f32 %v1019_v63, %v571_v38  ;;  %v2216_v14 = vadd.f32 1.0, %v3352_v10  ;;  %3359 = vtanh.f32 %v2089_v46  ;;  %v826_v20 = vadd.f32 %v762_v21, %v5318_v41 }
 0x20c   :  { %2596 = vst.msk [vmem:[%s5619_s6 + $0xc4] sm:$0xf] %vm2546_vm3, %v2926_v30  ;;  %v569_v58 = vmul.f32 0.5, %v5270_v45  ;;  %v1766_v17 = vmul.f32 0.5, %v5278_v61  ;;  %v1959_v13 = vmul.f32 %v1895_v57, %v5328_v23  ;;  %v639_v5 = vmul.f32 0.044715, %v5351_v2 }
 0x20d   :  { %v2867_v43 = vpack.c.bf16 %v1083_v31, %v1083_v31  ;;  %v2280_v51 = vmul.f32 %v2216_v14, %v1768_v34  ;;  %v890_v24 = vmul.f32 0.7978846, %v826_v20  ;;  %v1836_v3 = vmul.f32 0.044715, %v5355_v56  ;;  %v5675_v20 = vld [vmem:[#allocation6_spill] sm:$0xff] }
 0x20e   :  { %v572_v35 = vmul.f32 0.5, %v5294_v50  ;;  %v2023_v29 = vadd.f32 %v1959_v13, %v5328_v23  ;;  %v703_v40 = vmul.f32 %v639_v5, %v5351_v2  ;;  %v637_v38 = vmul.f32 0.044715, %v5360_v42  ;;  %v5384_v50 = vld [vmem:[%s5617_s4] ss:$0 sm:$0xff] }
 0x20f   :  { %v3354_v45 = vpop.eup %3353  ;;  %1404 = vst.msk [vmem:[%s5618_s5 + $0xd8] sm:$0xf] %vm1349_vm2, %v2867_v43  ;;  %v2931_v61 = vpack.c.bf16 %v2280_v51, %v2280_v51  ;;  %3361 = vtanh.f32 %v890_v24  ;;  %v1900_v39 = vmul.f32 %v1836_v3, %v5355_v56  ;;  %v5388_v26 = vadd.f32 %v5384_v50, %v4725_v9  ;;  %v5402_v9 = vld [vmem:[%s5616_s2] ss:$0 sm:$0xff]  ;;  %v5676_v43 = vld [vmem:[#allocation7_spill] sm:$0xff] }
 0x210   :  { %v1017_v48 = vadd.f32 1.0, %v3354_v45  ;;  %v2087_v52 = vmul.f32 0.7978846, %v2023_v29  ;;  %v767_v0 = vmul.f32 %v703_v40, %v5351_v2  ;;  %v701_v8 = vmul.f32 %v637_v38, %v5360_v42 }
 0x211   :  { %2601 = vst.msk [vmem:[%s5619_s6 + $0xd8] sm:$0xf] %vm2546_vm3, %v2931_v61  ;;  %v1769_v27 = vmul.f32 0.5, %v5298_v49  ;;  %v1964_v4 = vmul.f32 %v1900_v39, %v5355_v56  ;;  %v1834_v44 = vmul.f32 0.044715, %v5388_v26  ;;  %v5406_v36 = vadd.f32 %v5402_v9, %v4734_v32 }
 0x212   :  { %v3356_v60 = vpop.eup %3355  ;;  %v1081_v7 = vmul.f32 %v1017_v48, %v569_v58  ;;  %3363 = vtanh.f32 %v2087_v52  ;;  %v831_v59 = vadd.f32 %v767_v0, %v5351_v2  ;;  %v570_v49 = vmul.f32 0.5, %v5318_v41 }
 0x213   :  { %v2214_v25 = vadd.f32 1.0, %v3356_v60  ;;  %v2028_v47 = vadd.f32 %v1964_v4, %v5355_v56  ;;  %v765_v54 = vmul.f32 %v701_v8, %v5360_v42  ;;  %v1898_v12 = vmul.f32 %v1834_v44, %v5388_v26 }
 0x214   :  { %v3358_v6 = vpop.eup %3357  ;;  %v2865_v37 = vpack.c.bf16 %v1081_v7, %v1081_v7  ;;  %v895_v53 = vmul.f32 0.7978846, %v831_v59  ;;  %v640_v32 = vmul.f32 0.044715, %v5406_v36  ;;  %v5429_v14 = vadd.f32 %v5384_v50, %v4754_v11 }
 0x215   :  { %v2278_v34 = vmul.f32 %v2214_v25, %v1766_v17  ;;  %v3360_v15 = vpop.eup %3359  ;;  %v1020_v19 = vadd.f32 1.0, %v3358_v6  ;;  %v2092_v28 = vmul.f32 0.7978846, %v2028_v47  ;;  %v829_v46 = vadd.f32 %v765_v54, %v5360_v42 }
 0x216   :  { %v1962_v62 = vmul.f32 %v1898_v12, %v5388_v26  ;;  %1402 = vst.msk [vmem:[%s5618_s5 + $0xd0] sm:$0xf] %vm1349_vm2, %v2865_v37  ;;  %v2217_v63 = vadd.f32 1.0, %v3360_v15  ;;  %3365 = vtanh.f32 %v895_v53  ;;  %v704_v21 = vmul.f32 %v640_v32, %v5406_v36 }
 0x217   :  { %v2929_v41 = vpack.c.bf16 %v2278_v34, %v2278_v34  ;;  %v1084_v33 = vmul.f32 %v1020_v19, %v572_v35  ;;  %3367 = vtanh.f32 %v2092_v28  ;;  %v893_v10 = vmul.f32 0.7978846, %v829_v46 }
 0x218   :  { %v2026_v30 = vadd.f32 %v1962_v62, %v5388_v26  ;;  %v2281_v57 = vmul.f32 %v2217_v63, %v1769_v27  ;;  %v768_v31 = vmul.f32 %v704_v21, %v5406_v36  ;;  %v5433_v58 = vadd.f32 %v5402_v9, %v5675_v20 }
 0x219   :  { %2599 = vst.msk [vmem:[%s5619_s6 + $0xd0] sm:$0xf] %vm2546_vm3, %v2929_v41  ;;  %v3362_v17 = vpop.eup %3361  ;;  %v2868_v13 = vpack.c.bf16 %v1084_v33, %v1084_v33  ;;  %3369 = vtanh.f32 %v893_v10  ;;  %v5437_v51 = vadd.f32 %v5384_v50, %v5676_v43  ;;  %v1767_v35 = vmul.f32 0.5, %v5328_v23 }
 0x21a   :  { %v2090_v5 = vmul.f32 0.7978846, %v2026_v30  ;;  %v2932_v24 = vpack.c.bf16 %v2281_v57, %v2281_v57  ;;  %v1018_v3 = vadd.f32 1.0, %v3362_v17  ;;  %v832_v29 = vadd.f32 %v768_v31, %v5406_v36 }
 0x21b   :  { %1405 = vst.msk [vmem:[%s5618_s5 + $0xdc] sm:$0xf] %vm1349_vm2, %v2868_v13  ;;  %v575_v11 = vmul.f32 0.5, %v5351_v2  ;;  %v1837_v40 = vmul.f32 0.044715, %v5429_v14  ;;  %v1772_v61 = vmul.f32 0.5, %v5355_v56  ;;  %v5458_v8 = vadd.f32 %v5402_v9, %v4818_v18 }
 0x21c   :  { %3371 = vtanh.f32 %v2090_v5  ;;  %v638_v38 = vmul.f32 0.044715, %v5433_v58  ;;  %v3364_v45 = vpop.eup %3363  ;;  %2602 = vst.msk [vmem:[%s5619_s6 + $0xdc] sm:$0xf] %vm2546_vm3, %v2932_v24  ;;  %v1082_v23 = vmul.f32 %v1018_v3, %v570_v49  ;;  %v896_v39 = vmul.f32 0.7978846, %v832_v29 }
 0x21d   :  { %v1835_v48 = vmul.f32 0.044715, %v5437_v51  ;;  %v2215_v52 = vadd.f32 1.0, %v3364_v45  ;;  %v1901_v2 = vmul.f32 %v1837_v40, %v5429_v14  ;;  %v5463_v4 = vadd.f32 %v5384_v50, %v4820_v55 }
 0x21e   :  { %v702_v0 = vmul.f32 %v638_v38, %v5433_v58  ;;  %v2866_v60 = vpack.c.bf16 %v1082_v23, %v1082_v23  ;;  %3373 = vtanh.f32 %v896_v39  ;;  %v573_v44 = vmul.f32 0.5, %v5360_v42 }
 0x21f   :  { %v1899_v27 = vmul.f32 %v1835_v48, %v5437_v51  ;;  %v2279_v56 = vmul.f32 %v2215_v52, %v1767_v35  ;;  %v1965_v7 = vmul.f32 %v1901_v2, %v5429_v14  ;;  %v1770_v18 = vmul.f32 0.5, %v5388_v26  ;;  %v5677_v35 = vld [vmem:[#allocation8_spill] sm:$0xff] }
 0x220   :  { %v766_v25 = vmul.f32 %v702_v0, %v5433_v58  ;;  %v3366_v59 = vpop.eup %3365  ;;  %1403 = vst.msk [vmem:[%s5618_s5 + $0xd4] sm:$0xf] %vm1349_vm2, %v2866_v60  ;;  %v643_v55 = vmul.f32 0.044715, %v5458_v8  ;;  %v1840_v47 = vmul.f32 0.044715, %v5463_v4  ;;  %v5487_v62 = vadd.f32 %v5402_v9, %v4829_v1 }
 0x221   :  { %v1963_v49 = vmul.f32 %v1899_v27, %v5437_v51  ;;  %v3368_v54 = vpop.eup %3367  ;;  %v2930_v42 = vpack.c.bf16 %v2279_v56, %v2279_v56  ;;  %v1023_v12 = vadd.f32 1.0, %v3366_v59  ;;  %v2029_v6 = vadd.f32 %v1965_v7, %v5429_v14  ;;  %v5679_v27 = vld [vmem:[#allocation10_spill] sm:$0xff] }
 0x222   :  { %v830_v37 = vadd.f32 %v766_v25, %v5433_v58  ;;  %v2220_v34 = vadd.f32 1.0, %v3368_v54  ;;  %v707_v32 = vmul.f32 %v643_v55, %v5458_v8  ;;  %v1904_v26 = vmul.f32 %v1840_v47, %v5463_v4 }
 0x223   :  { %v2027_v53 = vadd.f32 %v1963_v49, %v5437_v51  ;;  %v3370_v15 = vpop.eup %3369  ;;  %2600 = vst.msk [vmem:[%s5619_s6 + $0xd4] sm:$0xf] %vm2546_vm3, %v2930_v42  ;;  %v1087_v19 = vmul.f32 %v1023_v12, %v575_v11  ;;  %v2093_v28 = vmul.f32 0.7978846, %v2029_v6  ;;  %v576_v57 = vmul.f32 0.5, %v5406_v36  ;;  %v5678_v11 = vld [vmem:[#allocation9_spill] sm:$0xff] }
 0x224   :  { %v894_v46 = vmul.f32 0.7978846, %v830_v37  ;;  %v2284_v41 = vmul.f32 %v2220_v34, %v1772_v61  ;;  %v1021_v63 = vadd.f32 1.0, %v3370_v15  ;;  %v771_v33 = vmul.f32 %v707_v32, %v5458_v8 }
 0x225   :  { %v2091_v21 = vmul.f32 0.7978846, %v2027_v53  ;;  %v2871_v30 = vpack.c.bf16 %v1087_v19, %v1087_v19  ;;  %3375 = vtanh.f32 %v2093_v28  ;;  %v1968_v31 = vmul.f32 %v1904_v26, %v5463_v4 }
 0x226   :  { %v3372_v10 = vpop.eup %3371  ;;  %v2935_v20 = vpack.c.bf16 %v2284_v41, %v2284_v41  ;;  %v1085_v17 = vmul.f32 %v1021_v63, %v573_v44  ;;  %3377 = vtanh.f32 %v894_v46  ;;  %v835_v1 = vadd.f32 %v771_v33, %v5458_v8 }
 0x227   :  { %v2218_v13 = vadd.f32 1.0, %v3372_v10  ;;  %1408 = vst.msk [vmem:[%s5618_s5 + $0xe8] sm:$0xf] %vm1349_vm2, %v2871_v30  ;;  %3379 = vtanh.f32 %v2091_v21  ;;  %v2032_v5 = vadd.f32 %v1968_v31, %v5463_v4  ;;  %v641_v43 = vmul.f32 0.044715, %v5487_v62 }
 0x228   :  { %v3374_v36 = vpop.eup %3373  ;;  %2605 = vst.msk [vmem:[%s5619_s6 + $0xe8] sm:$0xf] %vm2546_vm3, %v2935_v20  ;;  %v2869_v24 = vpack.c.bf16 %v1085_v17, %v1085_v17  ;;  %v5505_v29 = vadd.f32 %v5384_v50, %v5677_v35  ;;  %v5509_v40 = vadd.f32 %v5402_v9, %v5678_v11  ;;  %v899_v45 = vmul.f32 0.7978846, %v835_v1 }
 0x229   :  { %v2282_v3 = vmul.f32 %v2218_v13, %v1770_v18  ;;  %v1024_v38 = vadd.f32 1.0, %v3374_v36  ;;  %v2096_v23 = vmul.f32 0.7978846, %v2032_v5  ;;  %v705_v61 = vmul.f32 %v641_v43, %v5487_v62 }
 0x22a   :  { %1406 = vst.msk [vmem:[%s5618_s5 + $0xe0] sm:$0xf] %vm1349_vm2, %v2869_v24  ;;  %v1838_v48 = vmul.f32 0.044715, %v5505_v29  ;;  %3381 = vtanh.f32 %v899_v45  ;;  %v644_v0 = vmul.f32 0.044715, %v5509_v40  ;;  %v5526_v56 = vadd.f32 %v5384_v50, %v5679_v27 }
 0x22b   :  { %v2933_v39 = vpack.c.bf16 %v2282_v3, %v2282_v3  ;;  %v1088_v52 = vmul.f32 %v1024_v38, %v576_v57  ;;  %v769_v2 = vmul.f32 %v705_v61, %v5487_v62  ;;  %3383 = vtanh.f32 %v2096_v23 }
 0x22c   :  { %v1902_v60 = vmul.f32 %v1838_v48, %v5505_v29  ;;  %v5530_v44 = vadd.f32 %v5402_v9, %v4906_v22  ;;  %v708_v59 = vmul.f32 %v644_v0, %v5509_v40  ;;  %v5536_v18 = vadd.f32 %v5384_v50, %v4908_v16 }
 0x22d   :  { %2603 = vst.msk [vmem:[%s5619_s6 + $0xe0] sm:$0xf] %vm2546_vm3, %v2933_v39  ;;  %v2872_v7 = vpack.c.bf16 %v1088_v52, %v1088_v52  ;;  %v833_v25 = vadd.f32 %v769_v2, %v5487_v62  ;;  %v1773_v49 = vmul.f32 0.5, %v5429_v14  ;;  %v574_v55 = vmul.f32 0.5, %v5433_v58 }
 0x22e   :  { %v1966_v47 = vmul.f32 %v1902_v60, %v5505_v29  ;;  %v1841_v54 = vmul.f32 0.044715, %v5526_v56  ;;  %v1771_v22 = vmul.f32 0.5, %v5437_v51  ;;  %v772_v16 = vmul.f32 %v708_v59, %v5509_v40 }
 0x22f   :  { %v3376_v42 = vpop.eup %3375  ;;  %1409 = vst.msk [vmem:[%s5618_s5 + $0xec] sm:$0xf] %vm1349_vm2, %v2872_v7  ;;  %v897_v9 = vmul.f32 0.7978846, %v833_v25  ;;  %v642_v50 = vmul.f32 0.044715, %v5530_v44 }
 0x230   :  { %v3378_v14 = vpop.eup %3377  ;;  %v2221_v12 = vadd.f32 1.0, %v3376_v42  ;;  %v2030_v58 = vadd.f32 %v1966_v47, %v5505_v29  ;;  %v1905_v6 = vmul.f32 %v1841_v54, %v5526_v56  ;;  %v1839_v37 = vmul.f32 0.044715, %v5536_v18 }
 0x231   :  { %v3380_v34 = vpop.eup %3379  ;;  %v1022_v53 = vadd.f32 1.0, %v3378_v14  ;;  %3385 = vtanh.f32 %v897_v9  ;;  %v836_v32 = vadd.f32 %v772_v16, %v5509_v40  ;;  %v706_v51 = vmul.f32 %v642_v50, %v5530_v44 }
 0x232   :  { %v2285_v26 = vmul.f32 %v2221_v12, %v1773_v49  ;;  %v2219_v15 = vadd.f32 1.0, %v3380_v34  ;;  %v2094_v19 = vmul.f32 0.7978846, %v2030_v58  ;;  %v1969_v28 = vmul.f32 %v1905_v6, %v5526_v56 }
 0x233   :  { %v1086_v46 = vmul.f32 %v1022_v53, %v574_v55  ;;  %v900_v41 = vmul.f32 0.7978846, %v836_v32  ;;  %v770_v63 = vmul.f32 %v706_v51, %v5530_v44  ;;  %v1903_v21 = vmul.f32 %v1839_v37, %v5536_v18 }
 0x234   :  { %v2936_v33 = vpack.c.bf16 %v2285_v26, %v2285_v26  ;;  %v2283_v10 = vmul.f32 %v2219_v15, %v1771_v22  ;;  %3387 = vtanh.f32 %v2094_v19  ;;  %v2033_v30 = vadd.f32 %v1969_v28, %v5526_v56  ;;  %v3382_v57 = vpop.eup %3381 }
 0x235   :  { %v2870_v31 = vpack.c.bf16 %v1086_v46, %v1086_v46  ;;  %3389 = vtanh.f32 %v900_v41  ;;  %v834_v20 = vadd.f32 %v770_v63, %v5530_v44  ;;  %v1967_v17 = vmul.f32 %v1903_v21, %v5536_v18  ;;  %v3384_v13 = vpop.eup %3383 }
 0x236   :  { %2606 = vst.msk [vmem:[%s5619_s6 + $0xec] sm:$0xf] %vm2546_vm3, %v2936_v33  ;;  %v2934_v1 = vpack.c.bf16 %v2283_v10, %v2283_v10  ;;  %v579_v5 = vmul.f32 0.5, %v5458_v8  ;;  %v1027_v43 = vadd.f32 1.0, %v3382_v57  ;;  %v2097_v36 = vmul.f32 0.7978846, %v2033_v30 }
 0x237   :  { %1407 = vst.msk [vmem:[%s5618_s5 + $0xe4] sm:$0xf] %vm1349_vm2, %v2870_v31  ;;  %v1776_v24 = vmul.f32 0.5, %v5463_v4  ;;  %v2224_v3 = vadd.f32 1.0, %v3384_v13  ;;  %v898_v35 = vmul.f32 0.7978846, %v834_v20  ;;  %v2031_v11 = vadd.f32 %v1967_v17, %v5536_v18 }
 0x238   :  { %2604 = vst.msk [vmem:[%s5619_s6 + $0xe4] sm:$0xf] %vm2546_vm3, %v2934_v1  ;;  %v1091_v38 = vmul.f32 %v1027_v43, %v579_v5  ;;  %3391 = vtanh.f32 %v2097_v36  ;;  %v577_v4 = vmul.f32 0.5, %v5487_v62  ;;  %v1774_v60 = vmul.f32 0.5, %v5505_v29 }
 0x239   :  { %v2288_v8 = vmul.f32 %v2224_v3, %v1776_v24  ;;  %3393 = vtanh.f32 %v898_v35  ;;  %v2095_v45 = vmul.f32 0.7978846, %v2031_v11  ;;  %v580_v25 = vmul.f32 0.5, %v5509_v40 }
 0x23a   :  { %v2875_v23 = vpack.c.bf16 %v1091_v38, %v1091_v38  ;;  %v1777_v42 = vmul.f32 0.5, %v5526_v56  ;;  %v578_v29 = vmul.f32 0.5, %v5530_v44  ;;  %v1775_v56 = vmul.f32 0.5, %v5536_v18 }
 0x23b   :  { %v3386_v61 = vpop.eup %3385  ;;  %v2939_v39 = vpack.c.bf16 %v2288_v8, %v2288_v8  ;;  %3395 = vtanh.f32 %v2095_v45 }
 0x23c   :  { %1412 = vst.msk [vmem:[%s5618_s5 + $0xf8] sm:$0xf] %vm1349_vm2, %v2875_v23  ;;  %v1025_v48 = vadd.f32 1.0, %v3386_v61 }
 0x23d   :  { %2609 = vst.msk [vmem:[%s5619_s6 + $0xf8] sm:$0xf] %vm2546_vm3, %v2939_v39 }
 0x23e   :  { %v3388_v52 = vpop.eup %3387  ;;  %v1089_v2 = vmul.f32 %v1025_v48, %v577_v4 }
 0x23f   :  { %v3390_v0 = vpop.eup %3389  ;;  %v2222_v27 = vadd.f32 1.0, %v3388_v52 }
 0x240   :  { %v2873_v7 = vpack.c.bf16 %v1089_v2, %v1089_v2  ;;  %v1028_v59 = vadd.f32 1.0, %v3390_v0 }
 0x241   :  { %v2286_v49 = vmul.f32 %v2222_v27, %v1774_v60 }
 0x242   :  { %v3392_v55 = vpop.eup %3391  ;;  %1410 = vst.msk [vmem:[%s5618_s5 + $0xf0] sm:$0xf] %vm1349_vm2, %v2873_v7  ;;  %v1092_v62 = vmul.f32 %v1028_v59, %v580_v25 }
 0x243   :  { %v3394_v47 = vpop.eup %3393  ;;  %v2937_v54 = vpack.c.bf16 %v2286_v49, %v2286_v49  ;;  %v2225_v22 = vadd.f32 1.0, %v3392_v55 }
 0x244   :  { %v2876_v9 = vpack.c.bf16 %v1092_v62, %v1092_v62  ;;  %v1026_v16 = vadd.f32 1.0, %v3394_v47 }
 0x245   :  { %v3396_v50 = vpop.eup %3395  ;;  %2607 = vst.msk [vmem:[%s5619_s6 + $0xf0] sm:$0xf] %vm2546_vm3, %v2937_v54  ;;  %v2289_v40 = vmul.f32 %v2225_v22, %v1777_v42 }
 0x246   :  { %1413 = vst.msk [vmem:[%s5618_s5 + $0xfc] sm:$0xf] %vm1349_vm2, %v2876_v9  ;;  %v1090_v14 = vmul.f32 %v1026_v16, %v578_v29  ;;  %v2223_v12 = vadd.f32 1.0, %v3396_v50 }
 0x247   :  { %v2940_v58 = vpack.c.bf16 %v2289_v40, %v2289_v40 }
 0x248   :  { %v2874_v6 = vpack.c.bf16 %v1090_v14, %v1090_v14  ;;  %v2287_v44 = vmul.f32 %v2223_v12, %v1775_v56 }
 0x249   :  { %2610 = vst.msk [vmem:[%s5619_s6 + $0xfc] sm:$0xf] %vm2546_vm3, %v2940_v58 }
 0x24a   :  { %1411 = vst.msk [vmem:[%s5618_s5 + $0xf4] sm:$0xf] %vm1349_vm2, %v2874_v6  ;;  %v2938_v37 = vpack.c.bf16 %v2287_v44, %v2287_v44 }
 0x24c   :  { %2608 = vst.msk [vmem:[%s5619_s6 + $0xf4] sm:$0xf] %vm2546_vm3, %v2938_v37 }

// kernel: mbconv_forward.4
= control target key start
LH: loop header
LB: loop body
LE: loop exit
PB: predicated region body
PF: predicated region fallthrough
CT: control target
= control target key end

     0   :  { %s3968_s15 = smov 0   ;;  %s3970_s16 = smov 0   ;;  %s6552_s0 = inlined_call_operand.vmem [shape: bf16[2,16,16,16], index: 0, kind: input, shape index: {}]   ;;  %s6553_s1 = inlined_call_operand.vmem [shape: f32[3,3,16], index: 1, kind: input, shape index: {}]   ;;  %s6554_s2 = inlined_call_operand.vmem [shape: f32[1,16], index: 2, kind: input, shape index: {}]   ;;  %s6555_s3 = inlined_call_operand.vmem [shape: bf16[2,16,16,16], index: 3, kind: output, shape index: {0}]   ;;  %s6556_s4 = inlined_call_operand.vmem [shape: f32[2,1,16], index: 4, kind: output, shape index: {1}]  }
   0x1   :  { %s3972_s17 = smov 0  }
   0x2 LB: > { %s27_s18 = sadd.s32 1, %s3936_s16  ;;  %p3602_p0 = scmp.ge.s32.totalorder %s3940_s17, 1  ;;  %s3940_s17 = sphi %s3972_s17, %s15_s17   ;;  %s3936_s16 = sphi %s3970_s16, %s7299_s16   ;;  %s3932_s15 = sphi %s3968_s15, %s7298_s15  }
   0x3   : > { %p29_p1 = scmp.ge.s32.totalorder %s27_s18, 2  ;;  %p203_p2 = scmp.lt.s32.totalorder %s3940_s17, 3 }
   0x5   : > { %s7301_s18 = smov (%p29_p1, %s27_s18), 0  ;;  %p204_p3 = pnand %p3602_p0, %p203_p2 }
   0x7   : > { %207 = sbr.rel (%p204_p3) target bundleno = 595 (0x253), region = 32 }
   0xe   : > { %vm281_vm0 = vcmask 122880   ;;  %vm289_vm1 = vsmask.f32 256  ;;  %v291_v0 = vld [vmem:[#allocation2 + $0xc] sm:$0x1]  ;;  %vm278_vm2 = vcmask 125952  }
   0xf   : > { %vm3990_vm3 = vmand %vm281_vm0, %vm289_vm1  ;;  %v294_v2 = vld [vmem:[#allocation2 + $0x18] sm:$0x1]  ;;  %v297_v3 = vld [vmem:[#allocation2 + $0x24] sm:$0x1]  ;;  %vm339_vm4 = vsmask.f32 7938 }
  0x10   : > { %v292_v4 = vsel %vm3990_vm3, 0, %v291_v0  ;;  %v295_v5 = vsel %vm3990_vm3, 0, %v294_v2  ;;  %v298_v6 = vsel %vm3990_vm3, 0, %v297_v3  ;;  %v300_v7 = vld [vmem:[#allocation2 + $0x30] sm:$0x1]  ;;  %vm4002_vm5 = vmand %vm281_vm0, %vm339_vm4  ;;  %v3942_v12 = vmov 0  }
  0x11   : > { %293 = vst [vmem:[#allocation2 + $0xc] sm:$0x1] %v292_v4  ;;  %296 = vst [vmem:[#allocation2 + $0x18] sm:$0x1] %v295_v5  ;;  %v301_v9 = vsel %vm3990_vm3, 0, %v300_v7  ;;  %p248_p4 = scmp.lt.s32.totalorder %s3932_s15, 1 }
  0x12   : > { %299 = vst [vmem:[#allocation2 + $0x24] sm:$0x1] %v298_v6  ;;  %v303_v10 = vld [vmem:[#allocation2 + $0x3c] sm:$0x1]  ;;  %v306_v11 = vld [vmem:[#allocation2 + $0x48] sm:$0x1]  ;;  %vm4087_vm7 = vmand %vm278_vm2, %vm339_vm4 }
  0x13   : > { %279 = vst.msk [vmem:[#allocation2] sm:$0xf] %vm278_vm2, %v3942_v12  ;;  %280 = vst.msk [vmem:[#allocation2 + $0x4] sm:$0xf] %vm278_vm2, %v3942_v12  ;;  %v304_v13 = vsel %vm3990_vm3, 0, %v303_v10  ;;  %v307_v14 = vsel %vm3990_vm3, 0, %v306_v11 }
  0x14   : > { %282 = vst.msk [vmem:[#allocation2 + $0x8] sm:$0x1] %vm281_vm0, %v3942_v12  ;;  %286 = vst.msk [vmem:[#allocation2 + $0xd4] sm:$0x1] %vm281_vm0, %v3942_v12  ;;  %v309_v15 = vld [vmem:[#allocation2 + $0x54] sm:$0x1] }
  0x15   : > { %284 = vst.msk [vmem:[#allocation2 + $0xcc] sm:$0xf] %vm278_vm2, %v3942_v12  ;;  %285 = vst.msk [vmem:[#allocation2 + $0xd0] sm:$0xf] %vm278_vm2, %v3942_v12  ;;  %v341_v16 = vld [vmem:[#allocation2 + $0x14] sm:$0x1] }
  0x16   : > { %302 = vst [vmem:[#allocation2 + $0x30] sm:$0x1] %v301_v9  ;;  %305 = vst [vmem:[#allocation2 + $0x3c] sm:$0x1] %v304_v13  ;;  %v310_v17 = vsel %vm3990_vm3, 0, %v309_v15  ;;  %v342_v18 = vsel %vm4002_vm5, 0, %v341_v16 }
  0x17   : > { %308 = vst [vmem:[#allocation2 + $0x48] sm:$0x1] %v307_v14  ;;  %v344_v19 = vld [vmem:[#allocation2 + $0x20] sm:$0x1]  ;;  %v347_v20 = vld [vmem:[#allocation2 + $0x2c] sm:$0x1] }
  0x18   : > { %311 = vst [vmem:[#allocation2 + $0x54] sm:$0x1] %v310_v17  ;;  %343 = vst [vmem:[#allocation2 + $0x14] sm:$0x1] %v342_v18  ;;  %v345_v21 = vsel %vm4002_vm5, 0, %v344_v19  ;;  %v348_v22 = vsel %vm4002_vm5, 0, %v347_v20 }
  0x19   : > { %v350_v23 = vld [vmem:[#allocation2 + $0x38] sm:$0x1]  ;;  %v353_v24 = vld [vmem:[#allocation2 + $0x44] sm:$0x1]  ;;  %346 = vst [vmem:[#allocation2 + $0x20] sm:$0x1] %v345_v21 }
  0x1a   : > { %349 = vst [vmem:[#allocation2 + $0x2c] sm:$0x1] %v348_v22  ;;  %v351_v25 = vsel %vm4002_vm5, 0, %v350_v23  ;;  %v354_v26 = vsel %vm4002_vm5, 0, %v353_v24  ;;  %v356_v27 = vld [vmem:[#allocation2 + $0x50] sm:$0x1] }
  0x1b   : > { %v359_v28 = vld [vmem:[#allocation2 + $0x5c] sm:$0x1]  ;;  %352 = vst [vmem:[#allocation2 + $0x38] sm:$0x1] %v351_v25  ;;  %355 = vst [vmem:[#allocation2 + $0x44] sm:$0x1] %v354_v26 }
  0x1c   : > { %v357_v29 = vsel %vm4002_vm5, 0, %v356_v27  ;;  %v360_v30 = vsel %vm4002_vm5, 0, %v359_v28  ;;  %v312_v31 = vld [vmem:[#allocation2 + $0x60] sm:$0x1]  ;;  %v362_v32 = vld [vmem:[#allocation2 + $0x68] sm:$0x1] }
  0x1d   : > { %358 = vst [vmem:[#allocation2 + $0x50] sm:$0x1] %v357_v29  ;;  %361 = vst [vmem:[#allocation2 + $0x5c] sm:$0x1] %v360_v30  ;;  %v313_v33 = vsel %vm3990_vm3, 0, %v312_v31  ;;  %v363_v34 = vsel %vm4002_vm5, 0, %v362_v32 }
  0x1e   : > { %314 = vst [vmem:[#allocation2 + $0x60] sm:$0x1] %v313_v33  ;;  %364 = vst [vmem:[#allocation2 + $0x68] sm:$0x1] %v363_v34  ;;  %s7303_s15 = smov (!%p248_p4, %s3932_s15), 1  ;;  %v4047_v40 = vld [vmem:[#allocation2] sm:$0xff]  }
  0x1f   : > { %v315_v35 = vld [vmem:[#allocation2 + $0x6c] sm:$0x1]  ;;  %v365_v37 = vld [vmem:[#allocation2 + $0x74] sm:$0x1]  ;;  %v318_v38 = vld [vmem:[#allocation2 + $0x78] sm:$0x1]  ;;  %v3693_v49 = vunpack.c.l.bf16 %v4047_v40  ;;  %v4071_v51 = vunpack.c.h.bf16 %v4047_v40  ;;  %s276_s25 = scalar_lea.vmem %s6556_s4, %s7303_s15 }
  0x20   : > { %v316_v36 = vsel %vm3990_vm3, 0, %v315_v35  ;;  %s3657_s19 = sshll.u32 %s7303_s15, 7  ;;  %v1236_v39 = vld [vmem:[#allocation2] sm:$0xe]  ;;  %v368_v41 = vld [vmem:[#allocation2 + $0x80] sm:$0x1] }
  0x21   : > { %317 = vst [vmem:[#allocation2 + $0x6c] sm:$0x1] %v316_v36  ;;  %s4054_s22 = scalar_lea.vmem %s6552_s0, %s3657_s19  ;;  %v4057_v43 = vld [vmem:[#allocation2 + $0x8] sm:$0x1]  ;;  %v366_v44 = vsel %vm4002_vm5, 0, %v365_v37  ;;  %v319_v45 = vsel %vm3990_vm3, 0, %v318_v38  ;;  %v1252_v47 = vunpack.c.l.bf16 %v1236_v39  ;;  %s5453_s10 = scalar_lea.vmem %s6555_s3, %s3657_s19 }
  0x22   : > { %v389_v42 = vld [vmem:[%s4054_s22] sm:$0xf]  ;;  %v390_v46 = vld [vmem:[%s4054_s22 + $0x4] sm:$0xf]  ;;  %v2234_v50 = vld [vmem:[#allocation2 + $0xd0] sm:$0xf]  ;;  %v974_v56 = vunpack.c.l.bf16 %v4057_v43 }
  0x23   : > { %v4067_v48 = vld [vmem:[%s6553_s1 + $0x2] ss:$0 sm:$0xff]  ;;  %367 = vst [vmem:[#allocation2 + $0x74] sm:$0x1] %v366_v44  ;;  %320 = vst [vmem:[#allocation2 + $0x78] sm:$0x1] %v319_v45  ;;  %v4082_v61 = vunpack.c.l.bf16 %v2234_v50 }
  0x24   : > { %v4076_v52 = vld [vmem:[%s6553_s1 + $0x1] ss:$0 sm:$0xff]  ;;  %v369_v53 = vsel %vm4002_vm5, 0, %v368_v41  ;;  %v424_v54 = vshrl.u32 %v389_v42, 16  ;;  %v427_v55 = vshll.u32 %v389_v42, 16  ;;  %v432_v58 = vshrl.u32 %v390_v46, 16 }
  0x25   : > { %370 = vst [vmem:[#allocation2 + $0x80] sm:$0x1] %v369_v53  ;;  %v745_v57 = vld [vmem:[#allocation2 + $0xc] sm:$0xf]  ;;  %vm421_vm6 = vsmask.f32 4368  ;;  %v4092_v4 = vmul.f32 %v4067_v48, %v1252_v47  ;;  %v4097_v10 = vmul.f32 %v3693_v49, %v4076_v52  ;;  %v4125_v50 = vmul.f32 %v4071_v51, %v4076_v52 }
  0x26   : > { %v435_v59 = vshll.u32 %v390_v46, 16  ;;  %v391_v60 = vld [vmem:[%s4054_s22 + $0x8] sm:$0xf]  ;;  %6731 = vst [vmem:[#allocation3_spill] sm:$0xff] %v4082_v61  ;;  %v426_v62 = vrot.slane %v424_v54, 7  ;;  %v434_v5 = vrot.slane %v432_v58, 7  ;;  %vm4101_vm8 = vmor %vm289_vm1, %vm421_vm6  ;;  %v4130_v53 = vmul.f32 %v4076_v52, %v974_v56 }
  0x27   : > { %v441_v63 = vshrl.u32 %v391_v60, 16  ;;  %v444_v0 = vshll.u32 %v391_v60, 16  ;;  %v392_v2 = vld [vmem:[%s4054_s22 + $0xc] sm:$0xf]  ;;  %v749_v6 = vld [vmem:[#allocation2 + $0x14] sm:$0x1] }
  0x28   : > { %v449_v7 = vshrl.u32 %v392_v2, 16  ;;  %v452_v9 = vshll.u32 %v392_v2, 16  ;;  %v429_v11 = vor.u32 %v427_v55, %v426_v62  ;;  %v430_v13 = vrot.slane %v426_v62, 4  ;;  %v752_v15 = vld [vmem:[#allocation2 + $0x18] sm:$0xf] }
  0x29   : > { %v443_v14 = vrot.slane %v441_v63, 7  ;;  %v393_v16 = vld [vmem:[%s4054_s22 + $0x10] sm:$0xf]  ;;  %v437_v17 = vor.u32 %v435_v59, %v434_v5  ;;  %v439_v18 = vrot.slane %v434_v5, 4  ;;  %v394_v21 = vld [vmem:[%s4054_s22 + $0x14] sm:$0xf] }
  0x2a   : > { %v451_v19 = vrot.slane %v449_v7, 7  ;;  %v458_v20 = vshrl.u32 %v393_v16, 16  ;;  %v746_v22 = vsel %vm4087_vm7, %v429_v11, %v745_v57  ;;  %v756_v25 = vld [vmem:[#allocation2 + $0x20] sm:$0x1]  ;;  %v461_v26 = vshll.u32 %v393_v16, 16 }
  0x2b   : > { %v446_v23 = vor.u32 %v444_v0, %v443_v14  ;;  %v447_v24 = vrot.slane %v443_v14, 4  ;;  %v395_v27 = vld [vmem:[%s4054_s22 + $0x18] sm:$0xf]  ;;  %747 = vst [vmem:[#allocation2 + $0xc] sm:$0xf] %v746_v22  ;;  %v438_v28 = vsel %vm4101_vm8, %v430_v13, %v437_v17  ;;  %v750_v29 = vsel %vm3990_vm3, %v439_v18, %v749_v6 }
  0x2c   : > { %v454_v30 = vor.u32 %v452_v9, %v451_v19  ;;  %v456_v31 = vrot.slane %v451_v19, 4  ;;  %v396_v32 = vld [vmem:[%s4054_s22 + $0x1c] sm:$0xf]  ;;  %748 = vst.msk [vmem:[#allocation2 + $0x10] sm:$0xf] %vm278_vm2, %v438_v28  ;;  %v460_v34 = vrot.slane %v458_v20, 7  ;;  %v4147_v6 = vmul.f32 %v4071_v51, %v4067_v48 }
  0x2d   : > { %751 = vst [vmem:[#allocation2 + $0x14] sm:$0x1] %v750_v29  ;;  %v753_v33 = vsel %vm4087_vm7, %v446_v23, %v752_v15  ;;  %v466_v35 = vshrl.u32 %v394_v21, 16  ;;  %v469_v36 = vshll.u32 %v394_v21, 16  ;;  %v759_v39 = vld [vmem:[#allocation2 + $0x24] sm:$0xf]  ;;  %v4152_v11 = vmul.f32 %v4067_v48, %v974_v56 }
  0x2e   : > { %754 = vst [vmem:[#allocation2 + $0x18] sm:$0xf] %v753_v33  ;;  %v455_v37 = vsel %vm4101_vm8, %v447_v24, %v454_v30  ;;  %v757_v38 = vsel %vm3990_vm3, %v456_v31, %v756_v25  ;;  %v475_v41 = vshrl.u32 %v395_v27, 16  ;;  %v478_v42 = vshll.u32 %v395_v27, 16  ;;  %v763_v54 = vld [vmem:[#allocation2 + $0x2c] sm:$0x1] }
  0x2f   : > { %755 = vst.msk [vmem:[#allocation2 + $0x1c] sm:$0xf] %vm278_vm2, %v455_v37  ;;  %758 = vst [vmem:[#allocation2 + $0x20] sm:$0x1] %v757_v38  ;;  %v463_v44 = vor.u32 %v461_v26, %v460_v34  ;;  %v464_v45 = vrot.slane %v460_v34, 4  ;;  %v468_v46 = vrot.slane %v466_v35, 7 }
  0x30   : > { %v483_v47 = vshrl.u32 %v396_v32, 16  ;;  %v477_v55 = vrot.slane %v475_v41, 7  ;;  %v486_v57 = vshll.u32 %v396_v32, 16  ;;  %v766_v62 = vld [vmem:[#allocation2 + $0x30] sm:$0xf]  ;;  %vm1091_vm9 = vcmask 1046528  }
  0x31   : > { %v760_v58 = vsel %vm4087_vm7, %v463_v44, %v759_v39  ;;  %v471_v59 = vor.u32 %v469_v36, %v468_v46  ;;  %v473_v60 = vrot.slane %v468_v46, 4  ;;  %v4137_v0 = vld [vmem:[%s4054_s22 + $0x20] sm:$0xf]  ;;  %v4167_v25 = vld [vmem:[%s6553_s1 + $0x4] ss:$0 sm:$0xff]  ;;  %vm1369_vm10 = vcmask 1045504  }
  0x32   : > { %v4134_v63 = vrot.slane %v483_v47, 7  ;;  %v4143_v5 = vld [vmem:[%s6553_s1] ss:$0 sm:$0xff]  ;;  %761 = vst [vmem:[#allocation2 + $0x24] sm:$0xf] %v760_v58  ;;  %v480_v7 = vor.u32 %v478_v42, %v477_v55  ;;  %v481_v9 = vrot.slane %v477_v55, 4 }
  0x33   : > { %v859_v13 = vld [vmem:[#allocation2 + $0xc] sm:$0xf]  ;;  %v472_v16 = vsel %vm4101_vm8, %v464_v45, %v471_v59  ;;  %v764_v17 = vsel %vm3990_vm3, %v473_v60, %v763_v54  ;;  %v860_v22 = vld [vmem:[#allocation2 + $0x10] sm:$0xf]  ;;  %v492_v56 = vshrl.u32 %v4137_v0, 16  ;;  %v4182_v30 = vmul.f32 %v3693_v49, %v4143_v5 }
  0x34   : > { %v1237_v14 = vld [vmem:[#allocation2 + $0xc] sm:$0xe]  ;;  %v488_v18 = vor.u32 %v486_v57, %v4134_v63  ;;  %v891_v19 = vunpack.c.l.bf16 %v859_v13  ;;  %762 = vst.msk [vmem:[#allocation2 + $0x28] sm:$0xf] %vm278_vm2, %v472_v16  ;;  %765 = vst [vmem:[#allocation2 + $0x2c] sm:$0x1] %v764_v17  ;;  %v767_v43 = vsel %vm4087_vm7, %v480_v7, %v766_v62  ;;  %v892_v27 = vunpack.c.l.bf16 %v860_v22 }
  0x35   : > { %v1514_v15 = vld [vmem:[#allocation2 + $0xc] sm:$0xf]  ;;  %v1253_v20 = vunpack.c.l.bf16 %v1237_v14  ;;  %v4172_v26 = vld [vmem:[%s6553_s1 + $0x5] ss:$0 sm:$0xff]  ;;  %768 = vst [vmem:[#allocation2 + $0x30] sm:$0xf] %v767_v43  ;;  %v4186_v31 = vmul.f32 %v4071_v51, %v4143_v5 }
  0x36   : > { %v1925_v21 = vld [vmem:[#allocation2 + $0xc] sm:$0xe]  ;;  %v1546_v24 = vunpack.c.l.bf16 %v1514_v15  ;;  %v489_v28 = vsel %vm4101_vm8, %v481_v9, %v488_v18  ;;  %v4177_v29 = vld [vmem:[%s4054_s22 + $0x24] sm:$0xf]  ;;  %v1515_v35 = vld [vmem:[#allocation2 + $0x10] sm:$0xf]  ;;  %v4200_v39 = vmul.f32 %v4076_v52, %v891_v19  ;;  %v4212_v54 = vmul.f32 %v4076_v52, %v892_v27 }
  0x37   : > { %v4193_v34 = vld [vmem:[%s6553_s1 + $0x6] ss:$0 sm:$0xff]  ;;  %v959_v36 = vld [vmem:[#allocation2 + $0x14] sm:$0x1]  ;;  %769 = vst.msk [vmem:[#allocation2 + $0x34] sm:$0xf] %vm278_vm2, %v489_v28  ;;  %v1941_v37 = vunpack.c.l.bf16 %v1925_v21  ;;  %v4203_v41 = vmul.f32 %v4067_v48, %v1253_v20  ;;  %v4214_v55 = vunpack.c.l.bf16 %v1515_v35  ;;  %v4217_v59 = vmul.f32 %v4143_v5, %v891_v19 }
  0x38   : > { %v1648_v51 = vld [vmem:[#allocation2 + $0x14] sm:$0x1]  ;;  %v1238_v42 = vld [vmem:[#allocation2 + $0x18] sm:$0xe]  ;;  %v4205_v45 = vrot.slane %v492_v56, 7  ;;  %v4209_v47 = vmul.f32 %v4172_v26, %v1546_v24  ;;  %v975_v57 = vunpack.c.l.bf16 %v959_v36  ;;  %v4220_v60 = vmul.f32 %v4167_v25, %v1546_v24 }
  0x39   : > { %v1926_v44 = vld [vmem:[#allocation2 + $0x18] sm:$0xe]  ;;  %v4223_v62 = vmul.f32 %v4067_v48, %v892_v27  ;;  %v1664_v7 = vunpack.c.l.bf16 %v1648_v51  ;;  %v4226_v9 = vmul.f32 %v4193_v34, %v1941_v37  ;;  %v4229_v13 = vmul.f32 %v4143_v5, %v892_v27  ;;  %v960_v20 = vld [vmem:[#allocation2 + $0x20] sm:$0x1]  ;;  %v863_v37 = vld [vmem:[#allocation2 + $0x24] sm:$0xf] }
  0x3a   : > { %v3787_v58 = vld [vmem:[#allocation2 + $0x18] sm:$0xff]   ;;  %v1254_v14 = vunpack.c.l.bf16 %v1238_v42  ;;  %v1942_v15 = vunpack.c.l.bf16 %v1926_v44  ;;  %v1649_v21 = vld [vmem:[#allocation2 + $0x20] sm:$0x1]  ;;  %v4241_v56 = vmul.f32 %v4172_v26, %v4214_v55  ;;  %v4244_v24 = vmul.f32 %v4076_v52, %v975_v57  ;;  %v1239_v51 = vld [vmem:[#allocation2 + $0x24] sm:$0xe] }
  0x3b   : > { %6736 = vst [vmem:[#allocation4_spill] sm:$0xff] %v4229_v13  ;;  %v4233_v18 = vunpack.c.l.bf16 %v3787_v58  ;;  %v4235_v19 = vunpack.c.h.bf16 %v3787_v58  ;;  %v4248_v28 = vmul.f32 %v4067_v48, %v975_v57  ;;  %v4251_v35 = vmul.f32 %v4172_v26, %v1664_v7  ;;  %v864_v49 = vld [vmem:[#allocation2 + $0x28] sm:$0xf]  ;;  %v1927_v32 = vld [vmem:[#allocation2 + $0x24] sm:$0xe] }
  0x3c   : > { %6737 = vst [vmem:[#allocation5_spill] sm:$0xff] %v4244_v24  ;;  %v4254_v36 = vmul.f32 %v4193_v34, %v1664_v7  ;;  %v4257_v42 = vmul.f32 %v4067_v48, %v1254_v14  ;;  %v4260_v44 = vmul.f32 %v4193_v34, %v1942_v15  ;;  %v976_v58 = vunpack.c.l.bf16 %v960_v20  ;;  %v1518_v15 = vld [vmem:[#allocation2 + $0x24] sm:$0xf]  ;;  %v961_v33 = vld [vmem:[#allocation2 + $0x2c] sm:$0x1] }
  0x3d   : > { %6738 = vst [vmem:[#allocation6_spill] sm:$0xff] %v4248_v28  ;;  %v1665_v17 = vunpack.c.l.bf16 %v1649_v21  ;;  %v4264_v57 = vmul.f32 %v4233_v18, %v4143_v5  ;;  %v4268_v27 = vmul.f32 %v4233_v18, %v4076_v52  ;;  %v4272_v7 = vmul.f32 %v4235_v19, %v4076_v52  ;;  %v4302_v61 = vld [vmem:[#allocation2 + $0x2c] sm:$0x1]  ;;  %v1240_v22 = vld [vmem:[#allocation2 + $0x30] sm:$0xe] }
  0x3e   : > { %6739 = vst [vmem:[#allocation7_spill] sm:$0xff] %v4257_v42  ;;  %6740 = vst [vmem:[#allocation8_spill] sm:$0xff] %v4260_v44  ;;  %v4276_v14 = vmul.f32 %v4235_v19, %v4067_v48  ;;  %v4281_v21 = vmul.f32 %v4233_v18, %v4172_v26  ;;  %v895_v16 = vunpack.c.l.bf16 %v863_v37  ;;  %v1255_v43 = vunpack.c.l.bf16 %v1239_v51  ;;  %v4353_v23 = vld [vmem:[#allocation2 + $0x30] sm:$0xe]  ;;  %v780_v24 = vld [vmem:[#allocation2 + $0x48] sm:$0xf] }
  0x3f   : > { %6741 = vst [vmem:[#allocation9_spill] sm:$0xff] %v4264_v57  ;;  %6742 = vst [vmem:[#allocation10_spill] sm:$0xff] %v4268_v27  ;;  %v4286_v2 = vmul.f32 %v4076_v52, %v976_v58  ;;  %v4289_v40 = vmul.f32 %v4067_v48, %v976_v58  ;;  %v4294_v20 = vmul.f32 %v4235_v19, %v4143_v5  ;;  %v1550_v51 = vunpack.c.l.bf16 %v1518_v15  ;;  %v1519_v57 = vld [vmem:[#allocation2 + $0x28] sm:$0xf] }
  0x40   : > { %6743 = vst [vmem:[#allocation11_spill] sm:$0xff] %v4272_v7  ;;  %6744 = vst [vmem:[#allocation12_spill] sm:$0xff] %v4276_v14  ;;  %v4297_v37 = vmul.f32 %v4172_v26, %v1665_v17  ;;  %v896_v58 = vunpack.c.l.bf16 %v864_v49  ;;  %v4306_v42 = vmul.f32 %v4193_v34, %v1665_v17  ;;  %v4312_v15 = vmul.f32 %v4067_v48, %v1255_v43  ;;  %v2206_v27 = vld [vmem:[#allocation2 + $0x28] sm:$0xf] }
  0x41   : > { %6745 = vst [vmem:[#allocation13_spill] sm:$0xff] %v4281_v21  ;;  %6746 = vst [vmem:[#allocation14_spill] sm:$0xff] %v4286_v2  ;;  %v4317_v49 = vmul.f32 %v4143_v5, %v895_v16  ;;  %v1943_v14 = vunpack.c.l.bf16 %v1927_v32  ;;  %v4321_v17 = vmul.f32 %v4172_v26, %v1550_v51  ;;  %v977_v7 = vunpack.c.l.bf16 %v961_v33  ;;  %v5158_v12 = vld [vmem:[%s6553_s1 + $0x8] ss:$0 sm:$0xff] }
  0x42   : > { %6747 = vst [vmem:[#allocation15_spill] sm:$0xff] %v4289_v40  ;;  %6748 = vst [vmem:[#allocation16_spill] sm:$0xff] %v4294_v20  ;;  %v4309_v20 = vmul.f32 %v4076_v52, %v895_v16  ;;  %v4328_v46 = vmul.f32 %v4067_v48, %v896_v58  ;;  %v4330_v38 = vunpack.c.l.bf16 %v1519_v57  ;;  %v1256_v16 = vunpack.c.l.bf16 %v1240_v22 }
  0x43   : > { %6749 = vst [vmem:[#allocation17_spill] sm:$0xff] %v4297_v37  ;;  %6750 = vst [vmem:[#allocation18_spill] sm:$0xff] %v4306_v42  ;;  %v4325_v42 = vmul.f32 %v4076_v52, %v896_v58  ;;  %v4335_v40 = vmul.f32 %v4167_v25, %v1550_v51  ;;  %v4338_v33 = vmul.f32 %v4076_v52, %v977_v7  ;;  %v4343_v2 = vunpack.c.l.bf16 %v2206_v27  ;;  %v770_v51 = vld [vmem:[#allocation2 + $0x38] sm:$0x1] }
  0x44   : > { %6751 = vst [vmem:[#allocation19_spill] sm:$0xff] %v4309_v20  ;;  %6752 = vst [vmem:[#allocation20_spill] sm:$0xff] %v4312_v15  ;;  %v4341_v43 = vmul.f32 %v4193_v34, %v1943_v14  ;;  %v4346_v57 = vmul.f32 %v4067_v48, %v977_v7  ;;  %v6763_v22 = vunpack.c.l.bf16 %v4302_v61  ;;  %v4356_v15 = vmul.f32 %v4143_v5, %v896_v58  ;;  %v773_v58 = vld [vmem:[#allocation2 + $0x3c] sm:$0xf]  ;;  %v777_v20 = vld [vmem:[#allocation2 + $0x44] sm:$0x1] }
  0x45   : > { %6753 = vst [vmem:[#allocation21_spill] sm:$0xff] %v4317_v49  ;;  %6754 = vst [vmem:[#allocation22_spill] sm:$0xff] %v4321_v17  ;;  %v3788_v49 = vld [vmem:[#allocation2 + $0x30] sm:$0xff]   ;;  %v4359_v14 = vmul.f32 %v4067_v48, %v1256_v16  ;;  %v490_v7 = vrot.slane %v4134_v63, 4  ;;  %v1944_v16 = vunpack.c.l.bf16 %v4353_v23  ;;  %v6770_v17 = vshll.u32 %v4137_v0, 16 }
  0x46   : > { %6755 = vst [vmem:[#allocation23_spill] sm:$0xff] %v4325_v42  ;;  %6756 = vst [vmem:[#allocation24_spill] sm:$0xff] %v4328_v46  ;;  %v4351_v32 = vmul.f32 %v4172_v26, %v6763_v22  ;;  %v4361_v27 = vunpack.c.l.bf16 %v3788_v49  ;;  %v4373_v37 = vunpack.c.h.bf16 %v3788_v49  ;;  %v399_v22 = vld [vmem:[%s4054_s22 + $0x28] sm:$0xf]  ;;  %v400_v42 = vld [vmem:[%s4054_s22 + $0x2c] sm:$0xf] }
  0x47   : > { %6757 = vst [vmem:[#allocation25_spill] sm:$0xff] %v4330_v38  ;;  %6758 = vst [vmem:[#allocation26_spill] sm:$0xff] %v4335_v40  ;;  %v4369_v40 = vmul.f32 %v4172_v26, %v4330_v38  ;;  %v771_v63 = vsel %vm3990_vm3, %v490_v7, %v770_v51  ;;  %v6771_v23 = vshrl.u32 %v4177_v29, 16  ;;  %v401_v49 = vld [vmem:[%s4054_s22 + $0x30] sm:$0xf]  ;;  %v498_v7 = vrot.slane %v4205_v45, 4 }
  0x48   : > { %6759 = vst [vmem:[#allocation27_spill] sm:$0xff] %v4338_v33  ;;  %6760 = vst [vmem:[#allocation28_spill] sm:$0xff] %v4341_v43  ;;  %v4390_v51 = vmul.f32 %v4361_v27, %v4076_v52  ;;  %v503_v43 = vshll.u32 %v4177_v29, 16  ;;  %v402_v46 = vld [vmem:[%s4054_s22 + $0x34] sm:$0xf]  ;;  %v526_v38 = vshrl.u32 %v401_v49, 16 }
  0x49   : > { %6761 = vst [vmem:[#allocation29_spill] sm:$0xff] %v4343_v2  ;;  %6762 = vst [vmem:[#allocation30_spill] sm:$0xff] %v4346_v57  ;;  %v502_v33 = vrot.slane %v6771_v23, 7  ;;  %v512_v57 = vshll.u32 %v399_v22, 16  ;;  %v529_v13 = vshll.u32 %v401_v49, 16  ;;  %v537_v2 = vshll.u32 %v402_v46, 16 }
  0x4a   : > { %6764 = vst [vmem:[#allocation31_spill] sm:$0xff] %v4351_v32  ;;  %6765 = vst [vmem:[#allocation32_spill] sm:$0xff] %v4356_v15  ;;  %v497_v15 = vor.u32 %v6770_v17, %v4205_v45  ;;  %v509_v17 = vshrl.u32 %v399_v22, 16  ;;  %v517_v32 = vshrl.u32 %v400_v42, 16  ;;  %v534_v45 = vshrl.u32 %v402_v46, 16 }
  0x4b   : > { %6766 = vst [vmem:[#allocation33_spill] sm:$0xff] %v4359_v14  ;;  %6767 = vst [vmem:[#allocation34_spill] sm:$0xff] %v4361_v27  ;;  %v507_v0 = vrot.slane %v502_v33, 4  ;;  %v505_v23 = vor.u32 %v503_v43, %v502_v33  ;;  %v4403_v43 = vmul.f32 %v4373_v37, %v4076_v52  ;;  %v787_v22 = vld [vmem:[#allocation2 + $0x54] sm:$0xf]  ;;  %v6932_v1 = vrot.slane %v4209_v47, 1 }
  0x4c   : > { %6768 = vst [vmem:[#allocation35_spill] sm:$0xff] %v4369_v40  ;;  %6769 = vst [vmem:[#allocation36_spill] sm:$0xff] %v4373_v37  ;;  %v520_v40 = vshll.u32 %v400_v42, 16  ;;  %v511_v28 = vrot.slane %v509_v17, 7  ;;  %v4406_v49 = vrot.slane %v534_v45, 7  ;;  %v6775_v45 = vunpack.c.l.bf16 %v4302_v61 }
  0x4d   : > { %772 = vst [vmem:[#allocation2 + $0x38] sm:$0x1] %v771_v63  ;;  %6772 = vst [vmem:[#allocation37_spill] sm:$0xff] %v4390_v51  ;;  %v774_v63 = vsel %vm4087_vm7, %v497_v15, %v773_v58  ;;  %v778_v14 = vsel %vm3990_vm3, %v507_v0, %v777_v20  ;;  %v506_v29 = vsel %vm4101_vm8, %v498_v7, %v505_v23  ;;  %v519_v15 = vrot.slane %v517_v32, 7  ;;  %v784_v20 = vld [vmem:[#allocation2 + $0x50] sm:$0x1] }
  0x4e   : > { %775 = vst [vmem:[#allocation2 + $0x3c] sm:$0xf] %v774_v63  ;;  %779 = vst [vmem:[#allocation2 + $0x44] sm:$0x1] %v778_v14  ;;  %v528_v58 = vrot.slane %v526_v38, 7  ;;  %v514_v42 = vor.u32 %v512_v57, %v511_v28  ;;  %v515_v33 = vrot.slane %v511_v28, 4  ;;  %v539_v21 = vor.u32 %v537_v2, %v4406_v49 }
  0x4f   : > { %6773 = vst [vmem:[#allocation38_spill] sm:$0xff] %v4403_v43  ;;  %776 = vst.msk [vmem:[#allocation2 + $0x40] sm:$0xf] %vm278_vm2, %v506_v29  ;;  %v522_v7 = vor.u32 %v520_v40, %v519_v15  ;;  %v524_v14 = vrot.slane %v519_v15, 4  ;;  %v4413_v28 = vmul.f32 %v4373_v37, %v4067_v48  ;;  %v4427_v2 = vmul.f32 %v4193_v34, %v1944_v16 }
  0x50   : > { %v531_v17 = vor.u32 %v529_v13, %v528_v58  ;;  %v532_v32 = vrot.slane %v528_v58, 4  ;;  %v781_v23 = vsel %vm4087_vm7, %v514_v42, %v780_v24  ;;  %v4424_v24 = vmul.f32 %v4193_v34, %v6775_v45 }
  0x51   : > { %6774 = vst [vmem:[#allocation39_spill] sm:$0xff] %v4413_v28  ;;  %782 = vst [vmem:[#allocation2 + $0x48] sm:$0xf] %v781_v23  ;;  %v523_v57 = vsel %vm4101_vm8, %v515_v33, %v522_v7  ;;  %v785_v40 = vsel %vm3990_vm3, %v524_v14, %v784_v20  ;;  %v4431_v29 = vmul.f32 %v4361_v27, %v4143_v5  ;;  %vm3378_vm11 = vcmask 130048  }
  0x52   : > { %v788_v13 = vsel %vm4087_vm7, %v531_v17, %v787_v22  ;;  %6776 = vst [vmem:[#allocation40_spill] sm:$0xff] %v4424_v24  ;;  %6777 = vst [vmem:[#allocation41_spill] sm:$0xff] %v4427_v2  ;;  %v4435_v15 = vmul.f32 %v4361_v27, %v4172_v26  ;;  %v4448_v7 = vmul.f32 %v4373_v37, %v4143_v5 }
  0x53   : > { %6778 = vst [vmem:[#allocation42_spill] sm:$0xff] %v4431_v29  ;;  %783 = vst.msk [vmem:[#allocation2 + $0x4c] sm:$0xf] %vm278_vm2, %v523_v57 }
  0x54   : > { %v962_v63 = vld [vmem:[#allocation2 + $0x38] sm:$0x1]  ;;  %6779 = vst [vmem:[#allocation43_spill] sm:$0xff] %v4435_v15  ;;  %786 = vst [vmem:[#allocation2 + $0x50] sm:$0x1] %v785_v40 }
  0x55   : > { %v1651_v0 = vld [vmem:[#allocation2 + $0x38] sm:$0x1]  ;;  %v978_v38 = vunpack.c.l.bf16 %v962_v63  ;;  %v867_v58 = vld [vmem:[#allocation2 + $0x3c] sm:$0xf]  ;;  %789 = vst [vmem:[#allocation2 + $0x54] sm:$0xf] %v788_v13  ;;  %v540_v63 = vsel %vm4101_vm8, %v532_v32, %v539_v21 }
  0x56   : > { %v1667_v46 = vunpack.c.l.bf16 %v1651_v0  ;;  %v1241_v42 = vld [vmem:[#allocation2 + $0x3c] sm:$0xe]  ;;  %v899_v16 = vunpack.c.l.bf16 %v867_v58  ;;  %v4444_v0 = vld [vmem:[%s4054_s22 + $0x38] sm:$0xf]  ;;  %6781 = vst [vmem:[#allocation45_spill] sm:$0xff] %v4448_v7 }
  0x57   : > { %v1522_v33 = vld [vmem:[#allocation2 + $0x3c] sm:$0xf]  ;;  %v4439_v61 = vmul.f32 %v4076_v52, %v978_v38  ;;  %v1257_v20 = vunpack.c.l.bf16 %v1241_v42  ;;  %v4451_v14 = vmul.f32 %v4067_v48, %v978_v38  ;;  %v963_v57 = vld [vmem:[#allocation2 + $0x44] sm:$0x1]  ;;  %790 = vst.msk [vmem:[#allocation2 + $0x58] sm:$0xf] %vm278_vm2, %v540_v63 }
  0x58   : > { %v1929_v22 = vld [vmem:[#allocation2 + $0x3c] sm:$0xe]  ;;  %v4454_v17 = vmul.f32 %v4172_v26, %v1667_v46  ;;  %v1554_v23 = vunpack.c.l.bf16 %v1522_v33  ;;  %v868_v45 = vld [vmem:[#allocation2 + $0x40] sm:$0xf]  ;;  %v4462_v38 = vmul.f32 %v4076_v52, %v899_v16  ;;  %v979_v40 = vunpack.c.l.bf16 %v963_v57  ;;  %v1652_v21 = vld [vmem:[#allocation2 + $0x44] sm:$0x1] }
  0x59   : > { %6780 = vst [vmem:[#allocation44_spill] sm:$0xff] %v4439_v61  ;;  %6782 = vst [vmem:[#allocation46_spill] sm:$0xff] %v4451_v14  ;;  %v1945_v13 = vunpack.c.l.bf16 %v1929_v22  ;;  %v900_v42 = vunpack.c.l.bf16 %v868_v45  ;;  %v1523_v7 = vld [vmem:[#allocation2 + $0x40] sm:$0xf]  ;;  %v4467_v63 = vmul.f32 %v4067_v48, %v1257_v20  ;;  %v4473_v28 = vmul.f32 %v4193_v34, %v1667_v46  ;;  %v1242_v51 = vld [vmem:[#allocation2 + $0x48] sm:$0xe] }
  0x5a   : > { %6783 = vst [vmem:[#allocation47_spill] sm:$0xff] %v4454_v17  ;;  %6784 = vst [vmem:[#allocation48_spill] sm:$0xff] %v4462_v38  ;;  %v4476_v45 = vmul.f32 %v4172_v26, %v1554_v23  ;;  %v2210_v33 = vld [vmem:[#allocation2 + $0x40] sm:$0xf]  ;;  %v4479_v29 = vmul.f32 %v4143_v5, %v899_v16  ;;  %v4482_v20 = vmul.f32 %v4167_v25, %v1554_v23  ;;  %v4487_v22 = vunpack.c.l.bf16 %v1523_v7  ;;  %v3789_v58 = vld [vmem:[#allocation2 + $0x48] sm:$0xff]  }
  0x5b   : > { %6785 = vst [vmem:[#allocation49_spill] sm:$0xff] %v4467_v63  ;;  %6786 = vst [vmem:[#allocation50_spill] sm:$0xff] %v4473_v28  ;;  %v4485_v57 = vmul.f32 %v4193_v34, %v1945_v13  ;;  %v4491_v32 = vmul.f32 %v4076_v52, %v900_v42  ;;  %v1668_v14 = vunpack.c.l.bf16 %v1652_v21  ;;  %v1258_v61 = vunpack.c.l.bf16 %v1242_v51  ;;  %v964_v43 = vld [vmem:[#allocation2 + $0x50] sm:$0x1]  ;;  %v1930_v13 = vld [vmem:[#allocation2 + $0x48] sm:$0xe] }
  0x5c   : > { %6787 = vst [vmem:[#allocation51_spill] sm:$0xff] %v4476_v45  ;;  %6788 = vst [vmem:[#allocation52_spill] sm:$0xff] %v4479_v29  ;;  %v1653_v28 = vld [vmem:[#allocation2 + $0x50] sm:$0x1]  ;;  %v4495_v23 = vmul.f32 %v4067_v48, %v900_v42  ;;  %v4497_v29 = vunpack.c.l.bf16 %v2210_v33  ;;  %v4500_v7 = vmul.f32 %v4076_v52, %v979_v40  ;;  %v4504_v38 = vmul.f32 %v4067_v48, %v979_v40  ;;  %v791_v45 = vld [vmem:[#allocation2 + $0x5c] sm:$0x1] }
  0x5d   : > { %6789 = vst [vmem:[#allocation53_spill] sm:$0xff] %v4482_v20  ;;  %6790 = vst [vmem:[#allocation54_spill] sm:$0xff] %v4485_v57  ;;  %v4506_v21 = vunpack.c.l.bf16 %v3789_v58  ;;  %v4508_v51 = vunpack.c.h.bf16 %v3789_v58  ;;  %v871_v57 = vld [vmem:[#allocation2 + $0x54] sm:$0xf]  ;;  %v4511_v16 = vmul.f32 %v4143_v5, %v900_v42  ;;  %v4515_v33 = vmul.f32 %v4172_v26, %v4487_v22 }
  0x5e   : > { %6791 = vst [vmem:[#allocation55_spill] sm:$0xff] %v4487_v22  ;;  %6792 = vst [vmem:[#allocation56_spill] sm:$0xff] %v4491_v32  ;;  %v980_v63 = vunpack.c.l.bf16 %v964_v43  ;;  %v1669_v20 = vunpack.c.l.bf16 %v1653_v28  ;;  %v4519_v46 = vmul.f32 %v4172_v26, %v1668_v14  ;;  %v4522_v40 = vmul.f32 %v4067_v48, %v1258_v61  ;;  %v1243_v43 = vld [vmem:[#allocation2 + $0x54] sm:$0xe] }
  0x5f   : > { %6793 = vst [vmem:[#allocation57_spill] sm:$0xff] %v4495_v23  ;;  %6794 = vst [vmem:[#allocation58_spill] sm:$0xff] %v4497_v29  ;;  %v1946_v58 = vunpack.c.l.bf16 %v1930_v13  ;;  %v903_v22 = vunpack.c.l.bf16 %v871_v57  ;;  %v4532_v28 = vmul.f32 %v4193_v34, %v1668_v14  ;;  %v4536_v17 = vmul.f32 %v4508_v51, %v4076_v52  ;;  %v405_v29 = vld [vmem:[%s4054_s22 + $0x40] sm:$0xf] }
  0x60   : > { %6795 = vst [vmem:[#allocation59_spill] sm:$0xff] %v4500_v7  ;;  %6796 = vst [vmem:[#allocation60_spill] sm:$0xff] %v4504_v38  ;;  %v4540_v61 = vmul.f32 %v4508_v51, %v4067_v48  ;;  %v4544_v13 = vmul.f32 %v4506_v21, %v4172_v26  ;;  %v4547_v42 = vmul.f32 %v4076_v52, %v980_v63  ;;  %v1931_v7 = vld [vmem:[#allocation2 + $0x54] sm:$0xe] }
  0x61   : > { %6797 = vst [vmem:[#allocation61_spill] sm:$0xff] %v4506_v21  ;;  %6798 = vst [vmem:[#allocation62_spill] sm:$0xff] %v4508_v51  ;;  %v4550_v57 = vmul.f32 %v4067_v48, %v980_v63  ;;  %v4553_v14 = vmul.f32 %v4172_v26, %v1669_v20  ;;  %v4558_v23 = vmul.f32 %v4193_v34, %v1946_v58  ;;  %v872_v58 = vld [vmem:[#allocation2 + $0x58] sm:$0xf] }
  0x62   : > { %6799 = vst [vmem:[#allocation63_spill] sm:$0xff] %v4511_v16  ;;  %6800 = vst [vmem:[#allocation64_spill] sm:$0xff] %v4515_v33  ;;  %v4528_v16 = vmul.f32 %v4506_v21, %v4076_v52  ;;  %v4562_v32 = vmul.f32 %v4506_v21, %v4143_v5  ;;  %v4566_v63 = vmul.f32 %v4508_v51, %v4143_v5  ;;  %v1527_v21 = vld [vmem:[#allocation2 + $0x58] sm:$0xf]  ;;  %v794_v51 = vld [vmem:[#allocation2 + $0x60] sm:$0xf] }
  0x63   : > { %6801 = vst [vmem:[#allocation65_spill] sm:$0xff] %v4519_v46  ;;  %6802 = vst [vmem:[#allocation66_spill] sm:$0xff] %v4522_v40  ;;  %v4570_v15 = vmul.f32 %v4193_v34, %v1669_v20  ;;  %v4573_v38 = vmul.f32 %v4076_v52, %v903_v22  ;;  %v6816_v46 = vrot.slane %v4406_v49, 4  ;;  %v546_v40 = vshll.u32 %v4444_v0, 16 }
  0x64   : > { %6803 = vst [vmem:[#allocation67_spill] sm:$0xff] %v4528_v16  ;;  %6804 = vst [vmem:[#allocation68_spill] sm:$0xff] %v4532_v28  ;;  %v1526_v28 = vld [vmem:[#allocation2 + $0x54] sm:$0xf]  ;;  %v4591_v16 = vunpack.c.l.bf16 %v1527_v21 }
  0x65   : > { %6805 = vst [vmem:[#allocation69_spill] sm:$0xff] %v4536_v17  ;;  %6806 = vst [vmem:[#allocation70_spill] sm:$0xff] %v4540_v61  ;;  %v792_v33 = vsel %vm3990_vm3, %v6816_v46, %v791_v45  ;;  %v2214_v17 = vld [vmem:[#allocation2 + $0x58] sm:$0xf]  ;;  %v1558_v49 = vunpack.c.l.bf16 %v1526_v28  ;;  %v904_v61 = vunpack.c.l.bf16 %v872_v58  ;;  %v321_v45 = vld [vmem:[#allocation2 + $0x84] sm:$0x1] }
  0x66   : > { %6807 = vst [vmem:[#allocation71_spill] sm:$0xff] %v4544_v13  ;;  %6808 = vst [vmem:[#allocation72_spill] sm:$0xff] %v4547_v42  ;;  %v371_v46 = vld [vmem:[#allocation2 + $0x8c] sm:$0x1]  ;;  %v374_v42 = vld [vmem:[#allocation2 + $0x98] sm:$0x1] }
  0x67   : > { %6809 = vst [vmem:[#allocation73_spill] sm:$0xff] %v4550_v57  ;;  %6810 = vst [vmem:[#allocation74_spill] sm:$0xff] %v4553_v14  ;;  %v322_v21 = vsel %vm3990_vm3, 0, %v321_v45  ;;  %v375_v45 = vsel %vm4002_vm5, 0, %v374_v42 }
  0x68   : > { %6811 = vst [vmem:[#allocation75_spill] sm:$0xff] %v4558_v23  ;;  %6812 = vst [vmem:[#allocation76_spill] sm:$0xff] %v4562_v32  ;;  %v1259_v32 = vunpack.c.l.bf16 %v1243_v43  ;;  %v4587_v43 = vmul.f32 %v4143_v5, %v903_v22  ;;  %v1947_v23 = vunpack.c.l.bf16 %v1931_v7  ;;  %v4600_v7 = vunpack.c.l.bf16 %v2214_v17  ;;  %v407_v17 = vld [vmem:[%s4054_s22 + $0x48] sm:$0xf] }
  0x69   : > { %6813 = vst [vmem:[#allocation77_spill] sm:$0xff] %v4566_v63  ;;  %6814 = vst [vmem:[#allocation78_spill] sm:$0xff] %v4570_v15  ;;  %v404_v63 = vld [vmem:[%s4054_s22 + $0x3c] sm:$0xf]  ;;  %v6819_v15 = vshrl.u32 %v4444_v0, 16 }
  0x6a   : > { %6815 = vst [vmem:[#allocation79_spill] sm:$0xff] %v4573_v38  ;;  %793 = vst [vmem:[#allocation2 + $0x5c] sm:$0x1] %v792_v33  ;;  %v406_v33 = vld [vmem:[%s4054_s22 + $0x44] sm:$0xf]  ;;  %v4598_v22 = vmul.f32 %v4067_v48, %v1259_v32  ;;  %v551_v28 = vshrl.u32 %v404_v63, 16 }
  0x6b   : > { %6817 = vst [vmem:[#allocation80_spill] sm:$0xff] %v4587_v43  ;;  %6818 = vst [vmem:[#allocation81_spill] sm:$0xff] %v4591_v16  ;;  %v545_v57 = vrot.slane %v6819_v15, 7  ;;  %v554_v58 = vshll.u32 %v404_v63, 16  ;;  %v324_v43 = vld [vmem:[#allocation2 + $0x90] sm:$0x1] }
  0x6c   : > { %6820 = vst [vmem:[#allocation82_spill] sm:$0xff] %v4598_v22  ;;  %6821 = vst [vmem:[#allocation83_spill] sm:$0xff] %v4600_v7  ;;  %v372_v15 = vsel %vm4002_vm5, 0, %v371_v46  ;;  %v553_v0 = vrot.slane %v551_v28, 7  ;;  %v560_v32 = vshrl.u32 %v405_v29, 16  ;;  %v563_v38 = vshll.u32 %v405_v29, 16 }
  0x6d   : > { %v548_v14 = vor.u32 %v546_v40, %v545_v57  ;;  %v549_v20 = vrot.slane %v545_v57, 4  ;;  %323 = vst [vmem:[#allocation2 + $0x84] sm:$0x1] %v322_v21  ;;  %373 = vst [vmem:[#allocation2 + $0x8c] sm:$0x1] %v372_v15  ;;  %v568_v13 = vshrl.u32 %v406_v33, 16  ;;  %v4608_v7 = vmul.f32 %v4167_v25, %v1558_v49 }
  0x6e   : > { %v798_v57 = vld [vmem:[#allocation2 + $0x68] sm:$0x1]  ;;  %v325_v63 = vsel %vm3990_vm3, 0, %v324_v43  ;;  %v556_v46 = vor.u32 %v554_v58, %v553_v0  ;;  %v558_v28 = vrot.slane %v553_v0, 4  ;;  %v562_v21 = vrot.slane %v560_v32, 7 }
  0x6f   : > { %6822 = vst [vmem:[#allocation84_spill] sm:$0xff] %v4608_v7  ;;  %v795_v40 = vsel %vm4087_vm7, %v548_v14, %v794_v51  ;;  %v571_v29 = vshll.u32 %v406_v33, 16  ;;  %326 = vst [vmem:[#allocation2 + $0x90] sm:$0x1] %v325_v63  ;;  %v4617_v15 = vmul.f32 %v4172_v26, %v1558_v49  ;;  %v4620_v7 = vmul.f32 %v4193_v34, %v1947_v23  ;;  %v801_v51 = vld [vmem:[#allocation2 + $0x6c] sm:$0xf] }
  0x70   : > { %796 = vst [vmem:[#allocation2 + $0x60] sm:$0xf] %v795_v40  ;;  %376 = vst [vmem:[#allocation2 + $0x98] sm:$0x1] %v375_v45  ;;  %v570_v14 = vrot.slane %v568_v13, 7  ;;  %v577_v43 = vshrl.u32 %v407_v17, 16  ;;  %v557_v42 = vsel %vm4101_vm8, %v549_v20, %v556_v46  ;;  %v799_v58 = vsel %vm3990_vm3, %v558_v28, %v798_v57 }
  0x71   : > { %6823 = vst [vmem:[#allocation85_spill] sm:$0xff] %v4617_v15  ;;  %6824 = vst [vmem:[#allocation86_spill] sm:$0xff] %v4620_v7  ;;  %v965_v2 = vld [vmem:[#allocation2 + $0x5c] sm:$0x1]  ;;  %v565_v33 = vor.u32 %v563_v38, %v562_v21  ;;  %v566_v0 = vrot.slane %v562_v21, 4  ;;  %v4627_v32 = vmul.f32 %v4143_v5, %v904_v61  ;;  %v4630_v49 = vmul.f32 %v4076_v52, %v904_v61 }
  0x72   : > { %v4633_v23 = vmul.f32 %v4067_v48, %v904_v61  ;;  %v4637_v13 = vmul.f32 %v4172_v26, %v4591_v16  ;;  %v1654_v40 = vld [vmem:[#allocation2 + $0x5c] sm:$0x1]  ;;  %797 = vst.msk [vmem:[#allocation2 + $0x64] sm:$0xf] %vm278_vm2, %v557_v42  ;;  %800 = vst [vmem:[#allocation2 + $0x68] sm:$0x1] %v799_v58  ;;  %v573_v63 = vor.u32 %v571_v29, %v570_v14 }
  0x73   : > { %6825 = vst [vmem:[#allocation87_spill] sm:$0xff] %v4627_v32  ;;  %6826 = vst [vmem:[#allocation88_spill] sm:$0xff] %v4630_v49  ;;  %v805_v20 = vld [vmem:[#allocation2 + $0x74] sm:$0x1]  ;;  %v408_v38 = vld [vmem:[%s4054_s22 + $0x4c] sm:$0xf]  ;;  %v802_v57 = vsel %vm4087_vm7, %v565_v33, %v801_v51  ;;  %v981_v32 = vunpack.c.l.bf16 %v965_v2 }
  0x74   : > { %6827 = vst [vmem:[#allocation89_spill] sm:$0xff] %v4633_v23  ;;  %6828 = vst [vmem:[#allocation90_spill] sm:$0xff] %v4637_v13  ;;  %v575_v45 = vrot.slane %v570_v14, 4  ;;  %v579_v46 = vrot.slane %v577_v43, 7  ;;  %v327_v28 = vld [vmem:[#allocation2 + $0x9c] sm:$0x1]  ;;  %v1670_v13 = vunpack.c.l.bf16 %v1654_v40  ;;  %v574_v42 = vsel %vm4101_vm8, %v566_v0, %v573_v63 }
  0x75   : > { %803 = vst [vmem:[#allocation2 + $0x6c] sm:$0xf] %v802_v57  ;;  %v580_v7 = vshll.u32 %v407_v17, 16  ;;  %v377_v16 = vld [vmem:[#allocation2 + $0xa4] sm:$0x1]  ;;  %v585_v29 = vshrl.u32 %v408_v38, 16  ;;  %v4657_v61 = vmul.f32 %v4076_v52, %v981_v32 }
  0x76   : > { %v806_v58 = vsel %vm3990_vm3, %v575_v45, %v805_v20  ;;  %v808_v51 = vld [vmem:[#allocation2 + $0x78] sm:$0xf]  ;;  %804 = vst.msk [vmem:[#allocation2 + $0x70] sm:$0xf] %vm278_vm2, %v574_v42  ;;  %v588_v33 = vshll.u32 %v408_v38, 16  ;;  %v328_v17 = vsel %vm3990_vm3, 0, %v327_v28  ;;  %v4660_v42 = vmul.f32 %v4067_v48, %v981_v32 }
  0x77   : > { %v1244_v43 = vld [vmem:[#allocation2 + $0x60] sm:$0xe]  ;;  %807 = vst [vmem:[#allocation2 + $0x74] sm:$0x1] %v806_v58  ;;  %v582_v2 = vor.u32 %v580_v7, %v579_v46  ;;  %v583_v0 = vrot.slane %v579_v46, 4  ;;  %v587_v63 = vrot.slane %v585_v29, 7  ;;  %v4668_v46 = vmul.f32 %v4172_v26, %v1670_v13 }
  0x78   : > { %v1260_v40 = vunpack.c.l.bf16 %v1244_v43  ;;  %v1932_v57 = vld [vmem:[#allocation2 + $0x60] sm:$0xe]  ;;  %329 = vst [vmem:[#allocation2 + $0x9c] sm:$0x1] %v328_v17  ;;  %v378_v20 = vsel %vm4002_vm5, 0, %v377_v16  ;;  %6829 = vst [vmem:[#allocation91_spill] sm:$0xff] %v4657_v61  ;;  %v4672_v32 = vmul.f32 %v4193_v34, %v4214_v55 }
  0x79   : > { %6830 = vst [vmem:[#allocation92_spill] sm:$0xff] %v4660_v42  ;;  %v809_v7 = vsel %vm4087_vm7, %v582_v2, %v808_v51  ;;  %v812_v38 = vld [vmem:[#allocation2 + $0x80] sm:$0x1]  ;;  %379 = vst [vmem:[#allocation2 + $0xa4] sm:$0x1] %v378_v20  ;;  %v590_v43 = vor.u32 %v588_v33, %v587_v63  ;;  %v592_v17 = vrot.slane %v587_v63, 4  ;;  %v4675_v51 = vmul.f32 %v4193_v34, %v1670_v13 }
  0x7a   : > { %v4665_v28 = vld [vmem:[%s4054_s22 + $0x50] sm:$0xf]  ;;  %6831 = vst [vmem:[#allocation93_spill] sm:$0xff] %v4668_v46  ;;  %v3790_v58 = vld [vmem:[#allocation2 + $0x60] sm:$0xff]   ;;  %v966_v16 = vld [vmem:[#allocation2 + $0x68] sm:$0x1]  ;;  %v1948_v2 = vunpack.c.l.bf16 %v1932_v57  ;;  %v4684_v21 = vmul.f32 %v4067_v48, %v1260_v40 }
  0x7b   : > { %v1655_v29 = vld [vmem:[#allocation2 + $0x68] sm:$0x1]  ;;  %810 = vst [vmem:[#allocation2 + $0x78] sm:$0xf] %v809_v7  ;;  %6832 = vst [vmem:[#allocation94_spill] sm:$0xff] %v4675_v51  ;;  %v4677_v20 = vunpack.c.l.bf16 %v3790_v58  ;;  %v4679_v45 = vunpack.c.h.bf16 %v3790_v58  ;;  %v4681_v14 = vld [vmem:[#allocation2 + $0x18] sm:$0xff]   ;;  %v982_v7 = vunpack.c.l.bf16 %v966_v16  ;;  %v591_v33 = vsel %vm4101_vm8, %v583_v0, %v590_v43 }
  0x7c   : > { %6835 = vst [vmem:[#allocation97_spill] sm:$0xff] %v4684_v21  ;;  %v813_v63 = vsel %vm3990_vm3, %v592_v17, %v812_v38  ;;  %v4691_v22 = vld [vmem:[%s4054_s22 + $0x54] sm:$0xf]  ;;  %v1671_v58 = vunpack.c.l.bf16 %v1655_v29  ;;  %811 = vst.msk [vmem:[#allocation2 + $0x7c] sm:$0xf] %vm278_vm2, %v591_v33  ;;  %v594_v48 = vshrl.u32 %v4665_v28, 16  ;;  %v4708_v43 = vmul.f32 %v4193_v34, %v1948_v2 }
  0x7d   : > { %6833 = vst [vmem:[#allocation95_spill] sm:$0xff] %v4677_v20  ;;  %6834 = vst [vmem:[#allocation96_spill] sm:$0xff] %v4679_v45  ;;  %v4700_v0 = vmul.f32 %v4677_v20, %v4076_v52  ;;  %v4704_v38 = vmul.f32 %v4679_v45, %v4076_v52  ;;  %v4713_v29 = vld [vmem:[%s6553_s1 + $0x2] ss:$0 sm:$0xff]  ;;  %v875_v33 = vld [vmem:[#allocation2 + $0x6c] sm:$0xf]  ;;  %v4724_v2 = vmul.f32 %v4677_v20, %v4172_v26 }
  0x7e   : > { %814 = vst [vmem:[#allocation2 + $0x80] sm:$0x1] %v813_v63  ;;  %6838 = vst [vmem:[#allocation100_spill] sm:$0xff] %v4708_v43  ;;  %v4717_v17 = vmul.f32 %v4713_v29, %v4679_v45  ;;  %v1245_v63 = vld [vmem:[#allocation2 + $0x6c] sm:$0xe]  ;;  %v4735_v42 = vmul.f32 %v4713_v29, %v982_v7  ;;  %v4739_v13 = vmul.f32 %v4677_v20, %v4143_v5  ;;  %v4748_v23 = vrot.slane %v594_v48, 7 }
  0x7f   : > { %6836 = vst [vmem:[#allocation98_spill] sm:$0xff] %v4700_v0  ;;  %6837 = vst [vmem:[#allocation99_spill] sm:$0xff] %v4704_v38  ;;  %v4729_v40 = vld [vmem:[%s6553_s1 + $0x1] ss:$0 sm:$0xff]  ;;  %v1530_v57 = vld [vmem:[#allocation2 + $0x6c] sm:$0xf]  ;;  %v4743_v52 = vmul.f32 %v4679_v45, %v4143_v5  ;;  %v4746_v21 = vmul.f32 %v4172_v26, %v1671_v58  ;;  %v907_v51 = vunpack.c.l.bf16 %v875_v33  ;;  %v1261_v46 = vunpack.c.l.bf16 %v1245_v63 }
  0x80   : > { %6839 = vst [vmem:[#allocation101_spill] sm:$0xff] %v4717_v17  ;;  %v4732_v16 = vmul.f32 %v4729_v40, %v982_v7  ;;  %6841 = vst [vmem:[#allocation103_spill] sm:$0xff] %v4735_v42  ;;  %v876_v61 = vld [vmem:[#allocation2 + $0x70] sm:$0xf]  ;;  %v1933_v43 = vld [vmem:[#allocation2 + $0x6c] sm:$0xe]  ;;  %v4754_v20 = vmul.f32 %v4193_v34, %v1671_v58 }
  0x81   : > { %6842 = vst [vmem:[#allocation104_spill] sm:$0xff] %v4739_v13  ;;  %6843 = vst [vmem:[#allocation105_spill] sm:$0xff] %v4743_v52  ;;  %v1531_v15 = vld [vmem:[#allocation2 + $0x70] sm:$0xf]  ;;  %v1562_v52 = vunpack.c.l.bf16 %v1530_v57  ;;  %v908_v45 = vunpack.c.l.bf16 %v876_v61  ;;  %v967_v27 = vld [vmem:[#allocation2 + $0x74] sm:$0x1]  ;;  %v1949_v7 = vunpack.c.l.bf16 %v1933_v43  ;;  %v4761_v13 = vmul.f32 %v4143_v5, %v907_v51 }
  0x82   : > { %6840 = vst [vmem:[#allocation102_spill] sm:$0xff] %v4732_v16  ;;  %6844 = vst [vmem:[#allocation106_spill] sm:$0xff] %v4746_v21  ;;  %v2218_v37 = vld [vmem:[#allocation2 + $0x70] sm:$0xf]  ;;  %v1656_v24 = vld [vmem:[#allocation2 + $0x74] sm:$0x1]  ;;  %v4763_v58 = vunpack.c.l.bf16 %v1531_v15  ;;  %v4768_v17 = vmul.f32 %v4729_v40, %v907_v51  ;;  %v4771_v44 = vmul.f32 %v4713_v29, %v1261_v46  ;;  %v983_v49 = vunpack.c.l.bf16 %v967_v27 }
  0x83   : > { %6845 = vst [vmem:[#allocation107_spill] sm:$0xff] %v4754_v20  ;;  %v1246_v33 = vld [vmem:[#allocation2 + $0x78] sm:$0xe]  ;;  %6846 = vst [vmem:[#allocation108_spill] sm:$0xff] %v4761_v13  ;;  %v4765_v57 = vunpack.c.l.bf16 %v2218_v37  ;;  %v1672_v43 = vunpack.c.l.bf16 %v1656_v24  ;;  %v4774_v48 = vmul.f32 %v4172_v26, %v1562_v52  ;;  %v4777_v0 = vmul.f32 %v4729_v40, %v908_v45 }
  0x84   : > { %v3791_v63 = vld [vmem:[#allocation2 + $0x78] sm:$0xff]   ;;  %6847 = vst [vmem:[#allocation109_spill] sm:$0xff] %v4763_v58  ;;  %6849 = vst [vmem:[#allocation111_spill] sm:$0xff] %v4768_v17  ;;  %v1262_v13 = vunpack.c.l.bf16 %v1246_v33  ;;  %v4782_v37 = vmul.f32 %v4167_v25, %v1562_v52  ;;  %v4785_v51 = vmul.f32 %v4193_v34, %v1949_v7  ;;  %v4788_v46 = vmul.f32 %v4713_v29, %v908_v45 }
  0x85   : > { %6848 = vst [vmem:[#allocation110_spill] sm:$0xff] %v4765_v57  ;;  %v1934_v61 = vld [vmem:[#allocation2 + $0x78] sm:$0xe]  ;;  %6850 = vst [vmem:[#allocation112_spill] sm:$0xff] %v4771_v44  ;;  %v4779_v15 = vunpack.c.l.bf16 %v3791_v63  ;;  %v4791_v24 = vmul.f32 %v4143_v5, %v908_v45  ;;  %v4794_v42 = vmul.f32 %v4729_v40, %v983_v49  ;;  %v4797_v33 = vmul.f32 %v4713_v29, %v983_v49  ;;  %v815_v49 = vld [vmem:[#allocation2 + $0x84] sm:$0xf] }
  0x86   : > { %6851 = vst [vmem:[#allocation113_spill] sm:$0xff] %v4774_v48  ;;  %6852 = vst [vmem:[#allocation114_spill] sm:$0xff] %v4777_v0  ;;  %v1950_v27 = vunpack.c.l.bf16 %v1934_v61  ;;  %v4800_v25 = vmul.f32 %v4172_v26, %v1672_v43  ;;  %v4804_v7 = vmul.f32 %v4713_v29, %v1262_v13  ;;  %v4806_v16 = vunpack.c.h.bf16 %v3791_v63  ;;  %v411_v52 = vld [vmem:[%s4054_s22 + $0x58] sm:$0xf]  ;;  %v4836_v13 = vld [vmem:[#allocation2 + $0x80] sm:$0x1] }
  0x87   : > { %6853 = vst [vmem:[#allocation115_spill] sm:$0xff] %v4779_v15  ;;  %6854 = vst [vmem:[#allocation116_spill] sm:$0xff] %v4782_v37  ;;  %v4810_v45 = vmul.f32 %v4729_v40, %v4779_v15  ;;  %v4817_v37 = vmul.f32 %v4172_v26, %v4763_v58  ;;  %v4822_v63 = vmul.f32 %v4193_v34, %v1672_v43  ;;  %v6868_v43 = vshll.u32 %v4665_v28, 16  ;;  %v412_v44 = vld [vmem:[%s4054_s22 + $0x5c] sm:$0xf] }
  0x88   : > { %6855 = vst [vmem:[#allocation117_spill] sm:$0xff] %v4785_v51  ;;  %6856 = vst [vmem:[#allocation118_spill] sm:$0xff] %v4788_v46  ;;  %v4825_v17 = vmul.f32 %v4193_v34, %v1950_v27  ;;  %v4829_v61 = vmul.f32 %v4779_v15, %v4143_v5  ;;  %v4844_v5 = vmul.f32 %v4729_v40, %v4806_v16  ;;  %v330_v51 = vld [vmem:[#allocation2 + $0xa8] sm:$0x1]  ;;  %v600_v28 = vrot.slane %v4748_v23, 4 }
  0x89   : > { %6857 = vst [vmem:[#allocation119_spill] sm:$0xff] %v4791_v24  ;;  %6858 = vst [vmem:[#allocation120_spill] sm:$0xff] %v4794_v42  ;;  %v4831_v24 = vld [vmem:[#allocation2 + $0x80] sm:$0x1]  ;;  %v599_v34 = vor.u32 %v6868_v43, %v4748_v23  ;;  %v4849_v0 = vmul.f32 %v4713_v29, %v4806_v16  ;;  %v6871_v43 = vshrl.u32 %v4691_v22, 16  ;;  %v619_v58 = vshrl.u32 %v412_v44, 16 }
  0x8a   : > { %6859 = vst [vmem:[#allocation121_spill] sm:$0xff] %v4797_v33  ;;  %6860 = vst [vmem:[#allocation122_spill] sm:$0xff] %v4800_v25  ;;  %v380_v42 = vld [vmem:[#allocation2 + $0xb0] sm:$0x1]  ;;  %v819_v46 = vld [vmem:[#allocation2 + $0x8c] sm:$0x1] }
  0x8b   : > { %6861 = vst [vmem:[#allocation123_spill] sm:$0xff] %v4804_v7  ;;  %6862 = vst [vmem:[#allocation124_spill] sm:$0xff] %v4806_v16  ;;  %v816_v33 = vsel %vm4087_vm7, %v599_v34, %v815_v49  ;;  %v604_v27 = vrot.slane %v6871_v43, 7  ;;  %v605_v7 = vshll.u32 %v4691_v22, 16  ;;  %v611_v49 = vshrl.u32 %v411_v52, 16 }
  0x8c   : > { %6863 = vst [vmem:[#allocation125_spill] sm:$0xff] %v4810_v45  ;;  %6864 = vst [vmem:[#allocation126_spill] sm:$0xff] %v4817_v37  ;;  %v984_v45 = vunpack.c.l.bf16 %v4831_v24  ;;  %v413_v34 = vld [vmem:[%s4054_s22 + $0x60] sm:$0xf]  ;;  %v414_v43 = vld [vmem:[%s4054_s22 + $0x64] sm:$0xf] }
  0x8d   : > { %6865 = vst [vmem:[#allocation127_spill] sm:$0xff] %v4822_v63  ;;  %6866 = vst [vmem:[#allocation128_spill] sm:$0xff] %v4825_v17  ;;  %v607_v25 = vor.u32 %v605_v7, %v604_v27  ;;  %v609_v23 = vrot.slane %v604_v27, 4  ;;  %v614_v63 = vshll.u32 %v411_v52, 16  ;;  %v613_v48 = vrot.slane %v611_v49, 7 }
  0x8e   : > { %6867 = vst [vmem:[#allocation129_spill] sm:$0xff] %v4829_v61  ;;  %6869 = vst [vmem:[#allocation130_spill] sm:$0xff] %v4844_v5  ;;  %v4860_v61 = vmul.f32 %v4779_v15, %v4172_v26  ;;  %v622_v22 = vshll.u32 %v412_v44, 16  ;;  %v331_v37 = vsel %vm3990_vm3, 0, %v330_v51  ;;  %v381_v26 = vsel %vm4002_vm5, 0, %v380_v42 }
  0x8f   : > { %6870 = vst [vmem:[#allocation131_spill] sm:$0xff] %v4849_v0  ;;  %817 = vst [vmem:[#allocation2 + $0x84] sm:$0xf] %v816_v33  ;;  %v333_v24 = vld [vmem:[#allocation2 + $0xb4] sm:$0x1]  ;;  %v608_v33 = vsel %vm4101_vm8, %v600_v28, %v607_v25  ;;  %v820_v17 = vsel %vm3990_vm3, %v609_v23, %v819_v46  ;;  %v621_v27 = vrot.slane %v619_v58, 7  ;;  %v616_v44 = vor.u32 %v614_v63, %v613_v48 }
  0x90   : > { %6872 = vst [vmem:[#allocation132_spill] sm:$0xff] %v4860_v61  ;;  %v822_v7 = vld [vmem:[#allocation2 + $0x90] sm:$0xf]  ;;  %332 = vst [vmem:[#allocation2 + $0xa8] sm:$0x1] %v331_v37  ;;  %v628_v52 = vshrl.u32 %v413_v34, 16 }
  0x91   : > { %382 = vst [vmem:[#allocation2 + $0xb0] sm:$0x1] %v381_v26  ;;  %v383_v49 = vld [vmem:[#allocation2 + $0xbc] sm:$0x1]  ;;  %818 = vst.msk [vmem:[#allocation2 + $0x88] sm:$0xf] %vm278_vm2, %v608_v33  ;;  %v624_v20 = vor.u32 %v622_v22, %v621_v27  ;;  %v823_v46 = vsel %vm4087_vm7, %v616_v44, %v822_v7 }
  0x92   : > { %821 = vst [vmem:[#allocation2 + $0x8c] sm:$0x1] %v820_v17  ;;  %v617_v51 = vrot.slane %v613_v48, 4  ;;  %v826_v15 = vld [vmem:[#allocation2 + $0x98] sm:$0x1]  ;;  %v631_v42 = vshll.u32 %v413_v34, 16  ;;  %v4882_v48 = vmul.f32 %v4729_v40, %v984_v45 }
  0x93   : > { %v636_v38 = vshrl.u32 %v414_v43, 16  ;;  %v626_v21 = vrot.slane %v621_v27, 4  ;;  %v630_v25 = vrot.slane %v628_v52, 7  ;;  %v639_v28 = vshll.u32 %v414_v43, 16  ;;  %v829_v58 = vld [vmem:[#allocation2 + $0x9c] sm:$0xf] }
  0x94   : > { %v334_v23 = vsel %vm3990_vm3, 0, %v333_v24  ;;  %v384_v17 = vsel %vm4002_vm5, 0, %v383_v49  ;;  %6873 = vst [vmem:[#allocation133_spill] sm:$0xff] %v4882_v48  ;;  %824 = vst [vmem:[#allocation2 + $0x90] sm:$0xf] %v823_v46  ;;  %v625_v43 = vsel %vm4101_vm8, %v617_v51, %v624_v20  ;;  %v4889_v24 = vmul.f32 %v4713_v29, %v984_v45 }
  0x95   : > { %v638_v37 = vrot.slane %v636_v38, 7  ;;  %v827_v26 = vsel %vm3990_vm3, %v626_v21, %v826_v15  ;;  %v633_v38 = vor.u32 %v631_v42, %v630_v25  ;;  %335 = vst [vmem:[#allocation2 + $0xb4] sm:$0x1] %v334_v23  ;;  %385 = vst [vmem:[#allocation2 + $0xbc] sm:$0x1] %v384_v17  ;;  %v634_v52 = vrot.slane %v630_v25, 4 }
  0x96   : > { %v879_v63 = vld [vmem:[#allocation2 + $0x84] sm:$0xf]  ;;  %6874 = vst [vmem:[#allocation134_spill] sm:$0xff] %v4889_v24  ;;  %825 = vst.msk [vmem:[#allocation2 + $0x94] sm:$0xf] %vm278_vm2, %v625_v43  ;;  %v6875_v25 = vunpack.c.l.bf16 %v4836_v13  ;;  %v4947_v45 = vunpack.c.h.bf16 %v4681_v14 }
  0x97   : > { %v1247_v34 = vld [vmem:[#allocation2 + $0x84] sm:$0xe]  ;;  %v911_v33 = vunpack.c.l.bf16 %v879_v63  ;;  %828 = vst [vmem:[#allocation2 + $0x98] sm:$0x1] %v827_v26  ;;  %v833_v49 = vld [vmem:[#allocation2 + $0xa4] sm:$0x1]  ;;  %v830_v20 = vsel %vm4087_vm7, %v633_v38, %v829_v58  ;;  %v641_v51 = vor.u32 %v639_v28, %v638_v37 }
  0x98   : > { %v1534_v22 = vld [vmem:[#allocation2 + $0x84] sm:$0xf]  ;;  %v1263_v7 = vunpack.c.l.bf16 %v1247_v34  ;;  %v643_v21 = vrot.slane %v638_v37, 4  ;;  %831 = vst [vmem:[#allocation2 + $0x9c] sm:$0xf] %v830_v20  ;;  %v6879_v26 = vmov %v6875_v25 }
  0x99   : > { %v1935_v27 = vld [vmem:[#allocation2 + $0x84] sm:$0xe]  ;;  %v1566_v44 = vunpack.c.l.bf16 %v1534_v22  ;;  %v4908_v28 = vmul.f32 %v4729_v40, %v911_v33  ;;  %v880_v37 = vld [vmem:[#allocation2 + $0x88] sm:$0xf]  ;;  %v642_v17 = vsel %vm4101_vm8, %v634_v52, %v641_v51  ;;  %v4917_v34 = vld [vmem:[%s6553_s1] ss:$0 sm:$0xff] }
  0x9a   : > { %v4900_v46 = vld [vmem:[%s6553_s1 + $0x5] ss:$0 sm:$0xff]  ;;  %v1951_v58 = vunpack.c.l.bf16 %v1935_v27  ;;  %v834_v63 = vsel %vm3990_vm3, %v643_v21, %v833_v49  ;;  %v4921_v22 = vmul.f32 %v4917_v34, %v4806_v16  ;;  %v4926_v43 = vld [vmem:[%s6553_s1 + $0x6] ss:$0 sm:$0xff]  ;;  %v4934_v27 = vmul.f32 %v4713_v29, %v1263_v7  ;;  %v1535_v49 = vld [vmem:[#allocation2 + $0x88] sm:$0xf] }
  0x9b   : > { %v4905_v23 = vmul.f32 %v4900_v46, %v6875_v25  ;;  %6877 = vst [vmem:[#allocation136_spill] sm:$0xff] %v4908_v28  ;;  %v4931_v38 = vmul.f32 %v4926_v43, %v6879_v26  ;;  %v912_v52 = vunpack.c.l.bf16 %v880_v37  ;;  %v969_v20 = vld [vmem:[#allocation2 + $0x8c] sm:$0x1]  ;;  %832 = vst.msk [vmem:[#allocation2 + $0xa0] sm:$0xf] %vm278_vm2, %v642_v17  ;;  %v4940_v42 = vmul.f32 %v4900_v46, %v1566_v44 }
  0x9c   : > { %6878 = vst [vmem:[#allocation137_spill] sm:$0xff] %v4921_v22  ;;  %6881 = vst [vmem:[#allocation139_spill] sm:$0xff] %v4934_v27  ;;  %v1658_v51 = vld [vmem:[#allocation2 + $0x8c] sm:$0x1]  ;;  %v985_v13 = vunpack.c.l.bf16 %v969_v20  ;;  %v4944_v7 = vmul.f32 %v4917_v34, %v911_v33  ;;  %v1248_v15 = vld [vmem:[#allocation2 + $0x90] sm:$0xe]  ;;  %v4959_v20 = vmul.f32 %v4926_v43, %v1951_v58  ;;  %v4961_v33 = vunpack.c.l.bf16 %v1535_v49 }
  0x9d   : > { %6876 = vst [vmem:[#allocation135_spill] sm:$0xff] %v4905_v23  ;;  %6880 = vst [vmem:[#allocation138_spill] sm:$0xff] %v4931_v38  ;;  %v1674_v37 = vunpack.c.l.bf16 %v1658_v51  ;;  %v2222_v51 = vld [vmem:[#allocation2 + $0x88] sm:$0xf]  ;;  %v1936_v21 = vld [vmem:[#allocation2 + $0x90] sm:$0xe]  ;;  %v4965_v17 = vmul.f32 %v4729_v40, %v912_v52  ;;  %v4968_v28 = vmul.f32 %v4713_v29, %v912_v52  ;;  %v1264_v22 = vunpack.c.l.bf16 %v1248_v15 }
  0x9e   : > { %835 = vst [vmem:[#allocation2 + $0xa4] sm:$0x1] %v834_v63  ;;  %6882 = vst [vmem:[#allocation140_spill] sm:$0xff] %v4940_v42  ;;  %v4953_v63 = vld [vmem:[%s6553_s1 + $0x4] ss:$0 sm:$0xff]  ;;  %v3792_v26 = vld [vmem:[#allocation2 + $0x90] sm:$0xff]   ;;  %v4972_v58 = vmul.f32 %v4729_v40, %v985_v13  ;;  %v4975_v49 = vmul.f32 %v4713_v29, %v985_v13  ;;  %v4987_v15 = vmul.f32 %v4917_v34, %v912_v52 }
  0x9f   : > { %6883 = vst [vmem:[#allocation141_spill] sm:$0xff] %v4944_v7  ;;  %v4956_v25 = vmul.f32 %v4953_v63, %v1566_v44  ;;  %6885 = vst [vmem:[#allocation143_spill] sm:$0xff] %v4959_v20  ;;  %v970_v24 = vld [vmem:[#allocation2 + $0x98] sm:$0x1]  ;;  %v4977_v48 = vunpack.c.l.bf16 %v3792_v26  ;;  %v4979_v7 = vunpack.c.l.bf16 %v2222_v51  ;;  %v4982_v27 = vmul.f32 %v4900_v46, %v1674_v37  ;;  %v1249_v23 = vld [vmem:[#allocation2 + $0x9c] sm:$0xe] }
  0xa0   : > { %6886 = vst [vmem:[#allocation144_spill] sm:$0xff] %v4961_v33  ;;  %6887 = vst [vmem:[#allocation145_spill] sm:$0xff] %v4965_v17  ;;  %v1952_v20 = vunpack.c.l.bf16 %v1936_v21  ;;  %v4984_v0 = vunpack.c.h.bf16 %v3792_v26  ;;  %v4991_v44 = vmul.f32 %v4900_v46, %v4961_v33  ;;  %v4994_v13 = vmul.f32 %v4926_v43, %v1674_v37  ;;  %v883_v26 = vld [vmem:[#allocation2 + $0x9c] sm:$0xf] }
  0xa1   : > { %6884 = vst [vmem:[#allocation142_spill] sm:$0xff] %v4956_v25  ;;  %6888 = vst [vmem:[#allocation146_spill] sm:$0xff] %v4968_v28  ;;  %v1659_v25 = vld [vmem:[#allocation2 + $0x98] sm:$0x1]  ;;  %v986_v42 = vunpack.c.l.bf16 %v970_v24  ;;  %v4999_v38 = vmul.f32 %v4713_v29, %v1264_v22  ;;  %v5005_v33 = vmul.f32 %v4729_v40, %v4977_v48  ;;  %v5009_v24 = vmul.f32 %v4900_v46, %v4977_v48  ;;  %v1538_v37 = vld [vmem:[#allocation2 + $0x9c] sm:$0xf] }
  0xa2   : > { %6889 = vst [vmem:[#allocation147_spill] sm:$0xff] %v4972_v58  ;;  %6890 = vst [vmem:[#allocation148_spill] sm:$0xff] %v4975_v49  ;;  %v1675_v21 = vunpack.c.l.bf16 %v1659_v25  ;;  %v5013_v22 = vmul.f32 %v4926_v43, %v1952_v20  ;;  %v5017_v25 = vmul.f32 %v4729_v40, %v4984_v0  ;;  %v1937_v52 = vld [vmem:[#allocation2 + $0x9c] sm:$0xe]  ;;  %v915_v58 = vunpack.c.l.bf16 %v883_v26  ;;  %v1539_v20 = vld [vmem:[#allocation2 + $0xa0] sm:$0xf] }
  0xa3   : > { %6891 = vst [vmem:[#allocation149_spill] sm:$0xff] %v4977_v48  ;;  %6892 = vst [vmem:[#allocation150_spill] sm:$0xff] %v4979_v7  ;;  %v5024_v51 = vmul.f32 %v4729_v40, %v986_v42  ;;  %v5027_v49 = vmul.f32 %v4713_v29, %v986_v42  ;;  %v1265_v5 = vunpack.c.l.bf16 %v1249_v23  ;;  %v1570_v17 = vunpack.c.l.bf16 %v1538_v37  ;;  %v840_v7 = vld [vmem:[#allocation2 + $0xb0] sm:$0x1] }
  0xa4   : > { %6893 = vst [vmem:[#allocation151_spill] sm:$0xff] %v4982_v27  ;;  %6894 = vst [vmem:[#allocation152_spill] sm:$0xff] %v4984_v0  ;;  %v5035_v28 = vmul.f32 %v4900_v46, %v1675_v21  ;;  %v5039_v27 = vmul.f32 %v4917_v34, %v4984_v0  ;;  %v1953_v26 = vunpack.c.l.bf16 %v1937_v52  ;;  %v5055_v23 = vmul.f32 %v4926_v43, %v1675_v21 }
  0xa5   : > { %6895 = vst [vmem:[#allocation153_spill] sm:$0xff] %v4987_v15  ;;  %6896 = vst [vmem:[#allocation154_spill] sm:$0xff] %v4991_v44  ;;  %v5021_v15 = vmul.f32 %v4713_v29, %v4984_v0  ;;  %v5049_v37 = vmul.f32 %v4713_v29, %v1265_v5  ;;  %v415_v44 = vld [vmem:[%s4054_s22 + $0x68] sm:$0xf]  ;;  %v5065_v5 = vunpack.c.l.bf16 %v1539_v20 }
  0xa6   : > { %6897 = vst [vmem:[#allocation155_spill] sm:$0xff] %v4994_v13  ;;  %6898 = vst [vmem:[#allocation156_spill] sm:$0xff] %v4999_v38  ;;  %v884_v13 = vld [vmem:[#allocation2 + $0xa0] sm:$0xf]  ;;  %v5071_v21 = vmul.f32 %v4926_v43, %v1953_v26  ;;  %v645_v42 = vshrl.u32 %v415_v44, 16 }
  0xa7   : > { %6899 = vst [vmem:[#allocation157_spill] sm:$0xff] %v5005_v33  ;;  %6900 = vst [vmem:[#allocation158_spill] sm:$0xff] %v5009_v24  ;;  %v916_v52 = vunpack.c.l.bf16 %v884_v13  ;;  %v416_v33 = vld [vmem:[%s4054_s22 + $0x6c] sm:$0xf]  ;;  %v417_v38 = vld [vmem:[%s4054_s22 + $0x70] sm:$0xf]  ;;  %v5092_v20 = vmul.f32 %v4900_v46, %v5065_v5 }
  0xa8   : > { %6901 = vst [vmem:[#allocation159_spill] sm:$0xff] %v5013_v22  ;;  %6902 = vst [vmem:[#allocation160_spill] sm:$0xff] %v5017_v25  ;;  %v5032_v22 = vmul.f32 %v4917_v34, %v4977_v48  ;;  %v5046_v48 = vmul.f32 %v4729_v40, %v915_v58  ;;  %v336_v25 = vld [vmem:[#allocation2 + $0xc0] sm:$0x1]  ;;  %v5100_v24 = vld [vmem:[#allocation2 + $0xa4] sm:$0x1] }
  0xa9   : > { %6903 = vst [vmem:[#allocation161_spill] sm:$0xff] %v5021_v15  ;;  %6904 = vst [vmem:[#allocation162_spill] sm:$0xff] %v5024_v51  ;;  %v5063_v15 = vmul.f32 %v4900_v46, %v1570_v17  ;;  %v5074_v13 = vmul.f32 %v4917_v34, %v916_v52  ;;  %v648_v51 = vshll.u32 %v415_v44, 16  ;;  %v5085_v26 = vmul.f32 %v4713_v29, %v916_v52 }
  0xaa   : > { %6905 = vst [vmem:[#allocation163_spill] sm:$0xff] %v5027_v49  ;;  %6906 = vst [vmem:[#allocation164_spill] sm:$0xff] %v5032_v22  ;;  %v5060_v22 = vmul.f32 %v4917_v34, %v915_v58  ;;  %v386_v58 = vld [vmem:[#allocation2 + $0xc8] sm:$0x1]  ;;  %v5079_v49 = vld [vmem:[#allocation2 + $0xa4] sm:$0x1] }
  0xab   : > { %6907 = vst [vmem:[#allocation165_spill] sm:$0xff] %v5035_v28  ;;  %6908 = vst [vmem:[#allocation166_spill] sm:$0xff] %v5039_v27  ;;  %v5068_v27 = vmul.f32 %v4953_v63, %v1570_v17  ;;  %v5082_v17 = vmul.f32 %v4729_v40, %v916_v52  ;;  %v419_v28 = vld [vmem:[%s4054_s22 + $0x78] sm:$0xf] }
  0xac   : > { %6909 = vst [vmem:[#allocation167_spill] sm:$0xff] %v5046_v48  ;;  %6910 = vst [vmem:[#allocation168_spill] sm:$0xff] %v5049_v37  ;;  %v337_v37 = vsel %vm3990_vm3, 0, %v336_v25  ;;  %v987_v48 = vunpack.c.l.bf16 %v5079_v49 }
  0xad   : > { %6911 = vst [vmem:[#allocation169_spill] sm:$0xff] %v5055_v23  ;;  %6912 = vst [vmem:[#allocation170_spill] sm:$0xff] %v5060_v22  ;;  %v653_v23 = vshrl.u32 %v416_v33, 16  ;;  %v836_v22 = vld [vmem:[#allocation2 + $0xa8] sm:$0xf] }
  0xae   : > { %6913 = vst [vmem:[#allocation171_spill] sm:$0xff] %v5063_v15  ;;  %6914 = vst [vmem:[#allocation172_spill] sm:$0xff] %v5065_v5 }
  0xaf   : > { %6915 = vst [vmem:[#allocation173_spill] sm:$0xff] %v5068_v27  ;;  %6916 = vst [vmem:[#allocation174_spill] sm:$0xff] %v5071_v21  ;;  %v647_v21 = vrot.slane %v645_v42, 7  ;;  %v418_v27 = vld [vmem:[%s4054_s22 + $0x74] sm:$0xf]  ;;  %v655_v44 = vrot.slane %v653_v23, 7 }
  0xb0   : > { %6917 = vst [vmem:[#allocation175_spill] sm:$0xff] %v5074_v13  ;;  %v656_v13 = vshll.u32 %v416_v33, 16  ;;  %6918 = vst [vmem:[#allocation176_spill] sm:$0xff] %v5092_v20  ;;  %v387_v33 = vsel %vm4002_vm5, 0, %v386_v58  ;;  %v420_v42 = vld [vmem:[%s4054_s22 + $0x7c] sm:$0xf] }
  0xb1   : > { %v650_v52 = vor.u32 %v648_v51, %v647_v21  ;;  %v651_v0 = vrot.slane %v647_v21, 4  ;;  %338 = vst [vmem:[#allocation2 + $0xc0] sm:$0x1] %v337_v37  ;;  %v660_v5 = vrot.slane %v655_v44, 4  ;;  %388 = vst [vmem:[#allocation2 + $0xc8] sm:$0x1] %v387_v33 }
  0xb2   : > { %v658_v15 = vor.u32 %v656_v13, %v655_v44  ;;  %v662_v20 = vshrl.u32 %v417_v38, 16  ;;  %v665_v23 = vshll.u32 %v417_v38, 16  ;;  %v670_v61 = vshrl.u32 %v418_v27, 16  ;;  %v843_v58 = vld [vmem:[#allocation2 + $0xb4] sm:$0xf] }
  0xb3   : > { %v837_v25 = vsel %vm4087_vm7, %v650_v52, %v836_v22  ;;  %v673_v49 = vshll.u32 %v418_v27, 16  ;;  %v679_v51 = vshrl.u32 %v419_v28, 16  ;;  %v841_v8 = vsel %vm3990_vm3, %v660_v5, %v840_v7  ;;  %v847_v22 = vld [vmem:[#allocation2 + $0xbc] sm:$0x1]  ;;  %v2226_v33 = vld [vmem:[#allocation2 + $0xa0] sm:$0xf] }
  0xb4   : > { %838 = vst [vmem:[#allocation2 + $0xa8] sm:$0xf] %v837_v25  ;;  %v659_v37 = vsel %vm4101_vm8, %v651_v0, %v658_v15  ;;  %v664_v21 = vrot.slane %v662_v20, 7  ;;  %v682_v13 = vshll.u32 %v419_v28, 16  ;;  %v1676_v44 = vunpack.c.l.bf16 %v5100_v24  ;;  %842 = vst [vmem:[#allocation2 + $0xb0] sm:$0x1] %v841_v8 }
  0xb5   : > { %839 = vst.msk [vmem:[#allocation2 + $0xac] sm:$0xf] %vm278_vm2, %v659_v37  ;;  %v672_v38 = vrot.slane %v670_v61, 7  ;;  %v681_v52 = vrot.slane %v679_v51, 7  ;;  %v687_v27 = vshrl.u32 %v420_v42, 16  ;;  %v690_v57 = vshll.u32 %v420_v42, 16 }
  0xb6   : > { %v667_v25 = vor.u32 %v665_v23, %v664_v21  ;;  %v668_v16 = vrot.slane %v664_v21, 4  ;;  %v6919_v61 = vrot.slane %v4125_v50, 1  ;;  %v6920_v51 = vrot.slane %v4097_v10, 1 }
  0xb7   : > { %v675_v0 = vor.u32 %v673_v49, %v672_v38  ;;  %v677_v15 = vrot.slane %v672_v38, 4  ;;  %v684_v7 = vor.u32 %v682_v13, %v681_v52  ;;  %v685_v5 = vrot.slane %v681_v52, 4 }
  0xb8   : > { %v844_v28 = vsel %vm4087_vm7, %v667_v25, %v843_v58  ;;  %v850_v24 = vld [vmem:[#allocation2 + $0xc0] sm:$0xf]  ;;  %v689_v20 = vrot.slane %v687_v27, 7  ;;  %v1094_v37 = vsel %vm1091_vm9, %v6920_v51, %v6919_v61  ;;  %v5117_v23 = vunpack.c.l.bf16 %v2226_v33  ;;  %v854_v21 = vld [vmem:[#allocation2 + $0xc8] sm:$0x1] }
  0xb9   : > { %845 = vst [vmem:[#allocation2 + $0xb4] sm:$0xf] %v844_v28  ;;  %v676_v42 = vsel %vm4101_vm8, %v668_v16, %v675_v0  ;;  %v848_v49 = vsel %vm3990_vm3, %v677_v15, %v847_v22  ;;  %v851_v8 = vsel %vm4087_vm7, %v684_v7, %v850_v24  ;;  %v5126_v58 = vmul.f32 %v4729_v40, %v987_v48 }
  0xba   : > { %846 = vst.msk [vmem:[#allocation2 + $0xb8] sm:$0xf] %vm278_vm2, %v676_v42  ;;  %849 = vst [vmem:[#allocation2 + $0xbc] sm:$0x1] %v848_v49  ;;  %v692_v10 = vor.u32 %v690_v57, %v689_v20  ;;  %v694_v13 = vrot.slane %v689_v20, 4  ;;  %v1204_v38 = vadd.f32 %v1094_v37, %v4182_v30  ;;  %v5132_v52 = vmul.f32 %v4713_v29, %v987_v48 }
  0xbb   : > { %6921 = vst [vmem:[#allocation177_spill] sm:$0xff] %v5126_v58  ;;  %852 = vst [vmem:[#allocation2 + $0xc0] sm:$0xf] %v851_v8  ;;  %v5135_v3 = vmul.f32 %v4900_v46, %v1676_v44  ;;  %v1250_v22 = vld [vmem:[#allocation2 + $0xa8] sm:$0xe]  ;;  %v6923_v33 = vrot.slane %v4147_v6, 2  ;;  %v5148_v24 = vmul.f32 %v4926_v43, %v1676_v44  ;;  %v6933_v16 = vunpack.c.l.bf16 %v4681_v14 }
  0xbc   : > { %6922 = vst [vmem:[#allocation178_spill] sm:$0xff] %v5132_v52  ;;  %v1938_v27 = vld [vmem:[#allocation2 + $0xa8] sm:$0xe]  ;;  %v6924_v25 = vrot.slane %v4092_v4, 2  ;;  %v1266_v15 = vunpack.c.l.bf16 %v1250_v22  ;;  %v972_v7 = vld [vmem:[#allocation2 + $0xb0] sm:$0x1]  ;;  %v693_v48 = vsel %vm4101_vm8, %v685_v5, %v692_v10  ;;  %v855_v28 = vsel %vm3990_vm3, %v694_v13, %v854_v21 }
  0xbd   : > { %v3793_v30 = vld [vmem:[#allocation2 + $0xa8] sm:$0xff]   ;;  %v988_v4 = vunpack.c.l.bf16 %v972_v7  ;;  %v1661_v51 = vld [vmem:[#allocation2 + $0xb0] sm:$0x1]  ;;  %853 = vst.msk [vmem:[#allocation2 + $0xc4] sm:$0xf] %vm278_vm2, %v693_v48  ;;  %v1954_v5 = vunpack.c.l.bf16 %v1938_v27  ;;  %v6709_v44 = vrot.slane %v4241_v56, 1 }
  0xbe   : > { %v1372_v0 = vsel %vm1369_vm10, %v6924_v25, %v6923_v33  ;;  %v5150_v20 = vunpack.c.l.bf16 %v3793_v30  ;;  %v5152_v61 = vunpack.c.h.bf16 %v3793_v30  ;;  %856 = vst [vmem:[#allocation2 + $0xc8] sm:$0x1] %v855_v28  ;;  %v5165_v8 = vmul.f32 %v4713_v29, %v1266_v15  ;;  %v5174_v10 = vld [vmem:[%s6553_s1 + $0x9] ss:$0 sm:$0xff] }
  0xbf   : > { %v1482_v37 = vadd.f32 %v1372_v0, %v1204_v38  ;;  %v1677_v13 = vunpack.c.l.bf16 %v1661_v51  ;;  %v6927_v25 = vunpack.c.l.bf16 %v4681_v14  ;;  %v5196_v48 = vmul.f32 %v4729_v40, %v988_v4 }
  0xc0   : > { %6925 = vst [vmem:[#allocation179_spill] sm:$0xff] %v5165_v8  ;;  %v5169_v21 = vmul.f32 %v4729_v40, %v5150_v20  ;;  %v887_v38 = vld [vmem:[#allocation2 + $0xb4] sm:$0xf]  ;;  %v5185_v15 = vmul.f32 %v4729_v40, %v5152_v61  ;;  %v5189_v30 = vmul.f32 %v4713_v29, %v5152_v61  ;;  %v5193_v7 = vmul.f32 %v4900_v46, %v5150_v20 }
  0xc1   : > { %v1251_v22 = vld [vmem:[#allocation2 + $0xb4] sm:$0xe]  ;;  %v5181_v0 = vmul.f32 %v6927_v25, %v5158_v12  ;;  %6931 = vst [vmem:[#allocation184_spill] sm:$0xff] %v5196_v48  ;;  %v5199_v51 = vmul.f32 %v4926_v43, %v1954_v5  ;;  %v5201_v25 = vld [vmem:[#allocation2 + $0x24] ss:$148 sps:$4 sm:$0xff]   ;;  %v1616_v42 = vadd.f32 %v4220_v60, %v1482_v37  ;;  %v1783_v57 = vsel %vm1091_vm9, %v6932_v1, %v6709_v44 }
  0xc2   : > { %6926 = vst [vmem:[#allocation180_spill] sm:$0xff] %v5169_v21  ;;  %6928 = vst [vmem:[#allocation181_spill] sm:$0xff] %v5185_v15  ;;  %v1542_v28 = vld [vmem:[#allocation2 + $0xb4] sm:$0xf]  ;;  %v5212_v49 = vmul.f32 %v6933_v16, %v5174_v10  ;;  %v919_v33 = vunpack.c.l.bf16 %v887_v38  ;;  %v1267_v52 = vunpack.c.l.bf16 %v1251_v22  ;;  %v5217_v60 = vmul.f32 %v4713_v29, %v988_v4  ;;  %v1543_v44 = vld [vmem:[#allocation2 + $0xb8] sm:$0xf] }
  0xc3   : > { %6929 = vst [vmem:[#allocation182_spill] sm:$0xff] %v5189_v30  ;;  %6930 = vst [vmem:[#allocation183_spill] sm:$0xff] %v5193_v7  ;;  %v1939_v58 = vld [vmem:[#allocation2 + $0xb4] sm:$0xe]  ;;  %v5220_v37 = vmul.f32 %v4900_v46, %v1677_v13  ;;  %v1574_v47 = vunpack.c.l.bf16 %v1542_v28  ;;  %v920_v1 = vunpack.c.h.bf16 %v5201_v25  ;;  %v5229_v22 = vmul.f32 %v4917_v34, %v5150_v20  ;;  %v2230_v8 = vld [vmem:[#allocation2 + $0xb8] sm:$0xf] }
  0xc4   : > { %6934 = vst [vmem:[#allocation185_spill] sm:$0xff] %v5217_v60  ;;  %v5233_v4 = vmul.f32 %v4917_v34, %v5152_v61  ;;  %v5236_v28 = vmul.f32 %v4729_v40, %v919_v33  ;;  %v1955_v5 = vunpack.c.l.bf16 %v1939_v58  ;;  %v973_v14 = vld [vmem:[#allocation2 + $0xbc] sm:$0x1]  ;;  %v5239_v16 = vmul.f32 %v4926_v43, %v1677_v13  ;;  %v1940_v13 = vld [vmem:[#allocation2 + $0xc0] sm:$0xe] }
  0xc5   : > { %6935 = vst [vmem:[#allocation186_spill] sm:$0xff] %v5220_v37  ;;  %6936 = vst [vmem:[#allocation187_spill] sm:$0xff] %v5229_v22  ;;  %v1662_v21 = vld [vmem:[#allocation2 + $0xbc] sm:$0x1]  ;;  %v5242_v38 = vmul.f32 %v4713_v29, %v1267_v52  ;;  %v5245_v27 = vmul.f32 %v4900_v46, %v1574_v47  ;;  %v5247_v48 = vunpack.c.l.bf16 %v1543_v44  ;;  %v5252_v58 = vmul.f32 %v4729_v40, %v920_v1  ;;  %v5262_v44 = vld [vmem:[#allocation2 + $0xc0] sm:$0xff]  }
  0xc6   : > { %6937 = vst [vmem:[#allocation188_spill] sm:$0xff] %v5233_v4  ;;  %6938 = vst [vmem:[#allocation189_spill] sm:$0xff] %v5236_v28  ;;  %v5255_v22 = vmul.f32 %v4713_v29, %v920_v1  ;;  %v5258_v15 = vmul.f32 %v4917_v34, %v919_v33  ;;  %v5260_v52 = vunpack.c.l.bf16 %v2230_v8  ;;  %v1678_v7 = vunpack.c.l.bf16 %v1662_v21 }
  0xc7   : > { %6939 = vst [vmem:[#allocation190_spill] sm:$0xff] %v5239_v16  ;;  %6940 = vst [vmem:[#allocation191_spill] sm:$0xff] %v5242_v38  ;;  %v989_v16 = vunpack.c.l.bf16 %v973_v14  ;;  %v5266_v30 = vmul.f32 %v4953_v63, %v1574_v47  ;;  %v5269_v60 = vmul.f32 %v4926_v43, %v1955_v5  ;;  %v5272_v37 = vmul.f32 %v4917_v34, %v920_v1  ;;  %v5286_v34 = vld [vmem:[%s6553_s1 + $0xa] ss:$0 sm:$0xff] }
  0xc8   : > { %6941 = vst [vmem:[#allocation192_spill] sm:$0xff] %v5255_v22  ;;  %6942 = vst [vmem:[#allocation193_spill] sm:$0xff] %v5258_v15  ;;  %v5278_v21 = vmul.f32 %v4900_v46, %v5247_v48  ;;  %v1956_v14 = vunpack.c.l.bf16 %v1940_v13  ;;  %v2614_v15 = vld [vmem:[#allocation2 + $0x18] sm:$0xe]  ;;  %v1893_v28 = vadd.f32 %v1783_v57, %v1616_v42  ;;  %v5295_v13 = vmul.f32 %v4900_v46, %v1678_v7 }
  0xc9   : > { %6943 = vst [vmem:[#allocation194_spill] sm:$0xff] %v5272_v37  ;;  %v5289_v1 = vmul.f32 %v4729_v40, %v989_v16  ;;  %v5292_v33 = vmul.f32 %v4713_v29, %v989_v16  ;;  %v6944_v4 = vrot.slane %v4672_v32, 2  ;;  %v6945_v47 = vrot.slane %v4226_v9, 2 }
  0xca   : > { %v2375_v8 = vmul.f32 %v4947_v45, %v5174_v10  ;;  %v2470_v5 = vrot.slane %v5212_v49, 1  ;;  %v2630_v40 = vunpack.c.l.bf16 %v2614_v15  ;;  %v5306_v37 = vmul.f32 %v4926_v43, %v1678_v7  ;;  %v2337_v7 = vld [vmem:[#allocation2 + $0x20] sm:$0x1] }
  0xcb   : > { %v2060_v57 = vsel %vm1369_vm10, %v6945_v47, %v6944_v4  ;;  %v5309_v29 = vmul.f32 %v4926_v43, %v1956_v14  ;;  %v2652_v16 = vmul.f32 %v4947_v45, %v5286_v34  ;;  %v6947_v9 = vrot.slane %v4130_v53, 1 }
  0xcc   : > { %v2170_v42 = vadd.f32 %v2060_v57, %v1893_v28  ;;  %v6948_v4 = vrot.slane %v4125_v50, 1  ;;  %v2471_v57 = vrot.slane %v2375_v8, 1  ;;  %v2651_v49 = vmul.f32 %v5286_v34, %v2630_v40 }
  0xcd   : > { %6946 = vst [vmem:[#allocation195_spill] sm:$0xff] %v5309_v29  ;;  %v2748_v38 = vrot.slane %v2652_v16, 2  ;;  %v6949_v14 = vrot.slane %v4152_v11, 2  ;;  %v6950_v29 = vrot.slane %v4147_v6, 2  ;;  %v1585_v50 = vmul.f32 %v4953_v63, %v4214_v55 }
  0xce   : > { %v1096_v28 = vsel %vm1091_vm9, %v6948_v4, %v6947_v9  ;;  %v2305_v47 = vadd.f32 %v5181_v0, %v2170_v42  ;;  %v6951_v53 = vrot.slane %v4251_v35, 1  ;;  %v6952_v0 = vrot.slane %v4241_v56, 1 }
  0xcf   : > { %v1205_v15 = vadd.f32 %v1096_v28, %v4186_v31  ;;  %v1374_v22 = vsel %vm1369_vm10, %v6950_v29, %v6949_v14  ;;  %v2472_v42 = vsel %vm1091_vm9, %v2470_v5, %v2471_v57  ;;  %v2747_v31 = vrot.slane %v2651_v49, 2  ;;  %v5346_v5 = vld [vmem:[%s6554_s2] ss:$0 sm:$0xff] }
  0xd0   : > { %v1785_v8 = vsel %vm1091_vm9, %v6952_v0, %v6951_v53  ;;  %v2061_v16 = vrot.slane %v4254_v36, 2  ;;  %v2582_v11 = vadd.f32 %v2472_v42, %v2305_v47  ;;  %v2274_v6 = vmul.f32 %v4947_v45, %v5158_v12 }
  0xd1   : > { %v1483_v40 = vadd.f32 %v1374_v22, %v1205_v15  ;;  %v2353_v29 = vunpack.c.l.bf16 %v2337_v7  ;;  %v6953_v9 = vrot.slane %v4212_v54, 1  ;;  %v6954_v55 = vrot.slane %v4200_v39, 1 }
  0xd2   : > { %v2749_v56 = vsel %vm1369_vm10, %v2747_v31, %v2748_v38  ;;  %v6955_v36 = vrot.slane %v4672_v32, 2  ;;  %v6956_v49 = vrot.slane %v4223_v62, 2  ;;  %v6957_v15 = vrot.slane %v4203_v41, 2 }
  0xd3   : > { %v1099_v35 = vsel %vm1091_vm9, %v6954_v55, %v6953_v9  ;;  %v1617_v22 = vadd.f32 %v1585_v50, %v1483_v40  ;;  %v2859_v28 = vadd.f32 %v2749_v56, %v2582_v11  ;;  %v2376_v47 = vmul.f32 %v5174_v10, %v2353_v29  ;;  %v6958_v11 = vld [vmem:[#allocation8_spill] sm:$0xff] }
  0xd4   : > { %v2062_v4 = vsel %vm1369_vm10, %v6955_v36, %v2061_v16  ;;  %v1206_v45 = vadd.f32 %v1099_v35, %v4217_v59  ;;  %v2653_v39 = vmul.f32 %v5286_v34, %v2353_v29  ;;  %v1377_v7 = vsel %vm1369_vm10, %v6957_v15, %v6956_v49  ;;  %v6962_v49 = vld [vmem:[#allocation29_spill] sm:$0xff] }
  0xd5   : > { %v1894_v14 = vadd.f32 %v1785_v8, %v1617_v22  ;;  %v1586_v32 = vmul.f32 %v4953_v63, %v4233_v18  ;;  %v1689_v50 = vmul.f32 %v4900_v46, %v4235_v19  ;;  %v2898_v59 = vadd.f32 %v5346_v5, %v2859_v28  ;;  %v2615_v8 = vld [vmem:[#allocation2 + $0x24] sm:$0xe]  ;;  %v6960_v22 = vld [vmem:[#allocation13_spill] sm:$0xff] }
  0xd6   : > { %v1484_v53 = vadd.f32 %v1377_v7, %v1206_v45  ;;  %v2473_v0 = vrot.slane %v2376_v47, 1  ;;  %v2750_v42 = vrot.slane %v2653_v39, 2  ;;  %v1966_v31 = vmul.f32 %v4926_v43, %v4235_v19 }
  0xd7   : > { %v2171_v40 = vadd.f32 %v2062_v4, %v1894_v14  ;;  %v1787_v41 = vrot.slane %v1689_v50, 1  ;;  %v2063_v29 = vrot.slane %v6958_v11, 2  ;;  %v5368_v9 = vunpack.c.h.bf16 %v5262_v44 }
  0xd8   : > { %v1618_v16 = vadd.f32 %v1586_v32, %v1484_v53  ;;  %v2962_v18 = vmul.f32 0.044715, %v2898_v59  ;;  %v2474_v55 = vsel %vm1091_vm9, %v2471_v57, %v2473_v0  ;;  %v2751_v35 = vsel %vm1369_vm10, %v2748_v38, %v2750_v42 }
  0xd9   : > { %6959 = vst [vmem:[#allocation8_spill] sm:$0xff] %v5368_v9  ;;  %v2306_v56 = vadd.f32 %v2274_v6, %v2171_v40  ;;  %v6961_v36 = vrot.slane %v6960_v22, 1  ;;  %v2064_v28 = vrot.slane %v1966_v31, 2  ;;  %v2237_v4 = vunpack.c.l.bf16 %v5201_v25  ;;  %v6963_v40 = vld [vmem:[#allocation5_spill] sm:$0xff] }
  0xda   : > { %v2994_v47 = vmul.f32 %v2962_v18, %v2898_v59  ;;  %v5378_v15 = vmul.f32 %v5174_v10, %v6962_v49  ;;  %v2631_v7 = vunpack.c.l.bf16 %v2615_v8  ;;  %v2655_v31 = vmul.f32 %v5286_v34, %v6962_v49 }
  0xdb   : > { %v1788_v45 = vsel %vm1091_vm9, %v6961_v36, %v1787_v41  ;;  %v2583_v14 = vadd.f32 %v2474_v55, %v2306_v56  ;;  %v2065_v57 = vsel %vm1369_vm10, %v2063_v29, %v2064_v28  ;;  %v2275_v38 = vmul.f32 %v5158_v12, %v2237_v4  ;;  %v6966_v56 = vld [vmem:[#allocation4_spill] sm:$0xff] }
  0xdc   : > { %v1895_v39 = vadd.f32 %v1788_v45, %v1618_v16  ;;  %v2377_v6 = vmul.f32 %v5174_v10, %v2237_v4  ;;  %v3026_v53 = vmul.f32 %v2994_v47, %v2898_v59  ;;  %v2476_v50 = vrot.slane %v5378_v15, 1  ;;  %v6967_v4 = vld [vmem:[#allocation6_spill] sm:$0xff] }
  0xdd   : > { %v2654_v25 = vmul.f32 %v5286_v34, %v2631_v7  ;;  %v2860_v0 = vadd.f32 %v2751_v35, %v2583_v14  ;;  %v6964_v16 = vrot.slane %v6963_v40, 1  ;;  %v6965_v11 = vrot.slane %v4212_v54, 1 }
  0xde   : > { %v2172_v32 = vadd.f32 %v2065_v57, %v1895_v39  ;;  %v2475_v42 = vrot.slane %v2377_v6, 1  ;;  %v3058_v8 = vadd.f32 %v3026_v53, %v2898_v59  ;;  %v2753_v35 = vrot.slane %v2655_v31, 2  ;;  %v6970_v31 = vld [vmem:[#allocation18_spill] sm:$0xff] }
  0xdf   : > { %v1101_v29 = vsel %vm1091_vm9, %v6965_v11, %v6964_v16  ;;  %v2752_v55 = vrot.slane %v2654_v25, 2  ;;  %v2899_v36 = vadd.f32 %v5346_v5, %v2860_v0  ;;  %v6968_v47 = vrot.slane %v6967_v4, 2  ;;  %v6971_v16 = vld [vmem:[#allocation17_spill] sm:$0xff] }
  0xe0   : > { %v2307_v18 = vadd.f32 %v2275_v38, %v2172_v32  ;;  %v1207_v22 = vadd.f32 %v1101_v29, %v6966_v56  ;;  %v2477_v45 = vsel %vm1091_vm9, %v2475_v42, %v2476_v50  ;;  %v6969_v39 = vrot.slane %v4223_v62, 2  ;;  %v2338_v38 = vld [vmem:[#allocation2 + $0x2c] sm:$0x1]  ;;  %v6975_v56 = vld [vmem:[#allocation10_spill] sm:$0xff] }
  0xe1   : > { %v3090_v7 = vmul.f32 0.7978846, %v3058_v8  ;;  %v1587_v57 = vmul.f32 %v4953_v63, %v4235_v19  ;;  %v2930_v6 = vmul.f32 0.5, %v2898_v59  ;;  %v5402_v53 = vmul.f32 0.5, %v2899_v36 }
  0xe2   : > { %v1379_v15 = vsel %vm1369_vm10, %v6969_v39, %v6968_v47  ;;  %v2584_v54 = vadd.f32 %v2477_v45, %v2307_v18  ;;  %v2963_v32 = vmul.f32 0.044715, %v2899_v36  ;;  %v2754_v25 = vsel %vm1369_vm10, %v2752_v55, %v2753_v35  ;;  %v6973_v18 = vld [vmem:[#allocation11_spill] sm:$0xff]  ;;  %v6977_v47 = vld [vmem:[#allocation9_spill] sm:$0xff] }
  0xe3   : > { %v1485_v14 = vadd.f32 %v1379_v15, %v1207_v22  ;;  %3834 = vtanh.f32 %v3090_v7  ;;  %v2066_v62 = vrot.slane %v6970_v31, 2  ;;  %v6972_v11 = vrot.slane %v6971_v16, 1  ;;  %v6982_v16 = vld [vmem:[#allocation35_spill] sm:$0xff] }
  0xe4   : > { %v2861_v0 = vadd.f32 %v2754_v25, %v2584_v54  ;;  %v2995_v40 = vmul.f32 %v2963_v32, %v2899_v36  ;;  %v2354_v8 = vunpack.c.l.bf16 %v2338_v38  ;;  %v6974_v19 = vrot.slane %v6973_v18, 1 }
  0xe5   : > { %v1619_v42 = vadd.f32 %v1587_v57, %v1485_v14  ;;  %v1790_v29 = vsel %vm1091_vm9, %v1787_v41, %v6972_v11  ;;  %v6976_v59 = vrot.slane %v6975_v56, 1  ;;  %v2067_v4 = vsel %vm1369_vm10, %v2064_v28, %v2066_v62  ;;  %v6978_v41 = vld [vmem:[#allocation12_spill] sm:$0xff]  ;;  %v6980_v57 = vld [vmem:[#allocation7_spill] sm:$0xff] }
  0xe6   : > { %v2900_v45 = vadd.f32 %v5346_v5, %v2861_v0  ;;  %v3027_v15 = vmul.f32 %v2995_v40, %v2899_v36  ;;  %v2379_v7 = vmul.f32 %v5174_v10, %v2354_v8  ;;  %v2656_v54 = vmul.f32 %v5286_v34, %v2354_v8 }
  0xe7   : > { %v1104_v22 = vsel %vm1091_vm9, %v6976_v59, %v6974_v19  ;;  %v1896_v55 = vadd.f32 %v1790_v29, %v1619_v42  ;;  %v6979_v14 = vrot.slane %v6978_v41, 2  ;;  %v6981_v38 = vrot.slane %v6980_v57, 2  ;;  %v6983_v19 = vld [vmem:[#allocation26_spill] sm:$0xff]  ;;  %v6984_v59 = vld [vmem:[#allocation25_spill] sm:$0xff] }
  0xe8   : > { %v1208_v39 = vadd.f32 %v1104_v22, %v6977_v47  ;;  %v2964_v25 = vmul.f32 0.044715, %v2900_v45  ;;  %v2276_v0 = vmul.f32 %v5158_v12, %v6962_v49  ;;  %v3059_v42 = vadd.f32 %v3027_v15, %v2899_v36  ;;  %v3802_v47 = vld [vmem:[#allocation2 + $0x30] sm:$0xff]  }
  0xe9   : > { %v1382_v32 = vsel %vm1369_vm10, %v6981_v38, %v6979_v14  ;;  %v2173_v31 = vadd.f32 %v2067_v4, %v1896_v55  ;;  %v2478_v62 = vrot.slane %v2379_v7, 1  ;;  %v2755_v40 = vrot.slane %v2656_v54, 2  ;;  %v6985_v49 = vld [vmem:[#allocation22_spill] sm:$0xff]  ;;  %v6987_v38 = vld [vmem:[#allocation28_spill] sm:$0xff] }
  0xea   : > { %v1486_v28 = vadd.f32 %v1382_v32, %v1208_v39  ;;  %v1792_v11 = vrot.slane %v6982_v16, 1  ;;  %v2996_v29 = vmul.f32 %v2964_v25, %v2900_v45  ;;  %v1969_v22 = vmul.f32 %v4926_v43, %v6984_v59  ;;  %v2616_v15 = vld [vmem:[#allocation2 + $0x30] sm:$0xe] }
  0xeb   : > { %v2308_v8 = vadd.f32 %v2276_v0, %v2173_v31  ;;  %v3091_v14 = vmul.f32 0.7978846, %v3059_v42  ;;  %v2479_v55 = vsel %vm1091_vm9, %v2476_v50, %v2478_v62  ;;  %v2756_v4 = vsel %vm1369_vm10, %v2753_v35, %v2755_v40  ;;  %v6988_v35 = vld [vmem:[#allocation14_spill] sm:$0xff] }
  0xec   : > { %v1620_v56 = vadd.f32 %v6983_v19, %v1486_v28  ;;  %v6986_v39 = vrot.slane %v6985_v49, 1  ;;  %v3028_v7 = vmul.f32 %v2996_v29, %v2900_v45  ;;  %v2068_v32 = vrot.slane %v6987_v38, 2 }
  0xed   : > { %v2585_v54 = vadd.f32 %v2479_v55, %v2308_v8  ;;  %3836 = vtanh.f32 %v3091_v14  ;;  %v2069_v25 = vrot.slane %v1969_v22, 2  ;;  %v3761_v31 = vunpack.c.l.bf16 %v3802_v47  ;;  %v3835_v28 = vpop.eup %3834 }
  0xee   : > { %v1793_v36 = vsel %vm1091_vm9, %v6986_v39, %v1792_v11  ;;  %v3762_v0 = vunpack.c.h.bf16 %v3802_v47  ;;  %v3060_v42 = vadd.f32 %v3028_v7, %v2900_v45  ;;  %v2632_v62 = vunpack.c.l.bf16 %v2616_v15 }
  0xef   : > { %v1897_v57 = vadd.f32 %v1793_v36, %v1620_v56  ;;  %v2862_v50 = vadd.f32 %v2756_v4, %v2585_v54  ;;  %v6989_v40 = vrot.slane %v6988_v35, 1  ;;  %v6990_v16 = vrot.slane %v6973_v18, 1 }
  0xf0   : > { %v3154_v29 = vadd.f32 1.0, %v3835_v28  ;;  %v2070_v8 = vsel %vm1369_vm10, %v2068_v32, %v2069_v25  ;;  %v2277_v56 = vmul.f32 %v3761_v31, %v5158_v12  ;;  %v2380_v22 = vmul.f32 %v3761_v31, %v5174_v10 }
  0xf1   : > { %v1106_v19 = vsel %vm1091_vm9, %v6990_v16, %v6989_v40  ;;  %v3092_v14 = vmul.f32 0.7978846, %v3060_v42  ;;  %v2901_v47 = vadd.f32 %v5346_v5, %v2862_v50  ;;  %v2174_v55 = vadd.f32 %v2070_v8, %v1897_v57  ;;  %v6991_v42 = vld [vmem:[#allocation16_spill] sm:$0xff] }
  0xf2   : > { %v2381_v4 = vmul.f32 %v3762_v0, %v5174_v10  ;;  %v3186_v49 = vmul.f32 %v3154_v29, %v2930_v6  ;;  %v2480_v39 = vrot.slane %v2380_v22, 1  ;;  %v2657_v36 = vmul.f32 %v5286_v34, %v2632_v62  ;;  %v6992_v62 = vld [vmem:[#allocation15_spill] sm:$0xff] }
  0xf3   : > { %v2658_v18 = vmul.f32 %v3762_v0, %v5286_v34  ;;  %v2932_v15 = vmul.f32 0.5, %v2900_v45  ;;  %3838 = vtanh.f32 %v3092_v14  ;;  %v2965_v7 = vmul.f32 0.044715, %v2901_v47  ;;  %v2339_v29 = vld [vmem:[#allocation2 + $0x38] sm:$0x1] }
  0xf4   : > { %v2309_v54 = vadd.f32 %v2277_v56, %v2174_v55  ;;  %v3659_v57 = vpack.c.bf16 %v3186_v49, %v3186_v49  ;;  %v3379_v38 = vsel %vm3378_vm11, %v3186_v49, 0.0  ;;  %v2481_v6 = vrot.slane %v2381_v4, 1  ;;  %v6995_v56 = vld [vmem:[#allocation31_spill] sm:$0xff]  ;;  %v6997_v55 = vld [vmem:[#allocation40_spill] sm:$0xff] }
  0xf5   : > { %v2757_v32 = vrot.slane %v2657_v36, 2  ;;  %v2997_v31 = vmul.f32 %v2965_v7, %v2901_v47  ;;  %v2758_v28 = vrot.slane %v2658_v18, 2  ;;  %v1209_v50 = vadd.f32 %v1106_v19, %v6991_v42  ;;  %v6998_v42 = vld [vmem:[#allocation23_spill] sm:$0xff] }
  0xf6   : > { %v6993_v35 = vrot.slane %v6992_v62, 2  ;;  %v6994_v40 = vrot.slane %v6978_v41, 2  ;;  %3346 = vst.msk [vmem:[%s5453_s10] sm:$0xf] %vm278_vm2, %v3659_v57  ;;  %v2482_v45 = vsel %vm1091_vm9, %v2480_v39, %v2481_v6  ;;  %v1589_v8 = vmul.f32 %v4953_v63, %v6984_v59  ;;  %v7000_v59 = vld [vmem:[#allocation19_spill] sm:$0xff] }
  0xf7   : > { %v6996_v22 = vrot.slane %v6995_v56, 1  ;;  %v2071_v19 = vrot.slane %v6997_v55, 2  ;;  %v3029_v4 = vmul.f32 %v2997_v31, %v2901_v47  ;;  %v2586_v49 = vadd.f32 %v2482_v45, %v2309_v54  ;;  %v3837_v18 = vpop.eup %3836 }
  0xf8   : > { %v1384_v16 = vsel %vm1369_vm10, %v6994_v40, %v6993_v35  ;;  %v2759_v41 = vsel %vm1369_vm10, %v2757_v32, %v2758_v28  ;;  %v2278_v57 = vmul.f32 %v3762_v0, %v5158_v12  ;;  %v2355_v39 = vunpack.c.l.bf16 %v2339_v29  ;;  %v7005_v0 = vld [vmem:[#allocation20_spill] sm:$0xff] }
  0xf9   : > { %v1795_v14 = vsel %vm1091_vm9, %v1792_v11, %v6996_v22  ;;  %v1487_v36 = vadd.f32 %v1384_v16, %v1209_v50  ;;  %v2072_v7 = vsel %vm1369_vm10, %v2069_v25, %v2071_v19  ;;  %v6999_v62 = vrot.slane %v6998_v42, 1  ;;  %v7002_v50 = vld [vmem:[#allocation21_spill] sm:$0xff]  ;;  %v7003_v25 = vld [vmem:[#allocation24_spill] sm:$0xff] }
  0xfa   : > { %v7001_v35 = vrot.slane %v7000_v59, 1  ;;  %v3155_v11 = vadd.f32 1.0, %v3837_v18  ;;  %v3061_v56 = vadd.f32 %v3029_v4, %v2901_v47  ;;  %v2863_v22 = vadd.f32 %v2759_v41, %v2586_v49 }
  0xfb   : > { %v1621_v31 = vadd.f32 %v1589_v8, %v1487_v36  ;;  %v2382_v54 = vmul.f32 %v5174_v10, %v2355_v39  ;;  %v2659_v32 = vmul.f32 %v5286_v34, %v2355_v39  ;;  %v7004_v45 = vrot.slane %v7003_v25, 2  ;;  %v7007_v36 = vld [vmem:[#allocation34_spill] sm:$0xff] }
  0xfc   : > { %v1109_v40 = vsel %vm1091_vm9, %v7001_v35, %v6999_v62  ;;  %v7006_v29 = vrot.slane %v7005_v0, 2  ;;  %v3187_v19 = vmul.f32 %v3155_v11, %v5402_v53  ;;  %v3093_v59 = vmul.f32 0.7978846, %v3061_v56  ;;  %v5492_v56 = vld [vmem:[#allocation2 + $0x3c] ss:$24 sps:$4 sm:$0xff]  }
  0xfd   : > { %v1210_v16 = vadd.f32 %v1109_v40, %v7002_v50  ;;  %v2902_v18 = vadd.f32 %v5346_v5, %v2863_v22  ;;  %v1898_v4 = vadd.f32 %v1795_v14, %v1621_v31  ;;  %v2483_v8 = vrot.slane %v2382_v54, 1  ;;  %v3839_v62 = vpop.eup %3838  ;;  %v7008_v54 = vld [vmem:[#allocation36_spill] sm:$0xff] }
  0xfe   : > { %v1387_v55 = vsel %vm1369_vm10, %v7006_v29, %v7004_v45  ;;  %v2760_v49 = vrot.slane %v2659_v32, 2  ;;  %v1590_v39 = vmul.f32 %v4953_v63, %v7007_v36  ;;  %v3660_v35 = vpack.c.bf16 %v3187_v19, %v3187_v19 }
  0xff   : > { %v1488_v41 = vadd.f32 %v1387_v55, %v1210_v16  ;;  %v3380_v40 = vsel %vm3378_vm11, %v3187_v19, 0.0  ;;  %v2933_v50 = vmul.f32 0.5, %v2901_v47  ;;  %3840 = vtanh.f32 %v3093_v59  ;;  %v7009_v55 = vld [vmem:[#allocation41_spill] sm:$0xff] }
 0x100   : > { %v3381_v45 = vadd.f32 %v3380_v40, %v3379_v38  ;;  %v3156_v0 = vadd.f32 1.0, %v3839_v62  ;;  %v2966_v53 = vmul.f32 0.044715, %v2902_v18  ;;  %v2175_v11 = vadd.f32 %v2072_v7, %v1898_v4  ;;  %3347 = vst.msk [vmem:[%s5453_s10 + $0x4] sm:$0xf] %vm278_vm2, %v3660_v35  ;;  %v7010_v4 = vld [vmem:[#allocation58_spill] sm:$0xff] }
 0x101   : > { %v2484_v14 = vsel %vm1091_vm9, %v2481_v6, %v2483_v8  ;;  %v2761_v22 = vsel %vm1369_vm10, %v2758_v28, %v2760_v49  ;;  %v1622_v31 = vadd.f32 %v1590_v39, %v1488_v41  ;;  %v1695_v32 = vmul.f32 %v4900_v46, %v7008_v54  ;;  %v2617_v49 = vld [vmem:[#allocation2 + $0x3c] sm:$0xe] }
 0x102   : > { %v3188_v16 = vmul.f32 %v3156_v0, %v2932_v15  ;;  %v2998_v29 = vmul.f32 %v2966_v53, %v2902_v18  ;;  %v2310_v47 = vadd.f32 %v2278_v57, %v2175_v11  ;;  %v1972_v38 = vmul.f32 %v4926_v43, %v7008_v54  ;;  %v7011_v57 = vld [vmem:[#allocation43_spill] sm:$0xff] }
 0x103   : > { %v1797_v7 = vrot.slane %v1695_v32, 1  ;;  %v2073_v19 = vrot.slane %v7009_v55, 2  ;;  %v2241_v59 = vunpack.c.l.bf16 %v5492_v56  ;;  %v5506_v6 = vmul.f32 %v5174_v10, %v7010_v4 }
 0x104   : > { %v3661_v28 = vpack.c.bf16 %v3188_v16, %v3188_v16  ;;  %v3382_v8 = vsel %vm3378_vm11, %v3188_v16, 0.0  ;;  %v3030_v46 = vmul.f32 %v2998_v29, %v2902_v18  ;;  %v2587_v15 = vadd.f32 %v2484_v14, %v2310_v47 }
 0x105   : > { %v3383_v41 = vadd.f32 %v3382_v8, %v3381_v45  ;;  %v7012_v36 = vrot.slane %v7011_v57, 1  ;;  %v2074_v39 = vrot.slane %v1972_v38, 2  ;;  %v2279_v62 = vmul.f32 %v5158_v12, %v2241_v59  ;;  %v7016_v57 = vld [vmem:[#allocation30_spill] sm:$0xff] }
 0x106   : > { %3348 = vst.msk [vmem:[%s5453_s10 + $0x8] sm:$0xf] %vm278_vm2, %v3661_v28  ;;  %v3062_v35 = vadd.f32 %v3030_v46, %v2902_v18  ;;  %v2864_v40 = vadd.f32 %v2761_v22, %v2587_v15  ;;  %v2383_v53 = vmul.f32 %v5174_v10, %v2241_v59  ;;  %v6724_v14 = vrot.slane %v5506_v6, 1  ;;  %v7013_v59 = vld [vmem:[#allocation27_spill] sm:$0xff] }
 0x107   : > { %v1798_v43 = vsel %vm1091_vm9, %v7012_v36, %v1797_v7  ;;  %v2075_v11 = vsel %vm1369_vm10, %v2073_v19, %v2074_v39  ;;  %v2633_v32 = vunpack.c.l.bf16 %v2617_v49  ;;  %v5520_v45 = vmul.f32 %v5286_v34, %v7010_v4 }
 0x108   : > { %v1899_v0 = vadd.f32 %v1798_v43, %v1622_v31  ;;  %v3094_v16 = vmul.f32 0.7978846, %v3062_v35  ;;  %v2903_v29 = vadd.f32 %v5346_v5, %v2864_v40  ;;  %v2485_v38 = vrot.slane %v2383_v53, 1  ;;  %v7019_v53 = vld [vmem:[#allocation32_spill] sm:$0xff] }
 0x109   : > { %v3841_v55 = vpop.eup %3840  ;;  %v2934_v28 = vmul.f32 0.5, %v2902_v18  ;;  %v2660_v22 = vmul.f32 %v5286_v34, %v2633_v32  ;;  %v2763_v31 = vrot.slane %v5520_v45, 2  ;;  %v7014_v19 = vrot.slane %v7013_v59, 1 }
 0x10a   : > { %v2176_v47 = vadd.f32 %v2075_v11, %v1899_v0  ;;  %v7015_v8 = vrot.slane %v6998_v42, 1  ;;  %v3157_v15 = vadd.f32 1.0, %v3841_v55  ;;  %3842 = vtanh.f32 %v3094_v16  ;;  %v7020_v16 = vld [vmem:[#allocation47_spill] sm:$0xff] }
 0x10b   : > { %v2967_v49 = vmul.f32 0.044715, %v2903_v29  ;;  %v7017_v36 = vrot.slane %v7016_v57, 2  ;;  %v7018_v43 = vrot.slane %v7003_v25, 2  ;;  %v2487_v40 = vsel %vm1091_vm9, %v2485_v38, %v6724_v14  ;;  %v2340_v38 = vld [vmem:[#allocation2 + $0x44] sm:$0x1] }
 0x10c   : > { %v1111_v46 = vsel %vm1091_vm9, %v7015_v8, %v7014_v19  ;;  %v2311_v18 = vadd.f32 %v2279_v62, %v2176_v47  ;;  %v2762_v0 = vrot.slane %v2660_v22, 2  ;;  %v3189_v42 = vmul.f32 %v3157_v15, %v2933_v50  ;;  %v7022_v19 = vld [vmem:[#allocation50_spill] sm:$0xff]  ;;  %v2618_v14 = vld [vmem:[#allocation2 + $0x48] sm:$0xe] }
 0x10d   : > { %v1389_v35 = vsel %vm1369_vm10, %v7018_v43, %v7017_v36  ;;  %v1211_v11 = vadd.f32 %v1111_v46, %v7019_v53  ;;  %v2999_v32 = vmul.f32 %v2967_v49, %v2903_v29  ;;  %v1591_v45 = vmul.f32 %v4953_v63, %v7008_v54  ;;  %v7023_v43 = vld [vmem:[#allocation38_spill] sm:$0xff]  ;;  %v7027_v53 = vld [vmem:[#allocation39_spill] sm:$0xff] }
 0x10e   : > { %v7021_v55 = vrot.slane %v7020_v16, 1  ;;  %v2588_v59 = vadd.f32 %v2487_v40, %v2311_v18  ;;  %v2764_v62 = vsel %vm1369_vm10, %v2762_v0, %v2763_v31  ;;  %v2076_v8 = vrot.slane %v7022_v19, 2  ;;  %v7025_v18 = vld [vmem:[#allocation37_spill] sm:$0xff] }
 0x10f   : > { %v1489_v47 = vadd.f32 %v1389_v35, %v1211_v11  ;;  %v3662_v22 = vpack.c.bf16 %v3189_v42, %v3189_v42  ;;  %v3384_v46 = vsel %vm3378_vm11, %v3189_v42, 0.0  ;;  %v3031_v50 = vmul.f32 %v2999_v32, %v2903_v29  ;;  %v7029_v42 = vld [vmem:[#allocation33_spill] sm:$0xff] }
 0x110   : > { %v1800_v25 = vsel %vm1091_vm9, %v1797_v7, %v7021_v55  ;;  %v2280_v15 = vmul.f32 %v5158_v12, %v7010_v4  ;;  %v3385_v49 = vadd.f32 %v3384_v46, %v3383_v41  ;;  %v2865_v63 = vadd.f32 %v2764_v62, %v2588_v59  ;;  %v7032_v55 = vld [vmem:[#allocation64_spill] sm:$0xff] }
 0x111   : > { %v1623_v54 = vadd.f32 %v1591_v45, %v1489_v47  ;;  %v2077_v57 = vsel %vm1369_vm10, %v2074_v39, %v2076_v8  ;;  %3349 = vst.msk [vmem:[%s5453_s10 + $0xc] sm:$0xf] %vm278_vm2, %v3662_v22  ;;  %v3063_v7 = vadd.f32 %v3031_v50, %v2903_v29  ;;  %v2356_v36 = vunpack.c.l.bf16 %v2340_v38  ;;  %v7031_v39 = vld [vmem:[#allocation42_spill] sm:$0xff]  ;;  %v5570_v8 = vld [vmem:[%s6553_s1 + $0x6] ss:$0 sm:$0xff]  ;;  %v7033_v38 = vld [vmem:[#allocation55_spill] sm:$0xff] }
 0x112   : > { %v7024_v35 = vrot.slane %v7023_v43, 1  ;;  %v7026_v40 = vrot.slane %v7025_v18, 1  ;;  %v7028_v11 = vrot.slane %v7027_v53, 2  ;;  %v7030_v32 = vrot.slane %v7029_v42, 2 }
 0x113   : > { %v2904_v41 = vadd.f32 %v5346_v5, %v2865_v63  ;;  %v1900_v45 = vadd.f32 %v1800_v25, %v1623_v54  ;;  %v1802_v59 = vrot.slane %v7032_v55, 1  ;;  %v3095_v62 = vmul.f32 0.7978846, %v3063_v7 }
 0x114   : > { %v1114_v0 = vsel %vm1091_vm9, %v7026_v40, %v7024_v35  ;;  %v1392_v4 = vsel %vm1369_vm10, %v7030_v32, %v7028_v11  ;;  %v2385_v47 = vmul.f32 %v5174_v10, %v2356_v36  ;;  %v2662_v19 = vmul.f32 %v5286_v34, %v2356_v36  ;;  %v3843_v54 = vpop.eup %3842  ;;  %v7034_v36 = vld [vmem:[#allocation51_spill] sm:$0xff]  ;;  %v7036_v32 = vld [vmem:[#allocation53_spill] sm:$0xff] }
 0x115   : > { %v1212_v16 = vadd.f32 %v1114_v0, %v7031_v39  ;;  %v5574_v22 = vmul.f32 %v5570_v8, %v7033_v38  ;;  %v5576_v46 = vmul.f32 0.5, %v2903_v29  ;;  %v2968_v25 = vmul.f32 0.044715, %v2904_v41  ;;  %v3803_v29 = vld [vmem:[#allocation2 + $0x48] sm:$0xff]  }
 0x116   : > { %v2177_v50 = vadd.f32 %v2077_v57, %v1900_v45  ;;  %3844 = vtanh.f32 %v3095_v62  ;;  %v2488_v7 = vrot.slane %v2385_v47, 1  ;;  %v2765_v35 = vrot.slane %v2662_v19, 2 }
 0x117   : > { %v1490_v63 = vadd.f32 %v1392_v4, %v1212_v16  ;;  %v7035_v18 = vrot.slane %v7034_v36, 1  ;;  %v3158_v0 = vadd.f32 1.0, %v3843_v54  ;;  %v3000_v11 = vmul.f32 %v2968_v25, %v2904_v41  ;;  %v7038_v16 = vld [vmem:[#allocation54_spill] sm:$0xff] }
 0x118   : > { %v2312_v42 = vadd.f32 %v2280_v15, %v2177_v50  ;;  %v7037_v57 = vrot.slane %v5506_v6, 1  ;;  %v2766_v45 = vsel %vm1369_vm10, %v2763_v31, %v2765_v35  ;;  %v2078_v62 = vrot.slane %v7038_v16, 2 }
 0x119   : > { %v1803_v40 = vsel %vm1091_vm9, %v7035_v18, %v1802_v59  ;;  %v1624_v39 = vadd.f32 %v7036_v32, %v1490_v63  ;;  %v2079_v47 = vrot.slane %v5574_v22, 2  ;;  %v3190_v19 = vmul.f32 %v3158_v0, %v2934_v28 }
 0x11a   : > { %v2489_v4 = vsel %vm1091_vm9, %v7037_v57, %v2488_v7  ;;  %v3032_v36 = vmul.f32 %v3000_v11, %v2904_v41  ;;  %v3765_v50 = vunpack.c.l.bf16 %v3803_v29  ;;  %v3766_v63 = vunpack.c.h.bf16 %v3803_v29  ;;  %v7039_v29 = vld [vmem:[#allocation44_spill] sm:$0xff] }
 0x11b   : > { %v2589_v54 = vadd.f32 %v2489_v4, %v2312_v42  ;;  %v1901_v25 = vadd.f32 %v1803_v40, %v1624_v39  ;;  %v2080_v15 = vsel %vm1369_vm10, %v2078_v62, %v2079_v47  ;;  %v2634_v18 = vunpack.c.l.bf16 %v2618_v14 }
 0x11c   : > { %v3663_v32 = vpack.c.bf16 %v3190_v19, %v3190_v19  ;;  %v3386_v6 = vsel %vm3378_vm11, %v3190_v19, 0.0  ;;  %v3064_v7 = vadd.f32 %v3032_v36, %v2904_v41  ;;  %v2281_v16 = vmul.f32 %v3765_v50, %v5158_v12 }
 0x11d   : > { %v2866_v57 = vadd.f32 %v2766_v45, %v2589_v54  ;;  %v3387_v31 = vadd.f32 %v3386_v6, %v3385_v49  ;;  %v2178_v35 = vadd.f32 %v2080_v15, %v1901_v25  ;;  %v2386_v28 = vmul.f32 %v3765_v50, %v5174_v10  ;;  %v7042_v50 = vld [vmem:[#allocation45_spill] sm:$0xff] }
 0x11e   : > { %3350 = vst.msk [vmem:[%s5453_s10 + $0x10] sm:$0xf] %vm278_vm2, %v3663_v32  ;;  %v3096_v22 = vmul.f32 0.7978846, %v3064_v7  ;;  %v2387_v0 = vmul.f32 %v3766_v63, %v5174_v10  ;;  %v2663_v14 = vmul.f32 %v5286_v34, %v2634_v18  ;;  %v2664_v39 = vmul.f32 %v3766_v63, %v5286_v34  ;;  %v7043_v18 = vld [vmem:[#allocation46_spill] sm:$0xff] }
 0x11f   : > { %v2905_v40 = vadd.f32 %v5346_v5, %v2866_v57  ;;  %v2313_v11 = vadd.f32 %v2281_v16, %v2178_v35  ;;  %v2490_v42 = vrot.slane %v2386_v28, 1  ;;  %v7040_v49 = vrot.slane %v7039_v29, 1 }
 0x120   : > { %v7041_v4 = vrot.slane %v7023_v43, 1  ;;  %v2936_v62 = vmul.f32 0.5, %v2904_v41  ;;  %3846 = vtanh.f32 %v3096_v22  ;;  %v2491_v36 = vrot.slane %v2387_v0, 1  ;;  %v3845_v54 = vpop.eup %3844  ;;  %v5615_v41 = vld [vmem:[%s6553_s1 + $0x4] ss:$0 sm:$0xff] }
 0x121   : > { %v2969_v19 = vmul.f32 0.044715, %v2905_v40  ;;  %v2767_v25 = vrot.slane %v2663_v14, 2  ;;  %v2768_v15 = vrot.slane %v2664_v39, 2  ;;  %v7044_v6 = vrot.slane %v7043_v18, 2  ;;  %v7049_v18 = vld [vmem:[#allocation56_spill] sm:$0xff] }
 0x122   : > { %v1116_v45 = vsel %vm1091_vm9, %v7041_v4, %v7040_v49  ;;  %v7045_v7 = vrot.slane %v7027_v53, 2  ;;  %v3159_v35 = vadd.f32 1.0, %v3845_v54  ;;  %v2492_v43 = vsel %vm1091_vm9, %v2490_v42, %v2491_v36  ;;  %v2341_v22 = vld [vmem:[#allocation2 + $0x50] sm:$0x1]  ;;  %v7046_v53 = vld [vmem:[#allocation65_spill] sm:$0xff] }
 0x123   : > { %v1213_v32 = vadd.f32 %v1116_v45, %v7042_v50  ;;  %v3001_v16 = vmul.f32 %v2969_v19, %v2905_v40  ;;  %v1593_v28 = vmul.f32 %v5615_v41, %v7033_v38  ;;  %v2590_v0 = vadd.f32 %v2492_v43, %v2313_v11  ;;  %v7048_v45 = vld [vmem:[#allocation68_spill] sm:$0xff] }
 0x124   : > { %v1394_v57 = vsel %vm1369_vm10, %v7045_v7, %v7044_v6  ;;  %v2769_v14 = vsel %vm1369_vm10, %v2767_v25, %v2768_v15  ;;  %v7047_v29 = vrot.slane %v7046_v53, 1  ;;  %v3191_v42 = vmul.f32 %v3159_v35, %v5576_v46 }
 0x125   : > { %v1491_v39 = vadd.f32 %v1394_v57, %v1213_v32  ;;  %v3033_v4 = vmul.f32 %v3001_v16, %v2905_v40  ;;  %v2081_v19 = vrot.slane %v7048_v45, 2  ;;  %v2282_v54 = vmul.f32 %v3766_v63, %v5158_v12  ;;  %v7051_v32 = vld [vmem:[#allocation48_spill] sm:$0xff] }
 0x126   : > { %v1805_v49 = vsel %vm1091_vm9, %v1802_v59, %v7047_v29  ;;  %v2867_v38 = vadd.f32 %v2769_v14, %v2590_v0  ;;  %v2357_v11 = vunpack.c.l.bf16 %v2341_v22  ;;  %v7050_v25 = vrot.slane %v7049_v18, 1  ;;  %v7053_v0 = vld [vmem:[#allocation52_spill] sm:$0xff]  ;;  %v7056_v29 = vld [vmem:[#allocation49_spill] sm:$0xff] }
 0x127   : > { %v1625_v50 = vadd.f32 %v1593_v28, %v1491_v39  ;;  %v7052_v6 = vrot.slane %v7051_v32, 1  ;;  %v3664_v55 = vpack.c.bf16 %v3191_v42, %v3191_v42  ;;  %v3388_v59 = vsel %vm3378_vm11, %v3191_v42, 0.0  ;;  %v7054_v39 = vld [vmem:[#allocation57_spill] sm:$0xff] }
 0x128   : > { %v3065_v57 = vadd.f32 %v3033_v4, %v2905_v40  ;;  %v2082_v46 = vsel %vm1369_vm10, %v2079_v47, %v2081_v19  ;;  %v3389_v35 = vadd.f32 %v3388_v59, %v3387_v31  ;;  %v2906_v16 = vadd.f32 %v5346_v5, %v2867_v38 }
 0x129   : > { %v1119_v7 = vsel %vm1091_vm9, %v7052_v6, %v7050_v25  ;;  %v1902_v43 = vadd.f32 %v1805_v49, %v1625_v50  ;;  %v2388_v63 = vmul.f32 %v5174_v10, %v2357_v11  ;;  %3351 = vst.msk [vmem:[%s5453_s10 + $0x14] sm:$0xf] %vm278_vm2, %v3664_v55  ;;  %v2665_v22 = vmul.f32 %v5286_v34, %v2357_v11  ;;  %v7058_v25 = vld [vmem:[#allocation61_spill] sm:$0xff] }
 0x12a   : > { %v3097_v28 = vmul.f32 0.7978846, %v3065_v57  ;;  %v1214_v14 = vadd.f32 %v1119_v7, %v7053_v0  ;;  %v7055_v53 = vrot.slane %v7054_v39, 2  ;;  %v7057_v42 = vrot.slane %v7056_v29, 2  ;;  %v3847_v49 = vpop.eup %3846  ;;  %v7060_v0 = vld [vmem:[#allocation75_spill] sm:$0xff] }
 0x12b   : > { %v2937_v47 = vmul.f32 0.5, %v2905_v40  ;;  %v2970_v31 = vmul.f32 0.044715, %v2906_v16  ;;  %v2179_v45 = vadd.f32 %v2082_v46, %v1902_v43  ;;  %v2493_v19 = vrot.slane %v2388_v63, 1  ;;  %v5653_v40 = vld [vmem:[%s6553_s1 + $0x5] ss:$0 sm:$0xff] }
 0x12c   : > { %v1397_v4 = vsel %vm1369_vm10, %v7057_v42, %v7055_v53  ;;  %3848 = vtanh.f32 %v3097_v28  ;;  %v2770_v38 = vrot.slane %v2665_v22, 2  ;;  %v1594_v32 = vmul.f32 %v5615_v41, %v7058_v25  ;;  %v7059_v46 = vld [vmem:[#allocation62_spill] sm:$0xff]  ;;  %v7061_v29 = vld [vmem:[#allocation83_spill] sm:$0xff] }
 0x12d   : > { %v1492_v50 = vadd.f32 %v1397_v4, %v1214_v14  ;;  %v3160_v11 = vadd.f32 1.0, %v3847_v49  ;;  %v3002_v6 = vmul.f32 %v2970_v31, %v2906_v16  ;;  %v2314_v7 = vadd.f32 %v2282_v54, %v2179_v45  ;;  %v2619_v49 = vld [vmem:[#allocation2 + $0x54] sm:$0xe] }
 0x12e   : > { %v2494_v55 = vsel %vm1091_vm9, %v2491_v36, %v2493_v19  ;;  %v2771_v59 = vsel %vm1369_vm10, %v2768_v15, %v2770_v38  ;;  %v1701_v43 = vmul.f32 %v5653_v40, %v7059_v46  ;;  %v1978_v63 = vmul.f32 %v5570_v8, %v7059_v46  ;;  %v7062_v38 = vld [vmem:[#allocation71_spill] sm:$0xff] }
 0x12f   : > { %v1626_v57 = vadd.f32 %v1594_v32, %v1492_v50  ;;  %v3192_v28 = vmul.f32 %v3160_v11, %v2936_v62  ;;  %v3034_v22 = vmul.f32 %v3002_v6, %v2906_v16  ;;  %v2591_v54 = vadd.f32 %v2494_v55, %v2314_v7 }
 0x130   : > { %v2083_v36 = vrot.slane %v7060_v0, 2  ;;  %v1807_v14 = vrot.slane %v1701_v43, 1  ;;  %v2084_v15 = vrot.slane %v1978_v63, 2  ;;  %v2245_v53 = vunpack.c.h.bf16 %v5492_v56  ;;  %v7064_v63 = vld [vmem:[#allocation59_spill] sm:$0xff] }
 0x131   : > { %v5663_v42 = vmul.f32 %v5174_v10, %v7061_v29  ;;  %v3665_v4 = vpack.c.bf16 %v3192_v28, %v3192_v28  ;;  %v3390_v31 = vsel %vm3378_vm11, %v3192_v28, 0.0  ;;  %v3066_v45 = vadd.f32 %v3034_v22, %v2906_v16 }
 0x132   : > { %v2868_v19 = vadd.f32 %v2771_v59, %v2591_v54  ;;  %v3391_v62 = vadd.f32 %v3390_v31, %v3389_v35  ;;  %v7063_v50 = vrot.slane %v7062_v38, 1  ;;  %v2085_v32 = vsel %vm1369_vm10, %v2083_v36, %v2084_v15 }
 0x133   : > { %v2283_v11 = vmul.f32 %v5158_v12, %v2245_v53  ;;  %3352 = vst.msk [vmem:[%s5453_s10 + $0x18] sm:$0xf] %vm278_vm2, %v3665_v4  ;;  %v3098_v56 = vmul.f32 0.7978846, %v3066_v45  ;;  %v2389_v55 = vmul.f32 %v5174_v10, %v2245_v53  ;;  %v2496_v59 = vrot.slane %v5663_v42, 1  ;;  %v7067_v45 = vld [vmem:[#allocation63_spill] sm:$0xff] }
 0x134   : > { %v1808_v25 = vsel %vm1091_vm9, %v7063_v50, %v1807_v14  ;;  %v2907_v6 = vadd.f32 %v5346_v5, %v2868_v19  ;;  %v2635_v43 = vunpack.c.l.bf16 %v2619_v49  ;;  %v5678_v35 = vmul.f32 %v5286_v34, %v7061_v29 }
 0x135   : > { %v1903_v7 = vadd.f32 %v1808_v25, %v1626_v57  ;;  %v7065_v28 = vrot.slane %v7064_v63, 1  ;;  %v7066_v22 = vrot.slane %v7049_v18, 1  ;;  %v2938_v0 = vmul.f32 0.5, %v2906_v16  ;;  %v7068_v25 = vld [vmem:[#allocation60_spill] sm:$0xff] }
 0x136   : > { %3850 = vtanh.f32 %v3098_v56  ;;  %v2971_v36 = vmul.f32 0.044715, %v2907_v6  ;;  %v3849_v57 = vpop.eup %3848  ;;  %v2495_v31 = vrot.slane %v2389_v55, 1  ;;  %v2666_v10 = vmul.f32 %v5286_v34, %v2635_v43 }
 0x137   : > { %v1121_v54 = vsel %vm1091_vm9, %v7066_v22, %v7065_v28  ;;  %v2180_v4 = vadd.f32 %v2085_v32, %v1903_v7  ;;  %v2773_v53 = vrot.slane %v5678_v35, 2  ;;  %v3161_v49 = vadd.f32 1.0, %v3849_v57  ;;  %v7073_v57 = vld [vmem:[#allocation78_spill] sm:$0xff] }
 0x138   : > { %v1215_v19 = vadd.f32 %v1121_v54, %v7067_v45  ;;  %v3003_v38 = vmul.f32 %v2971_v36, %v2907_v6  ;;  %v7069_v63 = vrot.slane %v7068_v25, 2  ;;  %v7070_v18 = vrot.slane %v7054_v39, 2  ;;  %v2342_v39 = vld [vmem:[#allocation2 + $0x5c] sm:$0x1] }
 0x139   : > { %v2315_v50 = vadd.f32 %v2283_v11, %v2180_v4  ;;  %v2497_v32 = vsel %vm1091_vm9, %v2495_v31, %v2496_v59  ;;  %v2772_v56 = vrot.slane %v2666_v10, 2  ;;  %v1595_v55 = vmul.f32 %v5615_v41, %v7059_v46  ;;  %v7071_v11 = vld [vmem:[#allocation74_spill] sm:$0xff] }
 0x13a   : > { %v1399_v16 = vsel %vm1369_vm10, %v7070_v18, %v7069_v63  ;;  %v3193_v43 = vmul.f32 %v3161_v49, %v2937_v47  ;;  %v3035_v35 = vmul.f32 %v3003_v38, %v2907_v6  ;;  %v7072_v22 = vrot.slane %v7071_v11, 1  ;;  %v7074_v18 = vld [vmem:[#allocation69_spill] sm:$0xff] }
 0x13b   : > { %v1493_v7 = vadd.f32 %v1399_v16, %v1215_v19  ;;  %v2592_v28 = vadd.f32 %v2497_v32, %v2315_v50  ;;  %v2774_v36 = vsel %vm1369_vm10, %v2772_v56, %v2773_v53  ;;  %v2086_v45 = vrot.slane %v7073_v57, 2  ;;  %v7076_v32 = vld [vmem:[#allocation67_spill] sm:$0xff]  ;;  %v7083_v57 = vld [vmem:[#allocation90_spill] sm:$0xff] }
 0x13c   : > { %v1810_v54 = vsel %vm1091_vm9, %v1807_v14, %v7072_v22  ;;  %v2284_v31 = vmul.f32 %v5158_v12, %v7061_v29  ;;  %v3666_v10 = vpack.c.bf16 %v3193_v43, %v3193_v43  ;;  %v3392_v46 = vsel %vm3378_vm11, %v3193_v43, 0.0  ;;  %v7078_v29 = vld [vmem:[#allocation70_spill] sm:$0xff]  ;;  %v7082_v22 = vld [vmem:[#allocation76_spill] sm:$0xff] }
 0x13d   : > { %v1627_v4 = vadd.f32 %v1595_v55, %v1493_v7  ;;  %v3067_v47 = vadd.f32 %v3035_v35, %v2907_v6  ;;  %v2869_v19 = vadd.f32 %v2774_v36, %v2592_v28  ;;  %v3393_v49 = vadd.f32 %v3392_v46, %v3391_v62  ;;  %v7080_v55 = vld [vmem:[#allocation66_spill] sm:$0xff] }
 0x13e   : > { %v2087_v50 = vsel %vm1369_vm10, %v2084_v15, %v2086_v45  ;;  %v2358_v25 = vunpack.c.l.bf16 %v2342_v39  ;;  %3353 = vst.msk [vmem:[%s5453_s10 + $0x1c] sm:$0xf] %vm278_vm2, %v3666_v10  ;;  %v7075_v16 = vrot.slane %v7074_v18, 1  ;;  %v7077_v56 = vrot.slane %v7076_v32, 1  ;;  %v5723_v15 = vld [vmem:[%s6553_s1 + $0x9] ss:$0 sm:$0xff] }
 0x13f   : > { %v1904_v38 = vadd.f32 %v1810_v54, %v1627_v4  ;;  %v3099_v14 = vmul.f32 0.7978846, %v3067_v47  ;;  %v2908_v63 = vadd.f32 %v5346_v5, %v2869_v19  ;;  %v7079_v7 = vrot.slane %v7078_v29, 2 }
 0x140   : > { %v1124_v12 = vsel %vm1091_vm9, %v7077_v56, %v7075_v16  ;;  %v7081_v43 = vrot.slane %v7080_v55, 2  ;;  %v2391_v28 = vmul.f32 %v5723_v15, %v2358_v25  ;;  %v2668_v11 = vmul.f32 %v5286_v34, %v2358_v25  ;;  %v3851_v39 = vpop.eup %3850  ;;  %v7084_v16 = vld [vmem:[#allocation85_spill] sm:$0xff]  ;;  %v7087_v55 = vld [vmem:[#allocation86_spill] sm:$0xff] }
 0x141   : > { %v2181_v35 = vadd.f32 %v2087_v50, %v1904_v38  ;;  %v1216_v54 = vadd.f32 %v1124_v12, %v7082_v22  ;;  %v2939_v36 = vmul.f32 0.5, %v2907_v6  ;;  %3852 = vtanh.f32 %v3099_v14  ;;  %v3804_v12 = vld [vmem:[#allocation2 + $0x60] sm:$0xff]  }
 0x142   : > { %v1402_v62 = vsel %vm1369_vm10, %v7081_v43, %v7079_v7  ;;  %v2972_v4 = vmul.f32 0.044715, %v2908_v63  ;;  %v1812_v45 = vrot.slane %v7083_v57, 1  ;;  %v3162_v10 = vadd.f32 1.0, %v3851_v39  ;;  %v7086_v7 = vld [vmem:[#allocation81_spill] sm:$0xff] }
 0x143   : > { %v2316_v46 = vadd.f32 %v2284_v31, %v2181_v35  ;;  %v2498_v47 = vrot.slane %v2391_v28, 1  ;;  %v2775_v19 = vrot.slane %v2668_v11, 2  ;;  %v1494_v50 = vadd.f32 %v1402_v62, %v1216_v54  ;;  %v7088_v28 = vld [vmem:[#allocation84_spill] sm:$0xff] }
 0x144   : > { %v3004_v38 = vmul.f32 %v2972_v4, %v2908_v63  ;;  %v7085_v32 = vrot.slane %v7084_v16, 1  ;;  %v5734_v25 = vmul.f32 %v5570_v8, %v7086_v7  ;;  %v3194_v6 = vmul.f32 %v3162_v10, %v2938_v0  ;;  %v2620_v57 = vld [vmem:[#allocation2 + $0x60] sm:$0xe] }
 0x145   : > { %v2499_v14 = vsel %vm1091_vm9, %v2496_v59, %v2498_v47  ;;  %v2776_v31 = vsel %vm1369_vm10, %v2773_v53, %v2775_v19  ;;  %v2088_v43 = vrot.slane %v7087_v55, 2  ;;  %v1628_v11 = vadd.f32 %v7088_v28, %v1494_v50 }
 0x146   : > { %v1813_v56 = vsel %vm1091_vm9, %v7085_v32, %v1812_v45  ;;  %v3036_v62 = vmul.f32 %v3004_v38, %v2908_v63  ;;  %v2593_v35 = vadd.f32 %v2499_v14, %v2316_v46  ;;  %v2089_v22 = vrot.slane %v5734_v25, 2  ;;  %v5750_v46 = vld [vmem:[%s6553_s1 + $0x8] ss:$0 sm:$0xff]  ;;  %v7089_v14 = vld [vmem:[#allocation72_spill] sm:$0xff] }
 0x147   : > { %v3667_v54 = vpack.c.bf16 %v3194_v6, %v3194_v6  ;;  %v3394_v39 = vsel %vm3378_vm11, %v3194_v6, 0.0  ;;  %v3769_v4 = vunpack.c.l.bf16 %v3804_v12  ;;  %v3770_v0 = vunpack.c.h.bf16 %v3804_v12 }
 0x148   : > { %v3395_v42 = vadd.f32 %v3394_v39, %v3393_v49  ;;  %v3068_v10 = vadd.f32 %v3036_v62, %v2908_v63  ;;  %v2870_v59 = vadd.f32 %v2776_v31, %v2593_v35  ;;  %v1905_v47 = vadd.f32 %v1813_v56, %v1628_v11 }
 0x149   : > { %3354 = vst.msk [vmem:[%s5453_s10 + $0x20] sm:$0xf] %vm278_vm2, %v3667_v54  ;;  %v2090_v53 = vsel %vm1369_vm10, %v2088_v43, %v2089_v22  ;;  %v2285_v19 = vmul.f32 %v5750_v46, %v3769_v4  ;;  %v2392_v38 = vmul.f32 %v5723_v15, %v3769_v4  ;;  %v2393_v50 = vmul.f32 %v5723_v15, %v3770_v0 }
 0x14a   : > { %v3100_v16 = vmul.f32 0.7978846, %v3068_v10  ;;  %v2909_v49 = vadd.f32 %v5346_v5, %v2870_v59  ;;  %v2182_v32 = vadd.f32 %v2090_v53, %v1905_v47  ;;  %v2636_v56 = vunpack.c.l.bf16 %v2620_v57  ;;  %v7092_v47 = vld [vmem:[#allocation77_spill] sm:$0xff] }
 0x14b   : > { %v2500_v25 = vrot.slane %v2392_v38, 1  ;;  %v2501_v12 = vrot.slane %v2393_v50, 1  ;;  %v2670_v6 = vmul.f32 %v3770_v0, %v5286_v34  ;;  %v7090_v31 = vrot.slane %v7089_v14, 1  ;;  %v3853_v62 = vpop.eup %3852  ;;  %v7093_v38 = vld [vmem:[#allocation73_spill] sm:$0xff] }
 0x14c   : > { %v7091_v55 = vrot.slane %v7074_v18, 1  ;;  %v2940_v35 = vmul.f32 0.5, %v2908_v63  ;;  %3854 = vtanh.f32 %v3100_v16  ;;  %v2973_v28 = vmul.f32 0.044715, %v2909_v49  ;;  %v2343_v63 = vld [vmem:[#allocation2 + $0x68] sm:$0x1] }
 0x14d   : > { %v2317_v11 = vadd.f32 %v2285_v19, %v2182_v32  ;;  %v3163_v54 = vadd.f32 1.0, %v3853_v62  ;;  %v2502_v39 = vsel %vm1091_vm9, %v2500_v25, %v2501_v12  ;;  %v2669_v4 = vmul.f32 %v5286_v34, %v2636_v56  ;;  %v7096_v25 = vld [vmem:[#allocation93_spill] sm:$0xff] }
 0x14e   : > { %v1126_v43 = vsel %vm1091_vm9, %v7091_v55, %v7090_v31  ;;  %v2778_v57 = vrot.slane %v2670_v6, 2  ;;  %v3005_v10 = vmul.f32 %v2973_v28, %v2909_v49  ;;  %v7094_v50 = vrot.slane %v7093_v38, 2  ;;  %v7098_v55 = vld [vmem:[#allocation94_spill] sm:$0xff] }
 0x14f   : > { %v2594_v59 = vadd.f32 %v2502_v39, %v2317_v11  ;;  %v1217_v53 = vadd.f32 %v1126_v43, %v7092_v47  ;;  %v7095_v18 = vrot.slane %v7078_v29, 2  ;;  %v3195_v16 = vmul.f32 %v3163_v54, %v2939_v36 }
 0x150   : > { %v2777_v19 = vrot.slane %v2669_v4, 2  ;;  %v1597_v32 = vmul.f32 %v5615_v41, %v7086_v7  ;;  %v7097_v34 = vrot.slane %v7096_v25, 1  ;;  %v3037_v6 = vmul.f32 %v3005_v10, %v2909_v49  ;;  %v7104_v25 = vld [vmem:[#allocation89_spill] sm:$0xff] }
 0x151   : > { %v1404_v14 = vsel %vm1369_vm10, %v7095_v18, %v7094_v50  ;;  %v2091_v43 = vrot.slane %v7098_v55, 2  ;;  %v2286_v62 = vmul.f32 %v5750_v46, %v3770_v0  ;;  %v3668_v29 = vpack.c.bf16 %v3195_v16, %v3195_v16  ;;  %v5786_v0 = vld [vmem:[%s6553_s1 + $0xa] ss:$0 sm:$0xff]  ;;  %v7101_v50 = vld [vmem:[#allocation79_spill] sm:$0xff] }
 0x152   : > { %v1815_v56 = vsel %vm1091_vm9, %v1812_v45, %v7097_v34  ;;  %v1495_v31 = vadd.f32 %v1404_v14, %v1217_v53  ;;  %v3396_v28 = vsel %vm3378_vm11, %v3195_v16, 0.0  ;;  %v2779_v36 = vsel %vm1369_vm10, %v2777_v19, %v2778_v57  ;;  %v7099_v53 = vld [vmem:[#allocation88_spill] sm:$0xff] }
 0x153   : > { %v2359_v11 = vunpack.c.l.bf16 %v2343_v63  ;;  %v3397_v54 = vadd.f32 %v3396_v28, %v3395_v42  ;;  %v3069_v39 = vadd.f32 %v3037_v6, %v2909_v49  ;;  %v2871_v4 = vadd.f32 %v2779_v36, %v2594_v59  ;;  %3355 = vst.msk [vmem:[%s5453_s10 + $0x24] sm:$0xf] %vm278_vm2, %v3668_v29  ;;  %v7106_v6 = vld [vmem:[#allocation82_spill] sm:$0xff] }
 0x154   : > { %v1629_v7 = vadd.f32 %v1597_v32, %v1495_v31  ;;  %v2092_v45 = vsel %vm1369_vm10, %v2089_v22, %v2091_v43  ;;  %v7100_v38 = vrot.slane %v7099_v53, 1  ;;  %v7102_v42 = vrot.slane %v7101_v50, 1  ;;  %v7103_v22 = vld [vmem:[#allocation80_spill] sm:$0xff]  ;;  %v7108_v43 = vld [vmem:[#allocation95_spill] sm:$0xff] }
 0x155   : > { %v2394_v10 = vmul.f32 %v5723_v15, %v2359_v11  ;;  %v2671_v47 = vmul.f32 %v5786_v0, %v2359_v11  ;;  %v3101_v18 = vmul.f32 0.7978846, %v3069_v39  ;;  %v2910_v14 = vadd.f32 %v5346_v5, %v2871_v4  ;;  %v5803_v5 = vld [vmem:[#allocation2 + $0x6c] ss:$24 sps:$4 sm:$0xff]  }
 0x156   : > { %v1129_v59 = vsel %vm1091_vm9, %v7102_v42, %v7100_v38  ;;  %v1906_v63 = vadd.f32 %v1815_v56, %v1629_v7  ;;  %v7105_v34 = vrot.slane %v7104_v25, 2  ;;  %v7107_v31 = vrot.slane %v7106_v6, 2  ;;  %v3855_v28 = vpop.eup %3854  ;;  %v7109_v50 = vld [vmem:[#allocation96_spill] sm:$0xff] }
 0x157   : > { %v1218_v16 = vadd.f32 %v1129_v59, %v7103_v22  ;;  %v2503_v19 = vrot.slane %v2394_v10, 1  ;;  %v2780_v32 = vrot.slane %v2671_v47, 2  ;;  %v1598_v29 = vmul.f32 %v5615_v41, %v7108_v43  ;;  %v7110_v22 = vld [vmem:[#allocation100_spill] sm:$0xff] }
 0x158   : > { %v1407_v55 = vsel %vm1369_vm10, %v7107_v31, %v7105_v34  ;;  %v2941_v36 = vmul.f32 0.5, %v2909_v49  ;;  %3856 = vtanh.f32 %v3101_v18  ;;  %v2974_v11 = vmul.f32 0.044715, %v2910_v14  ;;  %v2621_v31 = vld [vmem:[#allocation2 + $0x6c] sm:$0xe] }
 0x159   : > { %v2183_v39 = vadd.f32 %v2092_v45, %v1906_v63  ;;  %v3164_v56 = vadd.f32 1.0, %v3855_v28  ;;  %v2504_v4 = vsel %vm1091_vm9, %v2501_v12, %v2503_v19  ;;  %v2781_v7 = vsel %vm1369_vm10, %v2778_v57, %v2780_v32 }
 0x15a   : > { %v1496_v10 = vadd.f32 %v1407_v55, %v1218_v16  ;;  %v3006_v47 = vmul.f32 %v2974_v11, %v2910_v14  ;;  %v1707_v42 = vmul.f32 %v5653_v40, %v7109_v50  ;;  %v1984_v59 = vmul.f32 %v5570_v8, %v7109_v50 }
 0x15b   : > { %v2318_v38 = vadd.f32 %v2286_v62, %v2183_v39  ;;  %v3196_v49 = vmul.f32 %v3164_v56, %v2940_v35  ;;  %v2093_v45 = vrot.slane %v7110_v22, 2  ;;  %v2249_v63 = vunpack.c.l.bf16 %v5803_v5  ;;  %v7112_v56 = vld [vmem:[#allocation110_spill] sm:$0xff] }
 0x15c   : > { %v1630_v18 = vadd.f32 %v1598_v29, %v1496_v10  ;;  %v3038_v34 = vmul.f32 %v3006_v47, %v2910_v14  ;;  %v1817_v19 = vrot.slane %v1707_v42, 1  ;;  %v2094_v57 = vrot.slane %v1984_v59, 2 }
 0x15d   : > { %v2595_v12 = vadd.f32 %v2504_v4, %v2318_v38  ;;  %v3669_v16 = vpack.c.bf16 %v3196_v49, %v3196_v49  ;;  %v3398_v62 = vsel %vm3378_vm11, %v3196_v49, 0.0  ;;  %v2287_v32 = vmul.f32 %v5750_v46, %v2249_v63 }
 0x15e   : > { %v2395_v6 = vmul.f32 %v5723_v15, %v2249_v63  ;;  %v3399_v55 = vadd.f32 %v3398_v62, %v3397_v54  ;;  %v3070_v35 = vadd.f32 %v3038_v34, %v2910_v14  ;;  %v7111_v29 = vrot.slane %v4724_v2, 1  ;;  %v5829_v54 = vld [vmem:[%s6554_s2] ss:$0 sm:$0xff] }
 0x15f   : > { %v2872_v43 = vadd.f32 %v2781_v7, %v2595_v12  ;;  %3356 = vst.msk [vmem:[%s5453_s10 + $0x28] sm:$0xf] %vm278_vm2, %v3669_v16  ;;  %v2095_v39 = vsel %vm1369_vm10, %v2093_v45, %v2094_v57  ;;  %v5824_v4 = vmul.f32 %v5723_v15, %v7112_v56  ;;  %v2637_v7 = vunpack.c.l.bf16 %v2621_v31  ;;  %v7116_v62 = vld [vmem:[#allocation92_spill] sm:$0xff] }
 0x160   : > { %v1818_v28 = vsel %vm1091_vm9, %v7111_v29, %v1817_v19  ;;  %v2505_v10 = vrot.slane %v2395_v6, 1  ;;  %v3102_v47 = vmul.f32 0.7978846, %v3070_v35  ;;  %v5834_v38 = vmul.f32 %v5786_v0, %v7112_v56 }
 0x161   : > { %v1907_v11 = vadd.f32 %v1818_v28, %v1630_v18  ;;  %v2911_v2 = vadd.f32 %v5829_v54, %v2872_v43  ;;  %v2942_v42 = vmul.f32 0.5, %v2910_v14  ;;  %v2506_v49 = vrot.slane %v5824_v4, 1  ;;  %v7113_v18 = vld [vmem:[#allocation91_spill] sm:$0xff] }
 0x162   : > { %v7114_v22 = vrot.slane %v7113_v18, 1  ;;  %v7115_v45 = vrot.slane %v7099_v53, 1  ;;  %v3857_v34 = vpop.eup %3856  ;;  %3858 = vtanh.f32 %v3102_v47  ;;  %v2672_v16 = vmul.f32 %v5786_v0, %v2637_v7 }
 0x163   : > { %v2184_v59 = vadd.f32 %v2095_v39, %v1907_v11  ;;  %v2975_v12 = vmul.f32 0.044715, %v2911_v2  ;;  %v7117_v6 = vrot.slane %v7116_v62, 2  ;;  %v7118_v31 = vrot.slane %v7104_v25, 2  ;;  %v7119_v39 = vld [vmem:[#allocation87_spill] sm:$0xff] }
 0x164   : > { %v1131_v63 = vsel %vm1091_vm9, %v7115_v45, %v7114_v22  ;;  %v3165_v35 = vadd.f32 1.0, %v3857_v34  ;;  %v2507_v29 = vsel %vm1091_vm9, %v2505_v10, %v2506_v49  ;;  %v2783_v28 = vrot.slane %v5834_v38, 2  ;;  %v7120_v22 = vld [vmem:[#allocation106_spill] sm:$0xff]  ;;  %v7122_v34 = vld [vmem:[#allocation107_spill] sm:$0xff] }
 0x165   : > { %v1409_v14 = vsel %vm1369_vm10, %v7118_v31, %v7117_v6  ;;  %v2319_v43 = vadd.f32 %v2287_v32, %v2184_v59  ;;  %v3007_v53 = vmul.f32 %v2975_v12, %v2911_v2  ;;  %v2782_v11 = vrot.slane %v2672_v16, 2  ;;  %v2344_v59 = vld [vmem:[#allocation2 + $0x74] sm:$0x1] }
 0x166   : > { %v1219_v4 = vadd.f32 %v1131_v63, %v7119_v39  ;;  %v1599_v47 = vmul.f32 %v5615_v41, %v7109_v50  ;;  %v3197_v7 = vmul.f32 %v3165_v35, %v2941_v36  ;;  %v7121_v45 = vrot.slane %v7120_v22, 1  ;;  %v7127_v39 = vld [vmem:[#allocation101_spill] sm:$0xff] }
 0x167   : > { %v2596_v18 = vadd.f32 %v2507_v29, %v2319_v43  ;;  %v2096_v32 = vrot.slane %v7122_v34, 2  ;;  %v3039_v10 = vmul.f32 %v3007_v53, %v2911_v2  ;;  %v2784_v38 = vsel %vm1369_vm10, %v2782_v11, %v2783_v28  ;;  %v7123_v29 = vld [vmem:[#allocation99_spill] sm:$0xff] }
 0x168   : > { %v1820_v25 = vsel %vm1091_vm9, %v1817_v19, %v7121_v45  ;;  %v1497_v12 = vadd.f32 %v1409_v14, %v1219_v4  ;;  %v2288_v63 = vmul.f32 %v5750_v46, %v7112_v56  ;;  %v3670_v16 = vpack.c.bf16 %v3197_v7, %v3197_v7  ;;  %v7125_v14 = vld [vmem:[#allocation98_spill] sm:$0xff] }
 0x169   : > { %v3400_v50 = vsel %vm3378_vm11, %v3197_v7, 0.0  ;;  %v2873_v36 = vadd.f32 %v2784_v38, %v2596_v18  ;;  %v2097_v62 = vsel %vm1369_vm10, %v2094_v57, %v2096_v32  ;;  %v3071_v31 = vadd.f32 %v3039_v10, %v2911_v2  ;;  %v7129_v7 = vld [vmem:[#allocation97_spill] sm:$0xff]  ;;  %v7132_v38 = vld [vmem:[#allocation104_spill] sm:$0xff] }
 0x16a   : > { %v3401_v6 = vadd.f32 %v3400_v50, %v3399_v55  ;;  %v1631_v35 = vadd.f32 %v1599_v47, %v1497_v12  ;;  %v2360_v19 = vunpack.c.l.bf16 %v2344_v59  ;;  %3357 = vst.msk [vmem:[%s5453_s10 + $0x2c] sm:$0xf] %vm278_vm2, %v3670_v16  ;;  %v7124_v53 = vrot.slane %v7123_v29, 1  ;;  %v7131_v55 = vld [vmem:[#allocation126_spill] sm:$0xff]  ;;  %v7133_v16 = vld [vmem:[#allocation113_spill] sm:$0xff] }
 0x16b   : > { %v2912_v43 = vadd.f32 %v5829_v54, %v2873_v36  ;;  %v7126_v11 = vrot.slane %v7125_v14, 1  ;;  %v7128_v4 = vrot.slane %v7127_v39, 2  ;;  %v7130_v18 = vrot.slane %v7129_v7, 2  ;;  %v7135_v7 = vld [vmem:[#allocation109_spill] sm:$0xff] }
 0x16c   : > { %v6725_v22 = vrot.slane %v7131_v55, 1  ;;  %v3103_v47 = vmul.f32 0.7978846, %v3071_v31  ;;  %v1908_v45 = vadd.f32 %v1820_v25, %v1631_v35  ;;  %v2397_v34 = vmul.f32 %v5723_v15, %v2360_v19 }
 0x16d   : > { %v1134_v56 = vsel %vm1091_vm9, %v7126_v11, %v7124_v53  ;;  %v1412_v57 = vsel %vm1369_vm10, %v7130_v18, %v7128_v4  ;;  %v2674_v32 = vmul.f32 %v5786_v0, %v2360_v19  ;;  %v2943_v59 = vmul.f32 0.5, %v2911_v2  ;;  %v3859_v53 = vpop.eup %3858  ;;  %v3805_v19 = vld [vmem:[#allocation2 + $0x78] sm:$0xff]  }
 0x16e   : > { %v2976_v10 = vmul.f32 0.044715, %v2912_v43  ;;  %v1220_v12 = vadd.f32 %v1134_v56, %v7132_v38  ;;  %v7134_v50 = vrot.slane %v7133_v16, 1  ;;  %3860 = vtanh.f32 %v3103_v47  ;;  %v2622_v56 = vld [vmem:[#allocation2 + $0x78] sm:$0xe] }
 0x16f   : > { %v2185_v14 = vadd.f32 %v2097_v62, %v1908_v45  ;;  %v2508_v11 = vrot.slane %v2397_v34, 1  ;;  %v2785_v31 = vrot.slane %v2674_v32, 2  ;;  %v3166_v25 = vadd.f32 1.0, %v3859_v53  ;;  %v7137_v45 = vld [vmem:[#allocation116_spill] sm:$0xff] }
 0x170   : > { %v1823_v36 = vsel %vm1091_vm9, %v7134_v50, %v6725_v22  ;;  %v3008_v35 = vmul.f32 %v2976_v10, %v2912_v43  ;;  %v1498_v4 = vadd.f32 %v1412_v57, %v1220_v12  ;;  %v5886_v2 = vmul.f32 %v5570_v8, %v7135_v7  ;;  %v7136_v50 = vld [vmem:[#allocation117_spill] sm:$0xff] }
 0x171   : > { %v2320_v18 = vadd.f32 %v2288_v63, %v2185_v14  ;;  %v2509_v38 = vsel %vm1091_vm9, %v2506_v49, %v2508_v11  ;;  %v2786_v16 = vsel %vm1369_vm10, %v2783_v28, %v2785_v31  ;;  %v2098_v22 = vrot.slane %v7136_v50, 2 }
 0x172   : > { %v3198_v47 = vmul.f32 %v3166_v25, %v2942_v42  ;;  %v3040_v62 = vmul.f32 %v3008_v35, %v2912_v43  ;;  %v1632_v34 = vadd.f32 %v7137_v45, %v1498_v4  ;;  %v2099_v57 = vrot.slane %v5886_v2, 2 }
 0x173   : > { %v2597_v32 = vadd.f32 %v2509_v38, %v2320_v18  ;;  %v3773_v10 = vunpack.c.l.bf16 %v3805_v19  ;;  %v3774_v12 = vunpack.c.h.bf16 %v3805_v19  ;;  %v2638_v53 = vunpack.c.l.bf16 %v2622_v56 }
 0x174   : > { %v3671_v9 = vpack.c.bf16 %v3198_v47, %v3198_v47  ;;  %v3402_v63 = vsel %vm3378_vm11, %v3198_v47, 0.0  ;;  %v3072_v14 = vadd.f32 %v3040_v62, %v2912_v43  ;;  %v1909_v49 = vadd.f32 %v1823_v36, %v1632_v34 }
 0x175   : > { %v3403_v11 = vadd.f32 %v3402_v63, %v3401_v6  ;;  %v2874_v28 = vadd.f32 %v2786_v16, %v2597_v32  ;;  %v2100_v31 = vsel %vm1369_vm10, %v2098_v22, %v2099_v57  ;;  %v2289_v42 = vmul.f32 %v5750_v46, %v3773_v10  ;;  %v7138_v6 = vld [vmem:[#allocation102_spill] sm:$0xff]  ;;  %v7141_v63 = vld [vmem:[#allocation105_spill] sm:$0xff] }
 0x176   : > { %3358 = vst.msk [vmem:[%s5453_s10 + $0x30] sm:$0xf] %vm278_vm2, %v3671_v9  ;;  %v3104_v25 = vmul.f32 0.7978846, %v3072_v14  ;;  %v2186_v35 = vadd.f32 %v2100_v31, %v1909_v49  ;;  %v2398_v4 = vmul.f32 %v5723_v15, %v3773_v10  ;;  %v2399_v2 = vmul.f32 %v5723_v15, %v3774_v12  ;;  %v7142_v49 = vld [vmem:[#allocation103_spill] sm:$0xff] }
 0x177   : > { %v2913_v19 = vadd.f32 %v5829_v54, %v2874_v28  ;;  %v2675_v56 = vmul.f32 %v5786_v0, %v2638_v53  ;;  %v2676_v36 = vmul.f32 %v5786_v0, %v3774_v12  ;;  %v7139_v18 = vrot.slane %v7138_v6, 1  ;;  %v7145_v6 = vld [vmem:[#allocation127_spill] sm:$0xff] }
 0x178   : > { %v7140_v22 = vrot.slane %v7123_v29, 1  ;;  %3862 = vtanh.f32 %v3104_v25  ;;  %v2321_v9 = vadd.f32 %v2289_v42, %v2186_v35  ;;  %v2510_v16 = vrot.slane %v2398_v4, 1  ;;  %v3861_v47 = vpop.eup %3860  ;;  %v2345_v25 = vld [vmem:[#allocation2 + $0x80] sm:$0x1] }
 0x179   : > { %v2511_v50 = vrot.slane %v2399_v2, 1  ;;  %v2944_v62 = vmul.f32 0.5, %v2912_v43  ;;  %v2977_v45 = vmul.f32 0.044715, %v2913_v19  ;;  %v2787_v34 = vrot.slane %v2675_v56, 2 }
 0x17a   : > { %v1136_v38 = vsel %vm1091_vm9, %v7140_v22, %v7139_v18  ;;  %v2788_v32 = vrot.slane %v2676_v36, 2  ;;  %v3167_v10 = vadd.f32 1.0, %v3861_v47  ;;  %v7143_v28 = vrot.slane %v7142_v49, 2 }
 0x17b   : > { %v2512_v53 = vsel %vm1091_vm9, %v2510_v16, %v2511_v50  ;;  %v1221_v14 = vadd.f32 %v1136_v38, %v7141_v63  ;;  %v7144_v29 = vrot.slane %v7127_v39, 2  ;;  %v3009_v42 = vmul.f32 %v2977_v45, %v2913_v19  ;;  %v7146_v39 = vld [vmem:[#allocation122_spill] sm:$0xff] }
 0x17c   : > { %v2598_v35 = vadd.f32 %v2512_v53, %v2321_v9  ;;  %v2789_v4 = vsel %vm1369_vm10, %v2787_v34, %v2788_v32  ;;  %v1601_v43 = vmul.f32 %v5615_v41, %v7135_v7  ;;  %v3199_v2 = vmul.f32 %v3167_v10, %v2943_v59 }
 0x17d   : > { %v1414_v31 = vsel %vm1369_vm10, %v7144_v29, %v7143_v28  ;;  %v5918_v56 = vmul.f32 0.5, %v2913_v19  ;;  %v2101_v18 = vrot.slane %v7145_v6, 2  ;;  %v3041_v22 = vmul.f32 %v3009_v42, %v2913_v19  ;;  %v7151_v42 = vld [vmem:[#allocation111_spill] sm:$0xff] }
 0x17e   : > { %v1499_v36 = vadd.f32 %v1414_v31, %v1221_v14  ;;  %v2875_v38 = vadd.f32 %v2789_v4, %v2598_v35  ;;  %v7147_v16 = vrot.slane %v7146_v39, 1  ;;  %v7148_v47 = vrot.slane %v7131_v55, 1  ;;  %v7149_v31 = vld [vmem:[#allocation114_spill] sm:$0xff]  ;;  %v7157_v39 = vld [vmem:[#allocation108_spill] sm:$0xff] }
 0x17f   : > { %v2361_v45 = vunpack.c.l.bf16 %v2345_v25  ;;  %v3672_v34 = vpack.c.bf16 %v3199_v2, %v3199_v2  ;;  %v3404_v53 = vsel %vm3378_vm11, %v3199_v2, 0.0  ;;  %v2102_v59 = vsel %vm1369_vm10, %v2099_v57, %v2101_v18 }
 0x180   : > { %v1825_v9 = vsel %vm1091_vm9, %v7148_v47, %v7147_v16  ;;  %v1633_v7 = vadd.f32 %v1601_v43, %v1499_v36  ;;  %v3405_v10 = vadd.f32 %v3404_v53, %v3403_v11  ;;  %v3073_v63 = vadd.f32 %v3041_v22, %v2913_v19  ;;  %v7153_v43 = vld [vmem:[#allocation118_spill] sm:$0xff]  ;;  %v7155_v36 = vld [vmem:[#allocation112_spill] sm:$0xff]  ;;  %v7158_v47 = vld [vmem:[#allocation115_spill] sm:$0xff] }
 0x181   : > { %v2914_v14 = vadd.f32 %v5829_v54, %v2875_v38  ;;  %v2400_v49 = vmul.f32 %v5723_v15, %v2361_v45  ;;  %3359 = vst.msk [vmem:[%s5453_s10 + $0x34] sm:$0xf] %vm278_vm2, %v3672_v34  ;;  %v2290_v55 = vmul.f32 %v5750_v46, %v3774_v12  ;;  %v2677_v29 = vmul.f32 %v5786_v0, %v2361_v45 }
 0x182   : > { %v1910_v28 = vadd.f32 %v1825_v9, %v1633_v7  ;;  %v7150_v25 = vrot.slane %v7149_v31, 1  ;;  %v7152_v35 = vrot.slane %v7151_v42, 1  ;;  %v3105_v57 = vmul.f32 0.7978846, %v3073_v63  ;;  %v3863_v22 = vpop.eup %3862 }
 0x183   : > { %v2978_v11 = vmul.f32 0.044715, %v2914_v14  ;;  %v2513_v19 = vrot.slane %v2400_v49, 1  ;;  %v7154_v2 = vrot.slane %v7153_v43, 2  ;;  %v7156_v6 = vrot.slane %v7155_v36, 2 }
 0x184   : > { %v1139_v4 = vsel %vm1091_vm9, %v7152_v35, %v7150_v25  ;;  %v2187_v38 = vadd.f32 %v2102_v59, %v1910_v28  ;;  %v2790_v12 = vrot.slane %v2677_v29, 2  ;;  %v1602_v9 = vmul.f32 %v5615_v41, %v7158_v47  ;;  %v7159_v25 = vld [vmem:[#allocation124_spill] sm:$0xff] }
 0x185   : > { %v1417_v18 = vsel %vm1369_vm10, %v7156_v6, %v7154_v2  ;;  %v1222_v16 = vadd.f32 %v1139_v4, %v7157_v39  ;;  %v3168_v45 = vadd.f32 1.0, %v3863_v22  ;;  %3864 = vtanh.f32 %v3105_v57  ;;  %v7160_v29 = vld [vmem:[#allocation128_spill] sm:$0xff] }
 0x186   : > { %v3010_v34 = vmul.f32 %v2978_v11, %v2914_v14  ;;  %v2514_v53 = vsel %vm1091_vm9, %v2511_v50, %v2513_v19  ;;  %v2322_v7 = vadd.f32 %v2290_v55, %v2187_v38  ;;  %v2791_v63 = vsel %vm1369_vm10, %v2788_v32, %v2790_v12  ;;  %v2623_v6 = vld [vmem:[#allocation2 + $0x84] sm:$0xe] }
 0x187   : > { %v1500_v49 = vadd.f32 %v1417_v18, %v1222_v16  ;;  %v1713_v42 = vmul.f32 %v5653_v40, %v7159_v25  ;;  %v3200_v35 = vmul.f32 %v3168_v45, %v2944_v62  ;;  %v1990_v28 = vmul.f32 %v5570_v8, %v7159_v25  ;;  %v7161_v22 = vld [vmem:[#allocation132_spill] sm:$0xff]  ;;  %v7163_v45 = vld [vmem:[#allocation150_spill] sm:$0xff] }
 0x188   : > { %v3042_v59 = vmul.f32 %v3010_v34, %v2914_v14  ;;  %v2103_v4 = vrot.slane %v7160_v29, 2  ;;  %v2599_v2 = vadd.f32 %v2514_v53, %v2322_v7  ;;  %v2253_v50 = vunpack.c.h.bf16 %v5803_v5 }
 0x189   : > { %v1634_v57 = vadd.f32 %v1602_v9, %v1500_v49  ;;  %v1827_v11 = vrot.slane %v1713_v42, 1  ;;  %v3673_v55 = vpack.c.bf16 %v3200_v35, %v3200_v35  ;;  %v3406_v32 = vsel %vm3378_vm11, %v3200_v35, 0.0  ;;  %v7164_v49 = vld [vmem:[#allocation120_spill] sm:$0xff] }
 0x18a   : > { %v3074_v19 = vadd.f32 %v3042_v59, %v2914_v14  ;;  %v2104_v36 = vrot.slane %v1990_v28, 2  ;;  %v3407_v18 = vadd.f32 %v3406_v32, %v3405_v10  ;;  %v2876_v62 = vadd.f32 %v2791_v63, %v2599_v2  ;;  %v7167_v32 = vld [vmem:[#allocation119_spill] sm:$0xff] }
 0x18b   : > { %v7162_v38 = vrot.slane %v7161_v22, 1  ;;  %v2291_v8 = vmul.f32 %v5750_v46, %v2253_v50  ;;  %3360 = vst.msk [vmem:[%s5453_s10 + $0x38] sm:$0xf] %vm278_vm2, %v3673_v55  ;;  %v2401_v47 = vmul.f32 %v5723_v15, %v2253_v50  ;;  %v2402_v10 = vmul.f32 %v5723_v15, %v7163_v45 }
 0x18c   : > { %v3106_v39 = vmul.f32 0.7978846, %v3074_v19  ;;  %v2105_v5 = vsel %vm1369_vm10, %v2103_v4, %v2104_v36  ;;  %v2915_v9 = vadd.f32 %v5829_v54, %v2876_v62  ;;  %v2639_v34 = vunpack.c.l.bf16 %v2623_v6  ;;  %v7168_v6 = vld [vmem:[#allocation121_spill] sm:$0xff] }
 0x18d   : > { %v1828_v12 = vsel %vm1091_vm9, %v7162_v38, %v1827_v11  ;;  %v2679_v53 = vmul.f32 %v5786_v0, %v7163_v45  ;;  %v2515_v63 = vrot.slane %v2401_v47, 1  ;;  %v7165_v42 = vrot.slane %v7164_v49, 1 }
 0x18e   : > { %v1911_v16 = vadd.f32 %v1828_v12, %v1634_v57  ;;  %3866 = vtanh.f32 %v3106_v39  ;;  %v7166_v35 = vrot.slane %v7149_v31, 1  ;;  %v2946_v28 = vmul.f32 0.5, %v2914_v14 }
 0x18f   : > { %v2979_v29 = vmul.f32 0.044715, %v2915_v9  ;;  %v2516_v4 = vrot.slane %v2402_v10, 1  ;;  %v2678_v2 = vmul.f32 %v5786_v0, %v2639_v34  ;;  %v3865_v57 = vpop.eup %3864  ;;  %v2793_v55 = vrot.slane %v2679_v53, 2  ;;  %v7171_v10 = vld [vmem:[#allocation135_spill] sm:$0xff] }
 0x190   : > { %v2188_v7 = vadd.f32 %v2105_v5, %v1911_v16  ;;  %v1141_v59 = vsel %vm1091_vm9, %v7166_v35, %v7165_v42  ;;  %v7169_v62 = vrot.slane %v7168_v6, 2  ;;  %v7170_v22 = vrot.slane %v7153_v43, 2  ;;  %v2346_v16 = vld [vmem:[#allocation2 + $0x8c] sm:$0x1]  ;;  %v7173_v42 = vld [vmem:[#allocation138_spill] sm:$0xff] }
 0x191   : > { %v1223_v19 = vadd.f32 %v1141_v59, %v7167_v32  ;;  %v3169_v12 = vadd.f32 1.0, %v3865_v57  ;;  %v3011_v31 = vmul.f32 %v2979_v29, %v2915_v9  ;;  %v2517_v39 = vsel %vm1091_vm9, %v2515_v63, %v2516_v4 }
 0x192   : > { %v2323_v50 = vadd.f32 %v2291_v8, %v2188_v7  ;;  %v1419_v38 = vsel %vm1369_vm10, %v7170_v22, %v7169_v62  ;;  %v2792_v14 = vrot.slane %v2678_v2, 2  ;;  %v1603_v8 = vmul.f32 %v5615_v41, %v7159_v25  ;;  %v7174_v22 = vld [vmem:[#allocation130_spill] sm:$0xff] }
 0x193   : > { %v1501_v47 = vadd.f32 %v1419_v38, %v1223_v19  ;;  %v7172_v34 = vrot.slane %v7171_v10, 1  ;;  %v3201_v7 = vmul.f32 %v3169_v12, %v5918_v56  ;;  %v3043_v43 = vmul.f32 %v3011_v31, %v2915_v9  ;;  %v7176_v12 = vld [vmem:[#allocation125_spill] sm:$0xff] }
 0x194   : > { %v2600_v5 = vadd.f32 %v2517_v39, %v2323_v50  ;;  %v2794_v49 = vsel %vm1369_vm10, %v2792_v14, %v2793_v55  ;;  %v2106_v35 = vrot.slane %v7173_v42, 2  ;;  %v2292_v29 = vmul.f32 %v5750_v46, %v7163_v45 }
 0x195   : > { %v1830_v53 = vsel %vm1091_vm9, %v1827_v11, %v7172_v34  ;;  %v1635_v59 = vadd.f32 %v1603_v8, %v1501_v47  ;;  %v2362_v2 = vunpack.c.l.bf16 %v2346_v16  ;;  %v3674_v57 = vpack.c.bf16 %v3201_v7, %v3201_v7  ;;  %v7180_v8 = vld [vmem:[#allocation123_spill] sm:$0xff] }
 0x196   : > { %v2877_v63 = vadd.f32 %v2794_v49, %v2600_v5  ;;  %v3408_v41 = vsel %vm3378_vm11, %v3201_v7, 0.0  ;;  %v3075_v25 = vadd.f32 %v3043_v43, %v2915_v9  ;;  %v2107_v11 = vsel %vm1369_vm10, %v2104_v36, %v2106_v35  ;;  %v7178_v5 = vld [vmem:[#allocation131_spill] sm:$0xff]  ;;  %v7182_v7 = vld [vmem:[#allocation129_spill] sm:$0xff] }
 0x197   : > { %v3409_v50 = vadd.f32 %v3408_v41, %v3407_v18  ;;  %v1912_v32 = vadd.f32 %v1830_v53, %v1635_v59  ;;  %v2403_v19 = vmul.f32 %v5723_v15, %v2362_v2  ;;  %3361 = vst.msk [vmem:[%s5453_s10 + $0x3c] sm:$0xf] %vm278_vm2, %v3674_v57  ;;  %v5998_v6 = vmul.f32 0.5, %v2915_v9 }
 0x198   : > { %v2916_v56 = vadd.f32 %v5829_v54, %v2877_v63  ;;  %v3107_v62 = vmul.f32 0.7978846, %v3075_v25  ;;  %v2680_v45 = vmul.f32 %v5786_v0, %v2362_v2  ;;  %v7175_v38 = vrot.slane %v7174_v22, 1  ;;  %v3867_v36 = vpop.eup %3866  ;;  %v7183_v63 = vld [vmem:[#allocation154_spill] sm:$0xff]  ;;  %v6018_v25 = vld [vmem:[%s6553_s1 + $0x6] ss:$0 sm:$0xff] }
 0x199   : > { %v7177_v31 = vrot.slane %v7176_v12, 1  ;;  %v2189_v14 = vadd.f32 %v2107_v11, %v1912_v32  ;;  %v2518_v16 = vrot.slane %v2403_v19, 1  ;;  %v7179_v47 = vrot.slane %v7178_v5, 2  ;;  %v7184_v11 = vld [vmem:[#allocation144_spill] sm:$0xff]  ;;  %v3806_v19 = vld [vmem:[#allocation2 + $0x90] sm:$0xff]  }
 0x19a   : > { %v2980_v18 = vmul.f32 0.044715, %v2916_v56  ;;  %v7181_v10 = vrot.slane %v7180_v8, 2  ;;  %v3170_v34 = vadd.f32 1.0, %v3867_v36  ;;  %3868 = vtanh.f32 %v3107_v62  ;;  %v2624_v12 = vld [vmem:[#allocation2 + $0x90] sm:$0xe] }
 0x19b   : > { %v1144_v39 = vsel %vm1091_vm9, %v7177_v31, %v7175_v38  ;;  %v2795_v53 = vrot.slane %v2680_v45, 2  ;;  %v2324_v42 = vadd.f32 %v2292_v29, %v2189_v14  ;;  %v2519_v35 = vsel %vm1091_vm9, %v2516_v4, %v2518_v16  ;;  %v7185_v4 = vld [vmem:[#allocation140_spill] sm:$0xff]  ;;  %v7187_v38 = vld [vmem:[#allocation143_spill] sm:$0xff]  ;;  %v7188_v36 = vld [vmem:[#allocation142_spill] sm:$0xff] }
 0x19c   : > { %v1422_v9 = vsel %vm1369_vm10, %v7181_v10, %v7179_v47  ;;  %v1224_v43 = vadd.f32 %v1144_v39, %v7182_v7  ;;  %v3012_v49 = vmul.f32 %v2980_v18, %v2916_v56  ;;  %v1832_v59 = vrot.slane %v7183_v63, 1 }
 0x19d   : > { %v3202_v2 = vmul.f32 %v3170_v34, %v2946_v28  ;;  %v2796_v57 = vsel %vm1369_vm10, %v2793_v55, %v2795_v53  ;;  %v6022_v32 = vmul.f32 %v6018_v25, %v7184_v11  ;;  %v2601_v62 = vadd.f32 %v2519_v35, %v2324_v42 }
 0x19e   : > { %v1502_v41 = vadd.f32 %v1422_v9, %v1224_v43  ;;  %v3044_v29 = vmul.f32 %v3012_v49, %v2916_v56  ;;  %v7186_v45 = vrot.slane %v7185_v4, 1  ;;  %v2108_v55 = vrot.slane %v7187_v38, 2 }
 0x19f   : > { %v3675_v31 = vpack.c.bf16 %v3202_v2, %v3202_v2  ;;  %v3410_v39 = vsel %vm3378_vm11, %v3202_v2, 0.0  ;;  %v2109_v14 = vrot.slane %v6022_v32, 2  ;;  %v2878_v8 = vadd.f32 %v2796_v57, %v2601_v62 }
 0x1a0   : > { %v1833_v28 = vsel %vm1091_vm9, %v7186_v45, %v1832_v59  ;;  %v1636_v18 = vadd.f32 %v7188_v36, %v1502_v41  ;;  %v3411_v16 = vadd.f32 %v3410_v39, %v3409_v50  ;;  %v3076_v47 = vadd.f32 %v3044_v29, %v2916_v56 }
 0x1a1   : > { %v3777_v10 = vunpack.c.l.bf16 %v3806_v19  ;;  %3362 = vst.msk [vmem:[%s5453_s10 + $0x40] sm:$0xf] %vm278_vm2, %v3675_v31  ;;  %v2110_v34 = vsel %vm1369_vm10, %v2108_v55, %v2109_v14  ;;  %v3778_v53 = vunpack.c.h.bf16 %v3806_v19  ;;  %v2640_v7 = vunpack.c.l.bf16 %v2624_v12  ;;  %v7189_v12 = vld [vmem:[#allocation133_spill] sm:$0xff] }
 0x1a2   : > { %v1913_v9 = vadd.f32 %v1833_v28, %v1636_v18  ;;  %v3108_v43 = vmul.f32 0.7978846, %v3076_v47  ;;  %v2917_v49 = vadd.f32 %v5829_v54, %v2878_v8  ;;  %v2948_v41 = vmul.f32 0.5, %v2916_v56  ;;  %v7192_v18 = vld [vmem:[#allocation134_spill] sm:$0xff] }
 0x1a3   : > { %v2293_v42 = vmul.f32 %v5750_v46, %v3777_v10  ;;  %v2404_v35 = vmul.f32 %v5723_v15, %v3777_v10  ;;  %v2405_v50 = vmul.f32 %v5723_v15, %v3778_v53  ;;  %v2681_v2 = vmul.f32 %v5786_v0, %v2640_v7  ;;  %v2347_v10 = vld [vmem:[#allocation2 + $0x98] sm:$0x1]  ;;  %v7195_v7 = vld [vmem:[#allocation137_spill] sm:$0xff] }
 0x1a4   : > { %v2190_v63 = vadd.f32 %v2110_v34, %v1913_v9  ;;  %v2682_v57 = vmul.f32 %v5786_v0, %v3778_v53  ;;  %3870 = vtanh.f32 %v3108_v43  ;;  %v2981_v32 = vmul.f32 0.044715, %v2917_v49  ;;  %v3869_v19 = vpop.eup %3868 }
 0x1a5   : > { %v2520_v29 = vrot.slane %v2404_v35, 1  ;;  %v2521_v4 = vrot.slane %v2405_v50, 1  ;;  %v2797_v45 = vrot.slane %v2681_v2, 2  ;;  %v3171_v38 = vadd.f32 1.0, %v3869_v19  ;;  %v7196_v50 = vld [vmem:[#allocation151_spill] sm:$0xff] }
 0x1a6   : > { %v2325_v62 = vadd.f32 %v2293_v42, %v2190_v63  ;;  %v2798_v28 = vrot.slane %v2682_v57, 2  ;;  %v3013_v55 = vmul.f32 %v2981_v32, %v2917_v49  ;;  %v7190_v31 = vrot.slane %v7189_v12, 1  ;;  %v6056_v42 = vld [vmem:[%s6553_s1 + $0x4] ss:$0 sm:$0xff] }
 0x1a7   : > { %v7191_v39 = vrot.slane %v7174_v22, 1  ;;  %v7193_v47 = vrot.slane %v7192_v18, 2  ;;  %v7194_v56 = vrot.slane %v7178_v5, 2  ;;  %v2522_v9 = vsel %vm1091_vm9, %v2520_v29, %v2521_v4  ;;  %v7198_v29 = vld [vmem:[#allocation155_spill] sm:$0xff] }
 0x1a8   : > { %v2799_v34 = vsel %vm1369_vm10, %v2797_v45, %v2798_v28  ;;  %v1605_v22 = vmul.f32 %v6056_v42, %v7184_v11  ;;  %v3203_v35 = vmul.f32 %v3171_v38, %v5998_v6  ;;  %v3045_v5 = vmul.f32 %v3013_v55, %v2917_v49 }
 0x1a9   : > { %v1146_v36 = vsel %vm1091_vm9, %v7191_v39, %v7190_v31  ;;  %v1424_v8 = vsel %vm1369_vm10, %v7194_v56, %v7193_v47  ;;  %v2602_v63 = vadd.f32 %v2522_v9, %v2325_v62  ;;  %v7197_v2 = vrot.slane %v7196_v50, 1 }
 0x1aa   : > { %v1225_v43 = vadd.f32 %v1146_v36, %v7195_v7  ;;  %v2111_v19 = vrot.slane %v7198_v29, 2  ;;  %v2294_v45 = vmul.f32 %v5750_v46, %v3778_v53  ;;  %v2363_v12 = vunpack.c.l.bf16 %v2347_v10  ;;  %v7199_v53 = vld [vmem:[#allocation145_spill] sm:$0xff] }
 0x1ab   : > { %v1835_v57 = vsel %vm1091_vm9, %v1832_v59, %v7197_v2  ;;  %v3676_v31 = vpack.c.bf16 %v3203_v35, %v3203_v35  ;;  %v3412_v39 = vsel %vm3378_vm11, %v3203_v35, 0.0  ;;  %v3077_v36 = vadd.f32 %v3045_v5, %v2917_v49  ;;  %v7203_v7 = vld [vmem:[#allocation141_spill] sm:$0xff]  ;;  %v7206_v35 = vld [vmem:[#allocation139_spill] sm:$0xff] }
 0x1ac   : > { %v1503_v32 = vadd.f32 %v1424_v8, %v1225_v43  ;;  %v2879_v11 = vadd.f32 %v2799_v34, %v2602_v63  ;;  %v3413_v18 = vadd.f32 %v3412_v39, %v3411_v16  ;;  %v2112_v38 = vsel %vm1369_vm10, %v2109_v14, %v2111_v19  ;;  %v7201_v8 = vld [vmem:[#allocation136_spill] sm:$0xff]  ;;  %v7204_v14 = vld [vmem:[#allocation146_spill] sm:$0xff] }
 0x1ad   : > { %v2406_v62 = vmul.f32 %v5723_v15, %v2363_v12  ;;  %3363 = vst.msk [vmem:[%s5453_s10 + $0x44] sm:$0xf] %vm278_vm2, %v3676_v31  ;;  %v3109_v59 = vmul.f32 0.7978846, %v3077_v36  ;;  %v2683_v47 = vmul.f32 %v5786_v0, %v2363_v12  ;;  %v7200_v56 = vrot.slane %v7199_v53, 1 }
 0x1ae   : > { %v1637_v6 = vadd.f32 %v1605_v22, %v1503_v32  ;;  %v2918_v55 = vadd.f32 %v5829_v54, %v2879_v11  ;;  %v7202_v10 = vrot.slane %v7201_v8, 1  ;;  %v7205_v22 = vrot.slane %v7204_v14, 2  ;;  %v3871_v50 = vpop.eup %3870  ;;  %v7208_v11 = vld [vmem:[#allocation149_spill] sm:$0xff] }
 0x1af   : > { %v2523_v16 = vrot.slane %v2406_v62, 1  ;;  %v7207_v5 = vrot.slane %v7206_v35, 2  ;;  %v2949_v2 = vmul.f32 0.5, %v2917_v49  ;;  %3872 = vtanh.f32 %v3109_v59  ;;  %v7209_v62 = vld [vmem:[#allocation152_spill] sm:$0xff]  ;;  %v7210_v59 = vld [vmem:[#allocation159_spill] sm:$0xff]  ;;  %v7211_v35 = vld [vmem:[#allocation158_spill] sm:$0xff] }
 0x1b0   : > { %v1149_v9 = vsel %vm1091_vm9, %v7202_v10, %v7200_v56  ;;  %v1914_v34 = vadd.f32 %v1835_v57, %v1637_v6  ;;  %v2982_v32 = vmul.f32 0.044715, %v2918_v55  ;;  %v2800_v29 = vrot.slane %v2683_v47, 2  ;;  %v6093_v47 = vld [vmem:[#allocation2 + $0x9c] ss:$24 sps:$4 sm:$0xff]  }
 0x1b1   : > { %v1226_v43 = vadd.f32 %v1149_v9, %v7203_v7  ;;  %v1427_v63 = vsel %vm1369_vm10, %v7207_v5, %v7205_v22  ;;  %v3172_v19 = vadd.f32 1.0, %v3871_v50  ;;  %v2524_v31 = vsel %vm1091_vm9, %v2521_v4, %v2523_v16 }
 0x1b2   : > { %v2191_v12 = vadd.f32 %v2112_v38, %v1914_v34  ;;  %v3014_v57 = vmul.f32 %v2982_v32, %v2918_v55  ;;  %v2801_v36 = vsel %vm1369_vm10, %v2798_v28, %v2800_v29  ;;  %v1606_v6 = vmul.f32 %v6056_v42, %v7208_v11 }
 0x1b3   : > { %v1504_v39 = vadd.f32 %v1427_v63, %v1226_v43  ;;  %v1719_v56 = vmul.f32 %v5653_v40, %v7209_v62  ;;  %v3204_v8 = vmul.f32 %v3172_v19, %v2948_v41  ;;  %v1996_v49 = vmul.f32 %v6018_v25, %v7209_v62  ;;  %v2625_v41 = vld [vmem:[#allocation2 + $0x9c] sm:$0xe] }
 0x1b4   : > { %v2326_v10 = vadd.f32 %v2294_v45, %v2191_v12  ;;  %v2113_v38 = vrot.slane %v7210_v59, 2  ;;  %v3046_v4 = vmul.f32 %v3014_v57, %v2918_v55  ;;  %v2257_v28 = vunpack.c.l.bf16 %v6093_v47 }
 0x1b5   : > { %v1638_v9 = vadd.f32 %v1606_v6, %v1504_v39  ;;  %v1837_v34 = vrot.slane %v1719_v56, 1  ;;  %v3677_v16 = vpack.c.bf16 %v3204_v8, %v3204_v8  ;;  %v3414_v7 = vsel %vm3378_vm11, %v3204_v8, 0.0 }
 0x1b6   : > { %v2603_v43 = vadd.f32 %v2524_v31, %v2326_v10  ;;  %v2114_v40 = vrot.slane %v1996_v49, 2  ;;  %v3415_v45 = vadd.f32 %v3414_v7, %v3413_v18  ;;  %v3078_v22 = vadd.f32 %v3046_v4, %v2918_v55 }
 0x1b7   : > { %v7212_v5 = vrot.slane %v7211_v35, 1  ;;  %v2295_v50 = vmul.f32 %v5750_v46, %v2257_v28  ;;  %3364 = vst.msk [vmem:[%s5453_s10 + $0x48] sm:$0xf] %vm278_vm2, %v3677_v16  ;;  %v2407_v12 = vmul.f32 %v5723_v15, %v2257_v28  ;;  %v6107_v31 = vmul.f32 %v5723_v15, %v5117_v23 }
 0x1b8   : > { %v2880_v32 = vadd.f32 %v2801_v36, %v2603_v43  ;;  %v2115_v19 = vsel %vm1369_vm10, %v2113_v38, %v2114_v40  ;;  %v3110_v39 = vmul.f32 0.7978846, %v3078_v22  ;;  %v2641_v18 = vunpack.c.l.bf16 %v2625_v41  ;;  %v7213_v36 = vld [vmem:[#allocation147_spill] sm:$0xff]  ;;  %v7216_v22 = vld [vmem:[#allocation153_spill] sm:$0xff] }
 0x1b9   : > { %v1838_v63 = vsel %vm1091_vm9, %v7212_v5, %v1837_v34  ;;  %v6111_v57 = vmul.f32 %v5786_v0, %v5117_v23  ;;  %v2525_v56 = vrot.slane %v2407_v12, 1  ;;  %v7214_v8 = vrot.slane %v7213_v36, 1  ;;  %v3873_v59 = vpop.eup %3872  ;;  %v2348_v36 = vld [vmem:[#allocation2 + $0xa4] sm:$0x1] }
 0x1ba   : > { %v1915_v29 = vadd.f32 %v1838_v63, %v1638_v9  ;;  %v2919_v11 = vadd.f32 %v5829_v54, %v2880_v32  ;;  %v7215_v10 = vrot.slane %v7199_v53, 1  ;;  %3874 = vtanh.f32 %v3110_v39  ;;  %v7217_v53 = vld [vmem:[#allocation148_spill] sm:$0xff] }
 0x1bb   : > { %v2526_v15 = vrot.slane %v6107_v31, 1  ;;  %v2684_v38 = vmul.f32 %v5786_v0, %v2641_v18  ;;  %v2803_v4 = vrot.slane %v6111_v57, 2  ;;  %v3173_v9 = vadd.f32 1.0, %v3873_v59  ;;  %v7220_v31 = vld [vmem:[#allocation165_spill] sm:$0xff] }
 0x1bc   : > { %v2192_v6 = vadd.f32 %v2115_v19, %v1915_v29  ;;  %v1151_v49 = vsel %vm1091_vm9, %v7215_v10, %v7214_v8  ;;  %v2950_v28 = vmul.f32 0.5, %v2918_v55  ;;  %v2983_v16 = vmul.f32 0.044715, %v2919_v11 }
 0x1bd   : > { %v2527_v43 = vsel %vm1091_vm9, %v2525_v56, %v2526_v15  ;;  %v2802_v41 = vrot.slane %v2684_v38, 2  ;;  %v1227_v35 = vadd.f32 %v1151_v49, %v7216_v22  ;;  %v7218_v5 = vrot.slane %v7217_v53, 2 }
 0x1be   : > { %v2327_v7 = vadd.f32 %v2295_v50, %v2192_v6  ;;  %v7219_v63 = vrot.slane %v7204_v14, 2  ;;  %v3205_v29 = vmul.f32 %v3173_v9, %v2949_v2  ;;  %v3015_v19 = vmul.f32 %v2983_v16, %v2919_v11  ;;  %v7222_v6 = vld [vmem:[#allocation169_spill] sm:$0xff] }
 0x1bf   : > { %v1607_v55 = vmul.f32 %v6056_v42, %v7209_v62  ;;  %v2804_v50 = vsel %vm1369_vm10, %v2802_v41, %v2803_v4  ;;  %v7221_v18 = vrot.slane %v7220_v31, 1  ;;  %v2116_v56 = vrot.slane %v7222_v6, 2  ;;  %v7225_v41 = vld [vmem:[#allocation157_spill] sm:$0xff] }
 0x1c0   : > { %v1429_v32 = vsel %vm1369_vm10, %v7219_v63, %v7218_v5  ;;  %v2604_v12 = vadd.f32 %v2527_v43, %v2327_v7  ;;  %v3678_v14 = vpack.c.bf16 %v3205_v29, %v3205_v29  ;;  %v3416_v8 = vsel %vm3378_vm11, %v3205_v29, 0.0  ;;  %v7223_v7 = vld [vmem:[#allocation160_spill] sm:$0xff]  ;;  %v7228_v63 = vld [vmem:[#allocation161_spill] sm:$0xff] }
 0x1c1   : > { %v1505_v39 = vadd.f32 %v1429_v32, %v1227_v35  ;;  %v1840_v57 = vsel %vm1091_vm9, %v1837_v34, %v7221_v18  ;;  %v3047_v2 = vmul.f32 %v3015_v19, %v2919_v11  ;;  %v3417_v49 = vadd.f32 %v3416_v8, %v3415_v45  ;;  %v7227_v45 = vld [vmem:[#allocation164_spill] sm:$0xff] }
 0x1c2   : > { %v2881_v10 = vadd.f32 %v2804_v50, %v2604_v12  ;;  %v2117_v38 = vsel %vm1369_vm10, %v2114_v40, %v2116_v56  ;;  %v2296_v62 = vmul.f32 %v5750_v46, %v5117_v23  ;;  %3365 = vst.msk [vmem:[%s5453_s10 + $0x4c] sm:$0xf] %vm278_vm2, %v3678_v14  ;;  %v2364_v16 = vunpack.c.l.bf16 %v2348_v36  ;;  %v7230_v32 = vld [vmem:[#allocation156_spill] sm:$0xff]  ;;  %v7233_v36 = vld [vmem:[#allocation171_spill] sm:$0xff] }
 0x1c3   : > { %v1639_v59 = vadd.f32 %v1607_v55, %v1505_v39  ;;  %v3079_v9 = vadd.f32 %v3047_v2, %v2919_v11  ;;  %v7224_v43 = vrot.slane %v7223_v7, 1  ;;  %v7226_v22 = vrot.slane %v7225_v41, 1  ;;  %v7232_v46 = vld [vmem:[#allocation176_spill] sm:$0xff]  ;;  %v6160_v39 = vld [vmem:[%s6553_s1 + $0x9] ss:$0 sm:$0xff] }
 0x1c4   : > { %v2920_v34 = vadd.f32 %v5829_v54, %v2881_v10  ;;  %v7229_v40 = vrot.slane %v7228_v63, 2  ;;  %v7231_v29 = vrot.slane %v7230_v32, 2  ;;  %v1842_v19 = vrot.slane %v7232_v46, 1  ;;  %v3875_v18 = vpop.eup %3874 }
 0x1c5   : > { %v1154_v35 = vsel %vm1091_vm9, %v7226_v22, %v7224_v43  ;;  %v1916_v53 = vadd.f32 %v1840_v57, %v1639_v59  ;;  %v6155_v12 = vmul.f32 0.5, %v2919_v11  ;;  %v3111_v55 = vmul.f32 0.7978846, %v3079_v9  ;;  %v7235_v43 = vld [vmem:[#allocation173_spill] sm:$0xff]  ;;  %v7236_v22 = vld [vmem:[#allocation172_spill] sm:$0xff] }
 0x1c6   : > { %v1228_v5 = vadd.f32 %v1154_v35, %v7227_v45  ;;  %v1432_v23 = vsel %vm1369_vm10, %v7231_v29, %v7229_v40  ;;  %v2984_v50 = vmul.f32 0.044715, %v2920_v34  ;;  %v2409_v31 = vmul.f32 %v6160_v39, %v2364_v16  ;;  %v3807_v35 = vld [vmem:[#allocation2 + $0xa8] sm:$0xff]  }
 0x1c7   : > { %v2193_v57 = vadd.f32 %v2117_v38, %v1916_v53  ;;  %v2686_v6 = vmul.f32 %v5786_v0, %v2364_v16  ;;  %v7234_v14 = vrot.slane %v7233_v36, 1  ;;  %v3174_v8 = vadd.f32 1.0, %v3875_v18 }
 0x1c8   : > { %v1506_v56 = vadd.f32 %v1432_v23, %v1228_v5  ;;  %3876 = vtanh.f32 %v3111_v55  ;;  %v3016_v2 = vmul.f32 %v2984_v50, %v2920_v34  ;;  %v2528_v10 = vrot.slane %v2409_v31, 1  ;;  %v7237_v5 = vld [vmem:[#allocation174_spill] sm:$0xff] }
 0x1c9   : > { %v1843_v11 = vsel %vm1091_vm9, %v7234_v14, %v1842_v19  ;;  %v2328_v59 = vadd.f32 %v2296_v62, %v2193_v57  ;;  %v2805_v9 = vrot.slane %v2686_v6, 2  ;;  %v1999_v38 = vmul.f32 %v6018_v25, %v7236_v22  ;;  %v2626_v57 = vld [vmem:[#allocation2 + $0xa8] sm:$0xe] }
 0x1ca   : > { %v1640_v41 = vadd.f32 %v7235_v43, %v1506_v56  ;;  %v3206_v16 = vmul.f32 %v3174_v8, %v2950_v28  ;;  %v3048_v53 = vmul.f32 %v3016_v2, %v2920_v34  ;;  %v2529_v45 = vsel %vm1091_vm9, %v2526_v15, %v2528_v10 }
 0x1cb   : > { %v2118_v40 = vrot.slane %v7237_v5, 2  ;;  %v2605_v32 = vadd.f32 %v2529_v45, %v2328_v59  ;;  %v2806_v29 = vsel %vm1369_vm10, %v2803_v4, %v2805_v9  ;;  %v2119_v55 = vrot.slane %v1999_v38, 2  ;;  %v6182_v4 = vld [vmem:[%s6553_s1 + $0x8] ss:$0 sm:$0xff] }
 0x1cc   : > { %v1917_v23 = vadd.f32 %v1843_v11, %v1640_v41  ;;  %v3679_v62 = vpack.c.bf16 %v3206_v16, %v3206_v16  ;;  %v3418_v50 = vsel %vm3378_vm11, %v3206_v16, 0.0  ;;  %v3080_v31 = vadd.f32 %v3048_v53, %v2920_v34  ;;  %v7238_v41 = vld [vmem:[#allocation162_spill] sm:$0xff] }
 0x1cd   : > { %v3781_v18 = vunpack.c.l.bf16 %v3807_v35  ;;  %v3419_v6 = vadd.f32 %v3418_v50, %v3417_v49  ;;  %v2882_v56 = vadd.f32 %v2806_v29, %v2605_v32  ;;  %v2120_v28 = vsel %vm1369_vm10, %v2118_v40, %v2119_v55  ;;  %v7242_v50 = vld [vmem:[#allocation163_spill] sm:$0xff] }
 0x1ce   : > { %v3782_v36 = vunpack.c.h.bf16 %v3807_v35  ;;  %3366 = vst.msk [vmem:[%s5453_s10 + $0x50] sm:$0xf] %vm278_vm2, %v3679_v62  ;;  %v3112_v15 = vmul.f32 0.7978846, %v3080_v31  ;;  %v2194_v14 = vadd.f32 %v2120_v28, %v1917_v23  ;;  %v2642_v10 = vunpack.c.l.bf16 %v2626_v57  ;;  %v7241_v23 = vld [vmem:[#allocation166_spill] sm:$0xff] }
 0x1cf   : > { %v2297_v11 = vmul.f32 %v6182_v4, %v3781_v18  ;;  %v2410_v8 = vmul.f32 %v6160_v39, %v3781_v18  ;;  %v6187_v2 = vadd.f32 %v5829_v54, %v2882_v56  ;;  %v7239_v38 = vrot.slane %v7238_v41, 1 }
 0x1d0   : > { %v2411_v49 = vmul.f32 %v6160_v39, %v3782_v36  ;;  %v2688_v59 = vmul.f32 %v5786_v0, %v3782_v36  ;;  %3878 = vtanh.f32 %v3112_v15  ;;  %v7240_v35 = vrot.slane %v7223_v7, 1 }
 0x1d1   : > { %v2329_v9 = vadd.f32 %v2297_v11, %v2194_v14  ;;  %v2530_v43 = vrot.slane %v2410_v8, 1  ;;  %v2952_v53 = vmul.f32 0.5, %v2920_v34  ;;  %v2985_v45 = vmul.f32 0.044715, %v6187_v2 }
 0x1d2   : > { %v1156_v16 = vsel %vm1091_vm9, %v7240_v35, %v7239_v38  ;;  %v2531_v5 = vrot.slane %v2411_v49, 1  ;;  %v2687_v40 = vmul.f32 %v5786_v0, %v2642_v10  ;;  %v3877_v32 = vpop.eup %3876  ;;  %v2808_v29 = vrot.slane %v2688_v59, 2  ;;  %v2349_v0 = vld [vmem:[#allocation2 + $0xb0] sm:$0x1] }
 0x1d3   : > { %v1229_v62 = vadd.f32 %v1156_v16, %v7241_v23  ;;  %v7243_v31 = vrot.slane %v7242_v50, 2  ;;  %v7244_v18 = vrot.slane %v7228_v63, 2  ;;  %v1609_v7 = vmul.f32 %v6056_v42, %v7236_v22 }
 0x1d4   : > { %v3175_v56 = vadd.f32 1.0, %v3877_v32  ;;  %v3017_v34 = vmul.f32 %v2985_v45, %v6187_v2  ;;  %v2532_v28 = vsel %vm1091_vm9, %v2530_v43, %v2531_v5  ;;  %v2807_v15 = vrot.slane %v2687_v40, 2 }
 0x1d5   : > { %v1434_v57 = vsel %vm1369_vm10, %v7244_v18, %v7243_v31  ;;  %v2606_v14 = vadd.f32 %v2532_v28, %v2329_v9  ;;  %v7245_v8 = vrot.slane %v5135_v3, 1  ;;  %v2121_v49 = vrot.slane %v5148_v24, 2  ;;  %v7249_v31 = vld [vmem:[#allocation170_spill] sm:$0xff]  ;;  %v6247_v28 = vld [vmem:[%s6553_s1 + $0x5] ss:$0 sm:$0xff] }
 0x1d6   : > { %v1507_v11 = vadd.f32 %v1434_v57, %v1229_v62  ;;  %v3207_v10 = vmul.f32 %v3175_v56, %v6155_v12  ;;  %v3049_v22 = vmul.f32 %v3017_v34, %v6187_v2  ;;  %v2809_v59 = vsel %vm1369_vm10, %v2807_v15, %v2808_v29  ;;  %v7247_v12 = vld [vmem:[#allocation167_spill] sm:$0xff]  ;;  %v6235_v62 = vld [vmem:[%s6553_s1 + $0xa] ss:$0 sm:$0xff]  ;;  %v7251_v57 = vld [vmem:[#allocation168_spill] sm:$0xff] }
 0x1d7   : > { %v1845_v63 = vsel %vm1091_vm9, %v1842_v19, %v7245_v8  ;;  %v2298_v43 = vmul.f32 %v6182_v4, %v3782_v36  ;;  %v2883_v41 = vadd.f32 %v2809_v59, %v2606_v14  ;;  %v2122_v38 = vsel %vm1369_vm10, %v2119_v55, %v2121_v49 }
 0x1d8   : > { %v1641_v9 = vadd.f32 %v1609_v7, %v1507_v11  ;;  %v2365_v3 = vunpack.c.l.bf16 %v2349_v0  ;;  %v3680_v35 = vpack.c.bf16 %v3207_v10, %v3207_v10  ;;  %v3420_v46 = vsel %vm3378_vm11, %v3207_v10, 0.0 }
 0x1d9   : > { %v3081_v19 = vadd.f32 %v3049_v22, %v6187_v2  ;;  %v7246_v24 = vrot.slane %v5082_v17, 1  ;;  %v7248_v16 = vrot.slane %v7247_v12, 1  ;;  %v3421_v40 = vadd.f32 %v3420_v46, %v3419_v6 }
 0x1da   : > { %v6227_v32 = vadd.f32 %v5829_v54, %v2883_v41  ;;  %v1918_v36 = vadd.f32 %v1845_v63, %v1641_v9  ;;  %v2412_v23 = vmul.f32 %v6160_v39, %v2365_v3  ;;  %3367 = vst.msk [vmem:[%s5453_s10 + $0x54] sm:$0xf] %vm278_vm2, %v3680_v35  ;;  %v2689_v50 = vmul.f32 %v6235_v62, %v2365_v3  ;;  %v3879_v34 = vpop.eup %3878 }
 0x1db   : > { %v1159_v45 = vsel %vm1091_vm9, %v7248_v16, %v7246_v24  ;;  %v3113_v55 = vmul.f32 0.7978846, %v3081_v19  ;;  %v7250_v6 = vrot.slane %v5085_v26, 2  ;;  %v7252_v7 = vrot.slane %v7251_v57, 2 }
 0x1dc   : > { %v1230_v18 = vadd.f32 %v1159_v45, %v7249_v31  ;;  %v7253_v15 = vunpack.c.l.bf16 %v5262_v44  ;;  %v2986_v14 = vmul.f32 0.044715, %v6227_v32  ;;  %v2195_v11 = vadd.f32 %v2122_v38, %v1918_v36 }
 0x1dd   : > { %v1437_v56 = vsel %vm1369_vm10, %v7252_v7, %v7250_v6  ;;  %v2533_v8 = vrot.slane %v2412_v23, 1  ;;  %v3176_v63 = vadd.f32 1.0, %v3879_v34  ;;  %3880 = vtanh.f32 %v3113_v55 }
 0x1de   : > { %v6252_v0 = vmul.f32 %v6247_v28, %v7253_v15  ;;  %v2810_v49 = vrot.slane %v2689_v50, 2  ;;  %v1508_v10 = vadd.f32 %v1437_v56, %v1230_v18  ;;  %v3018_v22 = vmul.f32 %v2986_v14, %v6227_v32  ;;  %v7254_v50 = vld [vmem:[#allocation183_spill] sm:$0xff] }
 0x1df   : > { %v2330_v59 = vadd.f32 %v2298_v43, %v2195_v11  ;;  %v2534_v41 = vsel %vm1091_vm9, %v2531_v5, %v2533_v8  ;;  %v1610_v9 = vmul.f32 %v6056_v42, %v5150_v20  ;;  %v3208_v3 = vmul.f32 %v3176_v63, %v2952_v53  ;;  %v2627_v5 = vld [vmem:[#allocation2 + $0xb4] sm:$0xe]  ;;  %v6292_v8 = vld [vmem:[#allocation2 + $0xc8] sm:$0x1] }
 0x1e0   : > { %v2811_v35 = vsel %vm1369_vm10, %v2808_v29, %v2810_v49  ;;  %v1725_v38 = vmul.f32 %v6247_v28, %v5152_v61  ;;  %v2002_v46 = vmul.f32 %v6018_v25, %v5152_v61  ;;  %v3050_v19 = vmul.f32 %v3018_v22, %v6227_v32 }
 0x1e1   : > { %v2607_v24 = vadd.f32 %v2534_v41, %v2330_v59  ;;  %v1642_v12 = vadd.f32 %v1610_v9, %v1508_v10  ;;  %v2123_v43 = vrot.slane %v5199_v51, 2  ;;  %v3681_v16 = vpack.c.bf16 %v3208_v3, %v3208_v3  ;;  %v7256_v9 = vld [vmem:[#allocation177_spill] sm:$0xff] }
 0x1e2   : > { %v3422_v20 = vsel %vm3378_vm11, %v3208_v3, 0.0  ;;  %v1847_v53 = vrot.slane %v1725_v38, 1  ;;  %v2124_v45 = vrot.slane %v2002_v46, 2  ;;  %v3082_v36 = vadd.f32 %v3050_v19, %v6227_v32 }
 0x1e3   : > { %v6267_v29 = vadd.f32 %v3422_v20, %v3421_v40  ;;  %v2884_v23 = vadd.f32 %v2811_v35, %v2607_v24  ;;  %v2261_v55 = vunpack.c.h.bf16 %v6093_v47  ;;  %3368 = vst.msk [vmem:[%s5453_s10 + $0x58] sm:$0xf] %vm278_vm2, %v3681_v16  ;;  %v7255_v31 = vrot.slane %v7254_v50, 1  ;;  %v7260_v20 = vld [vmem:[#allocation178_spill] sm:$0xff] }
 0x1e4   : > { %v2125_v51 = vsel %vm1369_vm10, %v2123_v43, %v2124_v45  ;;  %v6279_v6 = vmul.f32 %v6160_v39, %v5260_v52  ;;  %v2643_v57 = vunpack.c.l.bf16 %v2627_v5  ;;  %v3114_v40 = vmul.f32 0.7978846, %v3082_v36  ;;  %v2350_v43 = vld [vmem:[#allocation2 + $0xbc] sm:$0x1] }
 0x1e5   : > { %v1848_v18 = vsel %vm1091_vm9, %v7255_v31, %v1847_v53  ;;  %v6282_v7 = vadd.f32 %v5829_v54, %v2884_v23  ;;  %v2299_v47 = vmul.f32 %v6182_v4, %v2261_v55  ;;  %v2413_v34 = vmul.f32 %v6160_v39, %v2261_v55 }
 0x1e6   : > { %v1919_v56 = vadd.f32 %v1848_v18, %v1642_v12  ;;  %v2536_v15 = vrot.slane %v6279_v6, 1  ;;  %v2690_v14 = vmul.f32 %v6235_v62, %v2643_v57  ;;  %v6290_v11 = vmul.f32 %v6235_v62, %v5260_v52 }
 0x1e7   : > { %v2953_v63 = vmul.f32 0.5, %v6187_v2  ;;  %3882 = vtanh.f32 %v3114_v40  ;;  %v2987_v54 = vmul.f32 0.044715, %v6282_v7  ;;  %v3881_v10 = vpop.eup %3880  ;;  %v2535_v22 = vrot.slane %v2413_v34, 1  ;;  %v7259_v2 = vld [vmem:[#allocation175_spill] sm:$0xff]  ;;  %v7263_v40 = vld [vmem:[#allocation190_spill] sm:$0xff] }
 0x1e8   : > { %v2196_v49 = vadd.f32 %v2125_v51, %v1919_v56  ;;  %v2812_v59 = vrot.slane %v2690_v14, 2  ;;  %v2813_v41 = vrot.slane %v6290_v11, 2  ;;  %v7257_v3 = vrot.slane %v7256_v9, 1  ;;  %v7264_v14 = vld [vmem:[#allocation186_spill] sm:$0xff]  ;;  %v6336_v9 = vld [vmem:[%s6554_s2] ss:$0 sm:$0xff] }
 0x1e9   : > { %v7258_v35 = vrot.slane %v5082_v17, 1  ;;  %v3177_v46 = vadd.f32 1.0, %v3881_v10  ;;  %v3019_v19 = vmul.f32 %v2987_v54, %v6282_v7  ;;  %v1679_v5 = vunpack.c.l.bf16 %v6292_v8 }
 0x1ea   : > { %v2331_v24 = vadd.f32 %v2299_v47, %v2196_v49  ;;  %v2537_v16 = vsel %vm1091_vm9, %v2535_v22, %v2536_v15  ;;  %v7261_v36 = vrot.slane %v7260_v20, 2  ;;  %v7262_v23 = vrot.slane %v5085_v26, 2  ;;  %v7273_v20 = vld [vmem:[#allocation179_spill] sm:$0xff] }
 0x1eb   : > { %v1161_v38 = vsel %vm1091_vm9, %v7258_v35, %v7257_v3  ;;  %v1611_v17 = vmul.f32 %v6056_v42, %v5152_v61  ;;  %v6313_v50 = vmul.f32 %v3177_v46, %v2953_v63  ;;  %v3051_v31 = vmul.f32 %v3019_v19, %v6282_v7  ;;  %v7266_v35 = vld [vmem:[#allocation181_spill] sm:$0xff] }
 0x1ec   : > { %v1231_v12 = vadd.f32 %v1161_v38, %v7259_v2  ;;  %v1439_v55 = vsel %vm1369_vm10, %v7262_v23, %v7261_v36  ;;  %v2608_v18 = vadd.f32 %v2537_v16, %v2331_v24  ;;  %v2954_v6 = vmul.f32 0.5, %v6227_v32  ;;  %v7268_v38 = vld [vmem:[#allocation180_spill] sm:$0xff]  ;;  %v7270_v2 = vld [vmem:[#allocation187_spill] sm:$0xff] }
 0x1ed   : > { %v2814_v57 = vsel %vm1369_vm10, %v2812_v59, %v2813_v41  ;;  %v2126_v26 = vrot.slane %v7263_v40, 2  ;;  %v2366_v56 = vunpack.c.l.bf16 %v2350_v43  ;;  %v3682_v47 = vpack.c.bf16 %v6313_v50, %v6313_v50  ;;  %v7271_v43 = vld [vmem:[#allocation182_spill] sm:$0xff] }
 0x1ee   : > { %v1509_v51 = vadd.f32 %v1439_v55, %v1231_v12  ;;  %v3083_v61 = vadd.f32 %v3051_v31, %v6282_v7  ;;  %v2885_v34 = vadd.f32 %v2814_v57, %v2608_v18  ;;  %v7265_v63 = vrot.slane %v7264_v14, 1 }
 0x1ef   : > { %v2127_v32 = vsel %vm1369_vm10, %v2124_v45, %v2126_v26  ;;  %v2300_v10 = vmul.f32 %v6182_v4, %v5260_v52  ;;  %v2415_v22 = vmul.f32 %v6160_v39, %v2366_v56  ;;  %3369 = vst.msk [vmem:[%s5453_s10 + $0x5c] sm:$0xf] %vm278_vm2, %v3682_v47  ;;  %v7267_v45 = vrot.slane %v7266_v35, 1 }
 0x1f0   : > { %v1850_v54 = vsel %vm1091_vm9, %v1847_v53, %v7265_v63  ;;  %v1643_v49 = vadd.f32 %v1611_v17, %v1509_v51  ;;  %v3115_v59 = vmul.f32 0.7978846, %v3083_v61  ;;  %v6339_v3 = vadd.f32 %v6336_v9, %v2885_v34 }
 0x1f1   : > { %v2692_v53 = vmul.f32 %v6235_v62, %v2366_v56  ;;  %v7269_v46 = vrot.slane %v7268_v38, 1  ;;  %v2538_v24 = vrot.slane %v2415_v22, 1  ;;  %v7272_v16 = vrot.slane %v7271_v43, 2  ;;  %v3883_v55 = vpop.eup %3882  ;;  %v3808_v56 = vld [vmem:[#allocation2 + $0xc0] sm:$0xff]  }
 0x1f2   : > { %v1920_v19 = vadd.f32 %v1850_v54, %v1643_v49  ;;  %v7274_v36 = vrot.slane %v7273_v20, 2  ;;  %v1170_v17 = vrot.slane %v5289_v1, 1  ;;  %v1448_v31 = vrot.slane %v5292_v33, 2 }
 0x1f3   : > { %v1164_v52 = vsel %vm1091_vm9, %v7269_v46, %v7267_v45  ;;  %3884 = vtanh.f32 %v3115_v59  ;;  %v2988_v18 = vmul.f32 0.044715, %v6339_v3  ;;  %v3178_v51 = vadd.f32 1.0, %v3883_v55  ;;  %v2628_v46 = vld [vmem:[#allocation2 + $0xc0] sm:$0xe] }
 0x1f4   : > { %v1232_v12 = vadd.f32 %v1164_v52, %v7270_v2  ;;  %v1442_v23 = vsel %vm1369_vm10, %v7274_v36, %v7272_v16  ;;  %v2197_v57 = vadd.f32 %v2127_v32, %v1920_v19  ;;  %v2815_v40 = vrot.slane %v2692_v53, 2  ;;  %v7276_v55 = vld [vmem:[#allocation184_spill] sm:$0xff] }
 0x1f5   : > { %v3020_v47 = vmul.f32 %v2988_v18, %v6339_v3  ;;  %v2539_v61 = vsel %vm1091_vm9, %v2536_v15, %v2538_v24  ;;  %v1852_v34 = vrot.slane %v5278_v21, 1  ;;  %v2005_v14 = vmul.f32 %v6018_v25, %v5247_v48 }
 0x1f6   : > { %v1510_v26 = vadd.f32 %v1442_v23, %v1232_v12  ;;  %v6361_v63 = vmul.f32 %v3178_v51, %v2954_v6  ;;  %v2332_v54 = vadd.f32 %v2300_v10, %v2197_v57  ;;  %v2128_v32 = vrot.slane %v5269_v60, 2 }
 0x1f7   : > { %v3052_v22 = vmul.f32 %v3020_v47, %v6339_v3  ;;  %v7275_v59 = vrot.slane %v5245_v27, 1  ;;  %v2129_v15 = vrot.slane %v2005_v14, 2  ;;  %v3785_v45 = vunpack.c.l.bf16 %v3808_v56 }
 0x1f8   : > { %v1644_v49 = vadd.f32 %v5266_v30, %v1510_v26  ;;  %v3683_v21 = vpack.c.bf16 %v6361_v63, %v6361_v63  ;;  %v2955_v6 = vmul.f32 0.5, %v6282_v7  ;;  %v2609_v38 = vadd.f32 %v2539_v61, %v2332_v54 }
 0x1f9   : > { %v1853_v53 = vsel %vm1091_vm9, %v7275_v59, %v1852_v34  ;;  %v3084_v30 = vadd.f32 %v3052_v22, %v6339_v3  ;;  %v2816_v60 = vsel %vm1369_vm10, %v2813_v41, %v2815_v40  ;;  %v2130_v27 = vsel %vm1369_vm10, %v2128_v32, %v2129_v15 }
 0x1fa   : > { %v1921_v10 = vadd.f32 %v1853_v53, %v1644_v49  ;;  %v3786_v52 = vunpack.c.h.bf16 %v3808_v56  ;;  %3370 = vst.msk [vmem:[%s5453_s10 + $0x60] sm:$0xf] %vm278_vm2, %v3683_v21  ;;  %v2886_v19 = vadd.f32 %v2816_v60, %v2609_v38  ;;  %v2301_v2 = vmul.f32 %v6182_v4, %v3785_v45  ;;  %v7279_v49 = vld [vmem:[#allocation188_spill] sm:$0xff]  ;;  %v2351_v60 = vld [vmem:[#allocation2 + $0xc8] sm:$0x1] }
 0x1fb   : > { %v2416_v7 = vmul.f32 %v6160_v39, %v3785_v45  ;;  %v3116_v12 = vmul.f32 0.7978846, %v3084_v30  ;;  %v2644_v20 = vunpack.c.l.bf16 %v2628_v46  ;;  %v7277_v18 = vrot.slane %v7276_v55, 1 }
 0x1fc   : > { %v2198_v24 = vadd.f32 %v2130_v27, %v1921_v10  ;;  %v6382_v16 = vmul.f32 %v6160_v39, %v3786_v52  ;;  %v2694_v11 = vmul.f32 %v6235_v62, %v3786_v52  ;;  %v6386_v41 = vadd.f32 %v6336_v9, %v2886_v19 }
 0x1fd   : > { %v2540_v23 = vrot.slane %v2416_v7, 1  ;;  %v7278_v51 = vrot.slane %v7266_v35, 1  ;;  %v3885_v40 = vpop.eup %3884  ;;  %3886 = vtanh.f32 %v3116_v12  ;;  %v2693_v56 = vmul.f32 %v6235_v62, %v2644_v20  ;;  %v7280_v35 = vld [vmem:[#allocation185_spill] sm:$0xff] }
 0x1fe   : > { %v2333_v36 = vadd.f32 %v2301_v2, %v2198_v24  ;;  %v2541_v26 = vrot.slane %v6382_v16, 1  ;;  %v2818_v47 = vrot.slane %v2694_v11, 2  ;;  %v1854_v61 = vrot.slane %v5295_v13, 1 }
 0x1ff   : > { %v1166_v57 = vsel %vm1091_vm9, %v7278_v51, %v7277_v18  ;;  %v3179_v14 = vadd.f32 1.0, %v3885_v40  ;;  %v2989_v54 = vmul.f32 0.044715, %v6386_v41  ;;  %v2817_v59 = vrot.slane %v2693_v56, 2 }
 0x200   : > { %v1233_v32 = vadd.f32 %v1166_v57, %v7279_v49  ;;  %v2542_v22 = vsel %vm1091_vm9, %v2540_v23, %v2541_v26  ;;  %v7281_v53 = vrot.slane %v7280_v35, 2  ;;  %v7282_v45 = vrot.slane %v7271_v43, 2  ;;  %v7284_v23 = vld [vmem:[#allocation189_spill] sm:$0xff]  ;;  %v7288_v57 = vld [vmem:[#allocation191_spill] sm:$0xff] }
 0x201   : > { %v1613_v38 = vmul.f32 %v6056_v42, %v5247_v48  ;;  %v6406_v10 = vmul.f32 %v3179_v14, %v2955_v6  ;;  %v3021_v13 = vmul.f32 %v2989_v54, %v6386_v41  ;;  %v2610_v46 = vadd.f32 %v2542_v22, %v2333_v36  ;;  %v7290_v14 = vld [vmem:[#allocation193_spill] sm:$0xff] }
 0x202   : > { %v1444_v21 = vsel %vm1369_vm10, %v7282_v45, %v7281_v53  ;;  %v1856_v27 = vrot.slane %v6252_v0, 1  ;;  %v6413_v19 = vmul.f32 %v6247_v28, %v1679_v5  ;;  %v2819_v43 = vsel %vm1369_vm10, %v2817_v59, %v2818_v47 }
 0x203   : > { %v1511_v30 = vadd.f32 %v1444_v21, %v1233_v32  ;;  %v2131_v24 = vrot.slane %v5306_v37, 2  ;;  %v3684_v48 = vpack.c.bf16 %v6406_v10, %v6406_v10  ;;  %v3053_v6 = vmul.f32 %v3021_v13, %v6386_v41 }
 0x204   : > { %v2887_v2 = vadd.f32 %v2819_v43, %v2610_v46  ;;  %v1855_v7 = vsel %vm1091_vm9, %v1852_v34, %v1854_v61  ;;  %v2302_v16 = vmul.f32 %v6182_v4, %v3786_v52  ;;  %v2367_v20 = vunpack.c.l.bf16 %v2351_v60  ;;  %v7286_v34 = vld [vmem:[#allocation192_spill] sm:$0xff] }
 0x205   : > { %v1645_v12 = vadd.f32 %v1613_v38, %v1511_v30  ;;  %v2132_v0 = vsel %vm1369_vm10, %v2129_v15, %v2131_v24  ;;  %3371 = vst.msk [vmem:[%s5453_s10 + $0x64] sm:$0xf] %vm278_vm2, %v3684_v48  ;;  %v3085_v11 = vadd.f32 %v3053_v6, %v6386_v41  ;;  %v7283_v36 = vrot.slane %v5252_v58, 1  ;;  %v7292_v60 = vld [vmem:[#allocation8_spill] sm:$0xff] }
 0x206   : > { %v6427_v37 = vadd.f32 %v6336_v9, %v2887_v2  ;;  %v7285_v55 = vrot.slane %v7284_v23, 1  ;;  %v7287_v51 = vrot.slane %v7286_v34, 2  ;;  %v7289_v15 = vrot.slane %v7288_v57, 2  ;;  %v7294_v23 = vld [vmem:[#allocation3_spill] sm:$0xff] }
 0x207   : > { %v1922_v40 = vadd.f32 %v1855_v7, %v1645_v12  ;;  %v2418_v56 = vmul.f32 %v6160_v39, %v2367_v20  ;;  %v2695_v61 = vmul.f32 %v6235_v62, %v2367_v20  ;;  %v2956_v49 = vmul.f32 0.5, %v6339_v3  ;;  %v3887_v53 = vpop.eup %3886  ;;  %v2233_v3 = vld [vmem:[#allocation2 + $0xcc] sm:$0xf] }
 0x208   : > { %v1169_v18 = vsel %vm1091_vm9, %v7285_v55, %v7283_v36  ;;  %v1447_v52 = vsel %vm1369_vm10, %v7289_v15, %v7287_v51  ;;  %v3117_v32 = vmul.f32 0.7978846, %v3085_v11  ;;  %v2990_v22 = vmul.f32 0.044715, %v6427_v37  ;;  %v7293_v11 = vld [vmem:[#allocation195_spill] sm:$0xff] }
 0x209   : > { %v1234_v54 = vadd.f32 %v1169_v18, %v7290_v14  ;;  %v7291_v59 = vunpack.c.l.bf16 %v5262_v44  ;;  %v2199_v45 = vadd.f32 %v2132_v0, %v1922_v40  ;;  %v2543_v21 = vrot.slane %v2418_v56, 1  ;;  %v2629_v51 = vld [vmem:[#allocation2 + $0xcc] sm:$0xe] }
 0x20a   : > { %v2820_v38 = vrot.slane %v2695_v61, 2  ;;  %v3180_v46 = vadd.f32 1.0, %v3887_v53  ;;  %3888 = vtanh.f32 %v3117_v32  ;;  %v3022_v30 = vmul.f32 %v2990_v22, %v6427_v37 }
 0x20b   : > { %v1614_v35 = vmul.f32 %v6056_v42, %v7291_v59  ;;  %v1512_v13 = vadd.f32 %v1447_v52, %v1234_v54  ;;  %v1731_v43 = vmul.f32 %v6247_v28, %v7292_v60  ;;  %v2334_v24 = vadd.f32 %v2302_v16, %v2199_v45 }
 0x20c   : > { %v2544_v48 = vsel %vm1091_vm9, %v2541_v26, %v2543_v21  ;;  %v2821_v44 = vsel %vm1369_vm10, %v2818_v47, %v2820_v38  ;;  %v6452_v2 = vmul.f32 %v3180_v46, %v2956_v49  ;;  %v3054_v7 = vmul.f32 %v3022_v30, %v6427_v37  ;;  %v7296_v46 = vld [vmem:[#allocation194_spill] sm:$0xff] }
 0x20d   : > { %v1646_v6 = vadd.f32 %v1614_v35, %v1512_v13  ;;  %v1857_v12 = vrot.slane %v1731_v43, 1  ;;  %v2008_v0 = vmul.f32 %v6018_v25, %v7292_v60  ;;  %v2611_v20 = vadd.f32 %v2544_v48, %v2334_v24  ;;  %v2352_v24 = vld [vmem:[#allocation2 + $0xd4] sm:$0x1] }
 0x20e   : > { %v2133_v36 = vrot.slane %v7293_v11, 2  ;;  %v2265_v28 = vunpack.c.l.bf16 %v2233_v3  ;;  %v6460_v16 = vmul.f32 %v6160_v39, %v7294_v23  ;;  %v2009_v26 = vmul.f32 %v6018_v25, %v1679_v5 }
 0x20f   : > { %v3685_v47 = vpack.c.bf16 %v6452_v2, %v6452_v2  ;;  %v3086_v55 = vadd.f32 %v3054_v7, %v6427_v37  ;;  %v1858_v18 = vsel %vm1091_vm9, %v1856_v27, %v1857_v12  ;;  %v1859_v57 = vrot.slane %v6413_v19, 1 }
 0x210   : > { %v2888_v15 = vadd.f32 %v2821_v44, %v2611_v20  ;;  %v1923_v52 = vadd.f32 %v1858_v18, %v1646_v6  ;;  %v2134_v40 = vrot.slane %v2008_v0, 2  ;;  %v2303_v8 = vmul.f32 %v6182_v4, %v2265_v28 }
 0x211   : > { %3372 = vst.msk [vmem:[%s5453_s10 + $0x68] sm:$0xf] %vm278_vm2, %v3685_v47  ;;  %v3118_v56 = vmul.f32 0.7978846, %v3086_v55  ;;  %v2419_v25 = vmul.f32 %v6160_v39, %v2265_v28  ;;  %v2546_v5 = vrot.slane %v6460_v16, 1  ;;  %v2645_v14 = vunpack.c.l.bf16 %v2629_v51 }
 0x212   : > { %v6476_v61 = vadd.f32 %v6336_v9, %v2888_v15  ;;  %v2135_v27 = vsel %vm1369_vm10, %v2133_v36, %v2134_v40  ;;  %v2697_v19 = vmul.f32 %v6235_v62, %v7294_v23  ;;  %v7295_v32 = vrot.slane %v5252_v58, 1 }
 0x213   : > { %3890 = vtanh.f32 %v3118_v56  ;;  %v2200_v54 = vadd.f32 %v2135_v27, %v1923_v52  ;;  %v2545_v49 = vrot.slane %v2419_v25, 1  ;;  %v2957_v59 = vmul.f32 0.5, %v6386_v41 }
 0x214   : > { %v1171_v22 = vsel %vm1091_vm9, %v7295_v32, %v1170_v17  ;;  %v2991_v35 = vmul.f32 0.044715, %v6476_v61  ;;  %v2696_v53 = vmul.f32 %v6235_v62, %v2645_v14  ;;  %v2823_v45 = vrot.slane %v2697_v19, 2  ;;  %v3889_v21 = vpop.eup %3888 }
 0x215   : > { %v2335_v38 = vadd.f32 %v2303_v8, %v2200_v54  ;;  %v2547_v13 = vsel %vm1091_vm9, %v2545_v49, %v2546_v5  ;;  %v1235_v30 = vadd.f32 %v1171_v22, %v7296_v46  ;;  %v7297_v1 = vrot.slane %v7286_v34, 2 }
 0x216   : > { %v3181_v17 = vadd.f32 1.0, %v3889_v21  ;;  %v3023_v41 = vmul.f32 %v2991_v35, %v6476_v61  ;;  %v2822_v43 = vrot.slane %v2696_v53, 2  ;;  %v1615_v3 = vmul.f32 %v6056_v42, %v7292_v60 }
 0x217   : > { %v1449_v58 = vsel %vm1369_vm10, %v7297_v1, %v1448_v31  ;;  %v2612_v48 = vadd.f32 %v2547_v13, %v2335_v38  ;;  %v2136_v6 = vrot.slane %v2009_v26, 2  ;;  %v1860_v34 = vsel %vm1091_vm9, %v1857_v12, %v1859_v57 }
 0x218   : > { %v1513_v44 = vadd.f32 %v1449_v58, %v1235_v30  ;;  %v3213_v7 = vmul.f32 %v3181_v17, %v2957_v59  ;;  %v3055_v0 = vmul.f32 %v3023_v41, %v6476_v61  ;;  %v2824_v33 = vsel %vm1369_vm10, %v2822_v43, %v2823_v45 }
 0x219   : > { %v3424_v31 = vsel %vm3378_vm11, %v6313_v50, 0.0  ;;  %v2889_v20 = vadd.f32 %v2824_v33, %v2612_v48  ;;  %v2368_v36 = vunpack.c.l.bf16 %v2352_v24  ;;  %v2137_v16 = vsel %vm1369_vm10, %v2134_v40, %v2136_v6 }
 0x21a   : > { %v1647_v11 = vadd.f32 %v1615_v3, %v1513_v44  ;;  %v3425_v42 = vadd.f32 %v3424_v31, %v6267_v29  ;;  %v3686_v60 = vpack.c.bf16 %v3213_v7, %v3213_v7  ;;  %v3087_v28 = vadd.f32 %v3055_v0, %v6476_v61 }
 0x21b   : > { %v2928_v26 = vadd.f32 %v6336_v9, %v2889_v20  ;;  %v2304_v55 = vmul.f32 %v6182_v4, %v7294_v23  ;;  %v2421_v12 = vmul.f32 %v6160_v39, %v2368_v36  ;;  %v2698_v18 = vmul.f32 %v6235_v62, %v2368_v36 }
 0x21c   : > { %v1924_v47 = vadd.f32 %v1860_v34, %v1647_v11  ;;  %3373 = vst.msk [vmem:[%s5453_s10 + $0x6c] sm:$0xf] %vm278_vm2, %v3686_v60  ;;  %v3119_v50 = vmul.f32 0.7978846, %v3087_v28  ;;  %v3426_v29 = vsel %vm3378_vm11, %v6361_v63, 0.0  ;;  %v2958_v40 = vmul.f32 0.5, %v6427_v37 }
 0x21d   : > { %v3891_v51 = vpop.eup %3890  ;;  %v2992_v57 = vmul.f32 0.044715, %v2928_v26  ;;  %v2548_v52 = vrot.slane %v2421_v12, 1  ;;  %v2825_v4 = vrot.slane %v2698_v18, 2  ;;  %v3427_v23 = vadd.f32 %v3426_v29, %v3425_v42 }
 0x21e   : > { %v2201_v15 = vadd.f32 %v2137_v16, %v1924_v47  ;;  %v3182_v56 = vadd.f32 1.0, %v3891_v51  ;;  %3892 = vtanh.f32 %v3119_v50  ;;  %v3428_v63 = vsel %vm3378_vm11, %v6406_v10, 0.0 }
 0x21f   : > { %v3024_v39 = vmul.f32 %v2992_v57, %v2928_v26  ;;  %v2549_v25 = vsel %vm1091_vm9, %v2546_v5, %v2548_v52  ;;  %v2826_v62 = vsel %vm1369_vm10, %v2823_v45, %v2825_v4  ;;  %v3429_v49 = vadd.f32 %v3428_v63, %v3427_v23 }
 0x220   : > { %v2336_v8 = vadd.f32 %v2304_v55, %v2201_v15  ;;  %v3214_v27 = vmul.f32 %v3182_v56, %v2958_v40  ;;  %v3430_v5 = vsel %vm3378_vm11, %v6452_v2, 0.0  ;;  %v2959_v21 = vmul.f32 0.5, %v6476_v61 }
 0x221   : > { %v3056_v14 = vmul.f32 %v3024_v39, %v2928_v26  ;;  %v3431_v35 = vadd.f32 %v3430_v5, %v3429_v49  ;;  %v3432_v13 = vsel %vm3378_vm11, %v3213_v7, 0.0  ;;  %v2960_v3 = vmul.f32 0.5, %v2928_v26 }
 0x222   : > { %v2613_v19 = vadd.f32 %v2549_v25, %v2336_v8  ;;  %v3687_v54 = vpack.c.bf16 %v3214_v27, %v3214_v27  ;;  %v3434_v17 = vsel %vm3378_vm11, %v3214_v27, 0.0 }
 0x223   : > { %v3088_v37 = vadd.f32 %v3056_v14, %v2928_v26  ;;  %v3433_v46 = vadd.f32 %v3432_v13, %v3431_v35 }
 0x224   : > { %v2890_v32 = vadd.f32 %v2826_v62, %v2613_v19  ;;  %3374 = vst.msk [vmem:[%s5453_s10 + $0x70] sm:$0xf] %vm278_vm2, %v3687_v54 }
 0x225   : > { %v3120_v22 = vmul.f32 0.7978846, %v3088_v37  ;;  %v3435_v2 = vadd.f32 %v3434_v17, %v3433_v46 }
 0x226   : > { %v2929_v59 = vadd.f32 %v6336_v9, %v2890_v32 }
 0x227   : > { %3894 = vtanh.f32 %v3120_v22 }
 0x228   : > { %v2993_v53 = vmul.f32 0.044715, %v2929_v59  ;;  %v3893_v45 = vpop.eup %3892  ;;  %v2961_v34 = vmul.f32 0.5, %v2929_v59 }
 0x229   : > { %v3183_v10 = vadd.f32 1.0, %v3893_v45 }
 0x22a   : > { %v3025_v38 = vmul.f32 %v2993_v53, %v2929_v59 }
 0x22b   : > { %v3215_v30 = vmul.f32 %v3183_v10, %v2959_v21 }
 0x22c   : > { %v3057_v1 = vmul.f32 %v3025_v38, %v2929_v59 }
 0x22d   : > { %v3688_v58 = vpack.c.bf16 %v3215_v30, %v3215_v30  ;;  %v3436_v61 = vsel %vm3378_vm11, %v3215_v30, 0.0 }
 0x22e   : > { %v3089_v9 = vadd.f32 %v3057_v1, %v2929_v59  ;;  %v3437_v48 = vadd.f32 %v3436_v61, %v3435_v2 }
 0x22f   : > { %3375 = vst.msk [vmem:[%s5453_s10 + $0x74] sm:$0xf] %vm278_vm2, %v3688_v58 }
 0x230   : > { %v3121_v41 = vmul.f32 0.7978846, %v3089_v9 }
 0x231   : > { %v3895_v43 = vpop.eup %3894 }
 0x232   : > { %3896 = vtanh.f32 %v3121_v41  ;;  %v3184_v24 = vadd.f32 1.0, %v3895_v43 }
 0x234   : > { %v3216_v44 = vmul.f32 %v3184_v24, %v2960_v3 }
 0x236   : > { %v3689_v6 = vpack.c.bf16 %v3216_v44, %v3216_v44  ;;  %v3438_v7 = vsel %vm3378_vm11, %v3216_v44, 0.0 }
 0x237   : > { %v3439_v0 = vadd.f32 %v3438_v7, %v3437_v48 }
 0x238   : > { %3376 = vst.msk [vmem:[%s5453_s10 + $0x78] sm:$0xf] %vm278_vm2, %v3689_v6 }
 0x23c   : > { %v3897_v33 = vpop.eup %3896 }
 0x23d   : > { %v3185_v31 = vadd.f32 1.0, %v3897_v33 }
 0x23f   : > { %v3217_v20 = vmul.f32 %v3185_v31, %v2961_v34 }
 0x241   : > { %v3690_v11 = vpack.c.bf16 %v3217_v20, %v3217_v20  ;;  %v3440_v36 = vsel %vm3378_vm11, %v3217_v20, 0.0 }
 0x242   : > { %v3441_v42 = vadd.f32 %v3440_v36, %v3439_v0 }
 0x243   : > { %3377 = vst.msk [vmem:[%s5453_s10 + $0x7c] sm:$0xf] %vm278_vm2, %v3690_v11 }
 0x244   : > { %v3442_v60 = vrot.slane %v3441_v42, 4 }
 0x246   : > { %v3443_v28 = vadd.f32 %v3442_v60, %v3441_v42 }
 0x248   : > { %v3444_v16 = vrot.slane %v3443_v28, 2 }
 0x24a   : > { %v3445_v26 = vadd.f32 %v3444_v16, %v3443_v28 }
 0x24c   : > { %v3446_v47 = vrot.slane %v3445_v26, 1 }
 0x24e   : > { %v3447_v55 = vadd.f32 %v3446_v47, %v3445_v26 }
 0x250   : > { %v3448_v12 = vmul.f32 0.00390625, %v3447_v55 }
 0x252   : > { %3449 = vst.msk [vmem:[%s276_s25] sm:$0x1] %vm281_vm0, %v3448_v12 }
 0x253 PF: > { %s15_s17 = sadd.s32 1, %s3940_s17   ;;  %s7298_s15 = smov %s3936_s16 }
 0x254   : > { %p12_p5 = scmp.ge.s32.totalorder %s15_s17, 4   ;;  %s7299_s16 = smov %s7301_s18 }
 0x256   :  { %14 = sbr.rel (!%p12_p5) target bundleno = 2 (0x2), region = 85 }

</bundles_post_ra>
